<compile_context>
chip_gen: v6e
topology: v6e:2x2x1
jax: 0.10.0
libtpu: 0.0.40
codegen_flags: <defaults>
</compile_context>

<pallas_src>
import functools

import jax
import jax.numpy as jnp
from jax.experimental import pallas as pl
from jax.experimental.pallas import tpu as pltpu

BN_EPS = 1e-5


def _round_up(x, m):
    return (x + m - 1) // m * m


# ----------------------------------------------------------------------------
# Pallas kernel: full-K bf16 matmul (f32 acc) + fused scale/bias (+ReLU)
# ----------------------------------------------------------------------------
def _matmul_bn_act_kernel(x_ref, w_ref, sb_ref, o_ref, *, relu):
    acc = jnp.dot(x_ref[...], w_ref[...], preferred_element_type=jnp.float32)
    y = acc * sb_ref[0:1, :] + sb_ref[1:2, :]
    if relu:
        y = jnp.maximum(y, 0.0)
    o_ref[...] = y.astype(o_ref.dtype)


def matmul_scale_bias(x, w, scale, bias, relu, out_dtype=jnp.float32):
    """(M,K) @ (K,N) on the MXU (bf16 operands, f32 accumulate) with a fused
    per-output-column scale/bias (+ optional ReLU) epilogue.

    K is kept entirely inside the kernel body (K <= 4608 in this decoder, so a
    full-K bf16 panel is at most ~4.5 MiB at tm=512); grid is (M tiles, N
    tiles) only, both parallel."""
    M, K = x.shape
    _, N = w.shape

    Kpad = _round_up(K, 128)
    Npad = _round_up(N, 128)
    tn = 256 if Npad % 256 == 0 else 128
    # Small maps: tm=256 keeps >=2 M tiles so both v7x TensorCores get work;
    # big maps: tm=512 amortizes per-step pipeline overhead (v6e/v5e roofline).
    if M <= 2048:
        tm = min(256, _round_up(M, 8))
    else:
        tm = 512
    Mpad = _round_up(M, tm)

    xp = jnp.pad(x.astype(jnp.bfloat16), ((0, Mpad - M), (0, Kpad - K)))
    wp = jnp.pad(w.astype(jnp.bfloat16), ((0, Kpad - K), (0, Npad - N)))
    sb = jnp.stack([
        jnp.pad(scale.astype(jnp.float32), (0, Npad - N)),
        jnp.pad(bias.astype(jnp.float32), (0, Npad - N)),
    ])  # (2, Npad)

    grid = (Mpad // tm, Npad // tn)
    out_bytes = Mpad * Npad * jnp.dtype(out_dtype).itemsize
    cost = pl.CostEstimate(
        flops=2 * Mpad * Kpad * Npad,
        transcendentals=0,
        bytes_accessed=Mpad * Kpad * 2 + Kpad * Npad * 2 + 2 * Npad * 4
        + out_bytes,
    )

    out = pl.pallas_call(
        functools.partial(_matmul_bn_act_kernel, relu=relu),
        out_shape=jax.ShapeDtypeStruct((Mpad, Npad), out_dtype),
        grid_spec=pltpu.PrefetchScalarGridSpec(
            num_scalar_prefetch=0,
            grid=grid,
            in_specs=[
                pl.BlockSpec((tm, Kpad), lambda i, j: (i, 0)),
                pl.BlockSpec((Kpad, tn), lambda i, j: (0, j)),   # K-resident
                pl.BlockSpec((2, tn), lambda i, j: (0, j)),
            ],
            out_specs=pl.BlockSpec((tm, tn), lambda i, j: (i, j)),
        ),
        compiler_params=pltpu.CompilerParams(
            dimension_semantics=("parallel", "parallel"),
            vmem_limit_bytes=32 * 1024 * 1024),
        cost_estimate=cost,
    )(xp, wp, sb)
    return out[:M, :N]


# ----------------------------------------------------------------------------
# Conv = (bf16 im2col for k>1 / plain reshape for 1x1) + Pallas matmul
# ----------------------------------------------------------------------------
def _im2col(x, kh, kw, stride, padding):
    # TODO(synk): fuse the tap enumeration into the matmul kernel's reduction
    # (overlapping-window DMA) instead of materializing the 9xC patch buffer.
    N, H, W, C = x.shape
    xp = jnp.pad(x, ((0, 0), (padding, padding), (padding, padding), (0, 0)))
    Ho = (H + 2 * padding - kh) // stride + 1
    Wo = (W + 2 * padding - kw) // stride + 1
    cols = []
    for i in range(kh):
        for j in range(kw):
            sl = xp[:, i:i + stride * (Ho - 1) + 1:stride,
                    j:j + stride * (Wo - 1) + 1:stride, :]
            cols.append(sl)
    patches = jnp.concatenate(cols, axis=-1)
    return patches.reshape(N * Ho * Wo, kh * kw * C), N, Ho, Wo


def conv2d(x, p, *, stride=1, padding=0, relu=True, out_dtype=jnp.float32):
    """x: [N,H,W,Cin], p['w']: [kh,kw,Cin,Cout]."""
    w = p["w"]
    kh, kw, cin, cout = w.shape
    x = x.astype(jnp.bfloat16)
    if kh == 1 and kw == 1 and stride == 1 and padding == 0:
        n, h, wd, _ = x.shape
        patches, ho, wo = x.reshape(n * h * wd, cin), h, wd
    else:
        patches, n, ho, wo = _im2col(x, kh, kw, stride, padding)
    w2 = w.reshape(kh * kw * cin, cout)

    if "bn_gamma" in p:
        # Eval-mode InPlaceABNSync(activation='none') folded into the epilogue:
        # y = scale * (x @ w) + bias.
        scale = p["bn_gamma"] / jnp.sqrt(p["bn_var"] + BN_EPS)
        bias = p["bn_beta"] - p["bn_mean"] * scale
    else:
        scale = jnp.ones((cout,), jnp.float32)
        bias = jnp.zeros((cout,), jnp.float32)
    if p.get("b") is not None:
        bias = bias + scale * p["b"]

    out = matmul_scale_bias(patches, w2, scale, bias, relu, out_dtype)
    return out.reshape(n, ho, wo, cout)


# ----------------------------------------------------------------------------
# Glue ops: bilinear (align_corners=True) resize, SE module
# ----------------------------------------------------------------------------
def bilinear_resize(x, out_h, out_w):
    N, H, W, C = x.shape
    if (H, W) == (out_h, out_w):
        return x
    ys = jnp.linspace(0.0, H - 1.0, out_h) if out_h > 1 else jnp.zeros((out_h,))
    xs = jnp.linspace(0.0, W - 1.0, out_w) if out_w > 1 else jnp.zeros((out_w,))
    y0 = jnp.clip(jnp.floor(ys).astype(jnp.int32), 0, H - 1)
    y1 = jnp.minimum(y0 + 1, H - 1)
    x0 = jnp.clip(jnp.floor(xs).astype(jnp.int32), 0, W - 1)
    x1 = jnp.minimum(x0 + 1, W - 1)
    wy = (ys - y0.astype(jnp.float32))[None, :, None, None]
    wx = (xs - x0.astype(jnp.float32))[None, None, :, None]
    a = x[:, y0][:, :, x0]
    b = x[:, y0][:, :, x1]
    c = x[:, y1][:, :, x0]
    d = x[:, y1][:, :, x1]
    top = a * (1.0 - wx) + b * wx
    bot = c * (1.0 - wx) + d * wx
    return (top * (1.0 - wy) + bot * wy).astype(x.dtype)


def se_scale(x_bf16, p):
    """Per-(batch, channel) SE gate computed in f32 (tiny), returned as f32."""
    # TODO(synk): SEModule source not provided; standard squeeze-excitation.
    s = jnp.mean(x_bf16.astype(jnp.float32), axis=(1, 2))      # [N, C]
    s = jnp.maximum(s @ p["w1"] + p["b1"], 0.0)
    s = jax.nn.sigmoid(s @ p["w2"] + p["b2"])
    return s                                                   # [N, C] f32


# ----------------------------------------------------------------------------
# Parameter initialization (deterministic, kaiming-normal-like)
# ----------------------------------------------------------------------------
def _conv_init(key, kh, kw, cin, cout, bias=False, bn=True):
    kw_, kb = jax.random.split(key)
    fan_in = kh * kw * cin
    w = jax.random.normal(kw_, (kh, kw, cin, cout), jnp.float32) * jnp.sqrt(
        2.0 / fan_in)
    p = {"w": w}
    if bias:
        bound = 1.0 / jnp.sqrt(fan_in)
        p["b"] = jax.random.uniform(kb, (cout,), jnp.float32, -bound, bound)
    else:
        p["b"] = None
    if bn:
        p["bn_gamma"] = jnp.ones((cout,), jnp.float32)
        p["bn_beta"] = jnp.zeros((cout,), jnp.float32)
        p["bn_mean"] = jnp.zeros((cout,), jnp.float32)
        p["bn_var"] = jnp.ones((cout,), jnp.float32)
    return p


def _se_init(key, c, r=16):
    k1, k2 = jax.random.split(key)
    return {
        "w1": jax.random.normal(k1, (c, c // r), jnp.float32) * jnp.sqrt(2.0 / c),
        "b1": jnp.zeros((c // r,), jnp.float32),
        "w2": jax.random.normal(k2, (c // r, c), jnp.float32) * jnp.sqrt(
            2.0 / (c // r)),
        "b2": jnp.zeros((c,), jnp.float32),
    }


def init_alpha_hb_decoder(key, hbody_cls=3):
    k1, k2, k3, k4 = jax.random.split(key, 4)
    return {
        "c1a": _conv_init(k1, 3, 3, 512, 256, bias=False, bn=True),
        "c1b": _conv_init(k2, 1, 1, 256, 256, bias=False, bn=True),
        "se": _se_init(k3, 256, 16),
        "c2": _conv_init(k4, 1, 1, 256, hbody_cls, bias=True, bn=False),
        "alpha_hb": jnp.ones((1,), jnp.float32),
    }


# ----------------------------------------------------------------------------
# AlphaHBDecoder forward: x_seg, xfuse = decoder(x, skip)
# ----------------------------------------------------------------------------
def alpha_hb_decoder_forward(params, x_nchw, skip_nchw):
    # NCHW -> NHWC in bf16 (halves the HBM bytes of these mem-bound passes).
    x = jnp.transpose(x_nchw.astype(jnp.bfloat16), (0, 2, 3, 1))
    skip = jnp.transpose(skip_nchw.astype(jnp.bfloat16), (0, 2, 3, 1))
    _, H, W, _ = skip.shape

    xup = bilinear_resize(x, H, W)                  # align_corners=True, bf16
    alpha = params["alpha_hb"][0].astype(jnp.bfloat16)
    xfuse_in = xup + alpha * skip                   # bf16

    # conv1: 3x3 512->256 +BN+ReLU, 1x1 256->256 +BN+ReLU, SE(256, r=16)
    f = conv2d(xfuse_in, params["c1a"], stride=1, padding=1, relu=True,
               out_dtype=jnp.bfloat16)
    f = conv2d(f, params["c1b"], stride=1, padding=0, relu=True,
               out_dtype=jnp.bfloat16)
    s = se_scale(f, params["se"])                   # [N, 256] f32 gate
    f_se = f * s.astype(jnp.bfloat16)[:, None, None, :]   # bf16 SE output

    # conv2: 1x1 256->hbody_cls with bias (no BN / activation); reads bf16.
    x_seg = conv2d(f_se, params["c2"], stride=1, padding=0, relu=False,
                   out_dtype=jnp.float32)

    return (jnp.transpose(x_seg, (0, 3, 1, 2)),                       # NCHW
            jnp.transpose(f_se, (0, 3, 1, 2)).astype(jnp.float32))


if __name__ == "__main__":
    key = jax.random.PRNGKey(0)
    kp, kx, ks = jax.random.split(key, 3)
    params = init_alpha_hb_decoder(kp, hbody_cls=3)
    # x: low-res seg feature (512 ch), skip: high-res skip feature (512 ch)
    x = jax.random.normal(kx, (2, 512, 8, 8), jnp.float32)
    skip = jax.random.normal(ks, (2, 512, 16, 16), jnp.float32)

    fwd = jax.jit(alpha_hb_decoder_forward)
    x_seg, xfuse = jax.block_until_ready(fwd(params, x, skip))
    assert x_seg.shape == (2, 3, 16, 16), x_seg.shape
    assert xfuse.shape == (2, 256, 16, 16), xfuse.shape
    assert bool(jnp.all(jnp.isfinite(x_seg))) and bool(jnp.all(jnp.isfinite(xfuse)))
    print("KERNEL_OK")
</pallas_src>

<mosaic_0001>
module attributes {stable_mosaic.version = 11 : i64} {
  func.func @_matmul_bn_act_kernel(%arg0: i32, %arg1: i32, %arg2: memref<256x4608xbf16, #tpu.memory_space<vmem>>, %arg3: memref<4608x256xbf16, #tpu.memory_space<vmem>>, %arg4: memref<2x256xf32, #tpu.memory_space<vmem>>, %arg5: memref<256x256xbf16, #tpu.memory_space<vmem>>) attributes {dimension_semantics = [#tpu.dimension_semantics<parallel>, #tpu.dimension_semantics<parallel>], iteration_bounds = array<i64: 2, 1>, scalar_prefetch = 0 : i64, scratch_operands = 0 : i64, tpu.core_type = #tpu.core_type<tc>, window_params = [{transform_indices = @transform_0, window_bounds = array<i64: 256, 4608>}, {transform_indices = @transform_1, window_bounds = array<i64: 4608, 256>}, {transform_indices = @transform_2, window_bounds = array<i64: 2, 256>}, {transform_indices = @transform_3, window_bounds = array<i64: 256, 256>}]} {
    %c0 = arith.constant 0 : index
    %c0_0 = arith.constant 0 : index
    %0 = vector.load %arg2[%c0, %c0_0] : memref<256x4608xbf16, #tpu.memory_space<vmem>>, vector<256x4608xbf16>
    %c0_1 = arith.constant 0 : index
    %c0_2 = arith.constant 0 : index
    %1 = vector.load %arg3[%c0_1, %c0_2] : memref<4608x256xbf16, #tpu.memory_space<vmem>>, vector<4608x256xbf16>
    %cst = arith.constant dense<0.000000e+00> : vector<256x256xf32>
    %2 = tpu.matmul %0, %1, %cst {dimension_numbers = #tpu.dot_dimension_numbers<[1], [0], [0], [1], [0, 0, 1, 1], [], []>} : vector<256x4608xbf16>, vector<4608x256xbf16>, vector<256x256xf32> -> vector<256x256xf32>
    %c0_3 = arith.constant 0 : index
    %c0_4 = arith.constant 0 : index
    %3 = vector.load %arg4[%c0_3, %c0_4] : memref<2x256xf32, #tpu.memory_space<vmem>>, vector<1x256xf32>
    %4 = vector.broadcast %3 : vector<1x256xf32> to vector<256x256xf32>
    %5 = arith.mulf %2, %4 : vector<256x256xf32>
    %c1 = arith.constant 1 : index
    %c0_5 = arith.constant 0 : index
    %6 = vector.load %arg4[%c1, %c0_5] : memref<2x256xf32, #tpu.memory_space<vmem>>, vector<1x256xf32>
    %7 = vector.broadcast %6 : vector<1x256xf32> to vector<256x256xf32>
    %8 = arith.addf %5, %7 : vector<256x256xf32>
    %cst_6 = arith.constant 0.000000e+00 : f32
    %9 = vector.broadcast %cst_6 : f32 to vector<256x256xf32>
    %10 = arith.maximumf %8, %9 : vector<256x256xf32>
    %11 = arith.truncf %10 : vector<256x256xf32> to vector<256x256xbf16>
    %c0_7 = arith.constant 0 : index
    %c0_8 = arith.constant 0 : index
    %12 = vector.load %arg5[%c0_7, %c0_8] : memref<256x256xbf16, #tpu.memory_space<vmem>>, vector<256x256xbf16>
    tpu.vector_store %arg5[%c0_7, %c0_8], %11 {strides = array<i32>} : memref<256x256xbf16, #tpu.memory_space<vmem>>, vector<256x256xbf16>,
    return
  }
  func.func @transform_0(%arg0: i32, %arg1: i32) -> (i32, i32) {
    %c0_i32 = arith.constant 0 : i32
    %c0_i32_0 = arith.constant 0 : i32
    return %arg0, %c0_i32 : i32, i32
  }
  func.func @transform_1(%arg0: i32, %arg1: i32) -> (i32, i32) {
    %c0_i32 = arith.constant 0 : i32
    %c0_i32_0 = arith.constant 0 : i32
    return %c0_i32, %arg1 : i32, i32
  }
  func.func @transform_2(%arg0: i32, %arg1: i32) -> (i32, i32) {
    %c0_i32 = arith.constant 0 : i32
    %c0_i32_0 = arith.constant 0 : i32
    return %c0_i32, %arg1 : i32, i32
  }
  func.func @transform_3(%arg0: i32, %arg1: i32) -> (i32, i32) {
    %c0_i32 = arith.constant 0 : i32
    return %arg0, %arg1 : i32, i32
  }
}

module attributes {stable_mosaic.version = 11 : i64} {
  func.func @_matmul_bn_act_kernel(%arg0: i32, %arg1: i32, %arg2: memref<256x256xbf16, #tpu.memory_space<vmem>>, %arg3: memref<256x256xbf16, #tpu.memory_space<vmem>>, %arg4: memref<2x256xf32, #tpu.memory_space<vmem>>, %arg5: memref<256x256xbf16, #tpu.memory_space<vmem>>) attributes {dimension_semantics = [#tpu.dimension_semantics<parallel>, #tpu.dimension_semantics<parallel>], iteration_bounds = array<i64: 2, 1>, scalar_prefetch = 0 : i64, scratch_operands = 0 : i64, tpu.core_type = #tpu.core_type<tc>, window_params = [{transform_indices = @transform_0, window_bounds = array<i64: 256, 256>}, {transform_indices = @transform_1, window_bounds = array<i64: 256, 256>}, {transform_indices = @transform_2, window_bounds = array<i64: 2, 256>}, {transform_indices = @transform_3, window_bounds = array<i64: 256, 256>}]} {
    %c0 = arith.constant 0 : index
    %c0_0 = arith.constant 0 : index
    %0 = vector.load %arg2[%c0, %c0_0] : memref<256x256xbf16, #tpu.memory_space<vmem>>, vector<256x256xbf16>
    %c0_1 = arith.constant 0 : index
    %c0_2 = arith.constant 0 : index
    %1 = vector.load %arg3[%c0_1, %c0_2] : memref<256x256xbf16, #tpu.memory_space<vmem>>, vector<256x256xbf16>
    %cst = arith.constant dense<0.000000e+00> : vector<256x256xf32>
    %2 = tpu.matmul %0, %1, %cst {dimension_numbers = #tpu.dot_dimension_numbers<[1], [0], [0], [1], [0, 0, 1, 1], [], []>} : vector<256x256xbf16>, vector<256x256xbf16>, vector<256x256xf32> -> vector<256x256xf32>
    %c0_3 = arith.constant 0 : index
    %c0_4 = arith.constant 0 : index
    %3 = vector.load %arg4[%c0_3, %c0_4] : memref<2x256xf32, #tpu.memory_space<vmem>>, vector<1x256xf32>
    %4 = vector.broadcast %3 : vector<1x256xf32> to vector<256x256xf32>
    %5 = arith.mulf %2, %4 : vector<256x256xf32>
    %c1 = arith.constant 1 : index
    %c0_5 = arith.constant 0 : index
    %6 = vector.load %arg4[%c1, %c0_5] : memref<2x256xf32, #tpu.memory_space<vmem>>, vector<1x256xf32>
    %7 = vector.broadcast %6 : vector<1x256xf32> to vector<256x256xf32>
    %8 = arith.addf %5, %7 : vector<256x256xf32>
    %cst_6 = arith.constant 0.000000e+00 : f32
    %9 = vector.broadcast %cst_6 : f32 to vector<256x256xf32>
    %10 = arith.maximumf %8, %9 : vector<256x256xf32>
    %11 = arith.truncf %10 : vector<256x256xf32> to vector<256x256xbf16>
    %c0_7 = arith.constant 0 : index
    %c0_8 = arith.constant 0 : index
    %12 = vector.load %arg5[%c0_7, %c0_8] : memref<256x256xbf16, #tpu.memory_space<vmem>>, vector<256x256xbf16>
    tpu.vector_store %arg5[%c0_7, %c0_8], %11 {strides = array<i32>} : memref<256x256xbf16, #tpu.memory_space<vmem>>, vector<256x256xbf16>,
    return
  }
  func.func @transform_0(%arg0: i32, %arg1: i32) -> (i32, i32) {
    %c0_i32 = arith.constant 0 : i32
    %c0_i32_0 = arith.constant 0 : i32
    return %arg0, %c0_i32 : i32, i32
  }
  func.func @transform_1(%arg0: i32, %arg1: i32) -> (i32, i32) {
    %c0_i32 = arith.constant 0 : i32
    %c0_i32_0 = arith.constant 0 : i32
    return %c0_i32, %arg1 : i32, i32
  }
  func.func @transform_2(%arg0: i32, %arg1: i32) -> (i32, i32) {
    %c0_i32 = arith.constant 0 : i32
    %c0_i32_0 = arith.constant 0 : i32
    return %c0_i32, %arg1 : i32, i32
  }
  func.func @transform_3(%arg0: i32, %arg1: i32) -> (i32, i32) {
    %c0_i32 = arith.constant 0 : i32
    return %arg0, %arg1 : i32, i32
  }
}

module attributes {stable_mosaic.version = 11 : i64} {
  func.func @_matmul_bn_act_kernel(%arg0: i32, %arg1: i32, %arg2: memref<256x256xbf16, #tpu.memory_space<vmem>>, %arg3: memref<256x128xbf16, #tpu.memory_space<vmem>>, %arg4: memref<2x128xf32, #tpu.memory_space<vmem>>, %arg5: memref<256x128xf32, #tpu.memory_space<vmem>>) attributes {dimension_semantics = [#tpu.dimension_semantics<parallel>, #tpu.dimension_semantics<parallel>], iteration_bounds = array<i64: 2, 1>, scalar_prefetch = 0 : i64, scratch_operands = 0 : i64, tpu.core_type = #tpu.core_type<tc>, window_params = [{transform_indices = @transform_0, window_bounds = array<i64: 256, 256>}, {transform_indices = @transform_1, window_bounds = array<i64: 256, 128>}, {transform_indices = @transform_2, window_bounds = array<i64: 2, 128>}, {transform_indices = @transform_3, window_bounds = array<i64: 256, 128>}]} {
    %c0 = arith.constant 0 : index
    %c0_0 = arith.constant 0 : index
    %0 = vector.load %arg2[%c0, %c0_0] : memref<256x256xbf16, #tpu.memory_space<vmem>>, vector<256x256xbf16>
    %c0_1 = arith.constant 0 : index
    %c0_2 = arith.constant 0 : index
    %1 = vector.load %arg3[%c0_1, %c0_2] : memref<256x128xbf16, #tpu.memory_space<vmem>>, vector<256x128xbf16>
    %cst = arith.constant dense<0.000000e+00> : vector<256x128xf32>
    %2 = tpu.matmul %0, %1, %cst {dimension_numbers = #tpu.dot_dimension_numbers<[1], [0], [0], [1], [0, 0, 1, 1], [], []>} : vector<256x256xbf16>, vector<256x128xbf16>, vector<256x128xf32> -> vector<256x128xf32>
    %c0_3 = arith.constant 0 : index
    %c0_4 = arith.constant 0 : index
    %3 = vector.load %arg4[%c0_3, %c0_4] : memref<2x128xf32, #tpu.memory_space<vmem>>, vector<1x128xf32>
    %4 = vector.broadcast %3 : vector<1x128xf32> to vector<256x128xf32>
    %5 = arith.mulf %2, %4 : vector<256x128xf32>
    %c1 = arith.constant 1 : index
    %c0_5 = arith.constant 0 : index
    %6 = vector.load %arg4[%c1, %c0_5] : memref<2x128xf32, #tpu.memory_space<vmem>>, vector<1x128xf32>
    %7 = vector.broadcast %6 : vector<1x128xf32> to vector<256x128xf32>
    %8 = arith.addf %5, %7 : vector<256x128xf32>
    %c0_6 = arith.constant 0 : index
    %c0_7 = arith.constant 0 : index
    %9 = vector.load %arg5[%c0_6, %c0_7] : memref<256x128xf32, #tpu.memory_space<vmem>>, vector<256x128xf32>
    tpu.vector_store %arg5[%c0_6, %c0_7], %8 {strides = array<i32>} : memref<256x128xf32, #tpu.memory_space<vmem>>, vector<256x128xf32>,
    return
  }
  func.func @transform_0(%arg0: i32, %arg1: i32) -> (i32, i32) {
    %c0_i32 = arith.constant 0 : i32
    %c0_i32_0 = arith.constant 0 : i32
    return %arg0, %c0_i32 : i32, i32
  }
  func.func @transform_1(%arg0: i32, %arg1: i32) -> (i32, i32) {
    %c0_i32 = arith.constant 0 : i32
    %c0_i32_0 = arith.constant 0 : i32
    return %c0_i32, %arg1 : i32, i32
  }
  func.func @transform_2(%arg0: i32, %arg1: i32) -> (i32, i32) {
    %c0_i32 = arith.constant 0 : i32
    %c0_i32_0 = arith.constant 0 : i32
    return %c0_i32, %arg1 : i32, i32
  }
  func.func @transform_3(%arg0: i32, %arg1: i32) -> (i32, i32) {
    %c0_i32 = arith.constant 0 : i32
    return %arg0, %arg1 : i32, i32
  }
}

</mosaic_0001>

<bundles_post_ra>
// kernel: alpha_hb_decoder_forward.4
= control target key start
LH: loop header
LB: loop body
LE: loop exit
PB: predicated region body
PF: predicated region fallthrough
CT: control target
= control target key end

     0   :  { %s1720_s12 = smov 0   ;;  %s1722_s13 = smov 0   ;;  %s2069_s0 = inlined_call_operand.vmem [shape: bf16[512,256], index: 0, kind: input, shape index: {}]   ;;  %s2070_s1 = inlined_call_operand.vmem [shape: bf16[256,256], index: 1, kind: input, shape index: {}]   ;;  %s2071_s2 = inlined_call_operand.vmem [shape: f32[2,256], index: 2, kind: input, shape index: {}]   ;;  %s2072_s3 = inlined_call_operand.vmem [shape: bf16[512,256], index: 3, kind: output, shape index: {}]  }
   0x1   :  { %s1724_s14 = smov 0  }
   0x2 LB: > { %s25_s15 = sadd.s32 1, %s1694_s13  ;;  %p1384_p0 = scmp.ge.s32.totalorder %s1698_s14, 1  ;;  %s1698_s14 = sphi %s1724_s14, %s13_s14   ;;  %s1694_s13 = sphi %s1722_s13, %s2074_s13   ;;  %s1690_s12 = sphi %s1720_s12, %s2073_s12  }
   0x3   : > { %p27_p1 = scmp.ge.s32.totalorder %s25_s15, 2  ;;  %p175_p2 = scmp.lt.s32.totalorder %s1698_s14, 3 }
   0x5   : > { %s2076_s15 = smov (%p27_p1, %s25_s15), 0  ;;  %p176_p3 = pnand %p1384_p0, %p175_p2 }
   0x6   : > { %s1385_s26 = sshll.u32 (!%p176_p3), %s1690_s12, 5 }
   0x7   : > { %179 = sbr.rel (%p176_p3) target bundleno = 341 (0x155), region = 32  ;;  %p216_p4 = scmp.lt.s32.totalorder (!%p176_p3), %s1385_s26, 63 }
   0xc   : > { %v1580_v0 = vld [vmem:[%s2070_s1 + $0x74] ss:$8 sps:$4 sm:$0xff]   ;;  %v1582_v1 = vld [vmem:[%s2070_s1 + $0x70] ss:$8 sps:$4 sm:$0xff]   ;;  %v1583_v2 = vld [vmem:[%s2070_s1 + $0x64] ss:$8 sps:$4 sm:$0xff]  }
   0xd   : > { %630 = vmatprep.subr.bf16.mxu0 %v1580_v0  ;;  %1524 = vmatprep.subr.bf16.mxu1 %v1580_v0  ;;  %v1585_v3 = vld [vmem:[%s2070_s1 + $0x60] ss:$8 sps:$4 sm:$0xff]   ;;  %v1586_v4 = vld [vmem:[%s2070_s1 + $0x54] ss:$8 sps:$4 sm:$0xff]   ;;  %v1588_v5 = vld [vmem:[%s2070_s1 + $0x50] ss:$8 sps:$4 sm:$0xff]   ;;  %v825_v0 = vlaneseq }
   0xe   : > { %631 = vmatpush1.bf16.msra.mxu0 %v1582_v1  ;;  %1540 = vmatpush1.bf16.msra.mxu1 %v1582_v1  ;;  %v1589_v6 = vld [vmem:[%s2070_s1 + $0x44] ss:$8 sps:$4 sm:$0xff]   ;;  %v1591_v7 = vld [vmem:[%s2070_s1 + $0x40] ss:$8 sps:$4 sm:$0xff]   ;;  %v1592_v8 = vld [vmem:[%s2070_s1 + $0x34] ss:$8 sps:$4 sm:$0xff]  }
   0xf   : > { %632 = vmatprep.subr.bf16.mxu0 %v1583_v2  ;;  %1525 = vmatprep.subr.bf16.mxu1 %v1583_v2  ;;  %s2078_s26 = smov (!%p216_p4, %s1385_s26), 63  ;;  %v1594_v9 = vld [vmem:[%s2070_s1 + $0x30] ss:$8 sps:$4 sm:$0xff]   ;;  %v1595_v10 = vld [vmem:[%s2070_s1 + $0x24] ss:$8 sps:$4 sm:$0xff]   ;;  %v826_v1 = vshrl.u32 %v825_v0, 7 }
  0x10   : > { %s1490_s12 = sshll.u32 %s2078_s26, 3  ;;  %v1597_v11 = vld [vmem:[%s2070_s1 + $0x20] ss:$8 sps:$4 sm:$0xff]   ;;  %v1598_v12 = vld [vmem:[%s2070_s1 + $0x14] ss:$8 sps:$4 sm:$0xff]  }
  0x11   : > { %s1785_s20 = scalar_lea.vmem %s2069_s0, %s1490_s12  ;;  %v1600_v14 = vld [vmem:[%s2070_s1 + $0x10] ss:$8 sps:$4 sm:$0xff]   ;;  %v1601_v16 = vld [vmem:[%s2070_s1 + $0x4] ss:$8 sps:$4 sm:$0xff]   ;;  %v1603_v17 = vld [vmem:[%s2070_s1] ss:$8 sps:$4 sm:$0xff]   ;;  %s1910_s24 = scalar_lea.vmem %s2072_s3, %s1490_s12 }
  0x12   : > { %633 = vmatpush1.bf16.msra.mxu0 %v1585_v3  ;;  %1541 = vmatpush1.bf16.msra.mxu1 %v1585_v3  ;;  %v1630_v13 = vld [vmem:[%s1785_s20 + $0x4] ss:$8 sps:$4 sm:$0xff]   ;;  %v1604_v18 = vld [vmem:[%s2070_s1 + $0xf4] ss:$8 sps:$4 sm:$0xff]   ;;  %v1606_v19 = vld [vmem:[%s2070_s1 + $0xf0] ss:$8 sps:$4 sm:$0xff]  }
  0x13   : > { %634 = vmatprep.subr.bf16.mxu0 %v1586_v4  ;;  %1526 = vmatprep.subr.bf16.mxu1 %v1586_v4  ;;  %v1633_v15 = vld [vmem:[%s1785_s20 + $0x84] ss:$8 sps:$4 sm:$0xff]   ;;  %v1609_v21 = vld [vmem:[%s2070_s1 + $0xe0] ss:$8 sps:$4 sm:$0xff]   ;;  %v1610_v22 = vld [vmem:[%s2070_s1 + $0xd4] ss:$8 sps:$4 sm:$0xff]  }
  0x14   : > { %662 = vmatprep.mubr.bf16.mxu0 %v1630_v13  ;;  %742 = vmatprep.mubr.bf16.mxu1 %v1633_v15  ;;  %v1607_v20 = vld [vmem:[%s2070_s1 + $0xe4] ss:$8 sps:$4 sm:$0xff]   ;;  %v1612_v23 = vld [vmem:[%s2070_s1 + $0xd0] ss:$8 sps:$4 sm:$0xff]   ;;  %v1615_v25 = vld [vmem:[%s2070_s1 + $0xc0] ss:$8 sps:$4 sm:$0xff]  }
  0x15   : > { %v1613_v24 = vld [vmem:[%s2070_s1 + $0xc4] ss:$8 sps:$4 sm:$0xff]   ;;  %v1616_v26 = vld [vmem:[%s2070_s1 + $0xb4] ss:$8 sps:$4 sm:$0xff]   ;;  %v1618_v27 = vld [vmem:[%s2070_s1 + $0xb0] ss:$8 sps:$4 sm:$0xff]  }
  0x16   : > { %635 = vmatpush1.bf16.msra.mxu0 %v1588_v5  ;;  %1542 = vmatpush1.bf16.msra.mxu1 %v1588_v5  ;;  %v1619_v28 = vld [vmem:[%s2070_s1 + $0xa4] ss:$8 sps:$4 sm:$0xff]   ;;  %v1621_v29 = vld [vmem:[%s2070_s1 + $0xa0] ss:$8 sps:$4 sm:$0xff]   ;;  %v1622_v30 = vld [vmem:[%s2070_s1 + $0x94] ss:$8 sps:$4 sm:$0xff]  }
  0x17   : > { %636 = vmatprep.subr.bf16.mxu0 %v1589_v6  ;;  %1527 = vmatprep.subr.bf16.mxu1 %v1589_v6  ;;  %v1624_v31 = vld [vmem:[%s2070_s1 + $0x90] ss:$8 sps:$4 sm:$0xff]   ;;  %v1625_v32 = vld [vmem:[%s2070_s1 + $0x84] ss:$8 sps:$4 sm:$0xff]   ;;  %v1627_v33 = vld [vmem:[%s2070_s1 + $0x80] ss:$8 sps:$4 sm:$0xff]  }
  0x18   : > { %v1628_v34 = vld [vmem:[%s1785_s20] ss:$8 sps:$4 sm:$0xff]   ;;  %v1634_v36 = vld [vmem:[%s1785_s20 + $0x14] ss:$8 sps:$4 sm:$0xff]   ;;  %v1638_v38 = vld [vmem:[%s1785_s20 + $0x10] ss:$8 sps:$4 sm:$0xff]  }
  0x19   : > { %v1631_v35 = vld [vmem:[%s1785_s20 + $0x80] ss:$8 sps:$4 sm:$0xff]   ;;  %v1636_v37 = vld [vmem:[%s1785_s20 + $0x94] ss:$8 sps:$4 sm:$0xff]   ;;  %v1639_v39 = vld [vmem:[%s1785_s20 + $0x90] ss:$8 sps:$4 sm:$0xff]  }
  0x1a   : > { %637 = vmatpush1.bf16.msra.mxu0 %v1591_v7  ;;  %1543 = vmatpush1.bf16.msra.mxu1 %v1591_v7  ;;  %v1640_v40 = vld [vmem:[%s1785_s20 + $0x24] ss:$8 sps:$4 sm:$0xff]   ;;  %v1644_v42 = vld [vmem:[%s1785_s20 + $0x20] ss:$8 sps:$4 sm:$0xff]   ;;  %v1646_v44 = vld [vmem:[%s1785_s20 + $0x34] ss:$8 sps:$4 sm:$0xff]  }
  0x1b   : > { %638 = vmatprep.subr.bf16.mxu0 %v1592_v8  ;;  %1528 = vmatprep.subr.bf16.mxu1 %v1592_v8  ;;  %v1642_v41 = vld [vmem:[%s1785_s20 + $0xa4] ss:$8 sps:$4 sm:$0xff]   ;;  %v1645_v43 = vld [vmem:[%s1785_s20 + $0xa0] ss:$8 sps:$4 sm:$0xff]   ;;  %v1648_v45 = vld [vmem:[%s1785_s20 + $0xb4] ss:$8 sps:$4 sm:$0xff]  }
  0x1c   : > { %v1650_v46 = vld [vmem:[%s1785_s20 + $0x30] ss:$8 sps:$4 sm:$0xff]   ;;  %v1652_v48 = vld [vmem:[%s1785_s20 + $0x44] ss:$8 sps:$4 sm:$0xff]   ;;  %v1656_v50 = vld [vmem:[%s1785_s20 + $0x40] ss:$8 sps:$4 sm:$0xff]  }
  0x1d   : > { %v1651_v47 = vld [vmem:[%s1785_s20 + $0xb0] ss:$8 sps:$4 sm:$0xff]   ;;  %v1654_v49 = vld [vmem:[%s1785_s20 + $0xc4] ss:$8 sps:$4 sm:$0xff]   ;;  %v1657_v51 = vld [vmem:[%s1785_s20 + $0xc0] ss:$8 sps:$4 sm:$0xff]  }
  0x1e   : > { %639 = vmatpush1.bf16.msra.mxu0 %v1594_v9  ;;  %1544 = vmatpush1.bf16.msra.mxu1 %v1594_v9  ;;  %v1658_v52 = vld [vmem:[%s1785_s20 + $0x54] ss:$8 sps:$4 sm:$0xff]   ;;  %v1662_v54 = vld [vmem:[%s1785_s20 + $0x50] ss:$8 sps:$4 sm:$0xff]   ;;  %v1664_v56 = vld [vmem:[%s1785_s20 + $0x64] ss:$8 sps:$4 sm:$0xff]  }
  0x1f   : > { %640 = vmatprep.subr.bf16.mxu0 %v1595_v10  ;;  %1529 = vmatprep.subr.bf16.mxu1 %v1595_v10  ;;  %v1660_v53 = vld [vmem:[%s1785_s20 + $0xd4] ss:$8 sps:$4 sm:$0xff]   ;;  %v1663_v55 = vld [vmem:[%s1785_s20 + $0xd0] ss:$8 sps:$4 sm:$0xff]   ;;  %v1666_v57 = vld [vmem:[%s1785_s20 + $0xe4] ss:$8 sps:$4 sm:$0xff]  }
  0x20   : > { %v1668_v58 = vld [vmem:[%s1785_s20 + $0x60] ss:$8 sps:$4 sm:$0xff]   ;;  %v1670_v60 = vld [vmem:[%s1785_s20 + $0x74] ss:$8 sps:$4 sm:$0xff]   ;;  %v1674_v62 = vld [vmem:[%s1785_s20 + $0x70] ss:$8 sps:$4 sm:$0xff]  }
  0x21   : > { %v1669_v59 = vld [vmem:[%s1785_s20 + $0xe0] ss:$8 sps:$4 sm:$0xff]   ;;  %v1672_v61 = vld [vmem:[%s1785_s20 + $0xf4] ss:$8 sps:$4 sm:$0xff]   ;;  %v1675_v63 = vld [vmem:[%s1785_s20 + $0xf0] ss:$8 sps:$4 sm:$0xff]  }
  0x22   : > { %641 = vmatpush1.bf16.msra.mxu0 %v1597_v11  ;;  %1545 = vmatpush1.bf16.msra.mxu1 %v1597_v11  ;;  %v827_v2 = vsub.s32 0, %v826_v1  ;;  %v823_v3 = vld [vmem:[%s2071_s2] ss:$2 sm:$0x3]  ;;  %v831_v4 = vsub.s32 1, %v826_v1 }
  0x23   : > { %642 = vmatprep.subr.bf16.mxu0 %v1598_v12  ;;  %1530 = vmatprep.subr.bf16.mxu1 %v1598_v12  ;;  %v1455_v5 = vld [vmem:[%s2071_s2 + $0x1] ss:$2 sm:$0x3] }
  0x24   : > { %v1885_v6 = vrot.slane %v823_v3, %v827_v2  ;;  %v1887_v7 = vrot.slane %v1455_v5, %v827_v2  ;;  %v1889_v8 = vrot.slane %v823_v3, %v831_v4  ;;  %v1893_v13 = vrot.slane %v1455_v5, %v831_v4 }
  0x26   : > { %643 = vmatpush1.bf16.msra.mxu0 %v1600_v14  ;;  %1546 = vmatpush1.bf16.msra.mxu1 %v1600_v14 }
  0x27   : > { %644 = vmatprep.subr.bf16.mxu0 %v1601_v16  ;;  %1531 = vmatprep.subr.bf16.mxu1 %v1601_v16 }
  0x2a   : > { %645 = vmatpush1.bf16.msra.mxu0 %v1603_v17  ;;  %1547 = vmatpush1.bf16.msra.mxu1 %v1603_v17 }
  0x2b   : > { %646 = vmatprep.subr.bf16.mxu0 %v1604_v18  ;;  %1532 = vmatprep.subr.bf16.mxu1 %v1604_v18 }
  0x2e   : > { %647 = vmatpush2.bf16.msra.mxu0 %v1606_v19  ;;  %1548 = vmatpush2.bf16.msra.mxu1 %v1606_v19 }
  0x2f   : > { %648 = vmatprep.subr.bf16.mxu0 %v1607_v20  ;;  %1533 = vmatprep.subr.bf16.mxu1 %v1607_v20 }
  0x32   : > { %649 = vmatpush2.bf16.msra.mxu0 %v1609_v21  ;;  %1549 = vmatpush2.bf16.msra.mxu1 %v1609_v21 }
  0x33   : > { %650 = vmatprep.subr.bf16.mxu0 %v1610_v22  ;;  %1534 = vmatprep.subr.bf16.mxu1 %v1610_v22 }
  0x36   : > { %651 = vmatpush2.bf16.msra.mxu0 %v1612_v23  ;;  %1550 = vmatpush2.bf16.msra.mxu1 %v1612_v23 }
  0x37   : > { %652 = vmatprep.subr.bf16.mxu0 %v1613_v24  ;;  %1535 = vmatprep.subr.bf16.mxu1 %v1613_v24 }
  0x3a   : > { %653 = vmatpush2.bf16.msra.mxu0 %v1615_v25  ;;  %1551 = vmatpush2.bf16.msra.mxu1 %v1615_v25 }
  0x3b   : > { %654 = vmatprep.subr.bf16.mxu0 %v1616_v26  ;;  %1536 = vmatprep.subr.bf16.mxu1 %v1616_v26 }
  0x3e   : > { %655 = vmatpush2.bf16.msra.mxu0 %v1618_v27  ;;  %1552 = vmatpush2.bf16.msra.mxu1 %v1618_v27 }
  0x3f   : > { %656 = vmatprep.subr.bf16.mxu0 %v1619_v28  ;;  %1537 = vmatprep.subr.bf16.mxu1 %v1619_v28 }
  0x42   : > { %657 = vmatpush2.bf16.msra.mxu0 %v1621_v29  ;;  %1553 = vmatpush2.bf16.msra.mxu1 %v1621_v29 }
  0x43   : > { %658 = vmatprep.subr.bf16.mxu0 %v1622_v30  ;;  %1538 = vmatprep.subr.bf16.mxu1 %v1622_v30 }
  0x46   : > { %659 = vmatpush2.bf16.msra.mxu0 %v1624_v31  ;;  %1554 = vmatpush2.bf16.msra.mxu1 %v1624_v31 }
  0x47   : > { %660 = vmatprep.subr.bf16.mxu0 %v1625_v32  ;;  %1539 = vmatprep.subr.bf16.mxu1 %v1625_v32 }
  0x4a   : > { %661 = vmatpush2.bf16.msra.mxu0 %v1627_v33  ;;  %1555 = vmatpush2.bf16.msra.mxu1 %v1627_v33 }
  0x4d   : > { %663 = vmatmul.mubr.bf16.vlgmr.msra.gmra.mxu0 %v1628_v34  ;;  %743 = vmatmul.mubr.bf16.vlgmr.msra.gmra.mxu1 %v1631_v35 }
  0x4e   : > { %672 = vmatprep.mubr.bf16.mxu0 %v1634_v36  ;;  %752 = vmatprep.mubr.bf16.mxu1 %v1636_v37 }
  0x55   : > { %673 = vmatmul.mubr.bf16.gmra.mxu0 %v1638_v38  ;;  %753 = vmatmul.mubr.bf16.gmra.mxu1 %v1639_v39 }
  0x56   : > { %682 = vmatprep.mubr.bf16.mxu0 %v1640_v40  ;;  %762 = vmatprep.mubr.bf16.mxu1 %v1642_v41 }
  0x5d   : > { %683 = vmatmul.mubr.bf16.gmra.mxu0 %v1644_v42  ;;  %763 = vmatmul.mubr.bf16.gmra.mxu1 %v1645_v43 }
  0x5e   : > { %692 = vmatprep.mubr.bf16.mxu0 %v1646_v44  ;;  %772 = vmatprep.mubr.bf16.mxu1 %v1648_v45 }
  0x65   : > { %693 = vmatmul.mubr.bf16.gmra.mxu0 %v1650_v46  ;;  %773 = vmatmul.mubr.bf16.gmra.mxu1 %v1651_v47 }
  0x66   : > { %702 = vmatprep.mubr.bf16.mxu0 %v1652_v48  ;;  %782 = vmatprep.mubr.bf16.mxu1 %v1654_v49 }
  0x6d   : > { %703 = vmatmul.mubr.bf16.gmra.mxu0 %v1656_v50  ;;  %783 = vmatmul.mubr.bf16.gmra.mxu1 %v1657_v51 }
  0x6e   : > { %712 = vmatprep.mubr.bf16.mxu0 %v1658_v52  ;;  %792 = vmatprep.mubr.bf16.mxu1 %v1660_v53 }
  0x75   : > { %713 = vmatmul.mubr.bf16.gmra.mxu0 %v1662_v54  ;;  %793 = vmatmul.mubr.bf16.gmra.mxu1 %v1663_v55 }
  0x76   : > { %722 = vmatprep.mubr.bf16.mxu0 %v1664_v56  ;;  %802 = vmatprep.mubr.bf16.mxu1 %v1666_v57 }
  0x7d   : > { %723 = vmatmul.mubr.bf16.gmra.mxu0 %v1668_v58  ;;  %803 = vmatmul.mubr.bf16.gmra.mxu1 %v1669_v59 }
  0x7e   : > { %732 = vmatprep.mubr.bf16.mxu0 %v1670_v60  ;;  %812 = vmatprep.mubr.bf16.mxu1 %v1672_v61 }
  0x85   : > { %733 = vmatmul.mubr.bf16.gmra.mxu0 %v1674_v62  ;;  %813 = vmatmul.mubr.bf16.gmra.mxu1 %v1675_v63 }
 0x10d   : > { %v664_v9 = vpop.f32.mrf.mxu0  ;;  %v744_v10 = vpop.f32.mrf.mxu1 }
 0x10e   : > { %v835_v11 = vmul.f32 %v1885_v6, %v664_v9  ;;  %v867_v12 = vmul.f32 %v1885_v6, %v744_v10 }
 0x10f   : > { %v666_v14 = vpop.f32.mrf.mxu0  ;;  %v746_v15 = vpop.f32.mrf.mxu1 }
 0x110   : > { %v912_v16 = vadd.f32 %v1887_v7, %v835_v11  ;;  %v944_v17 = vadd.f32 %v1887_v7, %v867_v12  ;;  %v836_v18 = vmul.f32 %v1889_v8, %v666_v14  ;;  %v868_v19 = vmul.f32 %v1889_v8, %v746_v15 }
 0x111   : > { %v668_v20 = vpop.f32.mrf.mxu0  ;;  %v748_v21 = vpop.f32.mrf.mxu1 }
 0x112   : > { %v913_v22 = vadd.f32 %v1893_v13, %v836_v18  ;;  %v945_v23 = vadd.f32 %v1893_v13, %v868_v19  ;;  %v976_v24 = vmax.f32 %v912_v16, 0.0  ;;  %v1008_v25 = vmax.f32 %v944_v17, 0.0 }
 0x113   : > { %v837_v26 = vmul.f32 %v1885_v6, %v668_v20  ;;  %v869_v27 = vmul.f32 %v1885_v6, %v748_v21  ;;  %v670_v28 = vpop.f32.mrf.mxu0  ;;  %v750_v29 = vpop.f32.mrf.mxu1 }
 0x114   : > { %v977_v30 = vmax.f32 %v913_v22, 0.0  ;;  %v1009_v31 = vmax.f32 %v945_v23, 0.0  ;;  %v838_v32 = vmul.f32 %v1889_v8, %v670_v28  ;;  %v870_v33 = vmul.f32 %v1889_v8, %v750_v29 }
 0x115   : > { %v914_v34 = vadd.f32 %v1887_v7, %v837_v26  ;;  %v946_v35 = vadd.f32 %v1887_v7, %v869_v27  ;;  %v674_v36 = vpop.f32.mrf.mxu0  ;;  %v754_v37 = vpop.f32.mrf.mxu1 }
 0x116   : > { %v1492_v38 = vpack.c.bf16 %v977_v30, %v976_v24  ;;  %v1508_v39 = vpack.c.bf16 %v1009_v31, %v1008_v25  ;;  %v915_v40 = vadd.f32 %v1893_v13, %v838_v32  ;;  %v947_v41 = vadd.f32 %v1893_v13, %v870_v33 }
 0x117   : > { %v978_v42 = vmax.f32 %v914_v34, 0.0  ;;  %v1010_v43 = vmax.f32 %v946_v35, 0.0  ;;  %v839_v44 = vmul.f32 %v1885_v6, %v674_v36  ;;  %v871_v45 = vmul.f32 %v1885_v6, %v754_v37  ;;  %v676_v46 = vpop.f32.mrf.mxu0  ;;  %v756_v47 = vpop.f32.mrf.mxu1 }
 0x118   : > { %1232 = vst [vmem:[%s1910_s24] sm:$0xff] %v1492_v38  ;;  %1248 = vst [vmem:[%s1910_s24 + $0x80] sm:$0xff] %v1508_v39  ;;  %v979_v48 = vmax.f32 %v915_v40, 0.0  ;;  %v1011_v49 = vmax.f32 %v947_v41, 0.0  ;;  %v840_v50 = vmul.f32 %v1889_v8, %v676_v46  ;;  %v872_v51 = vmul.f32 %v1889_v8, %v756_v47 }
 0x119   : > { %v916_v52 = vadd.f32 %v1887_v7, %v839_v44  ;;  %v948_v53 = vadd.f32 %v1887_v7, %v871_v45  ;;  %v678_v54 = vpop.f32.mrf.mxu0  ;;  %v758_v55 = vpop.f32.mrf.mxu1 }
 0x11a   : > { %v1493_v56 = vpack.c.bf16 %v979_v48, %v978_v42  ;;  %v1509_v57 = vpack.c.bf16 %v1011_v49, %v1010_v43  ;;  %v917_v58 = vadd.f32 %v1893_v13, %v840_v50  ;;  %v949_v59 = vadd.f32 %v1893_v13, %v872_v51 }
 0x11b   : > { %v980_v60 = vmax.f32 %v916_v52, 0.0  ;;  %v1012_v61 = vmax.f32 %v948_v53, 0.0  ;;  %v841_v62 = vmul.f32 %v1885_v6, %v678_v54  ;;  %v873_v63 = vmul.f32 %v1885_v6, %v758_v55  ;;  %v680_v0 = vpop.f32.mrf.mxu0  ;;  %v760_v1 = vpop.f32.mrf.mxu1 }
 0x11c   : > { %1233 = vst [vmem:[%s1910_s24 + $0x8] sm:$0xff] %v1493_v56  ;;  %1249 = vst [vmem:[%s1910_s24 + $0x88] sm:$0xff] %v1509_v57  ;;  %v981_v2 = vmax.f32 %v917_v58, 0.0  ;;  %v1013_v3 = vmax.f32 %v949_v59, 0.0  ;;  %v842_v4 = vmul.f32 %v1889_v8, %v680_v0  ;;  %v874_v5 = vmul.f32 %v1889_v8, %v760_v1 }
 0x11d   : > { %v918_v9 = vadd.f32 %v1887_v7, %v841_v62  ;;  %v950_v10 = vadd.f32 %v1887_v7, %v873_v63  ;;  %v684_v11 = vpop.f32.mrf.mxu0  ;;  %v764_v12 = vpop.f32.mrf.mxu1 }
 0x11e   : > { %v1494_v14 = vpack.c.bf16 %v981_v2, %v980_v60  ;;  %v1510_v15 = vpack.c.bf16 %v1013_v3, %v1012_v61  ;;  %v919_v16 = vadd.f32 %v1893_v13, %v842_v4  ;;  %v951_v17 = vadd.f32 %v1893_v13, %v874_v5 }
 0x11f   : > { %v982_v18 = vmax.f32 %v918_v9, 0.0  ;;  %v1014_v19 = vmax.f32 %v950_v10, 0.0  ;;  %v843_v20 = vmul.f32 %v1885_v6, %v684_v11  ;;  %v875_v21 = vmul.f32 %v1885_v6, %v764_v12  ;;  %v686_v22 = vpop.f32.mrf.mxu0  ;;  %v766_v23 = vpop.f32.mrf.mxu1 }
 0x120   : > { %1234 = vst [vmem:[%s1910_s24 + $0x10] sm:$0xff] %v1494_v14  ;;  %1250 = vst [vmem:[%s1910_s24 + $0x90] sm:$0xff] %v1510_v15  ;;  %v983_v24 = vmax.f32 %v919_v16, 0.0  ;;  %v1015_v25 = vmax.f32 %v951_v17, 0.0  ;;  %v844_v26 = vmul.f32 %v1889_v8, %v686_v22  ;;  %v876_v27 = vmul.f32 %v1889_v8, %v766_v23 }
 0x121   : > { %v920_v28 = vadd.f32 %v1887_v7, %v843_v20  ;;  %v952_v29 = vadd.f32 %v1887_v7, %v875_v21  ;;  %v688_v30 = vpop.f32.mrf.mxu0  ;;  %v768_v31 = vpop.f32.mrf.mxu1 }
 0x122   : > { %v1495_v32 = vpack.c.bf16 %v983_v24, %v982_v18  ;;  %v1511_v33 = vpack.c.bf16 %v1015_v25, %v1014_v19  ;;  %v921_v34 = vadd.f32 %v1893_v13, %v844_v26  ;;  %v953_v35 = vadd.f32 %v1893_v13, %v876_v27 }
 0x123   : > { %v984_v36 = vmax.f32 %v920_v28, 0.0  ;;  %v1016_v37 = vmax.f32 %v952_v29, 0.0  ;;  %v845_v38 = vmul.f32 %v1885_v6, %v688_v30  ;;  %v877_v39 = vmul.f32 %v1885_v6, %v768_v31  ;;  %v690_v40 = vpop.f32.mrf.mxu0  ;;  %v770_v41 = vpop.f32.mrf.mxu1 }
 0x124   : > { %1235 = vst [vmem:[%s1910_s24 + $0x18] sm:$0xff] %v1495_v32  ;;  %1251 = vst [vmem:[%s1910_s24 + $0x98] sm:$0xff] %v1511_v33  ;;  %v985_v42 = vmax.f32 %v921_v34, 0.0  ;;  %v1017_v43 = vmax.f32 %v953_v35, 0.0  ;;  %v846_v44 = vmul.f32 %v1889_v8, %v690_v40  ;;  %v878_v45 = vmul.f32 %v1889_v8, %v770_v41 }
 0x125   : > { %v922_v46 = vadd.f32 %v1887_v7, %v845_v38  ;;  %v954_v47 = vadd.f32 %v1887_v7, %v877_v39  ;;  %v694_v48 = vpop.f32.mrf.mxu0  ;;  %v774_v49 = vpop.f32.mrf.mxu1 }
 0x126   : > { %v1496_v50 = vpack.c.bf16 %v985_v42, %v984_v36  ;;  %v1512_v51 = vpack.c.bf16 %v1017_v43, %v1016_v37  ;;  %v923_v52 = vadd.f32 %v1893_v13, %v846_v44  ;;  %v955_v53 = vadd.f32 %v1893_v13, %v878_v45 }
 0x127   : > { %v986_v54 = vmax.f32 %v922_v46, 0.0  ;;  %v1018_v55 = vmax.f32 %v954_v47, 0.0  ;;  %v847_v56 = vmul.f32 %v1885_v6, %v694_v48  ;;  %v879_v57 = vmul.f32 %v1885_v6, %v774_v49  ;;  %v696_v58 = vpop.f32.mrf.mxu0  ;;  %v776_v59 = vpop.f32.mrf.mxu1 }
 0x128   : > { %1236 = vst [vmem:[%s1910_s24 + $0x20] sm:$0xff] %v1496_v50  ;;  %1252 = vst [vmem:[%s1910_s24 + $0xa0] sm:$0xff] %v1512_v51  ;;  %v987_v60 = vmax.f32 %v923_v52, 0.0  ;;  %v1019_v61 = vmax.f32 %v955_v53, 0.0  ;;  %v848_v62 = vmul.f32 %v1889_v8, %v696_v58  ;;  %v880_v63 = vmul.f32 %v1889_v8, %v776_v59 }
 0x129   : > { %v924_v0 = vadd.f32 %v1887_v7, %v847_v56  ;;  %v956_v1 = vadd.f32 %v1887_v7, %v879_v57  ;;  %v698_v2 = vpop.f32.mrf.mxu0  ;;  %v778_v3 = vpop.f32.mrf.mxu1 }
 0x12a   : > { %v1497_v4 = vpack.c.bf16 %v987_v60, %v986_v54  ;;  %v1513_v5 = vpack.c.bf16 %v1019_v61, %v1018_v55  ;;  %v925_v9 = vadd.f32 %v1893_v13, %v848_v62  ;;  %v957_v10 = vadd.f32 %v1893_v13, %v880_v63 }
 0x12b   : > { %v988_v11 = vmax.f32 %v924_v0, 0.0  ;;  %v1020_v12 = vmax.f32 %v956_v1, 0.0  ;;  %v849_v14 = vmul.f32 %v1885_v6, %v698_v2  ;;  %v881_v15 = vmul.f32 %v1885_v6, %v778_v3  ;;  %v700_v16 = vpop.f32.mrf.mxu0  ;;  %v780_v17 = vpop.f32.mrf.mxu1 }
 0x12c   : > { %1237 = vst [vmem:[%s1910_s24 + $0x28] sm:$0xff] %v1497_v4  ;;  %1253 = vst [vmem:[%s1910_s24 + $0xa8] sm:$0xff] %v1513_v5  ;;  %v989_v18 = vmax.f32 %v925_v9, 0.0  ;;  %v1021_v19 = vmax.f32 %v957_v10, 0.0  ;;  %v850_v20 = vmul.f32 %v1889_v8, %v700_v16  ;;  %v882_v21 = vmul.f32 %v1889_v8, %v780_v17 }
 0x12d   : > { %v926_v22 = vadd.f32 %v1887_v7, %v849_v14  ;;  %v958_v23 = vadd.f32 %v1887_v7, %v881_v15  ;;  %v704_v24 = vpop.f32.mrf.mxu0  ;;  %v784_v25 = vpop.f32.mrf.mxu1 }
 0x12e   : > { %v1498_v26 = vpack.c.bf16 %v989_v18, %v988_v11  ;;  %v1514_v27 = vpack.c.bf16 %v1021_v19, %v1020_v12  ;;  %v927_v28 = vadd.f32 %v1893_v13, %v850_v20  ;;  %v959_v29 = vadd.f32 %v1893_v13, %v882_v21 }
 0x12f   : > { %v990_v30 = vmax.f32 %v926_v22, 0.0  ;;  %v1022_v31 = vmax.f32 %v958_v23, 0.0  ;;  %v851_v32 = vmul.f32 %v1885_v6, %v704_v24  ;;  %v883_v33 = vmul.f32 %v1885_v6, %v784_v25  ;;  %v706_v34 = vpop.f32.mrf.mxu0  ;;  %v786_v35 = vpop.f32.mrf.mxu1 }
 0x130   : > { %1238 = vst [vmem:[%s1910_s24 + $0x30] sm:$0xff] %v1498_v26  ;;  %1254 = vst [vmem:[%s1910_s24 + $0xb0] sm:$0xff] %v1514_v27  ;;  %v991_v36 = vmax.f32 %v927_v28, 0.0  ;;  %v1023_v37 = vmax.f32 %v959_v29, 0.0  ;;  %v852_v38 = vmul.f32 %v1889_v8, %v706_v34  ;;  %v884_v39 = vmul.f32 %v1889_v8, %v786_v35 }
 0x131   : > { %v928_v40 = vadd.f32 %v1887_v7, %v851_v32  ;;  %v960_v41 = vadd.f32 %v1887_v7, %v883_v33  ;;  %v708_v42 = vpop.f32.mrf.mxu0  ;;  %v788_v43 = vpop.f32.mrf.mxu1 }
 0x132   : > { %v1499_v44 = vpack.c.bf16 %v991_v36, %v990_v30  ;;  %v1515_v45 = vpack.c.bf16 %v1023_v37, %v1022_v31  ;;  %v929_v46 = vadd.f32 %v1893_v13, %v852_v38  ;;  %v961_v47 = vadd.f32 %v1893_v13, %v884_v39 }
 0x133   : > { %v992_v48 = vmax.f32 %v928_v40, 0.0  ;;  %v1024_v49 = vmax.f32 %v960_v41, 0.0  ;;  %v853_v50 = vmul.f32 %v1885_v6, %v708_v42  ;;  %v885_v51 = vmul.f32 %v1885_v6, %v788_v43  ;;  %v710_v52 = vpop.f32.mrf.mxu0  ;;  %v790_v53 = vpop.f32.mrf.mxu1 }
 0x134   : > { %1239 = vst [vmem:[%s1910_s24 + $0x38] sm:$0xff] %v1499_v44  ;;  %1255 = vst [vmem:[%s1910_s24 + $0xb8] sm:$0xff] %v1515_v45  ;;  %v993_v54 = vmax.f32 %v929_v46, 0.0  ;;  %v1025_v55 = vmax.f32 %v961_v47, 0.0  ;;  %v854_v56 = vmul.f32 %v1889_v8, %v710_v52  ;;  %v886_v57 = vmul.f32 %v1889_v8, %v790_v53 }
 0x135   : > { %v930_v58 = vadd.f32 %v1887_v7, %v853_v50  ;;  %v962_v59 = vadd.f32 %v1887_v7, %v885_v51  ;;  %v714_v60 = vpop.f32.mrf.mxu0  ;;  %v794_v61 = vpop.f32.mrf.mxu1 }
 0x136   : > { %v1500_v62 = vpack.c.bf16 %v993_v54, %v992_v48  ;;  %v1516_v63 = vpack.c.bf16 %v1025_v55, %v1024_v49  ;;  %v931_v0 = vadd.f32 %v1893_v13, %v854_v56  ;;  %v963_v1 = vadd.f32 %v1893_v13, %v886_v57 }
 0x137   : > { %v994_v2 = vmax.f32 %v930_v58, 0.0  ;;  %v1026_v3 = vmax.f32 %v962_v59, 0.0  ;;  %v855_v4 = vmul.f32 %v1885_v6, %v714_v60  ;;  %v887_v5 = vmul.f32 %v1885_v6, %v794_v61  ;;  %v716_v9 = vpop.f32.mrf.mxu0  ;;  %v796_v10 = vpop.f32.mrf.mxu1 }
 0x138   : > { %1240 = vst [vmem:[%s1910_s24 + $0x40] sm:$0xff] %v1500_v62  ;;  %1256 = vst [vmem:[%s1910_s24 + $0xc0] sm:$0xff] %v1516_v63  ;;  %v995_v11 = vmax.f32 %v931_v0, 0.0  ;;  %v1027_v12 = vmax.f32 %v963_v1, 0.0  ;;  %v856_v14 = vmul.f32 %v1889_v8, %v716_v9  ;;  %v888_v15 = vmul.f32 %v1889_v8, %v796_v10 }
 0x139   : > { %v932_v16 = vadd.f32 %v1887_v7, %v855_v4  ;;  %v964_v17 = vadd.f32 %v1887_v7, %v887_v5  ;;  %v718_v18 = vpop.f32.mrf.mxu0  ;;  %v798_v19 = vpop.f32.mrf.mxu1 }
 0x13a   : > { %v1501_v20 = vpack.c.bf16 %v995_v11, %v994_v2  ;;  %v1517_v21 = vpack.c.bf16 %v1027_v12, %v1026_v3  ;;  %v933_v22 = vadd.f32 %v1893_v13, %v856_v14  ;;  %v965_v23 = vadd.f32 %v1893_v13, %v888_v15 }
 0x13b   : > { %v996_v24 = vmax.f32 %v932_v16, 0.0  ;;  %v1028_v25 = vmax.f32 %v964_v17, 0.0  ;;  %v857_v26 = vmul.f32 %v1885_v6, %v718_v18  ;;  %v889_v27 = vmul.f32 %v1885_v6, %v798_v19  ;;  %v720_v28 = vpop.f32.mrf.mxu0  ;;  %v800_v29 = vpop.f32.mrf.mxu1 }
 0x13c   : > { %1241 = vst [vmem:[%s1910_s24 + $0x48] sm:$0xff] %v1501_v20  ;;  %1257 = vst [vmem:[%s1910_s24 + $0xc8] sm:$0xff] %v1517_v21  ;;  %v997_v30 = vmax.f32 %v933_v22, 0.0  ;;  %v1029_v31 = vmax.f32 %v965_v23, 0.0  ;;  %v858_v32 = vmul.f32 %v1889_v8, %v720_v28  ;;  %v890_v33 = vmul.f32 %v1889_v8, %v800_v29 }
 0x13d   : > { %v934_v34 = vadd.f32 %v1887_v7, %v857_v26  ;;  %v966_v35 = vadd.f32 %v1887_v7, %v889_v27  ;;  %v724_v36 = vpop.f32.mrf.mxu0  ;;  %v804_v37 = vpop.f32.mrf.mxu1 }
 0x13e   : > { %v1502_v38 = vpack.c.bf16 %v997_v30, %v996_v24  ;;  %v1518_v39 = vpack.c.bf16 %v1029_v31, %v1028_v25  ;;  %v935_v40 = vadd.f32 %v1893_v13, %v858_v32  ;;  %v967_v41 = vadd.f32 %v1893_v13, %v890_v33 }
 0x13f   : > { %v998_v42 = vmax.f32 %v934_v34, 0.0  ;;  %v1030_v43 = vmax.f32 %v966_v35, 0.0  ;;  %v859_v44 = vmul.f32 %v1885_v6, %v724_v36  ;;  %v891_v45 = vmul.f32 %v1885_v6, %v804_v37  ;;  %v726_v46 = vpop.f32.mrf.mxu0  ;;  %v806_v47 = vpop.f32.mrf.mxu1 }
 0x140   : > { %1242 = vst [vmem:[%s1910_s24 + $0x50] sm:$0xff] %v1502_v38  ;;  %1258 = vst [vmem:[%s1910_s24 + $0xd0] sm:$0xff] %v1518_v39  ;;  %v999_v48 = vmax.f32 %v935_v40, 0.0  ;;  %v1031_v49 = vmax.f32 %v967_v41, 0.0  ;;  %v860_v50 = vmul.f32 %v1889_v8, %v726_v46  ;;  %v892_v51 = vmul.f32 %v1889_v8, %v806_v47 }
 0x141   : > { %v936_v52 = vadd.f32 %v1887_v7, %v859_v44  ;;  %v968_v53 = vadd.f32 %v1887_v7, %v891_v45  ;;  %v728_v54 = vpop.f32.mrf.mxu0  ;;  %v808_v55 = vpop.f32.mrf.mxu1 }
 0x142   : > { %v1503_v56 = vpack.c.bf16 %v999_v48, %v998_v42  ;;  %v1519_v57 = vpack.c.bf16 %v1031_v49, %v1030_v43  ;;  %v937_v58 = vadd.f32 %v1893_v13, %v860_v50  ;;  %v969_v59 = vadd.f32 %v1893_v13, %v892_v51 }
 0x143   : > { %v1000_v60 = vmax.f32 %v936_v52, 0.0  ;;  %v1032_v61 = vmax.f32 %v968_v53, 0.0  ;;  %v861_v62 = vmul.f32 %v1885_v6, %v728_v54  ;;  %v893_v63 = vmul.f32 %v1885_v6, %v808_v55  ;;  %v730_v0 = vpop.f32.mrf.mxu0  ;;  %v810_v1 = vpop.f32.mrf.mxu1 }
 0x144   : > { %1243 = vst [vmem:[%s1910_s24 + $0x58] sm:$0xff] %v1503_v56  ;;  %1259 = vst [vmem:[%s1910_s24 + $0xd8] sm:$0xff] %v1519_v57  ;;  %v1001_v2 = vmax.f32 %v937_v58, 0.0  ;;  %v1033_v3 = vmax.f32 %v969_v59, 0.0  ;;  %v862_v4 = vmul.f32 %v1889_v8, %v730_v0  ;;  %v894_v5 = vmul.f32 %v1889_v8, %v810_v1 }
 0x145   : > { %v938_v9 = vadd.f32 %v1887_v7, %v861_v62  ;;  %v970_v10 = vadd.f32 %v1887_v7, %v893_v63  ;;  %v734_v11 = vpop.f32.mrf.mxu0  ;;  %v814_v12 = vpop.f32.mrf.mxu1 }
 0x146   : > { %v1504_v14 = vpack.c.bf16 %v1001_v2, %v1000_v60  ;;  %v1520_v15 = vpack.c.bf16 %v1033_v3, %v1032_v61  ;;  %v939_v16 = vadd.f32 %v1893_v13, %v862_v4  ;;  %v971_v17 = vadd.f32 %v1893_v13, %v894_v5 }
 0x147   : > { %v1002_v18 = vmax.f32 %v938_v9, 0.0  ;;  %v1034_v19 = vmax.f32 %v970_v10, 0.0  ;;  %v863_v20 = vmul.f32 %v1885_v6, %v734_v11  ;;  %v895_v21 = vmul.f32 %v1885_v6, %v814_v12  ;;  %v736_v22 = vpop.f32.mrf.mxu0  ;;  %v816_v23 = vpop.f32.mrf.mxu1 }
 0x148   : > { %1244 = vst [vmem:[%s1910_s24 + $0x60] sm:$0xff] %v1504_v14  ;;  %1260 = vst [vmem:[%s1910_s24 + $0xe0] sm:$0xff] %v1520_v15  ;;  %v1003_v24 = vmax.f32 %v939_v16, 0.0  ;;  %v1035_v25 = vmax.f32 %v971_v17, 0.0  ;;  %v864_v26 = vmul.f32 %v1889_v8, %v736_v22  ;;  %v896_v27 = vmul.f32 %v1889_v8, %v816_v23 }
 0x149   : > { %v940_v28 = vadd.f32 %v1887_v7, %v863_v20  ;;  %v972_v29 = vadd.f32 %v1887_v7, %v895_v21  ;;  %v738_v30 = vpop.f32.mrf.mxu0  ;;  %v818_v31 = vpop.f32.mrf.mxu1 }
 0x14a   : > { %v1505_v32 = vpack.c.bf16 %v1003_v24, %v1002_v18  ;;  %v1521_v33 = vpack.c.bf16 %v1035_v25, %v1034_v19  ;;  %v941_v34 = vadd.f32 %v1893_v13, %v864_v26  ;;  %v973_v35 = vadd.f32 %v1893_v13, %v896_v27 }
 0x14b   : > { %v1004_v36 = vmax.f32 %v940_v28, 0.0  ;;  %v1036_v37 = vmax.f32 %v972_v29, 0.0  ;;  %v865_v38 = vmul.f32 %v1885_v6, %v738_v30  ;;  %v897_v39 = vmul.f32 %v1885_v6, %v818_v31  ;;  %v740_v40 = vpop.f32.mrf.mxu0  ;;  %v820_v41 = vpop.f32.mrf.mxu1 }
 0x14c   : > { %1245 = vst [vmem:[%s1910_s24 + $0x68] sm:$0xff] %v1505_v32  ;;  %1261 = vst [vmem:[%s1910_s24 + $0xe8] sm:$0xff] %v1521_v33  ;;  %v1005_v42 = vmax.f32 %v941_v34, 0.0  ;;  %v1037_v43 = vmax.f32 %v973_v35, 0.0  ;;  %v866_v44 = vmul.f32 %v1889_v8, %v740_v40  ;;  %v898_v45 = vmul.f32 %v1889_v8, %v820_v41 }
 0x14d   : > { %v942_v46 = vadd.f32 %v1887_v7, %v865_v38  ;;  %v974_v47 = vadd.f32 %v1887_v7, %v897_v39 }
 0x14e   : > { %v1506_v48 = vpack.c.bf16 %v1005_v42, %v1004_v36  ;;  %v1522_v49 = vpack.c.bf16 %v1037_v43, %v1036_v37  ;;  %v943_v6 = vadd.f32 %v1893_v13, %v866_v44  ;;  %v975_v50 = vadd.f32 %v1893_v13, %v898_v45 }
 0x14f   : > { %v1006_v51 = vmax.f32 %v942_v46, 0.0  ;;  %v1038_v52 = vmax.f32 %v974_v47, 0.0 }
 0x150   : > { %1246 = vst [vmem:[%s1910_s24 + $0x70] sm:$0xff] %v1506_v48  ;;  %1262 = vst [vmem:[%s1910_s24 + $0xf0] sm:$0xff] %v1522_v49  ;;  %v1007_v53 = vmax.f32 %v943_v6, 0.0  ;;  %v1039_v54 = vmax.f32 %v975_v50, 0.0 }
 0x152   : > { %v1507_v55 = vpack.c.bf16 %v1007_v53, %v1006_v51  ;;  %v1523_v56 = vpack.c.bf16 %v1039_v54, %v1038_v52 }
 0x154   : > { %1247 = vst [vmem:[%s1910_s24 + $0x78] sm:$0xff] %v1507_v55  ;;  %1263 = vst [vmem:[%s1910_s24 + $0xf8] sm:$0xff] %v1523_v56 }
 0x155 PF: > { %s13_s14 = sadd.s32 1, %s1698_s14   ;;  %s2073_s12 = smov %s1694_s13 }
 0x156   : > { %p10_p5 = scmp.ge.s32.totalorder %s13_s14, 4   ;;  %s2074_s13 = smov %s2076_s15 }
 0x158   :  { %12 = sbr.rel (!%p10_p5) target bundleno = 2 (0x2), region = 69 }

// kernel: mul.0
= control target key start
LH: loop header
LB: loop body
LE: loop exit
PB: predicated region body
PF: predicated region fallthrough
CT: control target
= control target key end

     0   :  { %s3277_s0 = inlined_call_operand.vmem [shape: bf16[512,256], index: 0, kind: input, shape index: {}]   ;;  %s3278_s1 = inlined_call_operand.vmem [shape: bf16[512,256], index: 1, kind: input, shape index: {}]   ;;  %s3279_s2 = inlined_call_operand.vmem [shape: bf16[512,256], index: 2, kind: output, shape index: {}]  }
   0x1   :  { %v3_v0 = vld [vmem:[%s3277_s0] ss:$8 sps:$4 sm:$0xff]   ;;  %v2114_v2 = vld [vmem:[%s3277_s0 + $0x10] ss:$8 sps:$4 sm:$0xff]  }
   0x2   :  { %v6_v1 = vld [vmem:[%s3278_s1] ss:$8 sps:$4 sm:$0xff]   ;;  %v4_v3 = vunpack.c.l.bf16 %v3_v0  ;;  %v15_v5 = vunpack.c.h.bf16 %v3_v0  ;;  %v2115_v7 = vld [vmem:[%s3278_s1 + $0x10] ss:$8 sps:$4 sm:$0xff]   ;;  %v28_v10 = vunpack.c.l.bf16 %v2114_v2  ;;  %v41_v12 = vunpack.c.h.bf16 %v2114_v2 }
   0x3   :  { %v7_v4 = vunpack.c.l.bf16 %v6_v1  ;;  %v19_v6 = vunpack.c.h.bf16 %v6_v1  ;;  %v2118_v8 = vld [vmem:[%s3277_s0 + $0x20] ss:$8 sps:$4 sm:$0xff]   ;;  %v32_v11 = vunpack.c.l.bf16 %v2115_v7  ;;  %v45_v13 = vunpack.c.h.bf16 %v2115_v7  ;;  %v2122_v14 = vld [vmem:[%s3277_s0 + $0x30] ss:$8 sps:$4 sm:$0xff]  }
   0x4   :  { %v2119_v9 = vld [vmem:[%s3278_s1 + $0x20] ss:$8 sps:$4 sm:$0xff]   ;;  %v2123_v15 = vld [vmem:[%s3278_s1 + $0x30] ss:$8 sps:$4 sm:$0xff]   ;;  %v54_v18 = vunpack.c.l.bf16 %v2118_v8  ;;  %v67_v24 = vunpack.c.h.bf16 %v2118_v8  ;;  %v80_v28 = vunpack.c.l.bf16 %v2122_v14  ;;  %v93_v30 = vunpack.c.h.bf16 %v2122_v14 }
   0x5   :  { %v2533_v16 = vmul.f32 %v7_v4, %v4_v3  ;;  %v2535_v17 = vmul.f32 %v19_v6, %v15_v5  ;;  %v58_v19 = vunpack.c.l.bf16 %v2119_v9  ;;  %v2126_v20 = vld [vmem:[%s3277_s0 + $0x40] ss:$8 sps:$4 sm:$0xff]   ;;  %v2543_v22 = vmul.f32 %v32_v11, %v28_v10  ;;  %v2130_v26 = vld [vmem:[%s3277_s0 + $0x50] ss:$8 sps:$4 sm:$0xff]  }
   0x6   :  { %v2127_v21 = vld [vmem:[%s3278_s1 + $0x40] ss:$8 sps:$4 sm:$0xff]   ;;  %v2545_v23 = vmul.f32 %v45_v13, %v41_v12  ;;  %v71_v25 = vunpack.c.h.bf16 %v2119_v9  ;;  %v84_v29 = vunpack.c.l.bf16 %v2123_v15  ;;  %v2131_v31 = vld [vmem:[%s3278_s1 + $0x50] ss:$8 sps:$4 sm:$0xff]   ;;  %v97_v33 = vunpack.c.h.bf16 %v2123_v15 }
   0x7   :  { %v2550_v27 = vmul.f32 %v58_v19, %v54_v18  ;;  %v106_v34 = vunpack.c.l.bf16 %v2126_v20  ;;  %v110_v35 = vunpack.c.l.bf16 %v2127_v21  ;;  %v2134_v36 = vld [vmem:[%s3277_s0 + $0x60] ss:$8 sps:$4 sm:$0xff]   ;;  %v119_v39 = vunpack.c.h.bf16 %v2126_v20  ;;  %v2138_v42 = vld [vmem:[%s3277_s0 + $0x70] ss:$8 sps:$4 sm:$0xff]  }
   0x8   :  { %v2555_v32 = vmul.f32 %v71_v25, %v67_v24  ;;  %v2135_v37 = vld [vmem:[%s3278_s1 + $0x60] ss:$8 sps:$4 sm:$0xff]   ;;  %v2563_v38 = vmul.f32 %v84_v29, %v80_v28  ;;  %v123_v40 = vunpack.c.h.bf16 %v2127_v21  ;;  %v132_v41 = vunpack.c.l.bf16 %v2130_v26  ;;  %v2139_v47 = vld [vmem:[%s3278_s1 + $0x70] ss:$8 sps:$4 sm:$0xff]  }
   0x9   :  { %v2568_v43 = vmul.f32 %v97_v33, %v93_v30  ;;  %v2570_v44 = vmul.f32 %v110_v35, %v106_v34  ;;  %v136_v45 = vunpack.c.l.bf16 %v2131_v31  ;;  %v145_v46 = vunpack.c.h.bf16 %v2130_v26  ;;  %v2142_v52 = vld [vmem:[%s3277_s0 + $0x80] ss:$8 sps:$4 sm:$0xff]   ;;  %v2146_v58 = vld [vmem:[%s3277_s0 + $0x90] ss:$8 sps:$4 sm:$0xff]  }
   0xa   :  { %v2575_v48 = vmul.f32 %v123_v40, %v119_v39  ;;  %v149_v49 = vunpack.c.h.bf16 %v2131_v31  ;;  %v158_v50 = vunpack.c.l.bf16 %v2134_v36  ;;  %v162_v51 = vunpack.c.l.bf16 %v2135_v37  ;;  %v2143_v53 = vld [vmem:[%s3278_s1 + $0x80] ss:$8 sps:$4 sm:$0xff]   ;;  %v2147_v63 = vld [vmem:[%s3278_s1 + $0x90] ss:$8 sps:$4 sm:$0xff]  }
   0xb   :  { %v2583_v54 = vmul.f32 %v136_v45, %v132_v41  ;;  %v171_v55 = vunpack.c.h.bf16 %v2134_v36  ;;  %v175_v56 = vunpack.c.h.bf16 %v2135_v37  ;;  %v184_v57 = vunpack.c.l.bf16 %v2138_v42  ;;  %v2150_v4 = vld [vmem:[%s3277_s0 + $0xa0] ss:$8 sps:$4 sm:$0xff]   ;;  %v2154_v10 = vld [vmem:[%s3277_s0 + $0xb0] ss:$8 sps:$4 sm:$0xff]  }
   0xc   :  { %v2588_v59 = vmul.f32 %v149_v49, %v145_v46  ;;  %v2590_v60 = vmul.f32 %v162_v51, %v158_v50  ;;  %v188_v61 = vunpack.c.l.bf16 %v2139_v47  ;;  %v197_v62 = vunpack.c.h.bf16 %v2138_v42  ;;  %v2151_v5 = vld [vmem:[%s3278_s1 + $0xa0] ss:$8 sps:$4 sm:$0xff]   ;;  %v2155_v15 = vld [vmem:[%s3278_s1 + $0xb0] ss:$8 sps:$4 sm:$0xff]  }
   0xd   :  { %v2595_v0 = vmul.f32 %v175_v56, %v171_v55  ;;  %v201_v1 = vunpack.c.h.bf16 %v2139_v47  ;;  %v210_v2 = vunpack.c.l.bf16 %v2142_v52  ;;  %v214_v3 = vunpack.c.l.bf16 %v2143_v53  ;;  %v2158_v24 = vld [vmem:[%s3277_s0 + $0xc0] ss:$8 sps:$4 sm:$0xff]   ;;  %v2162_v31 = vld [vmem:[%s3277_s0 + $0xd0] ss:$8 sps:$4 sm:$0xff]  }
   0xe   :  { %v2603_v6 = vmul.f32 %v188_v61, %v184_v57  ;;  %v223_v7 = vunpack.c.h.bf16 %v2142_v52  ;;  %v227_v8 = vunpack.c.h.bf16 %v2143_v53  ;;  %v236_v9 = vunpack.c.l.bf16 %v2146_v58  ;;  %v2159_v25 = vld [vmem:[%s3278_s1 + $0xc0] ss:$8 sps:$4 sm:$0xff]   ;;  %v2163_v37 = vld [vmem:[%s3278_s1 + $0xd0] ss:$8 sps:$4 sm:$0xff]  }
   0xf   :  { %v2608_v11 = vmul.f32 %v201_v1, %v197_v62  ;;  %v2610_v12 = vmul.f32 %v214_v3, %v210_v2  ;;  %v240_v13 = vunpack.c.l.bf16 %v2147_v63  ;;  %v249_v14 = vunpack.c.h.bf16 %v2146_v58  ;;  %v2166_v45 = vld [vmem:[%s3277_s0 + $0xe0] ss:$8 sps:$4 sm:$0xff]   ;;  %v2170_v52 = vld [vmem:[%s3277_s0 + $0xf0] ss:$8 sps:$4 sm:$0xff]  }
  0x10   :  { %v2615_v18 = vmul.f32 %v227_v8, %v223_v7  ;;  %v253_v19 = vunpack.c.h.bf16 %v2147_v63  ;;  %v262_v20 = vunpack.c.l.bf16 %v2150_v4  ;;  %v266_v21 = vunpack.c.l.bf16 %v2151_v5  ;;  %v2167_v46 = vld [vmem:[%s3278_s1 + $0xe0] ss:$8 sps:$4 sm:$0xff]   ;;  %v2171_v58 = vld [vmem:[%s3278_s1 + $0xf0] ss:$8 sps:$4 sm:$0xff]  }
  0x11   :  { %v2623_v26 = vmul.f32 %v240_v13, %v236_v9  ;;  %v275_v28 = vunpack.c.h.bf16 %v2150_v4  ;;  %v279_v29 = vunpack.c.h.bf16 %v2151_v5  ;;  %v288_v30 = vunpack.c.l.bf16 %v2154_v10  ;;  %v2174_v2 = vld [vmem:[%s3277_s0 + $0x100] ss:$8 sps:$4 sm:$0xff]   ;;  %v2178_v9 = vld [vmem:[%s3277_s0 + $0x110] ss:$8 sps:$4 sm:$0xff]  }
  0x12   :  { %v2628_v33 = vmul.f32 %v253_v19, %v249_v14  ;;  %v2630_v34 = vmul.f32 %v266_v21, %v262_v20  ;;  %v292_v35 = vunpack.c.l.bf16 %v2155_v15  ;;  %v301_v36 = vunpack.c.h.bf16 %v2154_v10  ;;  %v2175_v3 = vld [vmem:[%s3278_s1 + $0x100] ss:$8 sps:$4 sm:$0xff]   ;;  %v2179_v19 = vld [vmem:[%s3278_s1 + $0x110] ss:$8 sps:$4 sm:$0xff]  }
  0x13   :  { %v2635_v39 = vmul.f32 %v279_v29, %v275_v28  ;;  %v305_v40 = vunpack.c.h.bf16 %v2155_v15  ;;  %v314_v41 = vunpack.c.l.bf16 %v2158_v24  ;;  %v318_v42 = vunpack.c.l.bf16 %v2159_v25  ;;  %v2182_v28 = vld [vmem:[%s3277_s0 + $0x120] ss:$8 sps:$4 sm:$0xff]  }
  0x14   :  { %v2643_v47 = vmul.f32 %v292_v35, %v288_v30  ;;  %v327_v49 = vunpack.c.h.bf16 %v2158_v24  ;;  %v331_v50 = vunpack.c.h.bf16 %v2159_v25  ;;  %v340_v51 = vunpack.c.l.bf16 %v2162_v31  ;;  %v2183_v29 = vld [vmem:[%s3278_s1 + $0x120] ss:$8 sps:$4 sm:$0xff]  }
  0x15   :  { %v2648_v53 = vmul.f32 %v305_v40, %v301_v36  ;;  %v2650_v55 = vmul.f32 %v318_v42, %v314_v41  ;;  %v344_v56 = vunpack.c.l.bf16 %v2163_v37  ;;  %v353_v57 = vunpack.c.h.bf16 %v2162_v31 }
  0x16   :  { %v2655_v61 = vmul.f32 %v331_v50, %v327_v49  ;;  %v357_v62 = vunpack.c.h.bf16 %v2163_v37  ;;  %v366_v63 = vunpack.c.l.bf16 %v2166_v45  ;;  %v370_v1 = vunpack.c.l.bf16 %v2167_v46  ;;  %v2186_v37 = vld [vmem:[%s3277_s0 + $0x130] ss:$8 sps:$4 sm:$0xff]  }
  0x17   :  { %v2663_v4 = vmul.f32 %v344_v56, %v340_v51  ;;  %v379_v5 = vunpack.c.h.bf16 %v2166_v45  ;;  %v383_v7 = vunpack.c.h.bf16 %v2167_v46  ;;  %v392_v8 = vunpack.c.l.bf16 %v2170_v52  ;;  %v2187_v46 = vld [vmem:[%s3278_s1 + $0x130] ss:$8 sps:$4 sm:$0xff]   ;;  %v2190_v56 = vld [vmem:[%s3277_s0 + $0x140] ss:$8 sps:$4 sm:$0xff]  }
  0x18   :  { %v2668_v10 = vmul.f32 %v357_v62, %v353_v57  ;;  %v2670_v13 = vmul.f32 %v370_v1, %v366_v63  ;;  %v396_v14 = vunpack.c.l.bf16 %v2171_v58  ;;  %v405_v15 = vunpack.c.h.bf16 %v2170_v52  ;;  %v2191_v57 = vld [vmem:[%s3278_s1 + $0x140] ss:$8 sps:$4 sm:$0xff]  }
  0x19   :  { %v2675_v20 = vmul.f32 %v383_v7, %v379_v5  ;;  %v409_v21 = vunpack.c.h.bf16 %v2171_v58  ;;  %v418_v24 = vunpack.c.l.bf16 %v2174_v2  ;;  %v422_v25 = vunpack.c.l.bf16 %v2175_v3 }
  0x1a   :  { %v2683_v30 = vmul.f32 %v396_v14, %v392_v8  ;;  %v431_v31 = vunpack.c.h.bf16 %v2174_v2  ;;  %v435_v35 = vunpack.c.h.bf16 %v2175_v3  ;;  %v444_v36 = vunpack.c.l.bf16 %v2178_v9  ;;  %v2194_v2 = vld [vmem:[%s3277_s0 + $0x150] ss:$8 sps:$4 sm:$0xff]  }
  0x1b   :  { %v2688_v40 = vmul.f32 %v409_v21, %v405_v15  ;;  %v2690_v41 = vmul.f32 %v422_v25, %v418_v24  ;;  %v448_v42 = vunpack.c.l.bf16 %v2179_v19  ;;  %v457_v45 = vunpack.c.h.bf16 %v2178_v9  ;;  %v2195_v9 = vld [vmem:[%s3278_s1 + $0x150] ss:$8 sps:$4 sm:$0xff]   ;;  %v2198_v24 = vld [vmem:[%s3277_s0 + $0x160] ss:$8 sps:$4 sm:$0xff]  }
  0x1c   :  { %v2695_v49 = vmul.f32 %v435_v35, %v431_v31  ;;  %v461_v50 = vunpack.c.h.bf16 %v2179_v19  ;;  %v470_v51 = vunpack.c.l.bf16 %v2182_v28  ;;  %v474_v52 = vunpack.c.l.bf16 %v2183_v29  ;;  %v2199_v25 = vld [vmem:[%s3278_s1 + $0x160] ss:$8 sps:$4 sm:$0xff]  }
  0x1d   :  { %v2703_v58 = vmul.f32 %v448_v42, %v444_v36  ;;  %v483_v62 = vunpack.c.h.bf16 %v2182_v28  ;;  %v487_v63 = vunpack.c.h.bf16 %v2183_v29  ;;  %v496_v1 = vunpack.c.l.bf16 %v2186_v37  ;;  %v2202_v36 = vld [vmem:[%s3277_s0 + $0x170] ss:$8 sps:$4 sm:$0xff]  }
  0x1e   :  { %v2708_v3 = vmul.f32 %v461_v50, %v457_v45  ;;  %v2710_v5 = vmul.f32 %v474_v52, %v470_v51  ;;  %v500_v7 = vunpack.c.l.bf16 %v2187_v46  ;;  %v509_v8 = vunpack.c.h.bf16 %v2186_v37  ;;  %v2203_v50 = vld [vmem:[%s3278_s1 + $0x170] ss:$8 sps:$4 sm:$0xff]  }
  0x1f   :  { %v2715_v14 = vmul.f32 %v487_v63, %v483_v62  ;;  %v513_v15 = vunpack.c.h.bf16 %v2187_v46  ;;  %v522_v19 = vunpack.c.l.bf16 %v2190_v56  ;;  %v526_v21 = vunpack.c.l.bf16 %v2191_v57  ;;  %v2206_v62 = vld [vmem:[%s3277_s0 + $0x180] ss:$8 sps:$4 sm:$0xff]  }
  0x20   :  { %v2723_v28 = vmul.f32 %v500_v7, %v496_v1  ;;  %v535_v29 = vunpack.c.h.bf16 %v2190_v56  ;;  %v539_v31 = vunpack.c.h.bf16 %v2191_v57  ;;  %v548_v35 = vunpack.c.l.bf16 %v2194_v2  ;;  %v2207_v63 = vld [vmem:[%s3278_s1 + $0x180] ss:$8 sps:$4 sm:$0xff]  }
  0x21   :  { %v2728_v37 = vmul.f32 %v513_v15, %v509_v8  ;;  %v2730_v42 = vmul.f32 %v526_v21, %v522_v19  ;;  %v552_v45 = vunpack.c.l.bf16 %v2195_v9  ;;  %v561_v46 = vunpack.c.h.bf16 %v2194_v2 }
  0x22   :  { %v2735_v51 = vmul.f32 %v539_v31, %v535_v29  ;;  %v565_v52 = vunpack.c.h.bf16 %v2195_v9  ;;  %v574_v56 = vunpack.c.l.bf16 %v2198_v24  ;;  %v578_v57 = vunpack.c.l.bf16 %v2199_v25  ;;  %v2210_v9 = vld [vmem:[%s3277_s0 + $0x190] ss:$8 sps:$4 sm:$0xff]  }
  0x23   :  { %v2743_v1 = vmul.f32 %v552_v45, %v548_v35  ;;  %v587_v2 = vunpack.c.h.bf16 %v2198_v24  ;;  %v591_v7 = vunpack.c.h.bf16 %v2199_v25  ;;  %v600_v8 = vunpack.c.l.bf16 %v2202_v36  ;;  %v2211_v25 = vld [vmem:[%s3278_s1 + $0x190] ss:$8 sps:$4 sm:$0xff]   ;;  %v2214_v45 = vld [vmem:[%s3277_s0 + $0x1a0] ss:$8 sps:$4 sm:$0xff]  }
  0x24   :  { %v2748_v15 = vmul.f32 %v565_v52, %v561_v46  ;;  %v2750_v19 = vmul.f32 %v578_v57, %v574_v56  ;;  %v604_v21 = vunpack.c.l.bf16 %v2203_v50  ;;  %v613_v24 = vunpack.c.h.bf16 %v2202_v36  ;;  %v2215_v46 = vld [vmem:[%s3278_s1 + $0x1a0] ss:$8 sps:$4 sm:$0xff]  }
  0x25   :  { %v2755_v29 = vmul.f32 %v591_v7, %v587_v2  ;;  %v617_v31 = vunpack.c.h.bf16 %v2203_v50  ;;  %v626_v35 = vunpack.c.l.bf16 %v2206_v62  ;;  %v630_v36 = vunpack.c.l.bf16 %v2207_v63 }
  0x26   :  { %v2763_v50 = vmul.f32 %v604_v21, %v600_v8  ;;  %v639_v52 = vunpack.c.h.bf16 %v2206_v62  ;;  %v643_v56 = vunpack.c.h.bf16 %v2207_v63  ;;  %v652_v57 = vunpack.c.l.bf16 %v2210_v9  ;;  %v2218_v62 = vld [vmem:[%s3277_s0 + $0x1b0] ss:$8 sps:$4 sm:$0xff]  }
  0x27   :  { %v2768_v63 = vmul.f32 %v617_v31, %v613_v24  ;;  %v2770_v2 = vmul.f32 %v630_v36, %v626_v35  ;;  %v656_v7 = vunpack.c.l.bf16 %v2211_v25  ;;  %v665_v8 = vunpack.c.h.bf16 %v2210_v9  ;;  %v2219_v9 = vld [vmem:[%s3278_s1 + $0x1b0] ss:$8 sps:$4 sm:$0xff]   ;;  %v2222_v35 = vld [vmem:[%s3277_s0 + $0x1c0] ss:$8 sps:$4 sm:$0xff]  }
  0x28   :  { %v2775_v21 = vmul.f32 %v643_v56, %v639_v52  ;;  %v669_v24 = vunpack.c.h.bf16 %v2211_v25  ;;  %v678_v25 = vunpack.c.l.bf16 %v2214_v45  ;;  %v682_v31 = vunpack.c.l.bf16 %v2215_v46  ;;  %v2223_v36 = vld [vmem:[%s3278_s1 + $0x1c0] ss:$8 sps:$4 sm:$0xff]  }
  0x29   :  { %v2783_v52 = vmul.f32 %v656_v7, %v652_v57  ;;  %v691_v45 = vunpack.c.h.bf16 %v2214_v45  ;;  %v695_v46 = vunpack.c.h.bf16 %v2215_v46  ;;  %v704_v56 = vunpack.c.l.bf16 %v2218_v62  ;;  %v2226_v57 = vld [vmem:[%s3277_s0 + $0x1d0] ss:$8 sps:$4 sm:$0xff]  }
  0x2a   :  { %v2788_v7 = vmul.f32 %v669_v24, %v665_v8  ;;  %v2790_v8 = vmul.f32 %v682_v31, %v678_v25  ;;  %v708_v24 = vunpack.c.l.bf16 %v2219_v9  ;;  %v717_v62 = vunpack.c.h.bf16 %v2218_v62  ;;  %v2227_v25 = vld [vmem:[%s3278_s1 + $0x1d0] ss:$8 sps:$4 sm:$0xff]  }
  0x2b   :  { %v2795_v31 = vmul.f32 %v695_v46, %v691_v45  ;;  %v721_v9 = vunpack.c.h.bf16 %v2219_v9  ;;  %v730_v45 = vunpack.c.l.bf16 %v2222_v35  ;;  %v734_v46 = vunpack.c.l.bf16 %v2223_v36 }
  0x2c   :  { %3280 = vst [vmem:[#allocation1_spill] sm:$0xff] %v2790_v8  ;;  %v2231_v8 = vld [vmem:[%s3278_s1 + $0x1e0] ss:$8 sps:$4 sm:$0xff]   ;;  %v2803_v56 = vmul.f32 %v708_v24, %v704_v56  ;;  %v743_v35 = vunpack.c.h.bf16 %v2222_v35  ;;  %v747_v36 = vunpack.c.h.bf16 %v2223_v36  ;;  %v756_v24 = vunpack.c.l.bf16 %v2226_v57 }
  0x2d   :  { %3281 = vst [vmem:[#allocation2_spill] sm:$0xff] %v2795_v31  ;;  %v2230_v31 = vld [vmem:[%s3277_s0 + $0x1e0] ss:$8 sps:$4 sm:$0xff]   ;;  %v2808_v62 = vmul.f32 %v721_v9, %v717_v62  ;;  %v2810_v9 = vmul.f32 %v734_v46, %v730_v45  ;;  %v760_v45 = vunpack.c.l.bf16 %v2227_v25  ;;  %v769_v57 = vunpack.c.h.bf16 %v2226_v57  ;;  %v2235_v46 = vld [vmem:[%s3278_s1 + $0x1f0] ss:$8 sps:$4 sm:$0xff]  }
  0x2e   :  { %3282 = vst [vmem:[#allocation3_spill] sm:$0xff] %v2803_v56  ;;  %v2234_v56 = vld [vmem:[%s3277_s0 + $0x1f0] ss:$8 sps:$4 sm:$0xff]   ;;  %v2815_v35 = vmul.f32 %v747_v36, %v743_v35  ;;  %v773_v25 = vunpack.c.h.bf16 %v2227_v25  ;;  %v782_v36 = vunpack.c.l.bf16 %v2230_v31  ;;  %v795_v31 = vunpack.c.h.bf16 %v2230_v31 }
  0x2f   :  { %3283 = vst [vmem:[#allocation4_spill] sm:$0xff] %v2808_v62  ;;  %3284 = vst [vmem:[#allocation5_spill] sm:$0xff] %v2810_v9  ;;  %v2238_v9 = vld [vmem:[%s3277_s0 + $0x4] ss:$8 sps:$4 sm:$0xff]   ;;  %v2823_v24 = vmul.f32 %v760_v45, %v756_v24  ;;  %v808_v45 = vunpack.c.l.bf16 %v2234_v56  ;;  %v821_v56 = vunpack.c.h.bf16 %v2234_v56 }
  0x30   :  { %3285 = vst [vmem:[#allocation6_spill] sm:$0xff] %v2815_v35  ;;  %v786_v35 = vunpack.c.l.bf16 %v2231_v8  ;;  %v2239_v62 = vld [vmem:[%s3278_s1 + $0x4] ss:$8 sps:$4 sm:$0xff]   ;;  %v799_v8 = vunpack.c.h.bf16 %v2231_v8  ;;  %v2828_v57 = vmul.f32 %v773_v25, %v769_v57  ;;  %v812_v25 = vunpack.c.l.bf16 %v2235_v46 }
  0x31   :  { %3286 = vst [vmem:[#allocation7_spill] sm:$0xff] %v2823_v24  ;;  %v2246_v24 = vld [vmem:[%s3277_s0 + $0x14] ss:$8 sps:$4 sm:$0xff]   ;;  %v825_v46 = vunpack.c.h.bf16 %v2235_v46 }
  0x32   :  { %3287 = vst [vmem:[#allocation8_spill] sm:$0xff] %v2828_v57  ;;  %v2830_v35 = vmul.f32 %v786_v35, %v782_v36  ;;  %v2247_v36 = vld [vmem:[%s3278_s1 + $0x14] ss:$8 sps:$4 sm:$0xff]   ;;  %v2835_v31 = vmul.f32 %v799_v8, %v795_v31  ;;  %v834_v8 = vunpack.c.l.bf16 %v2238_v9  ;;  %v2255_v57 = vld [vmem:[%s3278_s1 + $0x24] ss:$8 sps:$4 sm:$0xff]   ;;  %v2843_v45 = vmul.f32 %v812_v25, %v808_v45 }
  0x33   :  { %v852_v9 = vunpack.c.h.bf16 %v2238_v9  ;;  %v870_v25 = vunpack.c.l.bf16 %v2246_v24  ;;  %v2845_v56 = vmul.f32 %v825_v46, %v821_v56  ;;  %v874_v46 = vunpack.c.l.bf16 %v2247_v36 }
  0x34   :  { %3288 = vst [vmem:[#allocation9_spill] sm:$0xff] %v2830_v35  ;;  %3289 = vst [vmem:[#allocation10_spill] sm:$0xff] %v2835_v31  ;;  %v838_v31 = vunpack.c.l.bf16 %v2239_v62  ;;  %v2254_v35 = vld [vmem:[%s3277_s0 + $0x24] ss:$8 sps:$4 sm:$0xff]   ;;  %v856_v62 = vunpack.c.h.bf16 %v2239_v62  ;;  %v888_v24 = vunpack.c.h.bf16 %v2246_v24  ;;  %v892_v36 = vunpack.c.h.bf16 %v2247_v36 }
  0x35   :  { %3290 = vst [vmem:[#allocation11_spill] sm:$0xff] %v2843_v45  ;;  %3291 = vst [vmem:[#allocation12_spill] sm:$0xff] %v2845_v56  ;;  %v910_v56 = vunpack.c.l.bf16 %v2255_v57  ;;  %v2263_v45 = vld [vmem:[%s3278_s1 + $0x34] ss:$8 sps:$4 sm:$0xff]   ;;  %v878_v25 = vmul.f32 %v874_v46, %v870_v25  ;;  %v928_v57 = vunpack.c.h.bf16 %v2255_v57 }
  0x36   :  { %v842_v31 = vmul.f32 %v838_v31, %v834_v8  ;;  %v2262_v8 = vld [vmem:[%s3277_s0 + $0x34] ss:$8 sps:$4 sm:$0xff]   ;;  %v860_v9 = vmul.f32 %v856_v62, %v852_v9  ;;  %v906_v62 = vunpack.c.l.bf16 %v2254_v35  ;;  %v924_v35 = vunpack.c.h.bf16 %v2254_v35 }
  0x37   :  { %v896_v46 = vmul.f32 %v892_v36, %v888_v24  ;;  %v942_v24 = vunpack.c.l.bf16 %v2262_v8  ;;  %v884_v22 = vpack.c.bf16 %v878_v25, %v2543_v22  ;;  %v960_v8 = vunpack.c.h.bf16 %v2262_v8  ;;  %v2279_v25 = vld [vmem:[%s3278_s1 + $0x54] ss:$8 sps:$4 sm:$0xff]  }
  0x38   :  { %v848_v16 = vpack.c.bf16 %v842_v31, %v2533_v16  ;;  %v2270_v31 = vld [vmem:[%s3277_s0 + $0x44] ss:$8 sps:$4 sm:$0xff]   ;;  %v866_v17 = vpack.c.bf16 %v860_v9, %v2535_v17  ;;  %v914_v56 = vmul.f32 %v910_v56, %v906_v62  ;;  %v932_v36 = vmul.f32 %v928_v57, %v924_v35 }
  0x39   :  { %v2271_v9 = vld [vmem:[%s3278_s1 + $0x44] ss:$8 sps:$4 sm:$0xff]   ;;  %v946_v62 = vunpack.c.l.bf16 %v2263_v45  ;;  %v902_v23 = vpack.c.bf16 %v896_v46, %v2545_v23  ;;  %v964_v45 = vunpack.c.h.bf16 %v2263_v45  ;;  %v978_v35 = vunpack.c.l.bf16 %v2270_v31  ;;  %2249 = vst [vmem:[%s3279_s2 + $0x10] sm:$0xff] %v884_v22 }
  0x3a   :  { %2241 = vst [vmem:[%s3279_s2] sm:$0xff] %v848_v16  ;;  %v2278_v16 = vld [vmem:[%s3277_s0 + $0x54] ss:$8 sps:$4 sm:$0xff]   ;;  %2245 = vst [vmem:[%s3279_s2 + $0x8] sm:$0xff] %v866_v17  ;;  %v920_v27 = vpack.c.bf16 %v914_v56, %v2550_v27  ;;  %v938_v32 = vpack.c.bf16 %v932_v36, %v2555_v32  ;;  %v982_v17 = vunpack.c.l.bf16 %v2271_v9  ;;  %v996_v31 = vunpack.c.h.bf16 %v2270_v31  ;;  %v2286_v46 = vld [vmem:[%s3277_s0 + $0x64] ss:$8 sps:$4 sm:$0xff]  }
  0x3b   :  { %v950_v57 = vmul.f32 %v946_v62, %v942_v24  ;;  %2253 = vst [vmem:[%s3279_s2 + $0x18] sm:$0xff] %v902_v23  ;;  %v968_v56 = vmul.f32 %v964_v45, %v960_v8  ;;  %v1000_v24 = vunpack.c.h.bf16 %v2271_v9  ;;  %v1014_v9 = vunpack.c.l.bf16 %v2278_v16  ;;  %v2287_v36 = vld [vmem:[%s3278_s1 + $0x64] ss:$8 sps:$4 sm:$0xff]  }
  0x3c   :  { %2257 = vst [vmem:[%s3279_s2 + $0x20] sm:$0xff] %v920_v27  ;;  %v1018_v22 = vunpack.c.l.bf16 %v2279_v25  ;;  %2261 = vst [vmem:[%s3279_s2 + $0x28] sm:$0xff] %v938_v32  ;;  %v986_v62 = vmul.f32 %v982_v17, %v978_v35  ;;  %v1032_v8 = vunpack.c.h.bf16 %v2278_v16  ;;  %v1036_v16 = vunpack.c.h.bf16 %v2279_v25  ;;  %v2294_v25 = vld [vmem:[%s3277_s0 + $0x74] ss:$8 sps:$4 sm:$0xff]  }
  0x3d   :  { %v956_v38 = vpack.c.bf16 %v950_v57, %v2563_v38  ;;  %v974_v43 = vpack.c.bf16 %v968_v56, %v2568_v43  ;;  %v1004_v23 = vmul.f32 %v1000_v24, %v996_v31  ;;  %v1050_v45 = vunpack.c.l.bf16 %v2286_v46  ;;  %v2295_v35 = vld [vmem:[%s3278_s1 + $0x74] ss:$8 sps:$4 sm:$0xff]   ;;  %v2302_v31 = vld [vmem:[%s3277_s0 + $0x84] ss:$8 sps:$4 sm:$0xff]  }
  0x3e   :  { %v1022_v27 = vmul.f32 %v1018_v22, %v1014_v9  ;;  %v992_v44 = vpack.c.bf16 %v986_v62, %v2570_v44  ;;  %v1040_v32 = vmul.f32 %v1036_v16, %v1032_v8  ;;  %v1054_v57 = vunpack.c.l.bf16 %v2287_v36 }
  0x3f   :  { %2265 = vst [vmem:[%s3279_s2 + $0x30] sm:$0xff] %v956_v38  ;;  %v1068_v17 = vunpack.c.h.bf16 %v2286_v46  ;;  %v2303_v46 = vld [vmem:[%s3278_s1 + $0x84] ss:$8 sps:$4 sm:$0xff]   ;;  %2269 = vst [vmem:[%s3279_s2 + $0x38] sm:$0xff] %v974_v43  ;;  %v1010_v48 = vpack.c.bf16 %v1004_v23, %v2575_v48  ;;  %v1072_v56 = vunpack.c.h.bf16 %v2287_v36  ;;  %v1086_v24 = vunpack.c.l.bf16 %v2294_v25  ;;  %v2310_v38 = vld [vmem:[%s3277_s0 + $0x94] ss:$8 sps:$4 sm:$0xff]  }
  0x40   :  { %v1028_v54 = vpack.c.bf16 %v1022_v27, %v2583_v54  ;;  %2273 = vst [vmem:[%s3279_s2 + $0x40] sm:$0xff] %v992_v44  ;;  %v1046_v59 = vpack.c.bf16 %v1040_v32, %v2588_v59  ;;  %v1058_v9 = vmul.f32 %v1054_v57, %v1050_v45  ;;  %v1090_v22 = vunpack.c.l.bf16 %v2295_v35  ;;  %v2311_v43 = vld [vmem:[%s3278_s1 + $0x94] ss:$8 sps:$4 sm:$0xff]  }
  0x41   :  { %v1104_v36 = vunpack.c.h.bf16 %v2294_v25  ;;  %2277 = vst [vmem:[%s3279_s2 + $0x48] sm:$0xff] %v1010_v48  ;;  %v1076_v62 = vmul.f32 %v1072_v56, %v1068_v17  ;;  %v1108_v8 = vunpack.c.h.bf16 %v2295_v35  ;;  %v1122_v16 = vunpack.c.l.bf16 %v2302_v31  ;;  %v2318_v35 = vld [vmem:[%s3277_s0 + $0xa4] ss:$8 sps:$4 sm:$0xff]   ;;  %v2327_v56 = vld [vmem:[%s3278_s1 + $0xb4] ss:$8 sps:$4 sm:$0xff]  }
  0x42   :  { %2281 = vst [vmem:[%s3279_s2 + $0x50] sm:$0xff] %v1028_v54  ;;  %v1126_v25 = vunpack.c.l.bf16 %v2303_v46  ;;  %2285 = vst [vmem:[%s3279_s2 + $0x58] sm:$0xff] %v1046_v59  ;;  %v1064_v60 = vpack.c.bf16 %v1058_v9, %v2590_v60  ;;  %v1094_v23 = vmul.f32 %v1090_v22, %v1086_v24  ;;  %v1140_v27 = vunpack.c.h.bf16 %v2302_v31  ;;  %v2319_v17 = vld [vmem:[%s3278_s1 + $0xa4] ss:$8 sps:$4 sm:$0xff]   ;;  %v2326_v54 = vld [vmem:[%s3277_s0 + $0xb4] ss:$8 sps:$4 sm:$0xff]  }
  0x43   :  { %v1144_v45 = vunpack.c.h.bf16 %v2303_v46  ;;  %v1082_v0 = vpack.c.bf16 %v1076_v62, %v2595_v0  ;;  %v1112_v44 = vmul.f32 %v1108_v8, %v1104_v36  ;;  %v1158_v57 = vunpack.c.l.bf16 %v2310_v38 }
  0x44   :  { %v1130_v32 = vmul.f32 %v1126_v25, %v1122_v16  ;;  %2289 = vst [vmem:[%s3279_s2 + $0x60] sm:$0xff] %v1064_v60  ;;  %v1100_v6 = vpack.c.bf16 %v1094_v23, %v2603_v6  ;;  %v1162_v46 = vunpack.c.l.bf16 %v2311_v43  ;;  %v1176_v48 = vunpack.c.h.bf16 %v2310_v38  ;;  %v2334_v38 = vld [vmem:[%s3277_s0 + $0xc4] ss:$8 sps:$4 sm:$0xff]  }
  0x45   :  { %v1148_v31 = vmul.f32 %v1144_v45, %v1140_v27  ;;  %2293 = vst [vmem:[%s3279_s2 + $0x68] sm:$0xff] %v1082_v0  ;;  %v1118_v11 = vpack.c.bf16 %v1112_v44, %v2608_v11  ;;  %v1180_v24 = vunpack.c.h.bf16 %v2311_v43  ;;  %v1194_v59 = vunpack.c.l.bf16 %v2318_v35  ;;  %v2335_v43 = vld [vmem:[%s3278_s1 + $0xc4] ss:$8 sps:$4 sm:$0xff]   ;;  %v2342_v45 = vld [vmem:[%s3277_s0 + $0xd4] ss:$8 sps:$4 sm:$0xff]  }
  0x46   :  { %v1136_v12 = vpack.c.bf16 %v1130_v32, %v2610_v12  ;;  %2297 = vst [vmem:[%s3279_s2 + $0x70] sm:$0xff] %v1100_v6  ;;  %v1166_v9 = vmul.f32 %v1162_v46, %v1158_v57  ;;  %v1198_v22 = vunpack.c.l.bf16 %v2319_v17  ;;  %v1212_v36 = vunpack.c.h.bf16 %v2318_v35  ;;  %v2343_v32 = vld [vmem:[%s3278_s1 + $0xd4] ss:$8 sps:$4 sm:$0xff]   ;;  %v2351_v46 = vld [vmem:[%s3278_s1 + $0xe4] ss:$8 sps:$4 sm:$0xff]  }
  0x47   :  { %v1154_v18 = vpack.c.bf16 %v1148_v31, %v2615_v18  ;;  %2301 = vst [vmem:[%s3279_s2 + $0x78] sm:$0xff] %v1118_v11  ;;  %v1184_v62 = vmul.f32 %v1180_v24, %v1176_v48  ;;  %v1216_v8 = vunpack.c.h.bf16 %v2319_v17  ;;  %v1230_v16 = vunpack.c.l.bf16 %v2326_v54  ;;  %v2350_v31 = vld [vmem:[%s3277_s0 + $0xe4] ss:$8 sps:$4 sm:$0xff]   ;;  %v2358_v24 = vld [vmem:[%s3277_s0 + $0xf4] ss:$8 sps:$4 sm:$0xff]  }
  0x48   :  { %2305 = vst [vmem:[%s3279_s2 + $0x80] sm:$0xff] %v1136_v12  ;;  %v1234_v25 = vunpack.c.l.bf16 %v2327_v56  ;;  %v1172_v26 = vpack.c.bf16 %v1166_v9, %v2623_v26  ;;  %v1202_v60 = vmul.f32 %v1198_v22, %v1194_v59  ;;  %v1248_v23 = vunpack.c.h.bf16 %v2326_v54 }
  0x49   :  { %2309 = vst [vmem:[%s3279_s2 + $0x88] sm:$0xff] %v1154_v18  ;;  %v1252_v27 = vunpack.c.h.bf16 %v2327_v56  ;;  %v1190_v33 = vpack.c.bf16 %v1184_v62, %v2628_v33  ;;  %v1220_v35 = vmul.f32 %v1216_v8, %v1212_v36  ;;  %v1266_v44 = vunpack.c.l.bf16 %v2334_v38  ;;  %v2359_v36 = vld [vmem:[%s3278_s1 + $0xf4] ss:$8 sps:$4 sm:$0xff]  }
  0x4a   :  { %v1238_v0 = vmul.f32 %v1234_v25, %v1230_v16  ;;  %2313 = vst [vmem:[%s3279_s2 + $0x90] sm:$0xff] %v1172_v26  ;;  %v1208_v34 = vpack.c.bf16 %v1202_v60, %v2630_v34  ;;  %v1270_v17 = vunpack.c.l.bf16 %v2335_v43  ;;  %v1284_v6 = vunpack.c.h.bf16 %v2334_v38  ;;  %v2366_v16 = vld [vmem:[%s3277_s0 + $0x104] ss:$8 sps:$4 sm:$0xff]  }
  0x4b   :  { %v1256_v57 = vmul.f32 %v1252_v27, %v1248_v23  ;;  %2317 = vst [vmem:[%s3279_s2 + $0x98] sm:$0xff] %v1190_v33  ;;  %v1226_v39 = vpack.c.bf16 %v1220_v35, %v2635_v39  ;;  %v1288_v48 = vunpack.c.h.bf16 %v2335_v43  ;;  %v1302_v54 = vunpack.c.l.bf16 %v2342_v45  ;;  %v2367_v60 = vld [vmem:[%s3278_s1 + $0x104] ss:$8 sps:$4 sm:$0xff]   ;;  %v2374_v33 = vld [vmem:[%s3277_s0 + $0x114] ss:$8 sps:$4 sm:$0xff]  }
  0x4c   :  { %v1244_v47 = vpack.c.bf16 %v1238_v0, %v2643_v47  ;;  %2321 = vst [vmem:[%s3279_s2 + $0xa0] sm:$0xff] %v1208_v34  ;;  %v1274_v56 = vmul.f32 %v1270_v17, %v1266_v44  ;;  %v1306_v11 = vunpack.c.l.bf16 %v2343_v32  ;;  %v1320_v12 = vunpack.c.h.bf16 %v2342_v45  ;;  %v2375_v35 = vld [vmem:[%s3278_s1 + $0x114] ss:$8 sps:$4 sm:$0xff]   ;;  %v2382_v17 = vld [vmem:[%s3277_s0 + $0x124] ss:$8 sps:$4 sm:$0xff]  }
  0x4d   :  { %v1262_v53 = vpack.c.bf16 %v1256_v57, %v2648_v53  ;;  %2325 = vst [vmem:[%s3279_s2 + $0xa8] sm:$0xff] %v1226_v39  ;;  %v1292_v59 = vmul.f32 %v1288_v48, %v1284_v6  ;;  %v1324_v18 = vunpack.c.h.bf16 %v2343_v32  ;;  %v1338_v9 = vunpack.c.l.bf16 %v2350_v31 }
  0x4e   :  { %2329 = vst [vmem:[%s3279_s2 + $0xb0] sm:$0xff] %v1244_v47  ;;  %v1342_v22 = vunpack.c.l.bf16 %v2351_v46  ;;  %v1280_v55 = vpack.c.bf16 %v1274_v56, %v2650_v55  ;;  %v1310_v38 = vmul.f32 %v1306_v11, %v1302_v54  ;;  %v1356_v62 = vunpack.c.h.bf16 %v2350_v31  ;;  %v2383_v47 = vld [vmem:[%s3278_s1 + $0x124] ss:$8 sps:$4 sm:$0xff]   ;;  %v2390_v56 = vld [vmem:[%s3277_s0 + $0x134] ss:$8 sps:$4 sm:$0xff]  }
  0x4f   :  { %2333 = vst [vmem:[%s3279_s2 + $0xb8] sm:$0xff] %v1262_v53  ;;  %v1360_v8 = vunpack.c.h.bf16 %v2351_v46  ;;  %v1298_v61 = vpack.c.bf16 %v1292_v59, %v2655_v61  ;;  %v1328_v25 = vmul.f32 %v1324_v18, %v1320_v12  ;;  %v1374_v26 = vunpack.c.l.bf16 %v2358_v24  ;;  %v2391_v59 = vld [vmem:[%s3278_s1 + $0x134] ss:$8 sps:$4 sm:$0xff]  }
  0x50   :  { %v1346_v43 = vmul.f32 %v1342_v22, %v1338_v9  ;;  %2337 = vst [vmem:[%s3279_s2 + $0xc0] sm:$0xff] %v1280_v55  ;;  %v1316_v4 = vpack.c.bf16 %v1310_v38, %v2663_v4  ;;  %v1378_v27 = vunpack.c.l.bf16 %v2359_v36  ;;  %v1392_v45 = vunpack.c.h.bf16 %v2358_v24  ;;  %v2399_v55 = vld [vmem:[%s3278_s1 + $0x144] ss:$8 sps:$4 sm:$0xff]  }
  0x51   :  { %v1364_v23 = vmul.f32 %v1360_v8, %v1356_v62  ;;  %2341 = vst [vmem:[%s3279_s2 + $0xc8] sm:$0xff] %v1298_v61  ;;  %v1334_v10 = vpack.c.bf16 %v1328_v25, %v2668_v10  ;;  %v1396_v0 = vunpack.c.h.bf16 %v2359_v36  ;;  %v1410_v44 = vunpack.c.l.bf16 %v2366_v16  ;;  %v2398_v36 = vld [vmem:[%s3277_s0 + $0x144] ss:$8 sps:$4 sm:$0xff]   ;;  %v2406_v25 = vld [vmem:[%s3277_s0 + $0x154] ss:$8 sps:$4 sm:$0xff]  }
  0x52   :  { %v1352_v13 = vpack.c.bf16 %v1346_v43, %v2670_v13  ;;  %2345 = vst [vmem:[%s3279_s2 + $0xd0] sm:$0xff] %v1316_v4  ;;  %v1382_v32 = vmul.f32 %v1378_v27, %v1374_v26  ;;  %v1414_v34 = vunpack.c.l.bf16 %v2367_v60  ;;  %v1428_v57 = vunpack.c.h.bf16 %v2366_v16 }
  0x53   :  { %v1370_v20 = vpack.c.bf16 %v1364_v23, %v2675_v20  ;;  %2349 = vst [vmem:[%s3279_s2 + $0xd8] sm:$0xff] %v1334_v10  ;;  %v1400_v6 = vmul.f32 %v1396_v0, %v1392_v45  ;;  %v1432_v31 = vunpack.c.h.bf16 %v2367_v60  ;;  %v1446_v46 = vunpack.c.l.bf16 %v2374_v33  ;;  %v2407_v23 = vld [vmem:[%s3278_s1 + $0x154] ss:$8 sps:$4 sm:$0xff]  }
  0x54   :  { %2353 = vst [vmem:[%s3279_s2 + $0xe0] sm:$0xff] %v1352_v13  ;;  %v1450_v39 = vunpack.c.l.bf16 %v2375_v35  ;;  %v1388_v30 = vpack.c.bf16 %v1382_v32, %v2683_v30  ;;  %v1418_v48 = vmul.f32 %v1414_v34, %v1410_v44  ;;  %v1464_v54 = vunpack.c.h.bf16 %v2374_v33  ;;  %v2415_v44 = vld [vmem:[%s3278_s1 + $0x164] ss:$8 sps:$4 sm:$0xff]  }
  0x55   :  { %2357 = vst [vmem:[%s3279_s2 + $0xe8] sm:$0xff] %v1370_v20  ;;  %v1468_v53 = vunpack.c.h.bf16 %v2375_v35  ;;  %v1406_v40 = vpack.c.bf16 %v1400_v6, %v2688_v40  ;;  %v1436_v11 = vmul.f32 %v1432_v31, %v1428_v57  ;;  %v1482_v24 = vunpack.c.l.bf16 %v2382_v17  ;;  %v2414_v35 = vld [vmem:[%s3277_s0 + $0x164] ss:$8 sps:$4 sm:$0xff]   ;;  %v2422_v57 = vld [vmem:[%s3277_s0 + $0x174] ss:$8 sps:$4 sm:$0xff]  }
  0x56   :  { %v1454_v12 = vmul.f32 %v1450_v39, %v1446_v46  ;;  %2361 = vst [vmem:[%s3279_s2 + $0xf0] sm:$0xff] %v1388_v30  ;;  %v1424_v41 = vpack.c.bf16 %v1418_v48, %v2690_v41  ;;  %v1486_v9 = vunpack.c.l.bf16 %v2383_v47  ;;  %v1500_v22 = vunpack.c.h.bf16 %v2382_v17  ;;  %v2423_v17 = vld [vmem:[%s3278_s1 + $0x174] ss:$8 sps:$4 sm:$0xff]   ;;  %v2430_v30 = vld [vmem:[%s3277_s0 + $0x184] ss:$8 sps:$4 sm:$0xff]  }
  0x57   :  { %v1472_v18 = vmul.f32 %v1468_v53, %v1464_v54  ;;  %2365 = vst [vmem:[%s3279_s2 + $0xf8] sm:$0xff] %v1406_v40  ;;  %v1442_v49 = vpack.c.bf16 %v1436_v11, %v2695_v49  ;;  %v1504_v38 = vunpack.c.h.bf16 %v2383_v47  ;;  %v1518_v62 = vunpack.c.l.bf16 %v2390_v56  ;;  %v2431_v40 = vld [vmem:[%s3278_s1 + $0x184] ss:$8 sps:$4 sm:$0xff]  }
  0x58   :  { %v1460_v58 = vpack.c.bf16 %v1454_v12, %v2703_v58  ;;  %2369 = vst [vmem:[%s3279_s2 + $0x100] sm:$0xff] %v1424_v41  ;;  %v1490_v8 = vmul.f32 %v1486_v9, %v1482_v24  ;;  %v1522_v16 = vunpack.c.l.bf16 %v2391_v59  ;;  %v1536_v61 = vunpack.c.h.bf16 %v2390_v56 }
  0x59   :  { %v1478_v3 = vpack.c.bf16 %v1472_v18, %v2708_v3  ;;  %2373 = vst [vmem:[%s3279_s2 + $0x108] sm:$0xff] %v1442_v49  ;;  %v1508_v43 = vmul.f32 %v1504_v38, %v1500_v22  ;;  %v1540_v26 = vunpack.c.h.bf16 %v2391_v59  ;;  %v1554_v60 = vunpack.c.l.bf16 %v2398_v36  ;;  %v2438_v59 = vld [vmem:[%s3277_s0 + $0x194] ss:$8 sps:$4 sm:$0xff]   ;;  %v2447_v38 = vld [vmem:[%s3278_s1 + $0x1a4] ss:$8 sps:$4 sm:$0xff]  }
  0x5a   :  { %2377 = vst [vmem:[%s3279_s2 + $0x110] sm:$0xff] %v1460_v58  ;;  %v1558_v4 = vunpack.c.l.bf16 %v2399_v55  ;;  %v1496_v5 = vpack.c.bf16 %v1490_v8, %v2710_v5  ;;  %v1526_v27 = vmul.f32 %v1522_v16, %v1518_v62  ;;  %v1572_v45 = vunpack.c.h.bf16 %v2398_v36  ;;  %v2439_v22 = vld [vmem:[%s3278_s1 + $0x194] ss:$8 sps:$4 sm:$0xff]   ;;  %v2446_v58 = vld [vmem:[%s3277_s0 + $0x1a4] ss:$8 sps:$4 sm:$0xff]  }
  0x5b   :  { %2381 = vst [vmem:[%s3279_s2 + $0x118] sm:$0xff] %v1478_v3  ;;  %v1576_v33 = vunpack.c.h.bf16 %v2399_v55  ;;  %v1514_v14 = vpack.c.bf16 %v1508_v43, %v2715_v14  ;;  %v1544_v10 = vmul.f32 %v1540_v26, %v1536_v61  ;;  %v1590_v0 = vunpack.c.l.bf16 %v2406_v25 }
  0x5c   :  { %v1562_v13 = vmul.f32 %v1558_v4, %v1554_v60  ;;  %2385 = vst [vmem:[%s3279_s2 + $0x120] sm:$0xff] %v1496_v5  ;;  %v1532_v28 = vpack.c.bf16 %v1526_v27, %v2723_v28  ;;  %v1594_v32 = vunpack.c.l.bf16 %v2407_v23  ;;  %v1608_v34 = vunpack.c.h.bf16 %v2406_v25  ;;  %v2454_v25 = vld [vmem:[%s3277_s0 + $0x1b4] ss:$8 sps:$4 sm:$0xff]  }
  0x5d   :  { %v1580_v20 = vmul.f32 %v1576_v33, %v1572_v45  ;;  %2389 = vst [vmem:[%s3279_s2 + $0x128] sm:$0xff] %v1514_v14  ;;  %v1550_v37 = vpack.c.bf16 %v1544_v10, %v2728_v37  ;;  %v1612_v6 = vunpack.c.h.bf16 %v2407_v23  ;;  %v1626_v31 = vunpack.c.l.bf16 %v2414_v35  ;;  %v2455_v23 = vld [vmem:[%s3278_s1 + $0x1b4] ss:$8 sps:$4 sm:$0xff]   ;;  %v2462_v33 = vld [vmem:[%s3277_s0 + $0x1c4] ss:$8 sps:$4 sm:$0xff]  }
  0x5e   :  { %v1568_v42 = vpack.c.bf16 %v1562_v13, %v2730_v42  ;;  %2393 = vst [vmem:[%s3279_s2 + $0x130] sm:$0xff] %v1532_v28  ;;  %v1598_v46 = vmul.f32 %v1594_v32, %v1590_v0  ;;  %v1630_v39 = vunpack.c.l.bf16 %v2415_v44  ;;  %v1644_v47 = vunpack.c.h.bf16 %v2414_v35  ;;  %v2463_v13 = vld [vmem:[%s3278_s1 + $0x1c4] ss:$8 sps:$4 sm:$0xff]   ;;  %v2471_v32 = vld [vmem:[%s3278_s1 + $0x1d4] ss:$8 sps:$4 sm:$0xff]  }
  0x5f   :  { %v1586_v51 = vpack.c.bf16 %v1580_v20, %v2735_v51  ;;  %2397 = vst [vmem:[%s3279_s2 + $0x138] sm:$0xff] %v1550_v37  ;;  %v1616_v48 = vmul.f32 %v1612_v6, %v1608_v34  ;;  %v1648_v54 = vunpack.c.h.bf16 %v2415_v44  ;;  %v1662_v53 = vunpack.c.l.bf16 %v2422_v57  ;;  %v2470_v20 = vld [vmem:[%s3277_s0 + $0x1d4] ss:$8 sps:$4 sm:$0xff]   ;;  %v3292_v34 = vld [vmem:[#allocation1_spill] sm:$0xff] }
  0x60   :  { %2401 = vst [vmem:[%s3279_s2 + $0x140] sm:$0xff] %v1568_v42  ;;  %v1666_v56 = vunpack.c.l.bf16 %v2423_v17  ;;  %v1604_v1 = vpack.c.bf16 %v1598_v46, %v2743_v1  ;;  %v1634_v11 = vmul.f32 %v1630_v39, %v1626_v31  ;;  %v1680_v12 = vunpack.c.h.bf16 %v2422_v57  ;;  %v3293_v42 = vld [vmem:[#allocation2_spill] sm:$0xff] }
  0x61   :  { %2405 = vst [vmem:[%s3279_s2 + $0x148] sm:$0xff] %v1586_v51  ;;  %v1684_v24 = vunpack.c.h.bf16 %v2423_v17  ;;  %v1622_v15 = vpack.c.bf16 %v1616_v48, %v2748_v15  ;;  %v1652_v41 = vmul.f32 %v1648_v54, %v1644_v47  ;;  %v1698_v9 = vunpack.c.l.bf16 %v2430_v30  ;;  %v2478_v39 = vld [vmem:[%s3277_s0 + $0x1e4] ss:$8 sps:$4 sm:$0xff]  }
  0x62   :  { %v1670_v18 = vmul.f32 %v1666_v56, %v1662_v53  ;;  %2409 = vst [vmem:[%s3279_s2 + $0x150] sm:$0xff] %v1604_v1  ;;  %v1640_v19 = vpack.c.bf16 %v1634_v11, %v2750_v19  ;;  %v1702_v55 = vunpack.c.l.bf16 %v2431_v40  ;;  %v1716_v49 = vunpack.c.h.bf16 %v2430_v30  ;;  %v2479_v53 = vld [vmem:[%s3278_s1 + $0x1e4] ss:$8 sps:$4 sm:$0xff]   ;;  %v3294_v56 = vld [vmem:[#allocation3_spill] sm:$0xff] }
  0x63   :  { %v1688_v36 = vmul.f32 %v1684_v24, %v1680_v12  ;;  %2413 = vst [vmem:[%s3279_s2 + $0x158] sm:$0xff] %v1622_v15  ;;  %v1658_v29 = vpack.c.bf16 %v1652_v41, %v2755_v29  ;;  %v1720_v62 = vunpack.c.h.bf16 %v2431_v40  ;;  %v1734_v3 = vunpack.c.l.bf16 %v2438_v59  ;;  %v2486_v24 = vld [vmem:[%s3277_s0 + $0x1f4] ss:$8 sps:$4 sm:$0xff]  }
  0x64   :  { %v1676_v50 = vpack.c.bf16 %v1670_v18, %v2763_v50  ;;  %2417 = vst [vmem:[%s3279_s2 + $0x160] sm:$0xff] %v1640_v19  ;;  %v1706_v8 = vmul.f32 %v1702_v55, %v1698_v9  ;;  %v1738_v16 = vunpack.c.l.bf16 %v2439_v22  ;;  %v1752_v61 = vunpack.c.h.bf16 %v2438_v59  ;;  %v3295_v59 = vld [vmem:[#allocation4_spill] sm:$0xff]  ;;  %v3296_v19 = vld [vmem:[#allocation5_spill] sm:$0xff] }
  0x65   :  { %v1694_v63 = vpack.c.bf16 %v1688_v36, %v2768_v63  ;;  %2421 = vst [vmem:[%s3279_s2 + $0x168] sm:$0xff] %v1658_v29  ;;  %v1724_v43 = vmul.f32 %v1720_v62, %v1716_v49  ;;  %v1756_v26 = vunpack.c.h.bf16 %v2439_v22  ;;  %v1770_v60 = vunpack.c.l.bf16 %v2446_v58  ;;  %v2487_v22 = vld [vmem:[%s3278_s1 + $0x1f4] ss:$8 sps:$4 sm:$0xff]  }
  0x66   :  { %2425 = vst [vmem:[%s3279_s2 + $0x170] sm:$0xff] %v1676_v50  ;;  %v1774_v4 = vunpack.c.l.bf16 %v2447_v38  ;;  %v1712_v2 = vpack.c.bf16 %v1706_v8, %v2770_v2  ;;  %v1742_v5 = vmul.f32 %v1738_v16, %v1734_v3  ;;  %v1788_v27 = vunpack.c.h.bf16 %v2446_v58  ;;  %v3298_v50 = vld [vmem:[#allocation7_spill] sm:$0xff]  ;;  %v3299_v8 = vld [vmem:[#allocation8_spill] sm:$0xff] }
  0x67   :  { %2429 = vst [vmem:[%s3279_s2 + $0x178] sm:$0xff] %v1694_v63  ;;  %v1792_v45 = vunpack.c.h.bf16 %v2447_v38  ;;  %v1730_v21 = vpack.c.bf16 %v1724_v43, %v2775_v21  ;;  %v1760_v35 = vmul.f32 %v1756_v26, %v1752_v61  ;;  %v1806_v10 = vunpack.c.l.bf16 %v2454_v25  ;;  %v3297_v38 = vld [vmem:[#allocation6_spill] sm:$0xff] }
  0x68   :  { %v1778_v14 = vmul.f32 %v1774_v4, %v1770_v60  ;;  %2433 = vst [vmem:[%s3279_s2 + $0x180] sm:$0xff] %v1712_v2  ;;  %v1748_v52 = vpack.c.bf16 %v1742_v5, %v2783_v52  ;;  %v1810_v44 = vunpack.c.l.bf16 %v2455_v23  ;;  %v1824_v28 = vunpack.c.h.bf16 %v2454_v25  ;;  %v3300_v4 = vld [vmem:[#allocation9_spill] sm:$0xff]  ;;  %v3301_v5 = vld [vmem:[#allocation10_spill] sm:$0xff] }
  0x69   :  { %v1796_v0 = vmul.f32 %v1792_v45, %v1788_v27  ;;  %2437 = vst [vmem:[%s3279_s2 + $0x188] sm:$0xff] %v1730_v21  ;;  %v1766_v7 = vpack.c.bf16 %v1760_v35, %v2788_v7  ;;  %v1828_v17 = vunpack.c.h.bf16 %v2455_v23  ;;  %v1842_v37 = vunpack.c.l.bf16 %v2462_v33  ;;  %v3303_v35 = vld [vmem:[#allocation12_spill] sm:$0xff] }
  0x6a   :  { %v1784_v57 = vpack.c.bf16 %v1778_v14, %v3292_v34  ;;  %2441 = vst [vmem:[%s3279_s2 + $0x190] sm:$0xff] %v1748_v52  ;;  %v1814_v31 = vmul.f32 %v1810_v44, %v1806_v10  ;;  %v1846_v51 = vunpack.c.l.bf16 %v2463_v13  ;;  %v1860_v46 = vunpack.c.h.bf16 %v2462_v33  ;;  %v3302_v33 = vld [vmem:[#allocation11_spill] sm:$0xff] }
  0x6b   :  { %v1802_v6 = vpack.c.bf16 %v1796_v0, %v3293_v42  ;;  %2445 = vst [vmem:[%s3279_s2 + $0x198] sm:$0xff] %v1766_v7  ;;  %v1832_v47 = vmul.f32 %v1828_v17, %v1824_v28  ;;  %v1864_v30 = vunpack.c.h.bf16 %v2463_v13  ;;  %v1878_v48 = vunpack.c.l.bf16 %v2470_v20 }
  0x6c   :  { %2449 = vst [vmem:[%s3279_s2 + $0x1a0] sm:$0xff] %v1784_v57  ;;  %v1882_v54 = vunpack.c.l.bf16 %v2471_v32  ;;  %v1820_v40 = vpack.c.bf16 %v1814_v31, %v3294_v56  ;;  %v1850_v1 = vmul.f32 %v1846_v51, %v1842_v37  ;;  %v1896_v11 = vunpack.c.h.bf16 %v2470_v20 }
  0x6d   :  { %2453 = vst [vmem:[%s3279_s2 + $0x1a8] sm:$0xff] %v1802_v6  ;;  %v1900_v12 = vunpack.c.h.bf16 %v2471_v32  ;;  %v1838_v15 = vpack.c.bf16 %v1832_v47, %v3295_v59  ;;  %v1868_v41 = vmul.f32 %v1864_v30, %v1860_v46  ;;  %v1914_v9 = vunpack.c.l.bf16 %v2478_v39 }
  0x6e   :  { %v1886_v18 = vmul.f32 %v1882_v54, %v1878_v48  ;;  %2457 = vst [vmem:[%s3279_s2 + $0x1b0] sm:$0xff] %v1820_v40  ;;  %v1856_v36 = vpack.c.bf16 %v1850_v1, %v3296_v19  ;;  %v1918_v49 = vunpack.c.l.bf16 %v2479_v53  ;;  %v1932_v58 = vunpack.c.h.bf16 %v2478_v39 }
  0x6f   :  { %v1904_v55 = vmul.f32 %v1900_v12, %v1896_v11  ;;  %2461 = vst [vmem:[%s3279_s2 + $0x1b8] sm:$0xff] %v1838_v15  ;;  %v1874_v29 = vpack.c.bf16 %v1868_v41, %v3297_v38  ;;  %v1936_v3 = vunpack.c.h.bf16 %v2479_v53  ;;  %v1950_v63 = vunpack.c.l.bf16 %v2486_v24 }
  0x70   :  { %v1892_v62 = vpack.c.bf16 %v1886_v18, %v3298_v50  ;;  %2465 = vst [vmem:[%s3279_s2 + $0x1c0] sm:$0xff] %v1856_v36  ;;  %v1922_v61 = vmul.f32 %v1918_v49, %v1914_v9  ;;  %v1954_v25 = vunpack.c.l.bf16 %v2487_v22  ;;  %v1968_v43 = vunpack.c.h.bf16 %v2486_v24 }
  0x71   :  { %v1910_v16 = vpack.c.bf16 %v1904_v55, %v3299_v8  ;;  %2469 = vst [vmem:[%s3279_s2 + $0x1c8] sm:$0xff] %v1874_v29  ;;  %v1940_v26 = vmul.f32 %v1936_v3, %v1932_v58  ;;  %v1972_v60 = vunpack.c.h.bf16 %v2487_v22 }
  0x72   :  { %2473 = vst [vmem:[%s3279_s2 + $0x1d0] sm:$0xff] %v1892_v62  ;;  %v1928_v23 = vpack.c.bf16 %v1922_v61, %v3300_v4  ;;  %v1958_v2 = vmul.f32 %v1954_v25, %v1950_v63 }
  0x73   :  { %2477 = vst [vmem:[%s3279_s2 + $0x1d8] sm:$0xff] %v1910_v16  ;;  %v1946_v27 = vpack.c.bf16 %v1940_v26, %v3301_v5  ;;  %v1976_v45 = vmul.f32 %v1972_v60, %v1968_v43 }
  0x74   :  { %2481 = vst [vmem:[%s3279_s2 + $0x1e0] sm:$0xff] %v1928_v23  ;;  %v1964_v21 = vpack.c.bf16 %v1958_v2, %v3302_v33 }
  0x75   :  { %2485 = vst [vmem:[%s3279_s2 + $0x1e8] sm:$0xff] %v1946_v27  ;;  %v1982_v14 = vpack.c.bf16 %v1976_v45, %v3303_v35 }
  0x76   :  { %2489 = vst [vmem:[%s3279_s2 + $0x1f0] sm:$0xff] %v1964_v21 }
  0x77   :  { %2493 = vst [vmem:[%s3279_s2 + $0x1f8] sm:$0xff] %v1982_v14 }

// kernel: alpha_hb_decoder_forward.5
= control target key start
LH: loop header
LB: loop body
LE: loop exit
PB: predicated region body
PF: predicated region fallthrough
CT: control target
= control target key end

     0   :  { %s1249_s12 = smov 0   ;;  %s1251_s13 = smov 0   ;;  %s1479_s0 = inlined_call_operand.vmem [shape: bf16[512,256], index: 0, kind: input, shape index: {}]   ;;  %s1480_s1 = inlined_call_operand.vmem [shape: bf16[256,128], index: 1, kind: input, shape index: {}]   ;;  %s1481_s2 = inlined_call_operand.vmem [shape: f32[2,128], index: 2, kind: input, shape index: {}]   ;;  %s1482_s3 = inlined_call_operand.vmem [shape: f32[512,128], index: 3, kind: output, shape index: {}]  }
   0x1   :  { %s1253_s14 = smov 0  }
   0x2 LB: > { %s25_s15 = sadd.s32 1, %s1223_s13  ;;  %p930_p0 = scmp.ge.s32.totalorder %s1227_s14, 1  ;;  %s1227_s14 = sphi %s1253_s14, %s13_s14   ;;  %s1223_s13 = sphi %s1251_s13, %s1484_s13   ;;  %s1219_s12 = sphi %s1249_s12, %s1483_s12  }
   0x3   : > { %p27_p1 = scmp.ge.s32.totalorder %s25_s15, 2  ;;  %p171_p2 = scmp.lt.s32.totalorder %s1227_s14, 3 }
   0x5   : > { %s1486_s15 = smov (%p27_p1, %s25_s15), 0  ;;  %p172_p3 = pnand %p930_p0, %p171_p2 }
   0x6   : > { %s931_s18 = sshll.u32 (!%p172_p3), %s1219_s12, 5 }
   0x7   : > { %175 = sbr.rel (%p172_p3) target bundleno = 307 (0x133), region = 32  ;;  %p208_p4 = scmp.lt.s32.totalorder (!%p172_p3), %s931_s18, 63 }
   0xc   : > { %v1141_v0 = vld [vmem:[%s1480_s1 + $0x78] sm:$0xff]   ;;  %v1143_v2 = vld [vmem:[%s1480_s1 + $0x70] sm:$0xff]   ;;  %v1145_v4 = vld [vmem:[%s1480_s1 + $0x68] sm:$0xff]   ;;  %s1488_s18 = smov (!%p208_p4, %s931_s18), 63 }
   0xd   : > { %v1142_v1 = vld [vmem:[%s1480_s1 + $0x38] sm:$0xff]   ;;  %989 = vmatprep.subr.bf16.mxu0 %v1141_v0  ;;  %1101 = vmatprep.subr.bf16.mxu1 %v1141_v0  ;;  %v1144_v3 = vld [vmem:[%s1480_s1 + $0x30] sm:$0xff]   ;;  %v1146_v5 = vld [vmem:[%s1480_s1 + $0x28] sm:$0xff]   ;;  %s988_s6 = sshll.u32 %s1488_s18, 3 }
   0xe   : > { %990 = vmatpush3.bf16.msra.mxu0 %v1142_v1  ;;  %1109 = vmatpush3.bf16.msra.mxu1 %v1142_v1  ;;  %v1147_v6 = vld [vmem:[%s1480_s1 + $0x60] sm:$0xff]   ;;  %v1149_v8 = vld [vmem:[%s1480_s1 + $0x58] sm:$0xff]   ;;  %s1302_s11 = scalar_lea.vmem %s1479_s0, %s988_s6  ;;  %v1151_v10 = vld [vmem:[%s1480_s1 + $0x50] sm:$0xff]   ;;  %s1374_s10 = scalar_lea.vmem %s1482_s3, %s988_s6 }
   0xf   : > { %991 = vmatprep.subr.bf16.mxu0 %v1143_v2  ;;  %1102 = vmatprep.subr.bf16.mxu1 %v1143_v2  ;;  %v1148_v7 = vld [vmem:[%s1480_s1 + $0x20] sm:$0xff]   ;;  %v1150_v9 = vld [vmem:[%s1480_s1 + $0x18] sm:$0xff]   ;;  %v1152_v13 = vld [vmem:[%s1480_s1 + $0x10] sm:$0xff]  }
  0x10   : > { %v1159_v11 = vld [vmem:[%s1302_s11 + $0x4] ss:$8 sps:$4 sm:$0xff]   ;;  %v1157_v18 = vld [vmem:[%s1302_s11] ss:$8 sps:$4 sm:$0xff]   ;;  %v1163_v20 = vld [vmem:[%s1302_s11 + $0x14] ss:$8 sps:$4 sm:$0xff]  }
  0x11   : > { %v1162_v12 = vld [vmem:[%s1302_s11 + $0x84] ss:$8 sps:$4 sm:$0xff]   ;;  %584 = vmatprep.mubr.bf16.mxu0 %v1159_v11  ;;  %v1160_v19 = vld [vmem:[%s1302_s11 + $0x80] ss:$8 sps:$4 sm:$0xff]   ;;  %v1165_v21 = vld [vmem:[%s1302_s11 + $0x94] ss:$8 sps:$4 sm:$0xff]  }
  0x12   : > { %992 = vmatpush3.bf16.msra.mxu0 %v1144_v3  ;;  %1110 = vmatpush3.bf16.msra.mxu1 %v1144_v3  ;;  %v1153_v14 = vld [vmem:[%s1480_s1 + $0x48] sm:$0xff]   ;;  %v1155_v16 = vld [vmem:[%s1480_s1 + $0x40] sm:$0xff]   ;;  %v1167_v22 = vld [vmem:[%s1302_s11 + $0x10] ss:$8 sps:$4 sm:$0xff]  }
  0x13   : > { %993 = vmatprep.subr.bf16.mxu0 %v1145_v4  ;;  %1103 = vmatprep.subr.bf16.mxu1 %v1145_v4  ;;  %v1154_v15 = vld [vmem:[%s1480_s1 + $0x8] sm:$0xff]   ;;  %v1156_v17 = vld [vmem:[%s1480_s1] sm:$0xff]   ;;  %v1168_v23 = vld [vmem:[%s1302_s11 + $0x90] ss:$8 sps:$4 sm:$0xff]  }
  0x14   : > { %648 = vmatprep.mubr.bf16.mxu1 %v1162_v12  ;;  %v1169_v24 = vld [vmem:[%s1302_s11 + $0x24] ss:$8 sps:$4 sm:$0xff]   ;;  %v1173_v26 = vld [vmem:[%s1302_s11 + $0x20] ss:$8 sps:$4 sm:$0xff]   ;;  %v1175_v28 = vld [vmem:[%s1302_s11 + $0x34] ss:$8 sps:$4 sm:$0xff]  }
  0x15   : > { %v1171_v25 = vld [vmem:[%s1302_s11 + $0xa4] ss:$8 sps:$4 sm:$0xff]   ;;  %v1174_v27 = vld [vmem:[%s1302_s11 + $0xa0] ss:$8 sps:$4 sm:$0xff]   ;;  %v1177_v29 = vld [vmem:[%s1302_s11 + $0xb4] ss:$8 sps:$4 sm:$0xff]  }
  0x16   : > { %994 = vmatpush3.bf16.msra.mxu0 %v1146_v5  ;;  %1111 = vmatpush3.bf16.msra.mxu1 %v1146_v5  ;;  %v1179_v30 = vld [vmem:[%s1302_s11 + $0x30] ss:$8 sps:$4 sm:$0xff]   ;;  %v1181_v32 = vld [vmem:[%s1302_s11 + $0x44] ss:$8 sps:$4 sm:$0xff]   ;;  %v1185_v34 = vld [vmem:[%s1302_s11 + $0x40] ss:$8 sps:$4 sm:$0xff]  }
  0x17   : > { %995 = vmatprep.subr.bf16.mxu0 %v1147_v6  ;;  %1104 = vmatprep.subr.bf16.mxu1 %v1147_v6  ;;  %v1180_v31 = vld [vmem:[%s1302_s11 + $0xb0] ss:$8 sps:$4 sm:$0xff]   ;;  %v1183_v33 = vld [vmem:[%s1302_s11 + $0xc4] ss:$8 sps:$4 sm:$0xff]   ;;  %v1186_v35 = vld [vmem:[%s1302_s11 + $0xc0] ss:$8 sps:$4 sm:$0xff]  }
  0x18   : > { %v1187_v36 = vld [vmem:[%s1302_s11 + $0x54] ss:$8 sps:$4 sm:$0xff]   ;;  %v1191_v38 = vld [vmem:[%s1302_s11 + $0x50] ss:$8 sps:$4 sm:$0xff]   ;;  %v1193_v40 = vld [vmem:[%s1302_s11 + $0x64] ss:$8 sps:$4 sm:$0xff]  }
  0x19   : > { %v1189_v37 = vld [vmem:[%s1302_s11 + $0xd4] ss:$8 sps:$4 sm:$0xff]   ;;  %v1192_v39 = vld [vmem:[%s1302_s11 + $0xd0] ss:$8 sps:$4 sm:$0xff]   ;;  %v1195_v41 = vld [vmem:[%s1302_s11 + $0xe4] ss:$8 sps:$4 sm:$0xff]  }
  0x1a   : > { %996 = vmatpush3.bf16.msra.mxu0 %v1148_v7  ;;  %1112 = vmatpush3.bf16.msra.mxu1 %v1148_v7  ;;  %v1197_v42 = vld [vmem:[%s1302_s11 + $0x60] ss:$8 sps:$4 sm:$0xff]   ;;  %v1199_v44 = vld [vmem:[%s1302_s11 + $0x74] ss:$8 sps:$4 sm:$0xff]   ;;  %v1203_v46 = vld [vmem:[%s1302_s11 + $0x70] ss:$8 sps:$4 sm:$0xff]  }
  0x1b   : > { %997 = vmatprep.subr.bf16.mxu0 %v1149_v8  ;;  %1105 = vmatprep.subr.bf16.mxu1 %v1149_v8  ;;  %v1198_v43 = vld [vmem:[%s1302_s11 + $0xe0] ss:$8 sps:$4 sm:$0xff]   ;;  %v1201_v45 = vld [vmem:[%s1302_s11 + $0xf4] ss:$8 sps:$4 sm:$0xff]   ;;  %v1204_v47 = vld [vmem:[%s1302_s11 + $0xf0] ss:$8 sps:$4 sm:$0xff]  }
  0x1c   : > { %v1360_v51 = vld [vmem:[%s1481_s2] ss:$0 sm:$0xff]  ;;  %v1365_v55 = vld [vmem:[%s1481_s2 + $0x1] ss:$0 sm:$0xff] }
  0x1e   : > { %998 = vmatpush3.bf16.msra.mxu0 %v1150_v9  ;;  %1113 = vmatpush3.bf16.msra.mxu1 %v1150_v9 }
  0x1f   : > { %999 = vmatprep.subr.bf16.mxu0 %v1151_v10  ;;  %1106 = vmatprep.subr.bf16.mxu1 %v1151_v10 }
  0x22   : > { %1000 = vmatpush3.bf16.msra.mxu0 %v1152_v13  ;;  %1114 = vmatpush3.bf16.msra.mxu1 %v1152_v13 }
  0x23   : > { %1001 = vmatprep.subr.bf16.mxu0 %v1153_v14  ;;  %1107 = vmatprep.subr.bf16.mxu1 %v1153_v14 }
  0x26   : > { %1002 = vmatpush3.bf16.msra.mxu0 %v1154_v15  ;;  %1115 = vmatpush3.bf16.msra.mxu1 %v1154_v15 }
  0x27   : > { %1003 = vmatprep.subr.bf16.mxu0 %v1155_v16  ;;  %1108 = vmatprep.subr.bf16.mxu1 %v1155_v16 }
  0x2a   : > { %1004 = vmatpush3.bf16.msra.mxu0 %v1156_v17  ;;  %1116 = vmatpush3.bf16.msra.mxu1 %v1156_v17 }
  0x2d   : > { %585 = vmatmul.mubr.bf16.vlgmr.msra.gmra.mxu0 %v1157_v18  ;;  %649 = vmatmul.mubr.bf16.vlgmr.msra.gmra.mxu1 %v1160_v19 }
  0x2e   : > { %592 = vmatprep.mubr.bf16.mxu0 %v1163_v20  ;;  %656 = vmatprep.mubr.bf16.mxu1 %v1165_v21 }
  0x35   : > { %593 = vmatmul.mubr.bf16.gmra.mxu0 %v1167_v22  ;;  %657 = vmatmul.mubr.bf16.gmra.mxu1 %v1168_v23 }
  0x36   : > { %600 = vmatprep.mubr.bf16.mxu0 %v1169_v24  ;;  %664 = vmatprep.mubr.bf16.mxu1 %v1171_v25 }
  0x3d   : > { %601 = vmatmul.mubr.bf16.gmra.mxu0 %v1173_v26  ;;  %665 = vmatmul.mubr.bf16.gmra.mxu1 %v1174_v27 }
  0x3e   : > { %608 = vmatprep.mubr.bf16.mxu0 %v1175_v28  ;;  %672 = vmatprep.mubr.bf16.mxu1 %v1177_v29 }
  0x45   : > { %609 = vmatmul.mubr.bf16.gmra.mxu0 %v1179_v30  ;;  %673 = vmatmul.mubr.bf16.gmra.mxu1 %v1180_v31 }
  0x46   : > { %616 = vmatprep.mubr.bf16.mxu0 %v1181_v32  ;;  %680 = vmatprep.mubr.bf16.mxu1 %v1183_v33 }
  0x4d   : > { %617 = vmatmul.mubr.bf16.gmra.mxu0 %v1185_v34  ;;  %681 = vmatmul.mubr.bf16.gmra.mxu1 %v1186_v35 }
  0x4e   : > { %624 = vmatprep.mubr.bf16.mxu0 %v1187_v36  ;;  %688 = vmatprep.mubr.bf16.mxu1 %v1189_v37 }
  0x55   : > { %625 = vmatmul.mubr.bf16.gmra.mxu0 %v1191_v38  ;;  %689 = vmatmul.mubr.bf16.gmra.mxu1 %v1192_v39 }
  0x56   : > { %632 = vmatprep.mubr.bf16.mxu0 %v1193_v40  ;;  %696 = vmatprep.mubr.bf16.mxu1 %v1195_v41 }
  0x5d   : > { %633 = vmatmul.mubr.bf16.gmra.mxu0 %v1197_v42  ;;  %697 = vmatmul.mubr.bf16.gmra.mxu1 %v1198_v43 }
  0x5e   : > { %640 = vmatprep.mubr.bf16.mxu0 %v1199_v44  ;;  %704 = vmatprep.mubr.bf16.mxu1 %v1201_v45 }
  0x65   : > { %641 = vmatmul.mubr.bf16.gmra.mxu0 %v1203_v46  ;;  %705 = vmatmul.mubr.bf16.gmra.mxu1 %v1204_v47 }
  0xed   : > { %v1005_v48 = vpop.f32.mrf.mxu0  ;;  %v1053_v49 = vpop.f32.mrf.mxu1 }
  0xef   : > { %v1006_v50 = vpop.f32.mrf.mxu0  ;;  %v1054_v52 = vpop.f32.mrf.mxu1 }
  0xf0   : > { %v1007_v53 = vadd.f32 %v1006_v50, %v1005_v48  ;;  %v1055_v54 = vadd.f32 %v1054_v52, %v1053_v49 }
  0xf1   : > { %v1008_v56 = vpop.f32.mrf.mxu0  ;;  %v1056_v57 = vpop.f32.mrf.mxu1 }
  0xf2   : > { %v718_v58 = vmul.f32 %v1007_v53, %v1360_v51  ;;  %v734_v59 = vmul.f32 %v1055_v54, %v1360_v51 }
  0xf3   : > { %v1009_v60 = vpop.f32.mrf.mxu0  ;;  %v1057_v61 = vpop.f32.mrf.mxu1 }
  0xf4   : > { %v755_v62 = vadd.f32 %v1365_v55, %v718_v58  ;;  %v771_v63 = vadd.f32 %v1365_v55, %v734_v59  ;;  %v1010_v0 = vadd.f32 %v1009_v60, %v1008_v56  ;;  %v1058_v1 = vadd.f32 %v1057_v61, %v1056_v57 }
  0xf5   : > { %v1011_v2 = vpop.f32.mrf.mxu0  ;;  %v1059_v3 = vpop.f32.mrf.mxu1 }
  0xf6   : > { %787 = vst [vmem:[%s1374_s10] sm:$0xff] %v755_v62  ;;  %803 = vst [vmem:[%s1374_s10 + $0x80] sm:$0xff] %v771_v63  ;;  %v719_v4 = vmul.f32 %v1010_v0, %v1360_v51  ;;  %v735_v5 = vmul.f32 %v1058_v1, %v1360_v51 }
  0xf7   : > { %v1012_v6 = vpop.f32.mrf.mxu0  ;;  %v1060_v7 = vpop.f32.mrf.mxu1 }
  0xf8   : > { %v756_v8 = vadd.f32 %v1365_v55, %v719_v4  ;;  %v772_v9 = vadd.f32 %v1365_v55, %v735_v5  ;;  %v1013_v10 = vadd.f32 %v1012_v6, %v1011_v2  ;;  %v1061_v11 = vadd.f32 %v1060_v7, %v1059_v3 }
  0xf9   : > { %v1014_v12 = vpop.f32.mrf.mxu0  ;;  %v1062_v13 = vpop.f32.mrf.mxu1 }
  0xfa   : > { %788 = vst [vmem:[%s1374_s10 + $0x8] sm:$0xff] %v756_v8  ;;  %804 = vst [vmem:[%s1374_s10 + $0x88] sm:$0xff] %v772_v9  ;;  %v720_v14 = vmul.f32 %v1013_v10, %v1360_v51  ;;  %v736_v15 = vmul.f32 %v1061_v11, %v1360_v51 }
  0xfb   : > { %v1015_v16 = vpop.f32.mrf.mxu0  ;;  %v1063_v17 = vpop.f32.mrf.mxu1 }
  0xfc   : > { %v757_v18 = vadd.f32 %v1365_v55, %v720_v14  ;;  %v773_v19 = vadd.f32 %v1365_v55, %v736_v15  ;;  %v1016_v20 = vadd.f32 %v1015_v16, %v1014_v12  ;;  %v1064_v21 = vadd.f32 %v1063_v17, %v1062_v13 }
  0xfd   : > { %v1017_v22 = vpop.f32.mrf.mxu0  ;;  %v1065_v23 = vpop.f32.mrf.mxu1 }
  0xfe   : > { %789 = vst [vmem:[%s1374_s10 + $0x10] sm:$0xff] %v757_v18  ;;  %805 = vst [vmem:[%s1374_s10 + $0x90] sm:$0xff] %v773_v19  ;;  %v721_v24 = vmul.f32 %v1016_v20, %v1360_v51  ;;  %v737_v25 = vmul.f32 %v1064_v21, %v1360_v51 }
  0xff   : > { %v1018_v26 = vpop.f32.mrf.mxu0  ;;  %v1066_v27 = vpop.f32.mrf.mxu1 }
 0x100   : > { %v758_v28 = vadd.f32 %v1365_v55, %v721_v24  ;;  %v774_v29 = vadd.f32 %v1365_v55, %v737_v25  ;;  %v1019_v30 = vadd.f32 %v1018_v26, %v1017_v22  ;;  %v1067_v31 = vadd.f32 %v1066_v27, %v1065_v23 }
 0x101   : > { %v1020_v32 = vpop.f32.mrf.mxu0  ;;  %v1068_v33 = vpop.f32.mrf.mxu1 }
 0x102   : > { %790 = vst [vmem:[%s1374_s10 + $0x18] sm:$0xff] %v758_v28  ;;  %806 = vst [vmem:[%s1374_s10 + $0x98] sm:$0xff] %v774_v29  ;;  %v722_v34 = vmul.f32 %v1019_v30, %v1360_v51  ;;  %v738_v35 = vmul.f32 %v1067_v31, %v1360_v51 }
 0x103   : > { %v1021_v36 = vpop.f32.mrf.mxu0  ;;  %v1069_v37 = vpop.f32.mrf.mxu1 }
 0x104   : > { %v759_v38 = vadd.f32 %v1365_v55, %v722_v34  ;;  %v775_v39 = vadd.f32 %v1365_v55, %v738_v35  ;;  %v1022_v40 = vadd.f32 %v1021_v36, %v1020_v32  ;;  %v1070_v41 = vadd.f32 %v1069_v37, %v1068_v33 }
 0x105   : > { %v1023_v42 = vpop.f32.mrf.mxu0  ;;  %v1071_v43 = vpop.f32.mrf.mxu1 }
 0x106   : > { %791 = vst [vmem:[%s1374_s10 + $0x20] sm:$0xff] %v759_v38  ;;  %807 = vst [vmem:[%s1374_s10 + $0xa0] sm:$0xff] %v775_v39  ;;  %v723_v44 = vmul.f32 %v1022_v40, %v1360_v51  ;;  %v739_v45 = vmul.f32 %v1070_v41, %v1360_v51 }
 0x107   : > { %v1024_v46 = vpop.f32.mrf.mxu0  ;;  %v1072_v47 = vpop.f32.mrf.mxu1 }
 0x108   : > { %v760_v48 = vadd.f32 %v1365_v55, %v723_v44  ;;  %v776_v49 = vadd.f32 %v1365_v55, %v739_v45  ;;  %v1025_v50 = vadd.f32 %v1024_v46, %v1023_v42  ;;  %v1073_v52 = vadd.f32 %v1072_v47, %v1071_v43 }
 0x109   : > { %v1026_v53 = vpop.f32.mrf.mxu0  ;;  %v1074_v54 = vpop.f32.mrf.mxu1 }
 0x10a   : > { %792 = vst [vmem:[%s1374_s10 + $0x28] sm:$0xff] %v760_v48  ;;  %808 = vst [vmem:[%s1374_s10 + $0xa8] sm:$0xff] %v776_v49  ;;  %v724_v56 = vmul.f32 %v1025_v50, %v1360_v51  ;;  %v740_v57 = vmul.f32 %v1073_v52, %v1360_v51 }
 0x10b   : > { %v1027_v58 = vpop.f32.mrf.mxu0  ;;  %v1075_v59 = vpop.f32.mrf.mxu1 }
 0x10c   : > { %v761_v60 = vadd.f32 %v1365_v55, %v724_v56  ;;  %v777_v61 = vadd.f32 %v1365_v55, %v740_v57  ;;  %v1028_v62 = vadd.f32 %v1027_v58, %v1026_v53  ;;  %v1076_v63 = vadd.f32 %v1075_v59, %v1074_v54 }
 0x10d   : > { %v1029_v0 = vpop.f32.mrf.mxu0  ;;  %v1077_v1 = vpop.f32.mrf.mxu1 }
 0x10e   : > { %793 = vst [vmem:[%s1374_s10 + $0x30] sm:$0xff] %v761_v60  ;;  %809 = vst [vmem:[%s1374_s10 + $0xb0] sm:$0xff] %v777_v61  ;;  %v725_v2 = vmul.f32 %v1028_v62, %v1360_v51  ;;  %v741_v3 = vmul.f32 %v1076_v63, %v1360_v51 }
 0x10f   : > { %v1030_v4 = vpop.f32.mrf.mxu0  ;;  %v1078_v5 = vpop.f32.mrf.mxu1 }
 0x110   : > { %v762_v6 = vadd.f32 %v1365_v55, %v725_v2  ;;  %v778_v7 = vadd.f32 %v1365_v55, %v741_v3  ;;  %v1031_v8 = vadd.f32 %v1030_v4, %v1029_v0  ;;  %v1079_v9 = vadd.f32 %v1078_v5, %v1077_v1 }
 0x111   : > { %v1032_v10 = vpop.f32.mrf.mxu0  ;;  %v1080_v11 = vpop.f32.mrf.mxu1 }
 0x112   : > { %794 = vst [vmem:[%s1374_s10 + $0x38] sm:$0xff] %v762_v6  ;;  %810 = vst [vmem:[%s1374_s10 + $0xb8] sm:$0xff] %v778_v7  ;;  %v726_v12 = vmul.f32 %v1031_v8, %v1360_v51  ;;  %v742_v13 = vmul.f32 %v1079_v9, %v1360_v51 }
 0x113   : > { %v1033_v14 = vpop.f32.mrf.mxu0  ;;  %v1081_v15 = vpop.f32.mrf.mxu1 }
 0x114   : > { %v763_v16 = vadd.f32 %v1365_v55, %v726_v12  ;;  %v779_v17 = vadd.f32 %v1365_v55, %v742_v13  ;;  %v1034_v18 = vadd.f32 %v1033_v14, %v1032_v10  ;;  %v1082_v19 = vadd.f32 %v1081_v15, %v1080_v11 }
 0x115   : > { %v1035_v20 = vpop.f32.mrf.mxu0  ;;  %v1083_v21 = vpop.f32.mrf.mxu1 }
 0x116   : > { %795 = vst [vmem:[%s1374_s10 + $0x40] sm:$0xff] %v763_v16  ;;  %811 = vst [vmem:[%s1374_s10 + $0xc0] sm:$0xff] %v779_v17  ;;  %v727_v22 = vmul.f32 %v1034_v18, %v1360_v51  ;;  %v743_v23 = vmul.f32 %v1082_v19, %v1360_v51 }
 0x117   : > { %v1036_v24 = vpop.f32.mrf.mxu0  ;;  %v1084_v25 = vpop.f32.mrf.mxu1 }
 0x118   : > { %v764_v26 = vadd.f32 %v1365_v55, %v727_v22  ;;  %v780_v27 = vadd.f32 %v1365_v55, %v743_v23  ;;  %v1037_v28 = vadd.f32 %v1036_v24, %v1035_v20  ;;  %v1085_v29 = vadd.f32 %v1084_v25, %v1083_v21 }
 0x119   : > { %v1038_v30 = vpop.f32.mrf.mxu0  ;;  %v1086_v31 = vpop.f32.mrf.mxu1 }
 0x11a   : > { %796 = vst [vmem:[%s1374_s10 + $0x48] sm:$0xff] %v764_v26  ;;  %812 = vst [vmem:[%s1374_s10 + $0xc8] sm:$0xff] %v780_v27  ;;  %v728_v32 = vmul.f32 %v1037_v28, %v1360_v51  ;;  %v744_v33 = vmul.f32 %v1085_v29, %v1360_v51 }
 0x11b   : > { %v1039_v34 = vpop.f32.mrf.mxu0  ;;  %v1087_v35 = vpop.f32.mrf.mxu1 }
 0x11c   : > { %v765_v36 = vadd.f32 %v1365_v55, %v728_v32  ;;  %v781_v37 = vadd.f32 %v1365_v55, %v744_v33  ;;  %v1040_v38 = vadd.f32 %v1039_v34, %v1038_v30  ;;  %v1088_v39 = vadd.f32 %v1087_v35, %v1086_v31 }
 0x11d   : > { %v1041_v40 = vpop.f32.mrf.mxu0  ;;  %v1089_v41 = vpop.f32.mrf.mxu1 }
 0x11e   : > { %797 = vst [vmem:[%s1374_s10 + $0x50] sm:$0xff] %v765_v36  ;;  %813 = vst [vmem:[%s1374_s10 + $0xd0] sm:$0xff] %v781_v37  ;;  %v729_v42 = vmul.f32 %v1040_v38, %v1360_v51  ;;  %v745_v43 = vmul.f32 %v1088_v39, %v1360_v51 }
 0x11f   : > { %v1042_v44 = vpop.f32.mrf.mxu0  ;;  %v1090_v45 = vpop.f32.mrf.mxu1 }
 0x120   : > { %v766_v46 = vadd.f32 %v1365_v55, %v729_v42  ;;  %v782_v47 = vadd.f32 %v1365_v55, %v745_v43  ;;  %v1043_v48 = vadd.f32 %v1042_v44, %v1041_v40  ;;  %v1091_v49 = vadd.f32 %v1090_v45, %v1089_v41 }
 0x121   : > { %v1044_v50 = vpop.f32.mrf.mxu0  ;;  %v1092_v52 = vpop.f32.mrf.mxu1 }
 0x122   : > { %798 = vst [vmem:[%s1374_s10 + $0x58] sm:$0xff] %v766_v46  ;;  %814 = vst [vmem:[%s1374_s10 + $0xd8] sm:$0xff] %v782_v47  ;;  %v730_v53 = vmul.f32 %v1043_v48, %v1360_v51  ;;  %v746_v54 = vmul.f32 %v1091_v49, %v1360_v51 }
 0x123   : > { %v1045_v56 = vpop.f32.mrf.mxu0  ;;  %v1093_v57 = vpop.f32.mrf.mxu1 }
 0x124   : > { %v767_v58 = vadd.f32 %v1365_v55, %v730_v53  ;;  %v783_v59 = vadd.f32 %v1365_v55, %v746_v54  ;;  %v1046_v60 = vadd.f32 %v1045_v56, %v1044_v50  ;;  %v1094_v61 = vadd.f32 %v1093_v57, %v1092_v52 }
 0x125   : > { %v1047_v62 = vpop.f32.mrf.mxu0  ;;  %v1095_v63 = vpop.f32.mrf.mxu1 }
 0x126   : > { %799 = vst [vmem:[%s1374_s10 + $0x60] sm:$0xff] %v767_v58  ;;  %815 = vst [vmem:[%s1374_s10 + $0xe0] sm:$0xff] %v783_v59  ;;  %v731_v0 = vmul.f32 %v1046_v60, %v1360_v51  ;;  %v747_v1 = vmul.f32 %v1094_v61, %v1360_v51 }
 0x127   : > { %v1048_v2 = vpop.f32.mrf.mxu0  ;;  %v1096_v3 = vpop.f32.mrf.mxu1 }
 0x128   : > { %v768_v4 = vadd.f32 %v1365_v55, %v731_v0  ;;  %v784_v5 = vadd.f32 %v1365_v55, %v747_v1  ;;  %v1049_v6 = vadd.f32 %v1048_v2, %v1047_v62  ;;  %v1097_v7 = vadd.f32 %v1096_v3, %v1095_v63 }
 0x129   : > { %v1050_v8 = vpop.f32.mrf.mxu0  ;;  %v1098_v9 = vpop.f32.mrf.mxu1 }
 0x12a   : > { %800 = vst [vmem:[%s1374_s10 + $0x68] sm:$0xff] %v768_v4  ;;  %816 = vst [vmem:[%s1374_s10 + $0xe8] sm:$0xff] %v784_v5  ;;  %v732_v10 = vmul.f32 %v1049_v6, %v1360_v51  ;;  %v748_v11 = vmul.f32 %v1097_v7, %v1360_v51 }
 0x12b   : > { %v1051_v12 = vpop.f32.mrf.mxu0  ;;  %v1099_v13 = vpop.f32.mrf.mxu1 }
 0x12c   : > { %v769_v14 = vadd.f32 %v1365_v55, %v732_v10  ;;  %v785_v15 = vadd.f32 %v1365_v55, %v748_v11  ;;  %v1052_v16 = vadd.f32 %v1051_v12, %v1050_v8  ;;  %v1100_v17 = vadd.f32 %v1099_v13, %v1098_v9 }
 0x12e   : > { %801 = vst [vmem:[%s1374_s10 + $0x70] sm:$0xff] %v769_v14  ;;  %817 = vst [vmem:[%s1374_s10 + $0xf0] sm:$0xff] %v785_v15  ;;  %v733_v18 = vmul.f32 %v1052_v16, %v1360_v51  ;;  %v749_v19 = vmul.f32 %v1100_v17, %v1360_v51 }
 0x130   : > { %v770_v20 = vadd.f32 %v1365_v55, %v733_v18  ;;  %v786_v21 = vadd.f32 %v1365_v55, %v749_v19 }
 0x132   : > { %802 = vst [vmem:[%s1374_s10 + $0x78] sm:$0xff] %v770_v20  ;;  %818 = vst [vmem:[%s1374_s10 + $0xf8] sm:$0xff] %v786_v21 }
 0x133 PF: > { %s13_s14 = sadd.s32 1, %s1227_s14   ;;  %s1483_s12 = smov %s1223_s13 }
 0x134   : > { %p10_p5 = scmp.ge.s32.totalorder %s13_s14, 4   ;;  %s1484_s13 = smov %s1486_s15 }
 0x136   :  { %12 = sbr.rel (!%p10_p5) target bundleno = 2 (0x2), region = 68 }

// kernel: alpha_hb_decoder_forward.3
= control target key start
LH: loop header
LB: loop body
LE: loop exit
PB: predicated region body
PF: predicated region fallthrough
CT: control target
= control target key end

     0   :  { %s14216_s12 = smov 0   ;;  %s14218_s13 = smov 0   ;;  %s18274_s0 = inlined_call_operand.vmem [shape: bf16[512,4608], index: 0, kind: input, shape index: {}]   ;;  %s18275_s1 = inlined_call_operand.vmem [shape: bf16[4608,256], index: 1, kind: input, shape index: {}]   ;;  %s18276_s2 = inlined_call_operand.vmem [shape: f32[2,256], index: 2, kind: input, shape index: {}]   ;;  %s18277_s3 = inlined_call_operand.vmem [shape: bf16[512,256], index: 3, kind: output, shape index: {}]  }
   0x1   :  { %s14220_s14 = smov 0  }
   0x2 LB: > { %s25_s15 = sadd.s32 1, %s14190_s13  ;;  %p11193_p0 = scmp.ge.s32.totalorder %s14194_s14, 1  ;;  %s14194_s14 = sphi %s14220_s14, %s13_s14   ;;  %s14190_s13 = sphi %s14218_s13, %s18583_s13   ;;  %s14186_s12 = sphi %s14216_s12, %s18582_s12  }
   0x3   : > { %p27_p1 = scmp.ge.s32.totalorder %s25_s15, 2  ;;  %p175_p2 = scmp.lt.s32.totalorder %s14194_s14, 3 }
   0x5   : > { %s18585_s15 = smov (%p27_p1, %s25_s15), 0  ;;  %p176_p3 = pnand %p11193_p0, %p175_p2 }
   0x7   : > { %179 = sbr.rel (%p176_p3) target bundleno = 1433 (0x599), region = 32 }
   0xc   : > { %v12444_v0 = vld [vmem:[%s18275_s1 + $0x74] ss:$8 sps:$4 sm:$0xff]   ;;  %v12448_v2 = vld [vmem:[%s18275_s1 + $0x70] ss:$8 sps:$4 sm:$0xff]   ;;  %v12450_v4 = vld [vmem:[%s18275_s1 + $0x64] ss:$8 sps:$4 sm:$0xff]  }
   0xd   : > { %v12446_v1 = vld [vmem:[%s18275_s1 + $0x174] ss:$8 sps:$4 sm:$0xff]   ;;  %7158 = vmatprep.subr.bf16.mxu0 %v12444_v0  ;;  %v12449_v3 = vld [vmem:[%s18275_s1 + $0x170] ss:$8 sps:$4 sm:$0xff]   ;;  %v12452_v5 = vld [vmem:[%s18275_s1 + $0x164] ss:$8 sps:$4 sm:$0xff]  }
   0xe   : > { %7351 = vmatprep.subr.bf16.mxu1 %v12446_v1  ;;  %7159 = vmatpush1.bf16.msra.mxu0 %v12448_v2  ;;  %v12454_v6 = vld [vmem:[%s18275_s1 + $0x60] ss:$8 sps:$4 sm:$0xff]   ;;  %v12456_v8 = vld [vmem:[%s18275_s1 + $0x54] ss:$8 sps:$4 sm:$0xff]   ;;  %v12460_v10 = vld [vmem:[%s18275_s1 + $0x50] ss:$8 sps:$4 sm:$0xff]  }
   0xf   : > { %7352 = vmatpush1.bf16.msra.mxu1 %v12449_v3  ;;  %7160 = vmatprep.subr.bf16.mxu0 %v12450_v4  ;;  %v12455_v7 = vld [vmem:[%s18275_s1 + $0x160] ss:$8 sps:$4 sm:$0xff]   ;;  %v12458_v9 = vld [vmem:[%s18275_s1 + $0x154] ss:$8 sps:$4 sm:$0xff]   ;;  %v12461_v11 = vld [vmem:[%s18275_s1 + $0x150] ss:$8 sps:$4 sm:$0xff]  }
  0x10   : > { %7353 = vmatprep.subr.bf16.mxu1 %v12452_v5  ;;  %v12462_v12 = vld [vmem:[%s18275_s1 + $0x44] ss:$8 sps:$4 sm:$0xff]   ;;  %v12466_v14 = vld [vmem:[%s18275_s1 + $0x40] ss:$8 sps:$4 sm:$0xff]   ;;  %v12468_v16 = vld [vmem:[%s18275_s1 + $0x34] ss:$8 sps:$4 sm:$0xff]  }
  0x11   : > { %v12464_v13 = vld [vmem:[%s18275_s1 + $0x144] ss:$8 sps:$4 sm:$0xff]   ;;  %v12467_v15 = vld [vmem:[%s18275_s1 + $0x140] ss:$8 sps:$4 sm:$0xff]   ;;  %v12470_v17 = vld [vmem:[%s18275_s1 + $0x134] ss:$8 sps:$4 sm:$0xff]  }
  0x12   : > { %7161 = vmatpush1.bf16.msra.mxu0 %v12454_v6  ;;  %v12472_v18 = vld [vmem:[%s18275_s1 + $0x30] ss:$8 sps:$4 sm:$0xff]   ;;  %v12474_v20 = vld [vmem:[%s18275_s1 + $0x24] ss:$8 sps:$4 sm:$0xff]   ;;  %v12478_v22 = vld [vmem:[%s18275_s1 + $0x20] ss:$8 sps:$4 sm:$0xff]  }
  0x13   : > { %7354 = vmatpush1.bf16.msra.mxu1 %v12455_v7  ;;  %7162 = vmatprep.subr.bf16.mxu0 %v12456_v8  ;;  %v12473_v19 = vld [vmem:[%s18275_s1 + $0x130] ss:$8 sps:$4 sm:$0xff]   ;;  %v12476_v21 = vld [vmem:[%s18275_s1 + $0x124] ss:$8 sps:$4 sm:$0xff]   ;;  %v12479_v23 = vld [vmem:[%s18275_s1 + $0x120] ss:$8 sps:$4 sm:$0xff]  }
  0x14   : > { %7355 = vmatprep.subr.bf16.mxu1 %v12458_v9  ;;  %v12480_v24 = vld [vmem:[%s18275_s1 + $0x14] ss:$8 sps:$4 sm:$0xff]   ;;  %v12484_v26 = vld [vmem:[%s18275_s1 + $0x10] ss:$8 sps:$4 sm:$0xff]   ;;  %v12486_v28 = vld [vmem:[%s18275_s1 + $0x4] ss:$8 sps:$4 sm:$0xff]  }
  0x15   : > { %v12482_v25 = vld [vmem:[%s18275_s1 + $0x114] ss:$8 sps:$4 sm:$0xff]   ;;  %v12485_v27 = vld [vmem:[%s18275_s1 + $0x110] ss:$8 sps:$4 sm:$0xff]   ;;  %v12488_v29 = vld [vmem:[%s18275_s1 + $0x104] ss:$8 sps:$4 sm:$0xff]  }
  0x16   : > { %7163 = vmatpush1.bf16.msra.mxu0 %v12460_v10  ;;  %s11194_s30 = sshll.u32 %s14186_s12, 5  ;;  %v12490_v30 = vld [vmem:[%s18275_s1] ss:$8 sps:$4 sm:$0xff]   ;;  %v12492_v32 = vld [vmem:[%s18275_s1 + $0xf4] ss:$8 sps:$4 sm:$0xff]  }
  0x17   : > { %7356 = vmatpush1.bf16.msra.mxu1 %v12461_v11  ;;  %7164 = vmatprep.subr.bf16.mxu0 %v12462_v12  ;;  %v12491_v31 = vld [vmem:[%s18275_s1 + $0x100] ss:$8 sps:$4 sm:$0xff]   ;;  %p216_p4 = scmp.lt.s32.totalorder %s11194_s30, 63  ;;  %v12494_v33 = vld [vmem:[%s18275_s1 + $0x1f4] ss:$8 sps:$4 sm:$0xff]  }
  0x18   : > { %7357 = vmatprep.subr.bf16.mxu1 %v12464_v13  ;;  %v12496_v34 = vld [vmem:[%s18275_s1 + $0xf0] ss:$8 sps:$4 sm:$0xff]   ;;  %v12498_v36 = vld [vmem:[%s18275_s1 + $0xe4] ss:$8 sps:$4 sm:$0xff]   ;;  %v12502_v38 = vld [vmem:[%s18275_s1 + $0xe0] ss:$8 sps:$4 sm:$0xff]  }
  0x19   : > { %v12497_v35 = vld [vmem:[%s18275_s1 + $0x1f0] ss:$8 sps:$4 sm:$0xff]   ;;  %s18587_s30 = smov (!%p216_p4, %s11194_s30), 63  ;;  %v12500_v37 = vld [vmem:[%s18275_s1 + $0x1e4] ss:$8 sps:$4 sm:$0xff]  }
  0x1a   : > { %7165 = vmatpush1.bf16.msra.mxu0 %v12466_v14  ;;  %v12503_v39 = vld [vmem:[%s18275_s1 + $0x1e0] ss:$8 sps:$4 sm:$0xff]   ;;  %v12504_v40 = vld [vmem:[%s18275_s1 + $0xd4] ss:$8 sps:$4 sm:$0xff]   ;;  %s12419_s29 = smul.u32 144, %s18587_s30  ;;  %s12386_s27 = sshll.u32 %s18587_s30, 3 }
  0x1b   : > { %7358 = vmatpush1.bf16.msra.mxu1 %v12467_v15  ;;  %7166 = vmatprep.subr.bf16.mxu0 %v12468_v16  ;;  %v12506_v41 = vld [vmem:[%s18275_s1 + $0x1d4] ss:$8 sps:$4 sm:$0xff]   ;;  %v12508_v42 = vld [vmem:[%s18275_s1 + $0xd0] ss:$8 sps:$4 sm:$0xff]   ;;  %v12510_v44 = vld [vmem:[%s18275_s1 + $0xc4] ss:$8 sps:$4 sm:$0xff]   ;;  %s18052_s30 = scalar_lea.vmem %s18277_s3, %s12386_s27 }
  0x1c   : > { %7359 = vmatprep.subr.bf16.mxu1 %v12470_v17  ;;  %v12509_v43 = vld [vmem:[%s18275_s1 + $0x1d0] ss:$8 sps:$4 sm:$0xff]   ;;  %s14378_s17 = scalar_lea.vmem %s18274_s0, %s12419_s29  ;;  %v12512_v45 = vld [vmem:[%s18275_s1 + $0x1c4] ss:$8 sps:$4 sm:$0xff]   ;;  %v12514_v46 = vld [vmem:[%s18275_s1 + $0xc0] ss:$8 sps:$4 sm:$0xff]  }
  0x1d   : > { %v12515_v47 = vld [vmem:[%s18275_s1 + $0x1c0] ss:$8 sps:$4 sm:$0xff]   ;;  %v12516_v48 = vld [vmem:[%s18275_s1 + $0xb4] ss:$8 sps:$4 sm:$0xff]   ;;  %v12520_v52 = vld [vmem:[%s18275_s1 + $0xb0] ss:$8 sps:$4 sm:$0xff]  }
  0x1e   : > { %7167 = vmatpush1.bf16.msra.mxu0 %v12472_v18  ;;  %v12542_v49 = vld [vmem:[%s14378_s17 + $0x4] ss:$144 sps:$4 sm:$0xff]   ;;  %v12545_v51 = vld [vmem:[%s14378_s17 + $0xc] ss:$144 sps:$4 sm:$0xff]   ;;  %v12521_v53 = vld [vmem:[%s18275_s1 + $0x1b0] ss:$8 sps:$4 sm:$0xff]  }
  0x1f   : > { %7360 = vmatpush1.bf16.msra.mxu1 %v12473_v19  ;;  %7168 = vmatprep.subr.bf16.mxu0 %v12474_v20  ;;  %v12518_v50 = vld [vmem:[%s18275_s1 + $0x1b4] ss:$8 sps:$4 sm:$0xff]   ;;  %v12522_v54 = vld [vmem:[%s18275_s1 + $0xa4] ss:$8 sps:$4 sm:$0xff]   ;;  %v12526_v56 = vld [vmem:[%s18275_s1 + $0xa0] ss:$8 sps:$4 sm:$0xff]  }
  0x20   : > { %7361 = vmatprep.subr.bf16.mxu1 %v12476_v21  ;;  %7190 = vmatprep.mubr.bf16.mxu0 %v12542_v49  ;;  %v12524_v55 = vld [vmem:[%s18275_s1 + $0x1a4] ss:$8 sps:$4 sm:$0xff]   ;;  %v12527_v57 = vld [vmem:[%s18275_s1 + $0x1a0] ss:$8 sps:$4 sm:$0xff]   ;;  %v12528_v58 = vld [vmem:[%s18275_s1 + $0x94] ss:$8 sps:$4 sm:$0xff]  }
  0x21   : > { %7383 = vmatprep.mubr.bf16.mxu1 %v12545_v51  ;;  %v12530_v59 = vld [vmem:[%s18275_s1 + $0x194] ss:$8 sps:$4 sm:$0xff]   ;;  %v12532_v60 = vld [vmem:[%s18275_s1 + $0x90] ss:$8 sps:$4 sm:$0xff]   ;;  %v12534_v62 = vld [vmem:[%s18275_s1 + $0x84] ss:$8 sps:$4 sm:$0xff]  }
  0x22   : > { %7169 = vmatpush1.bf16.msra.mxu0 %v12478_v22  ;;  %v12533_v61 = vld [vmem:[%s18275_s1 + $0x190] ss:$8 sps:$4 sm:$0xff]   ;;  %v12536_v63 = vld [vmem:[%s18275_s1 + $0x184] ss:$8 sps:$4 sm:$0xff]   ;;  %v12538_v0 = vld [vmem:[%s18275_s1 + $0x80] ss:$8 sps:$4 sm:$0xff]  }
  0x23   : > { %7362 = vmatpush1.bf16.msra.mxu1 %v12479_v23  ;;  %7170 = vmatprep.subr.bf16.mxu0 %v12480_v24  ;;  %v12539_v1 = vld [vmem:[%s18275_s1 + $0x180] ss:$8 sps:$4 sm:$0xff]   ;;  %v12548_v2 = vld [vmem:[%s18275_s1 + $0x274] ss:$8 sps:$4 sm:$0xff]   ;;  %v12546_v6 = vld [vmem:[%s18275_s1 + $0x270] ss:$8 sps:$4 sm:$0xff]  }
  0x24   : > { %7363 = vmatprep.subr.bf16.mxu1 %v12482_v25  ;;  %v12551_v3 = vld [vmem:[%s18275_s1 + $0x374] ss:$8 sps:$4 sm:$0xff]   ;;  %v12540_v4 = vld [vmem:[%s14378_s17] ss:$144 sps:$4 sm:$0xff]   ;;  %v12543_v5 = vld [vmem:[%s14378_s17 + $0x8] ss:$144 sps:$4 sm:$0xff]  }
  0x25   : > { %v12549_v7 = vld [vmem:[%s18275_s1 + $0x370] ss:$8 sps:$4 sm:$0xff]   ;;  %v12552_v8 = vld [vmem:[%s14378_s17 + $0x124] ss:$144 sps:$4 sm:$0xff]   ;;  %v12554_v9 = vld [vmem:[%s14378_s17 + $0x12c] ss:$144 sps:$4 sm:$0xff]  }
  0x26   : > { %7171 = vmatpush1.bf16.msra.mxu0 %v12484_v26  ;;  %v12560_v10 = vld [vmem:[%s18275_s1 + $0x264] ss:$8 sps:$4 sm:$0xff]   ;;  %v12558_v12 = vld [vmem:[%s18275_s1 + $0x260] ss:$8 sps:$4 sm:$0xff]   ;;  %v12572_v14 = vld [vmem:[%s18275_s1 + $0x254] ss:$8 sps:$4 sm:$0xff]  }
  0x27   : > { %7364 = vmatpush1.bf16.msra.mxu1 %v12485_v27  ;;  %7172 = vmatprep.subr.bf16.mxu0 %v12486_v28  ;;  %v12563_v11 = vld [vmem:[%s18275_s1 + $0x364] ss:$8 sps:$4 sm:$0xff]   ;;  %v12561_v13 = vld [vmem:[%s18275_s1 + $0x360] ss:$8 sps:$4 sm:$0xff]   ;;  %v12575_v15 = vld [vmem:[%s18275_s1 + $0x354] ss:$8 sps:$4 sm:$0xff]  }
  0x28   : > { %7365 = vmatprep.subr.bf16.mxu1 %v12488_v29  ;;  %v12556_v16 = vld [vmem:[%s14378_s17 + $0x120] ss:$144 sps:$4 sm:$0xff]   ;;  %v12557_v17 = vld [vmem:[%s14378_s17 + $0x128] ss:$144 sps:$4 sm:$0xff]   ;;  %v12564_v18 = vld [vmem:[%s14378_s17 + $0x244] ss:$144 sps:$4 sm:$0xff]  }
  0x29   : > { %v12566_v19 = vld [vmem:[%s14378_s17 + $0x24c] ss:$144 sps:$4 sm:$0xff]   ;;  %v12570_v20 = vld [vmem:[%s18275_s1 + $0x250] ss:$8 sps:$4 sm:$0xff]   ;;  %v12582_v24 = vld [vmem:[%s18275_s1 + $0x240] ss:$8 sps:$4 sm:$0xff]  }
  0x2a   : > { %7173 = vmatpush1.bf16.msra.mxu0 %v12490_v30  ;;  %v12573_v21 = vld [vmem:[%s18275_s1 + $0x350] ss:$8 sps:$4 sm:$0xff]   ;;  %v12584_v22 = vld [vmem:[%s18275_s1 + $0x244] ss:$8 sps:$4 sm:$0xff]   ;;  %v12585_v27 = vld [vmem:[%s18275_s1 + $0x340] ss:$8 sps:$4 sm:$0xff]  }
  0x2b   : > { %7366 = vmatpush1.bf16.msra.mxu1 %v12491_v31  ;;  %7174 = vmatprep.subr.bf16.mxu0 %v12492_v32  ;;  %v12587_v23 = vld [vmem:[%s18275_s1 + $0x344] ss:$8 sps:$4 sm:$0xff]   ;;  %v12568_v25 = vld [vmem:[%s14378_s17 + $0x240] ss:$144 sps:$4 sm:$0xff]   ;;  %v12569_v26 = vld [vmem:[%s14378_s17 + $0x248] ss:$144 sps:$4 sm:$0xff]  }
  0x2c   : > { %7367 = vmatprep.subr.bf16.mxu1 %v12494_v33  ;;  %v12596_v28 = vld [vmem:[%s18275_s1 + $0x234] ss:$8 sps:$4 sm:$0xff]   ;;  %v12594_v32 = vld [vmem:[%s18275_s1 + $0x230] ss:$8 sps:$4 sm:$0xff]   ;;  %v12633_v51 = vld [vmem:[%s18275_s1 + $0x300] ss:$8 sps:$4 sm:$0xff]  }
  0x2d   : > { %v12599_v29 = vld [vmem:[%s18275_s1 + $0x334] ss:$8 sps:$4 sm:$0xff]   ;;  %v12597_v33 = vld [vmem:[%s18275_s1 + $0x330] ss:$8 sps:$4 sm:$0xff]  }
  0x2e   : > { %7175 = vmatpush2.bf16.msra.mxu0 %v12496_v34  ;;  %v12576_v30 = vld [vmem:[%s14378_s17 + $0x364] ss:$144 sps:$4 sm:$0xff]   ;;  %v12578_v31 = vld [vmem:[%s14378_s17 + $0x36c] ss:$144 sps:$4 sm:$0xff]   ;;  %v12592_v49 = vld [vmem:[%s14378_s17 + $0x480] ss:$144 sps:$4 sm:$0xff]  }
  0x2f   : > { %7368 = vmatpush2.bf16.msra.mxu1 %v12497_v35  ;;  %7176 = vmatprep.subr.bf16.mxu0 %v12498_v36  ;;  %v12608_v34 = vld [vmem:[%s18275_s1 + $0x224] ss:$8 sps:$4 sm:$0xff]   ;;  %v12606_v36 = vld [vmem:[%s18275_s1 + $0x220] ss:$8 sps:$4 sm:$0xff]  }
  0x30   : > { %7369 = vmatprep.subr.bf16.mxu1 %v12500_v37  ;;  %v12611_v35 = vld [vmem:[%s18275_s1 + $0x324] ss:$8 sps:$4 sm:$0xff]   ;;  %v12609_v37 = vld [vmem:[%s18275_s1 + $0x320] ss:$8 sps:$4 sm:$0xff]  }
  0x32   : > { %7177 = vmatpush2.bf16.msra.mxu0 %v12502_v38  ;;  %v12580_v38 = vld [vmem:[%s14378_s17 + $0x360] ss:$144 sps:$4 sm:$0xff]  }
  0x33   : > { %7370 = vmatpush2.bf16.msra.mxu1 %v12503_v39  ;;  %7178 = vmatprep.subr.bf16.mxu0 %v12504_v40  ;;  %v12620_v39 = vld [vmem:[%s18275_s1 + $0x214] ss:$8 sps:$4 sm:$0xff]  }
  0x34   : > { %7371 = vmatprep.subr.bf16.mxu1 %v12506_v41  ;;  %v12623_v40 = vld [vmem:[%s18275_s1 + $0x314] ss:$8 sps:$4 sm:$0xff]   ;;  %v12581_v41 = vld [vmem:[%s14378_s17 + $0x368] ss:$144 sps:$4 sm:$0xff]  }
  0x36   : > { %7179 = vmatpush2.bf16.msra.mxu0 %v12508_v42  ;;  %v12588_v42 = vld [vmem:[%s14378_s17 + $0x484] ss:$144 sps:$4 sm:$0xff]  }
  0x37   : > { %7372 = vmatpush2.bf16.msra.mxu1 %v12509_v43  ;;  %7180 = vmatprep.subr.bf16.mxu0 %v12510_v44  ;;  %v12590_v43 = vld [vmem:[%s14378_s17 + $0x48c] ss:$144 sps:$4 sm:$0xff]   ;;  %v12618_v44 = vld [vmem:[%s18275_s1 + $0x210] ss:$8 sps:$4 sm:$0xff]  }
  0x38   : > { %7373 = vmatprep.subr.bf16.mxu1 %v12512_v45  ;;  %v12621_v45 = vld [vmem:[%s18275_s1 + $0x310] ss:$8 sps:$4 sm:$0xff]  }
  0x3a   : > { %7181 = vmatpush2.bf16.msra.mxu0 %v12514_v46  ;;  %v12632_v46 = vld [vmem:[%s18275_s1 + $0x204] ss:$8 sps:$4 sm:$0xff]  }
  0x3b   : > { %7374 = vmatpush2.bf16.msra.mxu1 %v12515_v47  ;;  %7182 = vmatprep.subr.bf16.mxu0 %v12516_v48  ;;  %v12635_v47 = vld [vmem:[%s18275_s1 + $0x304] ss:$8 sps:$4 sm:$0xff]   ;;  %v12630_v48 = vld [vmem:[%s18275_s1 + $0x200] ss:$8 sps:$4 sm:$0xff]  }
  0x3c   : > { %7375 = vmatprep.subr.bf16.mxu1 %v12518_v50  ;;  %v12593_v50 = vld [vmem:[%s14378_s17 + $0x488] ss:$144 sps:$4 sm:$0xff]  }
  0x3e   : > { %7183 = vmatpush2.bf16.msra.mxu0 %v12520_v52  ;;  %v12644_v52 = vld [vmem:[%s18275_s1 + $0x2f4] ss:$8 sps:$4 sm:$0xff]  }
  0x3f   : > { %7376 = vmatpush2.bf16.msra.mxu1 %v12521_v53  ;;  %7184 = vmatprep.subr.bf16.mxu0 %v12522_v54  ;;  %v12647_v53 = vld [vmem:[%s18275_s1 + $0x3f4] ss:$8 sps:$4 sm:$0xff]  }
  0x40   : > { %7377 = vmatprep.subr.bf16.mxu1 %v12524_v55  ;;  %v12600_v54 = vld [vmem:[%s14378_s17 + $0x5a4] ss:$144 sps:$4 sm:$0xff]   ;;  %v12602_v55 = vld [vmem:[%s14378_s17 + $0x5ac] ss:$144 sps:$4 sm:$0xff]  }
  0x42   : > { %7185 = vmatpush2.bf16.msra.mxu0 %v12526_v56  ;;  %v12642_v56 = vld [vmem:[%s18275_s1 + $0x2f0] ss:$8 sps:$4 sm:$0xff]  }
  0x43   : > { %7378 = vmatpush2.bf16.msra.mxu1 %v12527_v57  ;;  %7186 = vmatprep.subr.bf16.mxu0 %v12528_v58  ;;  %v12645_v57 = vld [vmem:[%s18275_s1 + $0x3f0] ss:$8 sps:$4 sm:$0xff]   ;;  %v12656_v58 = vld [vmem:[%s18275_s1 + $0x2e4] ss:$8 sps:$4 sm:$0xff]  }
  0x44   : > { %7379 = vmatprep.subr.bf16.mxu1 %v12530_v59  ;;  %v12659_v59 = vld [vmem:[%s18275_s1 + $0x3e4] ss:$8 sps:$4 sm:$0xff]  }
  0x46   : > { %7187 = vmatpush2.bf16.msra.mxu0 %v12532_v60  ;;  %v12654_v60 = vld [vmem:[%s18275_s1 + $0x2e0] ss:$8 sps:$4 sm:$0xff]  }
  0x47   : > { %7380 = vmatpush2.bf16.msra.mxu1 %v12533_v61  ;;  %7188 = vmatprep.subr.bf16.mxu0 %v12534_v62  ;;  %v12657_v61 = vld [vmem:[%s18275_s1 + $0x3e0] ss:$8 sps:$4 sm:$0xff]  }
  0x48   : > { %7381 = vmatprep.subr.bf16.mxu1 %v12536_v63  ;;  %v12604_v62 = vld [vmem:[%s14378_s17 + $0x5a0] ss:$144 sps:$4 sm:$0xff]   ;;  %v12668_v63 = vld [vmem:[%s18275_s1 + $0x2d4] ss:$8 sps:$4 sm:$0xff]  }
  0x4a   : > { %7189 = vmatpush2.bf16.msra.mxu0 %v12538_v0  ;;  %v12671_v0 = vld [vmem:[%s18275_s1 + $0x3d4] ss:$8 sps:$4 sm:$0xff]  }
  0x4b   : > { %7382 = vmatpush2.bf16.msra.mxu1 %v12539_v1  ;;  %7544 = vmatprep.subr.bf16.mxu0 %v12548_v2  ;;  %v12605_v1 = vld [vmem:[%s14378_s17 + $0x5a8] ss:$144 sps:$4 sm:$0xff]   ;;  %v12612_v2 = vld [vmem:[%s14378_s17 + $0x6c4] ss:$144 sps:$4 sm:$0xff]  }
  0x4c   : > { %7737 = vmatprep.subr.bf16.mxu1 %v12551_v3  ;;  %v12614_v3 = vld [vmem:[%s14378_s17 + $0x6cc] ss:$144 sps:$4 sm:$0xff]  }
  0x4d   : > { %7191 = vmatmul.mubr.bf16.vlgmr.msra.gmra.mxu0 %v12540_v4  ;;  %v12666_v4 = vld [vmem:[%s18275_s1 + $0x2d0] ss:$8 sps:$4 sm:$0xff]  }
  0x4e   : > { %7384 = vmatmul.mubr.bf16.vlgmr.msra.gmra.mxu1 %v12543_v5  ;;  %7545 = vmatpush1.bf16.msra.mxu0 %v12546_v6  ;;  %v12669_v5 = vld [vmem:[%s18275_s1 + $0x3d0] ss:$8 sps:$4 sm:$0xff]   ;;  %v12680_v6 = vld [vmem:[%s18275_s1 + $0x2c4] ss:$8 sps:$4 sm:$0xff]  }
  0x4f   : > { %7738 = vmatpush1.bf16.msra.mxu1 %v12549_v7  ;;  %7200 = vmatprep.mubr.bf16.mxu0 %v12552_v8  ;;  %v12683_v7 = vld [vmem:[%s18275_s1 + $0x3c4] ss:$8 sps:$4 sm:$0xff]   ;;  %v12678_v8 = vld [vmem:[%s18275_s1 + $0x2c0] ss:$8 sps:$4 sm:$0xff]  }
  0x50   : > { %7393 = vmatprep.mubr.bf16.mxu1 %v12554_v9  ;;  %7546 = vmatprep.subr.bf16.mxu0 %v12560_v10  ;;  %v12616_v9 = vld [vmem:[%s14378_s17 + $0x6c0] ss:$144 sps:$4 sm:$0xff]   ;;  %v12617_v10 = vld [vmem:[%s14378_s17 + $0x6c8] ss:$144 sps:$4 sm:$0xff]  }
  0x51   : > { %7739 = vmatprep.subr.bf16.mxu1 %v12563_v11  ;;  %v12681_v11 = vld [vmem:[%s18275_s1 + $0x3c0] ss:$8 sps:$4 sm:$0xff]  }
  0x52   : > { %7547 = vmatpush1.bf16.msra.mxu0 %v12558_v12  ;;  %v12624_v12 = vld [vmem:[%s14378_s17 + $0x7e4] ss:$144 sps:$4 sm:$0xff]  }
  0x53   : > { %7740 = vmatpush1.bf16.msra.mxu1 %v12561_v13  ;;  %7548 = vmatprep.subr.bf16.mxu0 %v12572_v14  ;;  %v12692_v13 = vld [vmem:[%s18275_s1 + $0x2b4] ss:$8 sps:$4 sm:$0xff]  }
  0x54   : > { %7741 = vmatprep.subr.bf16.mxu1 %v12575_v15  ;;  %v12626_v14 = vld [vmem:[%s14378_s17 + $0x7ec] ss:$144 sps:$4 sm:$0xff]  }
  0x55   : > { %7201 = vmatmul.mubr.bf16.gmra.mxu0 %v12556_v16  ;;  %v12695_v15 = vld [vmem:[%s18275_s1 + $0x3b4] ss:$8 sps:$4 sm:$0xff]   ;;  %v12690_v16 = vld [vmem:[%s18275_s1 + $0x2b0] ss:$8 sps:$4 sm:$0xff]  }
  0x56   : > { %7394 = vmatmul.mubr.bf16.gmra.mxu1 %v12557_v17  ;;  %7210 = vmatprep.mubr.bf16.mxu0 %v12564_v18  ;;  %v12693_v17 = vld [vmem:[%s18275_s1 + $0x3b0] ss:$8 sps:$4 sm:$0xff]   ;;  %v12702_v18 = vld [vmem:[%s18275_s1 + $0x2a0] ss:$8 sps:$4 sm:$0xff]  }
  0x57   : > { %7403 = vmatprep.mubr.bf16.mxu1 %v12566_v19  ;;  %7549 = vmatpush1.bf16.msra.mxu0 %v12570_v20  ;;  %v12704_v19 = vld [vmem:[%s18275_s1 + $0x2a4] ss:$8 sps:$4 sm:$0xff]   ;;  %v12705_v20 = vld [vmem:[%s18275_s1 + $0x3a0] ss:$8 sps:$4 sm:$0xff]  }
  0x58   : > { %7742 = vmatpush1.bf16.msra.mxu1 %v12573_v21  ;;  %7550 = vmatprep.subr.bf16.mxu0 %v12584_v22  ;;  %v12707_v21 = vld [vmem:[%s18275_s1 + $0x3a4] ss:$8 sps:$4 sm:$0xff]   ;;  %v12628_v22 = vld [vmem:[%s14378_s17 + $0x7e0] ss:$144 sps:$4 sm:$0xff]  }
  0x59   : > { %7743 = vmatprep.subr.bf16.mxu1 %v12587_v23  ;;  %v12629_v23 = vld [vmem:[%s14378_s17 + $0x7e8] ss:$144 sps:$4 sm:$0xff]  }
  0x5b   : > { %7551 = vmatpush1.bf16.msra.mxu0 %v12582_v24  ;;  %v12636_v24 = vld [vmem:[%s14378_s17 + $0x904] ss:$144 sps:$4 sm:$0xff]  }
  0x5c   : > { %7744 = vmatpush1.bf16.msra.mxu1 %v12585_v27  ;;  %7552 = vmatprep.subr.bf16.mxu0 %v12596_v28  ;;  %v12716_v27 = vld [vmem:[%s18275_s1 + $0x294] ss:$8 sps:$4 sm:$0xff]   ;;  %v12717_v28 = vld [vmem:[%s18275_s1 + $0x390] ss:$8 sps:$4 sm:$0xff]  }
  0x5d   : > { %7745 = vmatprep.subr.bf16.mxu1 %v12599_v29  ;;  %7211 = vmatmul.mubr.bf16.gmra.mxu0 %v12568_v25  ;;  %v12638_v25 = vld [vmem:[%s14378_s17 + $0x90c] ss:$144 sps:$4 sm:$0xff]  }
  0x5e   : > { %7404 = vmatmul.mubr.bf16.gmra.mxu1 %v12569_v26  ;;  %7220 = vmatprep.mubr.bf16.mxu0 %v12576_v30  ;;  %v12714_v26 = vld [vmem:[%s18275_s1 + $0x290] ss:$8 sps:$4 sm:$0xff]   ;;  %v12719_v29 = vld [vmem:[%s18275_s1 + $0x394] ss:$8 sps:$4 sm:$0xff]  }
  0x5f   : > { %7413 = vmatprep.mubr.bf16.mxu1 %v12578_v31  ;;  %7553 = vmatpush1.bf16.msra.mxu0 %v12594_v32  ;;  %v12640_v30 = vld [vmem:[%s14378_s17 + $0x900] ss:$144 sps:$4 sm:$0xff]   ;;  %v12641_v31 = vld [vmem:[%s14378_s17 + $0x908] ss:$144 sps:$4 sm:$0xff]   ;;  %v12648_v32 = vld [vmem:[%s14378_s17 + $0xa24] ss:$144 sps:$4 sm:$0xff]  }
  0x60   : > { %7746 = vmatpush1.bf16.msra.mxu1 %v12597_v33  ;;  %7554 = vmatprep.subr.bf16.mxu0 %v12608_v34  ;;  %v12726_v33 = vld [vmem:[%s18275_s1 + $0x280] ss:$8 sps:$4 sm:$0xff]   ;;  %v12728_v34 = vld [vmem:[%s18275_s1 + $0x284] ss:$8 sps:$4 sm:$0xff]  }
  0x61   : > { %7747 = vmatprep.subr.bf16.mxu1 %v12611_v35  ;;  %v12729_v35 = vld [vmem:[%s18275_s1 + $0x380] ss:$8 sps:$4 sm:$0xff]  }
  0x63   : > { %7555 = vmatpush1.bf16.msra.mxu0 %v12606_v36  ;;  %v12731_v36 = vld [vmem:[%s18275_s1 + $0x384] ss:$8 sps:$4 sm:$0xff]  }
  0x64   : > { %7748 = vmatpush1.bf16.msra.mxu1 %v12609_v37  ;;  %7556 = vmatprep.subr.bf16.mxu0 %v12620_v39  ;;  %v12650_v37 = vld [vmem:[%s14378_s17 + $0xa2c] ss:$144 sps:$4 sm:$0xff]  }
  0x65   : > { %7749 = vmatprep.subr.bf16.mxu1 %v12623_v40  ;;  %7221 = vmatmul.mubr.bf16.gmra.mxu0 %v12580_v38  ;;  %v12740_v38 = vld [vmem:[%s18275_s1 + $0x474] ss:$8 sps:$4 sm:$0xff]   ;;  %v12652_v40 = vld [vmem:[%s14378_s17 + $0xa20] ss:$144 sps:$4 sm:$0xff]  }
  0x66   : > { %7414 = vmatmul.mubr.bf16.gmra.mxu1 %v12581_v41  ;;  %7230 = vmatprep.mubr.bf16.mxu0 %v12588_v42  ;;  %v12743_v39 = vld [vmem:[%s18275_s1 + $0x574] ss:$8 sps:$4 sm:$0xff]   ;;  %v12653_v41 = vld [vmem:[%s14378_s17 + $0xa28] ss:$144 sps:$4 sm:$0xff]  }
  0x67   : > { %7423 = vmatprep.mubr.bf16.mxu1 %v12590_v43  ;;  %7557 = vmatpush1.bf16.msra.mxu0 %v12618_v44  ;;  %v12660_v42 = vld [vmem:[%s14378_s17 + $0xb44] ss:$144 sps:$4 sm:$0xff]   ;;  %v12662_v43 = vld [vmem:[%s14378_s17 + $0xb4c] ss:$144 sps:$4 sm:$0xff]   ;;  %v12664_v44 = vld [vmem:[%s14378_s17 + $0xb40] ss:$144 sps:$4 sm:$0xff]  }
  0x68   : > { %7750 = vmatpush1.bf16.msra.mxu1 %v12621_v45  ;;  %7558 = vmatprep.subr.bf16.mxu0 %v12632_v46  ;;  %v12665_v45 = vld [vmem:[%s14378_s17 + $0xb48] ss:$144 sps:$4 sm:$0xff]   ;;  %v12672_v46 = vld [vmem:[%s14378_s17 + $0xc64] ss:$144 sps:$4 sm:$0xff]  }
  0x69   : > { %7751 = vmatprep.subr.bf16.mxu1 %v12635_v47  ;;  %v12674_v47 = vld [vmem:[%s14378_s17 + $0xc6c] ss:$144 sps:$4 sm:$0xff]  }
  0x6b   : > { %7559 = vmatpush1.bf16.msra.mxu0 %v12630_v48  ;;  %v12676_v48 = vld [vmem:[%s14378_s17 + $0xc60] ss:$144 sps:$4 sm:$0xff]  }
  0x6c   : > { %7752 = vmatpush1.bf16.msra.mxu1 %v12633_v51  ;;  %7560 = vmatprep.subr.bf16.mxu0 %v12644_v52  ;;  %v12686_v51 = vld [vmem:[%s14378_s17 + $0xd8c] ss:$144 sps:$4 sm:$0xff]   ;;  %v12688_v52 = vld [vmem:[%s14378_s17 + $0xd80] ss:$144 sps:$4 sm:$0xff]  }
  0x6d   : > { %7753 = vmatprep.subr.bf16.mxu1 %v12647_v53  ;;  %7231 = vmatmul.mubr.bf16.gmra.mxu0 %v12592_v49  ;;  %v12677_v49 = vld [vmem:[%s14378_s17 + $0xc68] ss:$144 sps:$4 sm:$0xff]  }
  0x6e   : > { %7424 = vmatmul.mubr.bf16.gmra.mxu1 %v12593_v50  ;;  %7240 = vmatprep.mubr.bf16.mxu0 %v12600_v54  ;;  %v12684_v50 = vld [vmem:[%s14378_s17 + $0xd84] ss:$144 sps:$4 sm:$0xff]   ;;  %v12689_v53 = vld [vmem:[%s14378_s17 + $0xd88] ss:$144 sps:$4 sm:$0xff]  }
  0x6f   : > { %7433 = vmatprep.mubr.bf16.mxu1 %v12602_v55  ;;  %7561 = vmatpush2.bf16.msra.mxu0 %v12642_v56  ;;  %v12696_v54 = vld [vmem:[%s14378_s17 + $0xea4] ss:$144 sps:$4 sm:$0xff]   ;;  %v12698_v55 = vld [vmem:[%s14378_s17 + $0xeac] ss:$144 sps:$4 sm:$0xff]   ;;  %v12700_v56 = vld [vmem:[%s14378_s17 + $0xea0] ss:$144 sps:$4 sm:$0xff]  }
  0x70   : > { %7754 = vmatpush2.bf16.msra.mxu1 %v12645_v57  ;;  %7562 = vmatprep.subr.bf16.mxu0 %v12656_v58  ;;  %v12701_v57 = vld [vmem:[%s14378_s17 + $0xea8] ss:$144 sps:$4 sm:$0xff]   ;;  %v12708_v58 = vld [vmem:[%s14378_s17 + $0xfc4] ss:$144 sps:$4 sm:$0xff]  }
  0x71   : > { %7755 = vmatprep.subr.bf16.mxu1 %v12659_v59  ;;  %v12710_v59 = vld [vmem:[%s14378_s17 + $0xfcc] ss:$144 sps:$4 sm:$0xff]  }
  0x73   : > { %7563 = vmatpush2.bf16.msra.mxu0 %v12654_v60  ;;  %v12712_v60 = vld [vmem:[%s14378_s17 + $0xfc0] ss:$144 sps:$4 sm:$0xff]  }
  0x74   : > { %7756 = vmatpush2.bf16.msra.mxu1 %v12657_v61  ;;  %7564 = vmatprep.subr.bf16.mxu0 %v12668_v63  ;;  %v12713_v61 = vld [vmem:[%s14378_s17 + $0xfc8] ss:$144 sps:$4 sm:$0xff]   ;;  %v12722_v63 = vld [vmem:[%s14378_s17 + $0x10ec] ss:$144 sps:$4 sm:$0xff]  }
  0x75   : > { %7757 = vmatprep.subr.bf16.mxu1 %v12671_v0  ;;  %7241 = vmatmul.mubr.bf16.gmra.mxu0 %v12604_v62  ;;  %v12720_v62 = vld [vmem:[%s14378_s17 + $0x10e4] ss:$144 sps:$4 sm:$0xff]   ;;  %v12724_v0 = vld [vmem:[%s14378_s17 + $0x10e0] ss:$144 sps:$4 sm:$0xff]  }
  0x76   : > { %7434 = vmatmul.mubr.bf16.gmra.mxu1 %v12605_v1  ;;  %7250 = vmatprep.mubr.bf16.mxu0 %v12612_v2  ;;  %v12725_v1 = vld [vmem:[%s14378_s17 + $0x10e8] ss:$144 sps:$4 sm:$0xff]   ;;  %v12734_v2 = vld [vmem:[%s14378_s17 + $0x14] ss:$144 sps:$4 sm:$0xff]  }
  0x77   : > { %7443 = vmatprep.mubr.bf16.mxu1 %v12614_v3  ;;  %7565 = vmatpush2.bf16.msra.mxu0 %v12666_v4  ;;  %v12737_v3 = vld [vmem:[%s14378_s17 + $0x1c] ss:$144 sps:$4 sm:$0xff]   ;;  %v12732_v4 = vld [vmem:[%s14378_s17 + $0x10] ss:$144 sps:$4 sm:$0xff]  }
  0x78   : > { %7758 = vmatpush2.bf16.msra.mxu1 %v12669_v5  ;;  %7566 = vmatprep.subr.bf16.mxu0 %v12680_v6  ;;  %v12735_v5 = vld [vmem:[%s14378_s17 + $0x18] ss:$144 sps:$4 sm:$0xff]  }
  0x79   : > { %7759 = vmatprep.subr.bf16.mxu1 %v12683_v7  ;;  %v12738_v6 = vld [vmem:[%s18275_s1 + $0x470] ss:$8 sps:$4 sm:$0xff]  }
  0x7a   : > { %v12741_v7 = vld [vmem:[%s18275_s1 + $0x570] ss:$8 sps:$4 sm:$0xff]  }
  0x7b   : > { %7567 = vmatpush2.bf16.msra.mxu0 %v12678_v8  ;;  %v12744_v8 = vld [vmem:[%s14378_s17 + $0x134] ss:$144 sps:$4 sm:$0xff]  }
  0x7c   : > { %7760 = vmatpush2.bf16.msra.mxu1 %v12681_v11  ;;  %7568 = vmatprep.subr.bf16.mxu0 %v12692_v13  ;;  %v12755_v11 = vld [vmem:[%s18275_s1 + $0x564] ss:$8 sps:$4 sm:$0xff]   ;;  %v12753_v13 = vld [vmem:[%s18275_s1 + $0x560] ss:$8 sps:$4 sm:$0xff]  }
  0x7d   : > { %7761 = vmatprep.subr.bf16.mxu1 %v12695_v15  ;;  %7251 = vmatmul.mubr.bf16.gmra.mxu0 %v12616_v9  ;;  %v12746_v9 = vld [vmem:[%s14378_s17 + $0x13c] ss:$144 sps:$4 sm:$0xff]  }
  0x7e   : > { %7444 = vmatmul.mubr.bf16.gmra.mxu1 %v12617_v10  ;;  %7260 = vmatprep.mubr.bf16.mxu0 %v12624_v12  ;;  %v12752_v10 = vld [vmem:[%s18275_s1 + $0x464] ss:$8 sps:$4 sm:$0xff]   ;;  %v12750_v12 = vld [vmem:[%s18275_s1 + $0x460] ss:$8 sps:$4 sm:$0xff]   ;;  %v12767_v15 = vld [vmem:[%s18275_s1 + $0x554] ss:$8 sps:$4 sm:$0xff]  }
  0x7f   : > { %7453 = vmatprep.mubr.bf16.mxu1 %v12626_v14  ;;  %7569 = vmatpush2.bf16.msra.mxu0 %v12690_v16  ;;  %v12764_v14 = vld [vmem:[%s18275_s1 + $0x454] ss:$8 sps:$4 sm:$0xff]   ;;  %v12748_v16 = vld [vmem:[%s14378_s17 + $0x130] ss:$144 sps:$4 sm:$0xff]  }
  0x80   : > { %7762 = vmatpush2.bf16.msra.mxu1 %v12693_v17  ;;  %7570 = vmatprep.subr.bf16.mxu0 %v12704_v19  ;;  %v12749_v17 = vld [vmem:[%s14378_s17 + $0x138] ss:$144 sps:$4 sm:$0xff]   ;;  %v12758_v19 = vld [vmem:[%s14378_s17 + $0x25c] ss:$144 sps:$4 sm:$0xff]  }
  0x81   : > { %7763 = vmatprep.subr.bf16.mxu1 %v12707_v21  ;;  %v12765_v21 = vld [vmem:[%s18275_s1 + $0x550] ss:$8 sps:$4 sm:$0xff]  }
  0x83   : > { %7571 = vmatpush2.bf16.msra.mxu0 %v12702_v18  ;;  %v12756_v18 = vld [vmem:[%s14378_s17 + $0x254] ss:$144 sps:$4 sm:$0xff]  }
  0x84   : > { %7764 = vmatpush2.bf16.msra.mxu1 %v12705_v20  ;;  %7572 = vmatprep.subr.bf16.mxu0 %v12716_v27  ;;  %v12762_v20 = vld [vmem:[%s18275_s1 + $0x450] ss:$8 sps:$4 sm:$0xff]   ;;  %v12777_v27 = vld [vmem:[%s18275_s1 + $0x540] ss:$8 sps:$4 sm:$0xff]  }
  0x85   : > { %7261 = vmatmul.mubr.bf16.gmra.mxu0 %v12628_v22  ;;  %7765 = vmatprep.subr.bf16.mxu1 %v12719_v29  ;;  %v12776_v22 = vld [vmem:[%s18275_s1 + $0x444] ss:$8 sps:$4 sm:$0xff]   ;;  %v12791_v29 = vld [vmem:[%s18275_s1 + $0x534] ss:$8 sps:$4 sm:$0xff]  }
  0x86   : > { %7454 = vmatmul.mubr.bf16.gmra.mxu1 %v12629_v23  ;;  %7270 = vmatprep.mubr.bf16.mxu0 %v12636_v24  ;;  %v12779_v23 = vld [vmem:[%s18275_s1 + $0x544] ss:$8 sps:$4 sm:$0xff]   ;;  %v12774_v24 = vld [vmem:[%s18275_s1 + $0x440] ss:$8 sps:$4 sm:$0xff]  }
  0x87   : > { %7463 = vmatprep.mubr.bf16.mxu1 %v12638_v25  ;;  %7573 = vmatpush2.bf16.msra.mxu0 %v12714_v26  ;;  %v12760_v25 = vld [vmem:[%s14378_s17 + $0x250] ss:$144 sps:$4 sm:$0xff]   ;;  %v12761_v26 = vld [vmem:[%s14378_s17 + $0x258] ss:$144 sps:$4 sm:$0xff]  }
  0x88   : > { %7766 = vmatpush2.bf16.msra.mxu1 %v12717_v28  ;;  %7574 = vmatprep.subr.bf16.mxu0 %v12728_v34  ;;  %v12788_v28 = vld [vmem:[%s18275_s1 + $0x434] ss:$8 sps:$4 sm:$0xff]   ;;  %v12800_v34 = vld [vmem:[%s18275_s1 + $0x424] ss:$8 sps:$4 sm:$0xff]  }
  0x89   : > { %7767 = vmatprep.subr.bf16.mxu1 %v12731_v36  ;;  %v12798_v36 = vld [vmem:[%s18275_s1 + $0x420] ss:$8 sps:$4 sm:$0xff]  }
  0x8b   : > { %7575 = vmatpush2.bf16.msra.mxu0 %v12726_v33  ;;  %v12789_v33 = vld [vmem:[%s18275_s1 + $0x530] ss:$8 sps:$4 sm:$0xff]  }
  0x8c   : > { %7768 = vmatpush2.bf16.msra.mxu1 %v12729_v35  ;;  %7930 = vmatprep.subr.bf16.mxu0 %v12740_v38  ;;  %v12803_v35 = vld [vmem:[%s18275_s1 + $0x524] ss:$8 sps:$4 sm:$0xff]   ;;  %v12773_v38 = vld [vmem:[%s14378_s17 + $0x378] ss:$144 sps:$4 sm:$0xff]  }
  0x8d   : > { %7271 = vmatmul.mubr.bf16.gmra.mxu0 %v12640_v30  ;;  %8123 = vmatprep.subr.bf16.mxu1 %v12743_v39  ;;  %v12768_v30 = vld [vmem:[%s14378_s17 + $0x374] ss:$144 sps:$4 sm:$0xff]   ;;  %v12801_v39 = vld [vmem:[%s18275_s1 + $0x520] ss:$8 sps:$4 sm:$0xff]  }
  0x8e   : > { %7464 = vmatmul.mubr.bf16.gmra.mxu1 %v12641_v31  ;;  %7280 = vmatprep.mubr.bf16.mxu0 %v12648_v32  ;;  %v12770_v31 = vld [vmem:[%s14378_s17 + $0x37c] ss:$144 sps:$4 sm:$0xff]   ;;  %v12786_v32 = vld [vmem:[%s18275_s1 + $0x430] ss:$8 sps:$4 sm:$0xff]  }
  0x8f   : > { %7473 = vmatprep.mubr.bf16.mxu1 %v12650_v37  ;;  %v12772_v37 = vld [vmem:[%s14378_s17 + $0x370] ss:$144 sps:$4 sm:$0xff]  }
  0x95   : > { %7281 = vmatmul.mubr.bf16.gmra.mxu0 %v12652_v40  ;;  %v12812_v40 = vld [vmem:[%s18275_s1 + $0x414] ss:$8 sps:$4 sm:$0xff]  }
  0x96   : > { %7474 = vmatmul.mubr.bf16.gmra.mxu1 %v12653_v41  ;;  %7290 = vmatprep.mubr.bf16.mxu0 %v12660_v42  ;;  %v12815_v41 = vld [vmem:[%s18275_s1 + $0x514] ss:$8 sps:$4 sm:$0xff]  }
  0x97   : > { %7483 = vmatprep.mubr.bf16.mxu1 %v12662_v43  ;;  %v12780_v42 = vld [vmem:[%s14378_s17 + $0x494] ss:$144 sps:$4 sm:$0xff]   ;;  %v12782_v43 = vld [vmem:[%s14378_s17 + $0x49c] ss:$144 sps:$4 sm:$0xff]  }
  0x9d   : > { %7291 = vmatmul.mubr.bf16.gmra.mxu0 %v12664_v44  ;;  %v12810_v44 = vld [vmem:[%s18275_s1 + $0x410] ss:$8 sps:$4 sm:$0xff]  }
  0x9e   : > { %7484 = vmatmul.mubr.bf16.gmra.mxu1 %v12665_v45  ;;  %7300 = vmatprep.mubr.bf16.mxu0 %v12672_v46  ;;  %v12813_v45 = vld [vmem:[%s18275_s1 + $0x510] ss:$8 sps:$4 sm:$0xff]   ;;  %v12824_v46 = vld [vmem:[%s18275_s1 + $0x404] ss:$8 sps:$4 sm:$0xff]  }
  0x9f   : > { %7493 = vmatprep.mubr.bf16.mxu1 %v12674_v47  ;;  %v12827_v47 = vld [vmem:[%s18275_s1 + $0x504] ss:$8 sps:$4 sm:$0xff]  }
  0xa5   : > { %7301 = vmatmul.mubr.bf16.gmra.mxu0 %v12676_v48  ;;  %v12822_v48 = vld [vmem:[%s18275_s1 + $0x400] ss:$8 sps:$4 sm:$0xff]  }
  0xa6   : > { %7494 = vmatmul.mubr.bf16.gmra.mxu1 %v12677_v49  ;;  %7310 = vmatprep.mubr.bf16.mxu0 %v12684_v50  ;;  %v12784_v49 = vld [vmem:[%s14378_s17 + $0x490] ss:$144 sps:$4 sm:$0xff]   ;;  %v12785_v50 = vld [vmem:[%s14378_s17 + $0x498] ss:$144 sps:$4 sm:$0xff]  }
  0xa7   : > { %7503 = vmatprep.mubr.bf16.mxu1 %v12686_v51  ;;  %v12825_v51 = vld [vmem:[%s18275_s1 + $0x500] ss:$8 sps:$4 sm:$0xff]  }
  0xad   : > { %7311 = vmatmul.mubr.bf16.gmra.mxu0 %v12688_v52  ;;  %v12836_v52 = vld [vmem:[%s18275_s1 + $0x4f4] ss:$8 sps:$4 sm:$0xff]  }
  0xae   : > { %7504 = vmatmul.mubr.bf16.gmra.mxu1 %v12689_v53  ;;  %7320 = vmatprep.mubr.bf16.mxu0 %v12696_v54  ;;  %v12839_v53 = vld [vmem:[%s18275_s1 + $0x5f4] ss:$8 sps:$4 sm:$0xff]  }
  0xaf   : > { %7513 = vmatprep.mubr.bf16.mxu1 %v12698_v55  ;;  %v12792_v54 = vld [vmem:[%s14378_s17 + $0x5b4] ss:$144 sps:$4 sm:$0xff]   ;;  %v12794_v55 = vld [vmem:[%s14378_s17 + $0x5bc] ss:$144 sps:$4 sm:$0xff]  }
  0xb5   : > { %7321 = vmatmul.mubr.bf16.gmra.mxu0 %v12700_v56  ;;  %v12834_v56 = vld [vmem:[%s18275_s1 + $0x4f0] ss:$8 sps:$4 sm:$0xff]  }
  0xb6   : > { %7514 = vmatmul.mubr.bf16.gmra.mxu1 %v12701_v57  ;;  %7330 = vmatprep.mubr.bf16.mxu0 %v12708_v58  ;;  %v12837_v57 = vld [vmem:[%s18275_s1 + $0x5f0] ss:$8 sps:$4 sm:$0xff]   ;;  %v12848_v58 = vld [vmem:[%s18275_s1 + $0x4e4] ss:$8 sps:$4 sm:$0xff]  }
  0xb7   : > { %7523 = vmatprep.mubr.bf16.mxu1 %v12710_v59  ;;  %v12851_v59 = vld [vmem:[%s18275_s1 + $0x5e4] ss:$8 sps:$4 sm:$0xff]  }
  0xbd   : > { %7331 = vmatmul.mubr.bf16.gmra.mxu0 %v12712_v60  ;;  %v12846_v60 = vld [vmem:[%s18275_s1 + $0x4e0] ss:$8 sps:$4 sm:$0xff]  }
  0xbe   : > { %7524 = vmatmul.mubr.bf16.gmra.mxu1 %v12713_v61  ;;  %7340 = vmatprep.mubr.bf16.mxu0 %v12720_v62  ;;  %v12796_v61 = vld [vmem:[%s14378_s17 + $0x5b0] ss:$144 sps:$4 sm:$0xff]   ;;  %v12797_v62 = vld [vmem:[%s14378_s17 + $0x5b8] ss:$144 sps:$4 sm:$0xff]  }
  0xbf   : > { %7533 = vmatprep.mubr.bf16.mxu1 %v12722_v63  ;;  %v12849_v63 = vld [vmem:[%s18275_s1 + $0x5e0] ss:$8 sps:$4 sm:$0xff]  }
  0xc5   : > { %7341 = vmatmul.mubr.bf16.gmra.mxu0 %v12724_v0  ;;  %v12860_v0 = vld [vmem:[%s18275_s1 + $0x4d4] ss:$8 sps:$4 sm:$0xff]  }
  0xc6   : > { %7534 = vmatmul.mubr.bf16.gmra.mxu1 %v12725_v1  ;;  %7576 = vmatprep.mubr.bf16.mxu0 %v12734_v2  ;;  %v12863_v1 = vld [vmem:[%s18275_s1 + $0x5d4] ss:$8 sps:$4 sm:$0xff]  }
  0xc7   : > { %7769 = vmatprep.mubr.bf16.mxu1 %v12737_v3  ;;  %v12804_v2 = vld [vmem:[%s14378_s17 + $0x6d4] ss:$144 sps:$4 sm:$0xff]   ;;  %v12806_v3 = vld [vmem:[%s14378_s17 + $0x6dc] ss:$144 sps:$4 sm:$0xff]  }
  0xcd   : > { %7577 = vmatmul.mubr.bf16.vlgmr.msra.gmra.mxu0 %v12732_v4  ;;  %v12858_v4 = vld [vmem:[%s18275_s1 + $0x4d0] ss:$8 sps:$4 sm:$0xff]  }
  0xce   : > { %7770 = vmatmul.mubr.bf16.vlgmr.msra.gmra.mxu1 %v12735_v5  ;;  %7931 = vmatpush1.bf16.msra.mxu0 %v12738_v6  ;;  %v12861_v5 = vld [vmem:[%s18275_s1 + $0x5d0] ss:$8 sps:$4 sm:$0xff]   ;;  %v12872_v6 = vld [vmem:[%s18275_s1 + $0x4c4] ss:$8 sps:$4 sm:$0xff]  }
  0xcf   : > { %8124 = vmatpush1.bf16.msra.mxu1 %v12741_v7  ;;  %7586 = vmatprep.mubr.bf16.mxu0 %v12744_v8  ;;  %v12875_v7 = vld [vmem:[%s18275_s1 + $0x5c4] ss:$8 sps:$4 sm:$0xff]   ;;  %v12870_v8 = vld [vmem:[%s18275_s1 + $0x4c0] ss:$8 sps:$4 sm:$0xff]  }
  0xd0   : > { %7779 = vmatprep.mubr.bf16.mxu1 %v12746_v9  ;;  %7932 = vmatprep.subr.bf16.mxu0 %v12752_v10  ;;  %v12808_v9 = vld [vmem:[%s14378_s17 + $0x6d0] ss:$144 sps:$4 sm:$0xff]   ;;  %v12809_v10 = vld [vmem:[%s14378_s17 + $0x6d8] ss:$144 sps:$4 sm:$0xff]  }
  0xd1   : > { %8125 = vmatprep.subr.bf16.mxu1 %v12755_v11  ;;  %v12873_v11 = vld [vmem:[%s18275_s1 + $0x5c0] ss:$8 sps:$4 sm:$0xff]  }
  0xd2   : > { %7933 = vmatpush1.bf16.msra.mxu0 %v12750_v12  ;;  %v12884_v12 = vld [vmem:[%s18275_s1 + $0x4b4] ss:$8 sps:$4 sm:$0xff]  }
  0xd3   : > { %8126 = vmatpush1.bf16.msra.mxu1 %v12753_v13  ;;  %7934 = vmatprep.subr.bf16.mxu0 %v12764_v14  ;;  %v12887_v13 = vld [vmem:[%s18275_s1 + $0x5b4] ss:$8 sps:$4 sm:$0xff]  }
  0xd4   : > { %8127 = vmatprep.subr.bf16.mxu1 %v12767_v15  ;;  %v12816_v14 = vld [vmem:[%s14378_s17 + $0x7f4] ss:$144 sps:$4 sm:$0xff]   ;;  %v12818_v15 = vld [vmem:[%s14378_s17 + $0x7fc] ss:$144 sps:$4 sm:$0xff]  }
  0xd5   : > { %7587 = vmatmul.mubr.bf16.gmra.mxu0 %v12748_v16  ;;  %v12882_v16 = vld [vmem:[%s18275_s1 + $0x4b0] ss:$8 sps:$4 sm:$0xff]  }
  0xd6   : > { %7780 = vmatmul.mubr.bf16.gmra.mxu1 %v12749_v17  ;;  %7596 = vmatprep.mubr.bf16.mxu0 %v12756_v18  ;;  %v12885_v17 = vld [vmem:[%s18275_s1 + $0x5b0] ss:$8 sps:$4 sm:$0xff]   ;;  %v12896_v18 = vld [vmem:[%s18275_s1 + $0x4a4] ss:$8 sps:$4 sm:$0xff]  }
  0xd7   : > { %7789 = vmatprep.mubr.bf16.mxu1 %v12758_v19  ;;  %7935 = vmatpush1.bf16.msra.mxu0 %v12762_v20  ;;  %v12899_v19 = vld [vmem:[%s18275_s1 + $0x5a4] ss:$8 sps:$4 sm:$0xff]   ;;  %v12894_v20 = vld [vmem:[%s18275_s1 + $0x4a0] ss:$8 sps:$4 sm:$0xff]  }
  0xd8   : > { %8128 = vmatpush1.bf16.msra.mxu1 %v12765_v21  ;;  %7936 = vmatprep.subr.bf16.mxu0 %v12776_v22  ;;  %v12820_v21 = vld [vmem:[%s14378_s17 + $0x7f0] ss:$144 sps:$4 sm:$0xff]   ;;  %v12821_v22 = vld [vmem:[%s14378_s17 + $0x7f8] ss:$144 sps:$4 sm:$0xff]  }
  0xd9   : > { %8129 = vmatprep.subr.bf16.mxu1 %v12779_v23  ;;  %v12897_v23 = vld [vmem:[%s18275_s1 + $0x5a0] ss:$8 sps:$4 sm:$0xff]  }
  0xdb   : > { %7937 = vmatpush1.bf16.msra.mxu0 %v12774_v24  ;;  %v12908_v24 = vld [vmem:[%s18275_s1 + $0x494] ss:$8 sps:$4 sm:$0xff]  }
  0xdc   : > { %8130 = vmatpush1.bf16.msra.mxu1 %v12777_v27  ;;  %7938 = vmatprep.subr.bf16.mxu0 %v12788_v28  ;;  %v12830_v27 = vld [vmem:[%s14378_s17 + $0x91c] ss:$144 sps:$4 sm:$0xff]   ;;  %v12906_v28 = vld [vmem:[%s18275_s1 + $0x490] ss:$8 sps:$4 sm:$0xff]  }
  0xdd   : > { %8131 = vmatprep.subr.bf16.mxu1 %v12791_v29  ;;  %7597 = vmatmul.mubr.bf16.gmra.mxu0 %v12760_v25  ;;  %v12911_v25 = vld [vmem:[%s18275_s1 + $0x594] ss:$8 sps:$4 sm:$0xff]   ;;  %v12909_v29 = vld [vmem:[%s18275_s1 + $0x590] ss:$8 sps:$4 sm:$0xff]  }
  0xde   : > { %7790 = vmatmul.mubr.bf16.gmra.mxu1 %v12761_v26  ;;  %7606 = vmatprep.mubr.bf16.mxu0 %v12768_v30  ;;  %v12828_v26 = vld [vmem:[%s14378_s17 + $0x914] ss:$144 sps:$4 sm:$0xff]  }
  0xdf   : > { %7799 = vmatprep.mubr.bf16.mxu1 %v12770_v31  ;;  %7939 = vmatpush1.bf16.msra.mxu0 %v12786_v32  ;;  %v12920_v30 = vld [vmem:[%s18275_s1 + $0x484] ss:$8 sps:$4 sm:$0xff]   ;;  %v12918_v32 = vld [vmem:[%s18275_s1 + $0x480] ss:$8 sps:$4 sm:$0xff]  }
  0xe0   : > { %8132 = vmatpush1.bf16.msra.mxu1 %v12789_v33  ;;  %7940 = vmatprep.subr.bf16.mxu0 %v12800_v34  ;;  %v12923_v31 = vld [vmem:[%s18275_s1 + $0x584] ss:$8 sps:$4 sm:$0xff]   ;;  %v12832_v33 = vld [vmem:[%s14378_s17 + $0x910] ss:$144 sps:$4 sm:$0xff]  }
  0xe1   : > { %8133 = vmatprep.subr.bf16.mxu1 %v12803_v35  ;;  %v12921_v34 = vld [vmem:[%s18275_s1 + $0x580] ss:$8 sps:$4 sm:$0xff]   ;;  %v12932_v35 = vld [vmem:[%s18275_s1 + $0x674] ss:$8 sps:$4 sm:$0xff]  }
  0xe3   : > { %7941 = vmatpush1.bf16.msra.mxu0 %v12798_v36  ;;  %v12935_v36 = vld [vmem:[%s18275_s1 + $0x774] ss:$8 sps:$4 sm:$0xff]  }
  0xe4   : > { %8134 = vmatpush1.bf16.msra.mxu1 %v12801_v39  ;;  %7942 = vmatprep.subr.bf16.mxu0 %v12812_v40  ;;  %v12842_v39 = vld [vmem:[%s14378_s17 + $0xa3c] ss:$144 sps:$4 sm:$0xff]  }
  0xe5   : > { %8135 = vmatprep.subr.bf16.mxu1 %v12815_v41  ;;  %7607 = vmatmul.mubr.bf16.gmra.mxu0 %v12772_v37  ;;  %v12833_v37 = vld [vmem:[%s14378_s17 + $0x918] ss:$144 sps:$4 sm:$0xff]  }
  0xe6   : > { %7800 = vmatmul.mubr.bf16.gmra.mxu1 %v12773_v38  ;;  %7616 = vmatprep.mubr.bf16.mxu0 %v12780_v42  ;;  %v12840_v38 = vld [vmem:[%s14378_s17 + $0xa34] ss:$144 sps:$4 sm:$0xff]  }
  0xe7   : > { %7809 = vmatprep.mubr.bf16.mxu1 %v12782_v43  ;;  %7943 = vmatpush1.bf16.msra.mxu0 %v12810_v44 }
  0xe8   : > { %8136 = vmatpush1.bf16.msra.mxu1 %v12813_v45  ;;  %7944 = vmatprep.subr.bf16.mxu0 %v12824_v46  ;;  %v12844_v46 = vld [vmem:[%s14378_s17 + $0xa30] ss:$144 sps:$4 sm:$0xff]  }
  0xe9   : > { %8137 = vmatprep.subr.bf16.mxu1 %v12827_v47  ;;  %v12845_v47 = vld [vmem:[%s14378_s17 + $0xa38] ss:$144 sps:$4 sm:$0xff]  }
  0xeb   : > { %7945 = vmatpush1.bf16.msra.mxu0 %v12822_v48 }
  0xec   : > { %8138 = vmatpush1.bf16.msra.mxu1 %v12825_v51  ;;  %7946 = vmatprep.subr.bf16.mxu0 %v12836_v52  ;;  %v12852_v51 = vld [vmem:[%s14378_s17 + $0xb54] ss:$144 sps:$4 sm:$0xff]   ;;  %v12854_v52 = vld [vmem:[%s14378_s17 + $0xb5c] ss:$144 sps:$4 sm:$0xff]  }
  0xed   : > { %8139 = vmatprep.subr.bf16.mxu1 %v12839_v53  ;;  %7617 = vmatmul.mubr.bf16.gmra.mxu0 %v12784_v49 }
  0xee   : > { %7810 = vmatmul.mubr.bf16.gmra.mxu1 %v12785_v50  ;;  %7626 = vmatprep.mubr.bf16.mxu0 %v12792_v54 }
  0xef   : > { %7819 = vmatprep.mubr.bf16.mxu1 %v12794_v55  ;;  %7947 = vmatpush2.bf16.msra.mxu0 %v12834_v56 }
  0xf0   : > { %8140 = vmatpush2.bf16.msra.mxu1 %v12837_v57  ;;  %7948 = vmatprep.subr.bf16.mxu0 %v12848_v58 }
  0xf1   : > { %8141 = vmatprep.subr.bf16.mxu1 %v12851_v59 }
  0xf3   : > { %7949 = vmatpush2.bf16.msra.mxu0 %v12846_v60 }
  0xf4   : > { %8142 = vmatpush2.bf16.msra.mxu1 %v12849_v63  ;;  %7950 = vmatprep.subr.bf16.mxu0 %v12860_v0  ;;  %v12857_v63 = vld [vmem:[%s14378_s17 + $0xb58] ss:$144 sps:$4 sm:$0xff]  }
  0xf5   : > { %8143 = vmatprep.subr.bf16.mxu1 %v12863_v1  ;;  %7627 = vmatmul.mubr.bf16.gmra.mxu0 %v12796_v61 }
  0xf6   : > { %7820 = vmatmul.mubr.bf16.gmra.mxu1 %v12797_v62  ;;  %7636 = vmatprep.mubr.bf16.mxu0 %v12804_v2  ;;  %v12856_v62 = vld [vmem:[%s14378_s17 + $0xb50] ss:$144 sps:$4 sm:$0xff]  }
  0xf7   : > { %7829 = vmatprep.mubr.bf16.mxu1 %v12806_v3  ;;  %7951 = vmatpush2.bf16.msra.mxu0 %v12858_v4  ;;  %v12864_v3 = vld [vmem:[%s14378_s17 + $0xc74] ss:$144 sps:$4 sm:$0xff]   ;;  %v12866_v4 = vld [vmem:[%s14378_s17 + $0xc7c] ss:$144 sps:$4 sm:$0xff]  }
  0xf8   : > { %8144 = vmatpush2.bf16.msra.mxu1 %v12861_v5  ;;  %7952 = vmatprep.subr.bf16.mxu0 %v12872_v6 }
  0xf9   : > { %8145 = vmatprep.subr.bf16.mxu1 %v12875_v7 }
  0xfb   : > { %7953 = vmatpush2.bf16.msra.mxu0 %v12870_v8 }
  0xfc   : > { %8146 = vmatpush2.bf16.msra.mxu1 %v12873_v11  ;;  %7954 = vmatprep.subr.bf16.mxu0 %v12884_v12 }
  0xfd   : > { %8147 = vmatprep.subr.bf16.mxu1 %v12887_v13  ;;  %7637 = vmatmul.mubr.bf16.gmra.mxu0 %v12808_v9 }
  0xfe   : > { %7830 = vmatmul.mubr.bf16.gmra.mxu1 %v12809_v10  ;;  %7646 = vmatprep.mubr.bf16.mxu0 %v12816_v14  ;;  %v12868_v14 = vld [vmem:[%s14378_s17 + $0xc70] ss:$144 sps:$4 sm:$0xff]  }
  0xff   : > { %7839 = vmatprep.mubr.bf16.mxu1 %v12818_v15  ;;  %7955 = vmatpush2.bf16.msra.mxu0 %v12882_v16  ;;  %v12869_v15 = vld [vmem:[%s14378_s17 + $0xc78] ss:$144 sps:$4 sm:$0xff]  }
 0x100   : > { %8148 = vmatpush2.bf16.msra.mxu1 %v12885_v17  ;;  %7956 = vmatprep.subr.bf16.mxu0 %v12896_v18 }
 0x101   : > { %8149 = vmatprep.subr.bf16.mxu1 %v12899_v19  ;;  %v12878_v19 = vld [vmem:[%s14378_s17 + $0xd94] ss:$144 sps:$4 sm:$0xff]  }
 0x103   : > { %7957 = vmatpush2.bf16.msra.mxu0 %v12894_v20  ;;  %v12881_v20 = vld [vmem:[%s14378_s17 + $0xd9c] ss:$144 sps:$4 sm:$0xff]  }
 0x104   : > { %8150 = vmatpush2.bf16.msra.mxu1 %v12897_v23  ;;  %7958 = vmatprep.subr.bf16.mxu0 %v12908_v24 }
 0x105   : > { %8151 = vmatprep.subr.bf16.mxu1 %v12911_v25  ;;  %7647 = vmatmul.mubr.bf16.gmra.mxu0 %v12820_v21 }
 0x106   : > { %7840 = vmatmul.mubr.bf16.gmra.mxu1 %v12821_v22  ;;  %7656 = vmatprep.mubr.bf16.mxu0 %v12828_v26 }
 0x107   : > { %7849 = vmatprep.mubr.bf16.mxu1 %v12830_v27  ;;  %7959 = vmatpush2.bf16.msra.mxu0 %v12906_v28 }
 0x108   : > { %8152 = vmatpush2.bf16.msra.mxu1 %v12909_v29  ;;  %7960 = vmatprep.subr.bf16.mxu0 %v12920_v30  ;;  %v12876_v30 = vld [vmem:[%s14378_s17 + $0xd90] ss:$144 sps:$4 sm:$0xff]  }
 0x109   : > { %8153 = vmatprep.subr.bf16.mxu1 %v12923_v31  ;;  %v12879_v31 = vld [vmem:[%s14378_s17 + $0xd98] ss:$144 sps:$4 sm:$0xff]  }
 0x10b   : > { %7961 = vmatpush2.bf16.msra.mxu0 %v12918_v32 }
 0x10c   : > { %8154 = vmatpush2.bf16.msra.mxu1 %v12921_v34  ;;  %8316 = vmatprep.subr.bf16.mxu0 %v12932_v35  ;;  %v12890_v35 = vld [vmem:[%s14378_s17 + $0xeb4] ss:$144 sps:$4 sm:$0xff]  }
 0x10d   : > { %8509 = vmatprep.subr.bf16.mxu1 %v12935_v36  ;;  %v7192_v40 = vpop.f32.mrf.mxu0  ;;  %7657 = vmatmul.mubr.bf16.gmra.mxu0 %v12832_v33  ;;  %v12893_v36 = vld [vmem:[%s14378_s17 + $0xebc] ss:$144 sps:$4 sm:$0xff]  }
 0x10e   : > { %v7385_v41 = vpop.f32.mrf.mxu1  ;;  %7850 = vmatmul.mubr.bf16.gmra.mxu1 %v12833_v37  ;;  %7666 = vmatprep.mubr.bf16.mxu0 %v12840_v38 }
 0x10f   : > { %v14929_v42 = vadd.f32 %v7385_v41, %v7192_v40  ;;  %7859 = vmatprep.mubr.bf16.mxu1 %v12842_v39  ;;  %v7194_v43 = vpop.f32.mrf.mxu0 }
 0x110   : > { %v7387_v44 = vpop.f32.mrf.mxu1 }
 0x111   : > { %v14931_v45 = vadd.f32 %v7387_v44, %v7194_v43  ;;  %v7196_v48 = vpop.f32.mrf.mxu0 }
 0x112   : > { %v7389_v49 = vpop.f32.mrf.mxu1 }
 0x113   : > { %v14935_v50 = vadd.f32 %v7389_v49, %v7196_v48  ;;  %v7198_v53 = vpop.f32.mrf.mxu0  ;;  %v12888_v48 = vld [vmem:[%s14378_s17 + $0xeb0] ss:$144 sps:$4 sm:$0xff]   ;;  %v12891_v49 = vld [vmem:[%s14378_s17 + $0xeb8] ss:$144 sps:$4 sm:$0xff]  }
 0x114   : > { %v7391_v54 = vpop.f32.mrf.mxu1 }
 0x115   : > { %v14939_v55 = vadd.f32 %v7391_v54, %v7198_v53  ;;  %v7202_v56 = vpop.f32.mrf.mxu0  ;;  %7667 = vmatmul.mubr.bf16.gmra.mxu0 %v12844_v46  ;;  %v12902_v54 = vld [vmem:[%s14378_s17 + $0xfd4] ss:$144 sps:$4 sm:$0xff]  }
 0x116   : > { %v7395_v57 = vpop.f32.mrf.mxu1  ;;  %7860 = vmatmul.mubr.bf16.gmra.mxu1 %v12845_v47  ;;  %7676 = vmatprep.mubr.bf16.mxu0 %v12852_v51 }
 0x117   : > { %v14941_v58 = vadd.f32 %v7395_v57, %v7202_v56  ;;  %7869 = vmatprep.mubr.bf16.mxu1 %v12854_v52  ;;  %v7204_v59 = vpop.f32.mrf.mxu0  ;;  %v12905_v56 = vld [vmem:[%s14378_s17 + $0xfdc] ss:$144 sps:$4 sm:$0xff]  }
 0x118   : > { %v7397_v60 = vpop.f32.mrf.mxu1 }
 0x119   : > { %v14943_v61 = vadd.f32 %v7397_v60, %v7204_v59  ;;  %v7206_v0 = vpop.f32.mrf.mxu0 }
 0x11a   : > { %v7399_v1 = vpop.f32.mrf.mxu1 }
 0x11b   : > { %v14947_v2 = vadd.f32 %v7399_v1, %v7206_v0  ;;  %v7208_v5 = vpop.f32.mrf.mxu0 }
 0x11c   : > { %v7401_v6 = vpop.f32.mrf.mxu1 }
 0x11d   : > { %v14951_v7 = vadd.f32 %v7401_v6, %v7208_v5  ;;  %v7212_v8 = vpop.f32.mrf.mxu0  ;;  %7677 = vmatmul.mubr.bf16.gmra.mxu0 %v12856_v62  ;;  %v12900_v5 = vld [vmem:[%s14378_s17 + $0xfd0] ss:$144 sps:$4 sm:$0xff]   ;;  %v12903_v6 = vld [vmem:[%s14378_s17 + $0xfd8] ss:$144 sps:$4 sm:$0xff]  }
 0x11e   : > { %v7405_v9 = vpop.f32.mrf.mxu1  ;;  %7870 = vmatmul.mubr.bf16.gmra.mxu1 %v12857_v63  ;;  %7686 = vmatprep.mubr.bf16.mxu0 %v12864_v3 }
 0x11f   : > { %v14953_v10 = vadd.f32 %v7405_v9, %v7212_v8  ;;  %7879 = vmatprep.mubr.bf16.mxu1 %v12866_v4  ;;  %v7214_v11 = vpop.f32.mrf.mxu0 }
 0x120   : > { %v7407_v12 = vpop.f32.mrf.mxu1 }
 0x121   : > { %v14955_v13 = vadd.f32 %v7407_v12, %v7214_v11  ;;  %v7216_v16 = vpop.f32.mrf.mxu0  ;;  %v12914_v12 = vld [vmem:[%s14378_s17 + $0x10f4] ss:$144 sps:$4 sm:$0xff]  }
 0x122   : > { %v7409_v17 = vpop.f32.mrf.mxu1 }
 0x123   : > { %v14959_v18 = vadd.f32 %v7409_v17, %v7216_v16  ;;  %v7218_v21 = vpop.f32.mrf.mxu0 }
 0x124   : > { %v7411_v22 = vpop.f32.mrf.mxu1 }
 0x125   : > { %v14963_v23 = vadd.f32 %v7411_v22, %v7218_v21  ;;  %v7222_v24 = vpop.f32.mrf.mxu0  ;;  %7687 = vmatmul.mubr.bf16.gmra.mxu0 %v12868_v14  ;;  %v12917_v14 = vld [vmem:[%s14378_s17 + $0x10fc] ss:$144 sps:$4 sm:$0xff]  }
 0x126   : > { %v7415_v25 = vpop.f32.mrf.mxu1  ;;  %7880 = vmatmul.mubr.bf16.gmra.mxu1 %v12869_v15  ;;  %7696 = vmatprep.mubr.bf16.mxu0 %v12878_v19 }
 0x127   : > { %v14965_v26 = vadd.f32 %v7415_v25, %v7222_v24  ;;  %7889 = vmatprep.mubr.bf16.mxu1 %v12881_v20  ;;  %v7224_v27 = vpop.f32.mrf.mxu0 }
 0x128   : > { %v7417_v28 = vpop.f32.mrf.mxu1 }
 0x129   : > { %v14967_v29 = vadd.f32 %v7417_v28, %v7224_v27  ;;  %v7226_v32 = vpop.f32.mrf.mxu0  ;;  %v12912_v27 = vld [vmem:[%s14378_s17 + $0x10f0] ss:$144 sps:$4 sm:$0xff]   ;;  %v12915_v28 = vld [vmem:[%s14378_s17 + $0x10f8] ss:$144 sps:$4 sm:$0xff]  }
 0x12a   : > { %v7419_v33 = vpop.f32.mrf.mxu1 }
 0x12b   : > { %v14971_v34 = vadd.f32 %v7419_v33, %v7226_v32  ;;  %v7228_v37 = vpop.f32.mrf.mxu0  ;;  %v12926_v33 = vld [vmem:[%s14378_s17 + $0x24] ss:$144 sps:$4 sm:$0xff]  }
 0x12c   : > { %v7421_v38 = vpop.f32.mrf.mxu1 }
 0x12d   : > { %v14975_v39 = vadd.f32 %v7421_v38, %v7228_v37  ;;  %v7232_v40 = vpop.f32.mrf.mxu0  ;;  %7697 = vmatmul.mubr.bf16.gmra.mxu0 %v12876_v30 }
 0x12e   : > { %v7425_v41 = vpop.f32.mrf.mxu1  ;;  %7890 = vmatmul.mubr.bf16.gmra.mxu1 %v12879_v31  ;;  %7706 = vmatprep.mubr.bf16.mxu0 %v12890_v35  ;;  %v12929_v35 = vld [vmem:[%s14378_s17 + $0x2c] ss:$144 sps:$4 sm:$0xff]  }
 0x12f   : > { %v14977_v43 = vadd.f32 %v7425_v41, %v7232_v40  ;;  %7899 = vmatprep.mubr.bf16.mxu1 %v12893_v36  ;;  %v7234_v44 = vpop.f32.mrf.mxu0 }
 0x130   : > { %v7427_v46 = vpop.f32.mrf.mxu1 }
 0x131   : > { %v14979_v47 = vadd.f32 %v7427_v46, %v7234_v44  ;;  %v7236_v51 = vpop.f32.mrf.mxu0 }
 0x132   : > { %v7429_v52 = vpop.f32.mrf.mxu1 }
 0x133   : > { %v14983_v53 = vadd.f32 %v7429_v52, %v7236_v51  ;;  %v7238_v57 = vpop.f32.mrf.mxu0  ;;  %v12927_v51 = vld [vmem:[%s14378_s17 + $0x28] ss:$144 sps:$4 sm:$0xff]  }
 0x134   : > { %v7431_v59 = vpop.f32.mrf.mxu1 }
 0x135   : > { %v14987_v60 = vadd.f32 %v7431_v59, %v7238_v57  ;;  %v7242_v62 = vpop.f32.mrf.mxu0  ;;  %7707 = vmatmul.mubr.bf16.gmra.mxu0 %v12888_v48 }
 0x136   : > { %v7435_v63 = vpop.f32.mrf.mxu1  ;;  %7900 = vmatmul.mubr.bf16.gmra.mxu1 %v12891_v49  ;;  %7716 = vmatprep.mubr.bf16.mxu0 %v12902_v54  ;;  %v12924_v49 = vld [vmem:[%s14378_s17 + $0x20] ss:$144 sps:$4 sm:$0xff]  }
 0x137   : > { %v14989_v0 = vadd.f32 %v7435_v63, %v7242_v62  ;;  %7909 = vmatprep.mubr.bf16.mxu1 %v12905_v56  ;;  %v7244_v1 = vpop.f32.mrf.mxu0  ;;  %v12930_v54 = vld [vmem:[%s18275_s1 + $0x670] ss:$8 sps:$4 sm:$0xff]   ;;  %v12938_v63 = vld [vmem:[%s14378_s17 + $0x144] ss:$144 sps:$4 sm:$0xff]  }
 0x138   : > { %v7437_v3 = vpop.f32.mrf.mxu1  ;;  %v12933_v56 = vld [vmem:[%s18275_s1 + $0x770] ss:$8 sps:$4 sm:$0xff]  }
 0x139   : > { %v14991_v4 = vadd.f32 %v7437_v3, %v7244_v1  ;;  %v7246_v8 = vpop.f32.mrf.mxu0  ;;  %v12941_v1 = vld [vmem:[%s14378_s17 + $0x14c] ss:$144 sps:$4 sm:$0xff]  }
 0x13a   : > { %v7439_v9 = vpop.f32.mrf.mxu1 }
 0x13b   : > { %v14995_v11 = vadd.f32 %v7439_v9, %v7246_v8  ;;  %v7248_v15 = vpop.f32.mrf.mxu0  ;;  %v12947_v8 = vld [vmem:[%s18275_s1 + $0x764] ss:$8 sps:$4 sm:$0xff]  }
 0x13c   : > { %v7441_v16 = vpop.f32.mrf.mxu1 }
 0x13d   : > { %v14999_v17 = vadd.f32 %v7441_v16, %v7248_v15  ;;  %v7252_v19 = vpop.f32.mrf.mxu0  ;;  %7717 = vmatmul.mubr.bf16.gmra.mxu0 %v12900_v5 }
 0x13e   : > { %v7445_v20 = vpop.f32.mrf.mxu1  ;;  %7910 = vmatmul.mubr.bf16.gmra.mxu1 %v12903_v6  ;;  %7726 = vmatprep.mubr.bf16.mxu0 %v12914_v12  ;;  %v12944_v6 = vld [vmem:[%s18275_s1 + $0x664] ss:$8 sps:$4 sm:$0xff]   ;;  %v12942_v12 = vld [vmem:[%s18275_s1 + $0x660] ss:$8 sps:$4 sm:$0xff]  }
 0x13f   : > { %v15001_v21 = vadd.f32 %v7445_v20, %v7252_v19  ;;  %7919 = vmatprep.mubr.bf16.mxu1 %v12917_v14  ;;  %v7254_v22 = vpop.f32.mrf.mxu0  ;;  %v12945_v14 = vld [vmem:[%s18275_s1 + $0x760] ss:$8 sps:$4 sm:$0xff]   ;;  %v12956_v19 = vld [vmem:[%s18275_s1 + $0x654] ss:$8 sps:$4 sm:$0xff]  }
 0x140   : > { %v7447_v24 = vpop.f32.mrf.mxu1  ;;  %v12959_v20 = vld [vmem:[%s18275_s1 + $0x754] ss:$8 sps:$4 sm:$0xff]  }
 0x141   : > { %v15003_v25 = vadd.f32 %v7447_v24, %v7254_v22  ;;  %v7256_v30 = vpop.f32.mrf.mxu0 }
 0x142   : > { %v7449_v31 = vpop.f32.mrf.mxu1 }
 0x143   : > { %v15007_v32 = vadd.f32 %v7449_v31, %v7256_v30  ;;  %v7258_v36 = vpop.f32.mrf.mxu0  ;;  %v12936_v30 = vld [vmem:[%s14378_s17 + $0x140] ss:$144 sps:$4 sm:$0xff]   ;;  %v12939_v31 = vld [vmem:[%s14378_s17 + $0x148] ss:$144 sps:$4 sm:$0xff]  }
 0x144   : > { %v7451_v37 = vpop.f32.mrf.mxu1 }
 0x145   : > { %v15011_v38 = vadd.f32 %v7451_v37, %v7258_v36  ;;  %v7262_v40 = vpop.f32.mrf.mxu0  ;;  %7727 = vmatmul.mubr.bf16.gmra.mxu0 %v12912_v27  ;;  %v12950_v37 = vld [vmem:[%s14378_s17 + $0x264] ss:$144 sps:$4 sm:$0xff]  }
 0x146   : > { %v7455_v41 = vpop.f32.mrf.mxu1  ;;  %7920 = vmatmul.mubr.bf16.gmra.mxu1 %v12915_v28  ;;  %7962 = vmatprep.mubr.bf16.mxu0 %v12926_v33 }
 0x147   : > { %v15013_v44 = vadd.f32 %v7455_v41, %v7262_v40  ;;  %8155 = vmatprep.mubr.bf16.mxu1 %v12929_v35  ;;  %v7264_v46 = vpop.f32.mrf.mxu0  ;;  %v12953_v40 = vld [vmem:[%s14378_s17 + $0x26c] ss:$144 sps:$4 sm:$0xff]   ;;  %v12954_v41 = vld [vmem:[%s18275_s1 + $0x650] ss:$8 sps:$4 sm:$0xff]  }
 0x148   : > { %v7457_v48 = vpop.f32.mrf.mxu1 }
 0x149   : > { %v15017_v52 = vadd.f32 %v7457_v48, %v7264_v46  ;;  %v7266_v57 = vpop.f32.mrf.mxu0 }
 0x14a   : > { %v7459_v59 = vpop.f32.mrf.mxu1 }
 0x14b   : > { %v15025_v62 = vadd.f32 %v7459_v59, %v7266_v57  ;;  %v7268_v3 = vpop.f32.mrf.mxu0 }
 0x14c   : > { %v7461_v5 = vpop.f32.mrf.mxu1 }
 0x14d   : > { %v15035_v9 = vadd.f32 %v7461_v5, %v7268_v3  ;;  %v7272_v15 = vpop.f32.mrf.mxu0  ;;  %7963 = vmatmul.mubr.bf16.vlgmr.msra.gmra.mxu0 %v12924_v49  ;;  %v12957_v49 = vld [vmem:[%s18275_s1 + $0x750] ss:$8 sps:$4 sm:$0xff]  }
 0x14e   : > { %v7465_v16 = vpop.f32.mrf.mxu1  ;;  %8156 = vmatmul.mubr.bf16.vlgmr.msra.gmra.mxu1 %v12927_v51  ;;  %8317 = vmatpush1.bf16.msra.mxu0 %v12930_v54  ;;  %v12968_v51 = vld [vmem:[%s18275_s1 + $0x644] ss:$8 sps:$4 sm:$0xff]  }
 0x14f   : > { %v15049_v22 = vadd.f32 %v7465_v16, %v7272_v15  ;;  %8510 = vmatpush1.bf16.msra.mxu1 %v12933_v56  ;;  %v7274_v24 = vpop.f32.mrf.mxu0  ;;  %7972 = vmatprep.mubr.bf16.mxu0 %v12938_v63  ;;  %v12971_v54 = vld [vmem:[%s18275_s1 + $0x744] ss:$8 sps:$4 sm:$0xff]   ;;  %v12966_v63 = vld [vmem:[%s18275_s1 + $0x640] ss:$8 sps:$4 sm:$0xff]   ;;  %v12980_v15 = vld [vmem:[%s18275_s1 + $0x634] ss:$8 sps:$4 sm:$0xff]  }
 0x150   : > { %v7467_v27 = vpop.f32.mrf.mxu1  ;;  %8165 = vmatprep.mubr.bf16.mxu1 %v12941_v1  ;;  %8318 = vmatprep.subr.bf16.mxu0 %v12944_v6  ;;  %v12969_v1 = vld [vmem:[%s18275_s1 + $0x740] ss:$8 sps:$4 sm:$0xff]   ;;  %v12983_v16 = vld [vmem:[%s18275_s1 + $0x734] ss:$8 sps:$4 sm:$0xff]  }
 0x151   : > { %v15051_v28 = vadd.f32 %v7467_v27, %v7274_v24  ;;  %8511 = vmatprep.subr.bf16.mxu1 %v12947_v8  ;;  %v7276_v33 = vpop.f32.mrf.mxu0  ;;  %v12948_v8 = vld [vmem:[%s14378_s17 + $0x260] ss:$144 sps:$4 sm:$0xff]   ;;  %v12962_v27 = vld [vmem:[%s14378_s17 + $0x384] ss:$144 sps:$4 sm:$0xff]  }
 0x152   : > { %v7469_v35 = vpop.f32.mrf.mxu1  ;;  %8319 = vmatpush1.bf16.msra.mxu0 %v12942_v12  ;;  %v12951_v12 = vld [vmem:[%s14378_s17 + $0x268] ss:$144 sps:$4 sm:$0xff]  }
 0x153   : > { %v15055_v36 = vadd.f32 %v7469_v35, %v7276_v33  ;;  %8512 = vmatpush1.bf16.msra.mxu1 %v12945_v14  ;;  %v7278_v46 = vpop.f32.mrf.mxu0  ;;  %8320 = vmatprep.subr.bf16.mxu0 %v12956_v19 }
 0x154   : > { %v7471_v48 = vpop.f32.mrf.mxu1  ;;  %8513 = vmatprep.subr.bf16.mxu1 %v12959_v20 }
 0x155   : > { %v15071_v56 = vadd.f32 %v7471_v48, %v7278_v46  ;;  %v7282_v57 = vpop.f32.mrf.mxu0  ;;  %7973 = vmatmul.mubr.bf16.gmra.mxu0 %v12936_v30  ;;  %v12965_v30 = vld [vmem:[%s14378_s17 + $0x38c] ss:$144 sps:$4 sm:$0xff]  }
 0x156   : > { %v7475_v59 = vpop.f32.mrf.mxu1  ;;  %8166 = vmatmul.mubr.bf16.gmra.mxu1 %v12939_v31  ;;  %7982 = vmatprep.mubr.bf16.mxu0 %v12950_v37  ;;  %v12978_v31 = vld [vmem:[%s18275_s1 + $0x630] ss:$8 sps:$4 sm:$0xff]  }
 0x157   : > { %v15079_v3 = vadd.f32 %v7475_v59, %v7282_v57  ;;  %8175 = vmatprep.mubr.bf16.mxu1 %v12953_v40  ;;  %v7284_v5 = vpop.f32.mrf.mxu0  ;;  %8321 = vmatpush1.bf16.msra.mxu0 %v12954_v41  ;;  %v12981_v37 = vld [vmem:[%s18275_s1 + $0x730] ss:$8 sps:$4 sm:$0xff]   ;;  %v12992_v40 = vld [vmem:[%s18275_s1 + $0x624] ss:$8 sps:$4 sm:$0xff]  }
 0x158   : > { %v7477_v6 = vpop.f32.mrf.mxu1  ;;  %8514 = vmatpush1.bf16.msra.mxu1 %v12957_v49  ;;  %8322 = vmatprep.subr.bf16.mxu0 %v12968_v51  ;;  %v12995_v41 = vld [vmem:[%s18275_s1 + $0x724] ss:$8 sps:$4 sm:$0xff]   ;;  %v12990_v51 = vld [vmem:[%s18275_s1 + $0x620] ss:$8 sps:$4 sm:$0xff]  }
 0x159   : > { %v15083_v14 = vadd.f32 %v7477_v6, %v7284_v5  ;;  %8515 = vmatprep.subr.bf16.mxu1 %v12971_v54  ;;  %v7286_v19 = vpop.f32.mrf.mxu0  ;;  %v12993_v54 = vld [vmem:[%s18275_s1 + $0x720] ss:$8 sps:$4 sm:$0xff]  }
 0x15a   : > { %v7479_v20 = vpop.f32.mrf.mxu1  ;;  %v12963_v5 = vld [vmem:[%s14378_s17 + $0x388] ss:$144 sps:$4 sm:$0xff]  }
 0x15b   : > { %v15091_v24 = vadd.f32 %v7479_v20, %v7286_v19  ;;  %v7288_v33 = vpop.f32.mrf.mxu0  ;;  %8323 = vmatpush1.bf16.msra.mxu0 %v12966_v63  ;;  %v12974_v20 = vld [vmem:[%s14378_s17 + $0x4a4] ss:$144 sps:$4 sm:$0xff]  }
 0x15c   : > { %v7481_v35 = vpop.f32.mrf.mxu1  ;;  %8516 = vmatpush1.bf16.msra.mxu1 %v12969_v1  ;;  %8324 = vmatprep.subr.bf16.mxu0 %v12980_v15  ;;  %v12960_v1 = vld [vmem:[%s14378_s17 + $0x380] ss:$144 sps:$4 sm:$0xff]  }
 0x15d   : > { %v15107_v46 = vadd.f32 %v7481_v35, %v7288_v33  ;;  %8517 = vmatprep.subr.bf16.mxu1 %v12983_v16  ;;  %v7292_v48 = vpop.f32.mrf.mxu0  ;;  %7983 = vmatmul.mubr.bf16.gmra.mxu0 %v12948_v8  ;;  %v13004_v8 = vld [vmem:[%s18275_s1 + $0x614] ss:$8 sps:$4 sm:$0xff]   ;;  %v13005_v35 = vld [vmem:[%s18275_s1 + $0x710] ss:$8 sps:$4 sm:$0xff]  }
 0x15e   : > { %v7485_v49 = vpop.f32.mrf.mxu1  ;;  %8176 = vmatmul.mubr.bf16.gmra.mxu1 %v12951_v12  ;;  %7992 = vmatprep.mubr.bf16.mxu0 %v12962_v27  ;;  %v13007_v12 = vld [vmem:[%s18275_s1 + $0x714] ss:$8 sps:$4 sm:$0xff]  }
 0x15f   : > { %v15115_v57 = vadd.f32 %v7485_v49, %v7292_v48  ;;  %8185 = vmatprep.mubr.bf16.mxu1 %v12965_v30  ;;  %v7294_v59 = vpop.f32.mrf.mxu0  ;;  %8325 = vmatpush1.bf16.msra.mxu0 %v12978_v31  ;;  %v12977_v27 = vld [vmem:[%s14378_s17 + $0x4ac] ss:$144 sps:$4 sm:$0xff]   ;;  %v13002_v30 = vld [vmem:[%s18275_s1 + $0x610] ss:$8 sps:$4 sm:$0xff]  }
 0x160   : > { %v7487_v63 = vpop.f32.mrf.mxu1  ;;  %8518 = vmatpush1.bf16.msra.mxu1 %v12981_v37  ;;  %8326 = vmatprep.subr.bf16.mxu0 %v12992_v40  ;;  %v13016_v37 = vld [vmem:[%s18275_s1 + $0x604] ss:$8 sps:$4 sm:$0xff]  }
 0x161   : > { %v15119_v6 = vadd.f32 %v7487_v63, %v7294_v59  ;;  %8519 = vmatprep.subr.bf16.mxu1 %v12995_v41  ;;  %v7296_v15 = vpop.f32.mrf.mxu0  ;;  %v13019_v40 = vld [vmem:[%s18275_s1 + $0x704] ss:$8 sps:$4 sm:$0xff]  }
 0x162   : > { %v7489_v16 = vpop.f32.mrf.mxu1 }
 0x163   : > { %v15127_v19 = vadd.f32 %v7489_v16, %v7296_v15  ;;  %v7298_v31 = vpop.f32.mrf.mxu0  ;;  %8327 = vmatpush1.bf16.msra.mxu0 %v12990_v51  ;;  %v13014_v51 = vld [vmem:[%s18275_s1 + $0x600] ss:$8 sps:$4 sm:$0xff]   ;;  %v13031_v16 = vld [vmem:[%s18275_s1 + $0x7f4] ss:$8 sps:$4 sm:$0xff]  }
 0x164   : > { %v7491_v33 = vpop.f32.mrf.mxu1  ;;  %8520 = vmatpush1.bf16.msra.mxu1 %v12993_v54  ;;  %8328 = vmatprep.subr.bf16.mxu0 %v13004_v8  ;;  %v13017_v54 = vld [vmem:[%s18275_s1 + $0x700] ss:$8 sps:$4 sm:$0xff]  }
 0x165   : > { %v15143_v41 = vadd.f32 %v7491_v33, %v7298_v31  ;;  %8521 = vmatprep.subr.bf16.mxu1 %v13007_v12  ;;  %v7302_v48 = vpop.f32.mrf.mxu0  ;;  %7993 = vmatmul.mubr.bf16.gmra.mxu0 %v12960_v1  ;;  %v12972_v12 = vld [vmem:[%s14378_s17 + $0x4a0] ss:$144 sps:$4 sm:$0xff]   ;;  %v12975_v15 = vld [vmem:[%s14378_s17 + $0x4a8] ss:$144 sps:$4 sm:$0xff]   ;;  %v12986_v33 = vld [vmem:[%s14378_s17 + $0x5c4] ss:$144 sps:$4 sm:$0xff]  }
 0x166   : > { %v7495_v49 = vpop.f32.mrf.mxu1  ;;  %8186 = vmatmul.mubr.bf16.gmra.mxu1 %v12963_v5  ;;  %8002 = vmatprep.mubr.bf16.mxu0 %v12974_v20  ;;  %v13028_v5 = vld [vmem:[%s18275_s1 + $0x6f4] ss:$8 sps:$4 sm:$0xff]  }
 0x167   : > { %v15151_v59 = vadd.f32 %v7495_v49, %v7302_v48  ;;  %8195 = vmatprep.mubr.bf16.mxu1 %v12977_v27  ;;  %v7304_v63 = vpop.f32.mrf.mxu0  ;;  %8329 = vmatpush1.bf16.msra.mxu0 %v13002_v30  ;;  %v12989_v48 = vld [vmem:[%s14378_s17 + $0x5cc] ss:$144 sps:$4 sm:$0xff]   ;;  %v13026_v30 = vld [vmem:[%s18275_s1 + $0x6f0] ss:$8 sps:$4 sm:$0xff]  }
 0x168   : > { %v7497_v8 = vpop.f32.mrf.mxu1  ;;  %8522 = vmatpush1.bf16.msra.mxu1 %v13005_v35  ;;  %8330 = vmatprep.subr.bf16.mxu0 %v13016_v37  ;;  %v13040_v49 = vld [vmem:[%s18275_s1 + $0x6e4] ss:$8 sps:$4 sm:$0xff]  }
 0x169   : > { %v15155_v1 = vadd.f32 %v7497_v8, %v7304_v63  ;;  %8523 = vmatprep.subr.bf16.mxu1 %v13019_v40  ;;  %v7306_v20 = vpop.f32.mrf.mxu0  ;;  %v13029_v40 = vld [vmem:[%s18275_s1 + $0x7f0] ss:$8 sps:$4 sm:$0xff]   ;;  %v13043_v63 = vld [vmem:[%s18275_s1 + $0x7e4] ss:$8 sps:$4 sm:$0xff]  }
 0x16a   : > { %v7499_v27 = vpop.f32.mrf.mxu1 }
 0x16b   : > { %v15163_v31 = vadd.f32 %v7499_v27, %v7306_v20  ;;  %v7308_v35 = vpop.f32.mrf.mxu0  ;;  %8331 = vmatpush1.bf16.msra.mxu0 %v13014_v51  ;;  %v13038_v20 = vld [vmem:[%s18275_s1 + $0x6e0] ss:$8 sps:$4 sm:$0xff]  }
 0x16c   : > { %v7501_v37 = vpop.f32.mrf.mxu1  ;;  %8524 = vmatpush1.bf16.msra.mxu1 %v13017_v54  ;;  %8332 = vmatprep.subr.bf16.mxu0 %v13028_v5  ;;  %v13041_v27 = vld [vmem:[%s18275_s1 + $0x7e0] ss:$8 sps:$4 sm:$0xff]  }
 0x16d   : > { %18278 = vst [vmem:[#allocation2_spill] sm:$0xff] %v15163_v31  ;;  %v15179_v8 = vadd.f32 %v7501_v37, %v7308_v35  ;;  %8525 = vmatprep.subr.bf16.mxu1 %v13031_v16  ;;  %v7312_v51 = vpop.f32.mrf.mxu0  ;;  %8003 = vmatmul.mubr.bf16.gmra.mxu0 %v12972_v12  ;;  %v12984_v35 = vld [vmem:[%s14378_s17 + $0x5c0] ss:$144 sps:$4 sm:$0xff]   ;;  %v12987_v37 = vld [vmem:[%s14378_s17 + $0x5c8] ss:$144 sps:$4 sm:$0xff]  }
 0x16e   : > { %v7505_v54 = vpop.f32.mrf.mxu1  ;;  %8196 = vmatmul.mubr.bf16.gmra.mxu1 %v12975_v15  ;;  %8012 = vmatprep.mubr.bf16.mxu0 %v12986_v33  ;;  %v13052_v15 = vld [vmem:[%s18275_s1 + $0x6d4] ss:$8 sps:$4 sm:$0xff]  }
 0x16f   : > { %18279 = vst [vmem:[#allocation3_spill] sm:$0xff] %v15179_v8  ;;  %v15187_v31 = vadd.f32 %v7505_v54, %v7312_v51  ;;  %8205 = vmatprep.mubr.bf16.mxu1 %v12989_v48  ;;  %v7314_v5 = vpop.f32.mrf.mxu0  ;;  %8333 = vmatpush2.bf16.msra.mxu0 %v13026_v30  ;;  %v13055_v33 = vld [vmem:[%s18275_s1 + $0x7d4] ss:$8 sps:$4 sm:$0xff]   ;;  %v13050_v30 = vld [vmem:[%s18275_s1 + $0x6d0] ss:$8 sps:$4 sm:$0xff]  }
 0x170   : > { %v7507_v16 = vpop.f32.mrf.mxu1  ;;  %8526 = vmatpush2.bf16.msra.mxu1 %v13029_v40  ;;  %8334 = vmatprep.subr.bf16.mxu0 %v13040_v49  ;;  %v13001_v8 = vld [vmem:[%s14378_s17 + $0x6ec] ss:$144 sps:$4 sm:$0xff]  }
 0x171   : > { %18280 = vst [vmem:[#allocation4_spill] sm:$0xff] %v15187_v31  ;;  %v15191_v12 = vadd.f32 %v7507_v16, %v7314_v5  ;;  %8527 = vmatprep.subr.bf16.mxu1 %v13043_v63  ;;  %v7316_v48 = vpop.f32.mrf.mxu0  ;;  %v12998_v31 = vld [vmem:[%s14378_s17 + $0x6e4] ss:$144 sps:$4 sm:$0xff]   ;;  %v13053_v63 = vld [vmem:[%s18275_s1 + $0x7d0] ss:$8 sps:$4 sm:$0xff]  }
 0x172   : > { %v7509_v51 = vpop.f32.mrf.mxu1  ;;  %v13064_v5 = vld [vmem:[%s18275_s1 + $0x6c4] ss:$8 sps:$4 sm:$0xff]  }
 0x173   : > { %18281 = vst [vmem:[#allocation5_spill] sm:$0xff] %v15191_v12  ;;  %v15199_v54 = vadd.f32 %v7509_v51, %v7316_v48  ;;  %v7318_v40 = vpop.f32.mrf.mxu0  ;;  %8335 = vmatpush2.bf16.msra.mxu0 %v13038_v20  ;;  %v13067_v16 = vld [vmem:[%s18275_s1 + $0x7c4] ss:$8 sps:$4 sm:$0xff]   ;;  %v13062_v51 = vld [vmem:[%s18275_s1 + $0x6c0] ss:$8 sps:$4 sm:$0xff]  }
 0x174   : > { %v7511_v49 = vpop.f32.mrf.mxu1  ;;  %8528 = vmatpush2.bf16.msra.mxu1 %v13041_v27  ;;  %8336 = vmatprep.subr.bf16.mxu0 %v13052_v15 }
 0x175   : > { %18282 = vst [vmem:[#allocation6_spill] sm:$0xff] %v15199_v54  ;;  %v15215_v48 = vadd.f32 %v7511_v49, %v7318_v40  ;;  %8529 = vmatprep.subr.bf16.mxu1 %v13055_v33  ;;  %v7322_v20 = vpop.f32.mrf.mxu0  ;;  %8013 = vmatmul.mubr.bf16.gmra.mxu0 %v12984_v35  ;;  %v13065_v54 = vld [vmem:[%s18275_s1 + $0x7c0] ss:$8 sps:$4 sm:$0xff]  }
 0x176   : > { %v7515_v27 = vpop.f32.mrf.mxu1  ;;  %8206 = vmatmul.mubr.bf16.gmra.mxu1 %v12987_v37  ;;  %8022 = vmatprep.mubr.bf16.mxu0 %v12998_v31  ;;  %v12996_v40 = vld [vmem:[%s14378_s17 + $0x6e0] ss:$144 sps:$4 sm:$0xff]   ;;  %v12999_v49 = vld [vmem:[%s14378_s17 + $0x6e8] ss:$144 sps:$4 sm:$0xff]   ;;  %v13076_v37 = vld [vmem:[%s18275_s1 + $0x6b4] ss:$8 sps:$4 sm:$0xff]  }
 0x177   : > { %18283 = vst [vmem:[#allocation7_spill] sm:$0xff] %v15215_v48  ;;  %v15223_v12 = vadd.f32 %v7515_v27, %v7322_v20  ;;  %8215 = vmatprep.mubr.bf16.mxu1 %v13001_v8  ;;  %v7324_v15 = vpop.f32.mrf.mxu0  ;;  %8337 = vmatpush2.bf16.msra.mxu0 %v13050_v30  ;;  %v13079_v31 = vld [vmem:[%s18275_s1 + $0x7b4] ss:$8 sps:$4 sm:$0xff]   ;;  %v13074_v30 = vld [vmem:[%s18275_s1 + $0x6b0] ss:$8 sps:$4 sm:$0xff]  }
 0x178   : > { %v7517_v33 = vpop.f32.mrf.mxu1  ;;  %8530 = vmatpush2.bf16.msra.mxu1 %v13053_v63  ;;  %8338 = vmatprep.subr.bf16.mxu0 %v13064_v5  ;;  %v13013_v48 = vld [vmem:[%s14378_s17 + $0x80c] ss:$144 sps:$4 sm:$0xff]  }
 0x179   : > { %18284 = vst [vmem:[#allocation8_spill] sm:$0xff] %v15223_v12  ;;  %v15227_v35 = vadd.f32 %v7517_v33, %v7324_v15  ;;  %8531 = vmatprep.subr.bf16.mxu1 %v13067_v16  ;;  %v7326_v8 = vpop.f32.mrf.mxu0  ;;  %v13010_v12 = vld [vmem:[%s14378_s17 + $0x804] ss:$144 sps:$4 sm:$0xff]   ;;  %v13077_v16 = vld [vmem:[%s18275_s1 + $0x7b0] ss:$8 sps:$4 sm:$0xff]  }
 0x17a   : > { %v7519_v20 = vpop.f32.mrf.mxu1  ;;  %v13088_v15 = vld [vmem:[%s18275_s1 + $0x6a4] ss:$8 sps:$4 sm:$0xff]  }
 0x17b   : > { %18285 = vst [vmem:[#allocation9_spill] sm:$0xff] %v15227_v35  ;;  %v15235_v27 = vadd.f32 %v7519_v20, %v7326_v8  ;;  %v7328_v63 = vpop.f32.mrf.mxu0  ;;  %8339 = vmatpush2.bf16.msra.mxu0 %v13062_v51  ;;  %v13091_v33 = vld [vmem:[%s18275_s1 + $0x7a4] ss:$8 sps:$4 sm:$0xff]   ;;  %v13086_v20 = vld [vmem:[%s18275_s1 + $0x6a0] ss:$8 sps:$4 sm:$0xff]  }
 0x17c   : > { %v7521_v5 = vpop.f32.mrf.mxu1  ;;  %8532 = vmatpush2.bf16.msra.mxu1 %v13065_v54  ;;  %8340 = vmatprep.subr.bf16.mxu0 %v13076_v37 }
 0x17d   : > { %18286 = vst [vmem:[#allocation10_spill] sm:$0xff] %v15235_v27  ;;  %v15251_v8 = vadd.f32 %v7521_v5, %v7328_v63  ;;  %8533 = vmatprep.subr.bf16.mxu1 %v13079_v31  ;;  %v7332_v51 = vpop.f32.mrf.mxu0  ;;  %8023 = vmatmul.mubr.bf16.gmra.mxu0 %v12996_v40  ;;  %v13089_v27 = vld [vmem:[%s18275_s1 + $0x7a0] ss:$8 sps:$4 sm:$0xff]  }
 0x17e   : > { %v7525_v54 = vpop.f32.mrf.mxu1  ;;  %8216 = vmatmul.mubr.bf16.gmra.mxu1 %v12999_v49  ;;  %8032 = vmatprep.mubr.bf16.mxu0 %v13010_v12  ;;  %v13008_v63 = vld [vmem:[%s14378_s17 + $0x800] ss:$144 sps:$4 sm:$0xff]   ;;  %v13011_v5 = vld [vmem:[%s14378_s17 + $0x808] ss:$144 sps:$4 sm:$0xff]   ;;  %v13100_v49 = vld [vmem:[%s18275_s1 + $0x694] ss:$8 sps:$4 sm:$0xff]  }
 0x17f   : > { %18287 = vst [vmem:[#allocation11_spill] sm:$0xff] %v15251_v8  ;;  %v15259_v35 = vadd.f32 %v7525_v54, %v7332_v51  ;;  %8225 = vmatprep.mubr.bf16.mxu1 %v13013_v48  ;;  %v7334_v37 = vpop.f32.mrf.mxu0  ;;  %8341 = vmatpush2.bf16.msra.mxu0 %v13074_v30  ;;  %v13103_v12 = vld [vmem:[%s18275_s1 + $0x794] ss:$8 sps:$4 sm:$0xff]   ;;  %v13098_v30 = vld [vmem:[%s18275_s1 + $0x690] ss:$8 sps:$4 sm:$0xff]  }
 0x180   : > { %v7527_v31 = vpop.f32.mrf.mxu1  ;;  %8534 = vmatpush2.bf16.msra.mxu1 %v13077_v16  ;;  %8342 = vmatprep.subr.bf16.mxu0 %v13088_v15  ;;  %v13025_v8 = vld [vmem:[%s14378_s17 + $0x92c] ss:$144 sps:$4 sm:$0xff]  }
 0x181   : > { %18288 = vst [vmem:[#allocation12_spill] sm:$0xff] %v15259_v35  ;;  %v15263_v40 = vadd.f32 %v7527_v31, %v7334_v37  ;;  %8535 = vmatprep.subr.bf16.mxu1 %v13091_v33  ;;  %v7336_v48 = vpop.f32.mrf.mxu0  ;;  %v13022_v35 = vld [vmem:[%s14378_s17 + $0x924] ss:$144 sps:$4 sm:$0xff]   ;;  %v13101_v33 = vld [vmem:[%s18275_s1 + $0x790] ss:$8 sps:$4 sm:$0xff]  }
 0x182   : > { %v7529_v51 = vpop.f32.mrf.mxu1  ;;  %v13112_v37 = vld [vmem:[%s18275_s1 + $0x684] ss:$8 sps:$4 sm:$0xff]  }
 0x183   : > { %18289 = vst [vmem:[#allocation13_spill] sm:$0xff] %v15263_v40  ;;  %v15271_v54 = vadd.f32 %v7529_v51, %v7336_v48  ;;  %v7338_v16 = vpop.f32.mrf.mxu0  ;;  %8343 = vmatpush2.bf16.msra.mxu0 %v13086_v20  ;;  %v13115_v31 = vld [vmem:[%s18275_s1 + $0x784] ss:$8 sps:$4 sm:$0xff]   ;;  %v13110_v51 = vld [vmem:[%s18275_s1 + $0x680] ss:$8 sps:$4 sm:$0xff]  }
 0x184   : > { %v7531_v15 = vpop.f32.mrf.mxu1  ;;  %8536 = vmatpush2.bf16.msra.mxu1 %v13089_v27  ;;  %8344 = vmatprep.subr.bf16.mxu0 %v13100_v49 }
 0x185   : > { %18290 = vst [vmem:[#allocation14_spill] sm:$0xff] %v15271_v54  ;;  %v15287_v48 = vadd.f32 %v7531_v15, %v7338_v16  ;;  %8537 = vmatprep.subr.bf16.mxu1 %v13103_v12  ;;  %v7342_v20 = vpop.f32.mrf.mxu0  ;;  %8033 = vmatmul.mubr.bf16.gmra.mxu0 %v13008_v63  ;;  %v13113_v54 = vld [vmem:[%s18275_s1 + $0x780] ss:$8 sps:$4 sm:$0xff]  }
 0x186   : > { %v7535_v27 = vpop.f32.mrf.mxu1  ;;  %8226 = vmatmul.mubr.bf16.gmra.mxu1 %v13011_v5  ;;  %8042 = vmatprep.mubr.bf16.mxu0 %v13022_v35  ;;  %v13020_v16 = vld [vmem:[%s14378_s17 + $0x920] ss:$144 sps:$4 sm:$0xff]   ;;  %v13023_v15 = vld [vmem:[%s14378_s17 + $0x928] ss:$144 sps:$4 sm:$0xff]   ;;  %v13124_v5 = vld [vmem:[%s18275_s1 + $0x874] ss:$8 sps:$4 sm:$0xff]  }
 0x187   : > { %18291 = vst [vmem:[#allocation15_spill] sm:$0xff] %v15287_v48  ;;  %v15295_v40 = vadd.f32 %v7535_v27, %v7342_v20  ;;  %8235 = vmatprep.mubr.bf16.mxu1 %v13025_v8  ;;  %v7344_v49 = vpop.f32.mrf.mxu0  ;;  %8345 = vmatpush2.bf16.msra.mxu0 %v13098_v30  ;;  %v13127_v35 = vld [vmem:[%s18275_s1 + $0x974] ss:$8 sps:$4 sm:$0xff]  }
 0x188   : > { %v7537_v12 = vpop.f32.mrf.mxu1  ;;  %8538 = vmatpush2.bf16.msra.mxu1 %v13101_v33  ;;  %8346 = vmatprep.subr.bf16.mxu0 %v13112_v37  ;;  %v13037_v48 = vld [vmem:[%s14378_s17 + $0xa4c] ss:$144 sps:$4 sm:$0xff]  }
 0x189   : > { %18292 = vst [vmem:[#allocation16_spill] sm:$0xff] %v15295_v40  ;;  %v15299_v63 = vadd.f32 %v7537_v12, %v7344_v49  ;;  %8539 = vmatprep.subr.bf16.mxu1 %v13115_v31  ;;  %v7346_v8 = vpop.f32.mrf.mxu0  ;;  %v13034_v40 = vld [vmem:[%s14378_s17 + $0xa44] ss:$144 sps:$4 sm:$0xff]  }
 0x18a   : > { %v7539_v20 = vpop.f32.mrf.mxu1 }
 0x18b   : > { %18293 = vst [vmem:[#allocation17_spill] sm:$0xff] %v15299_v63  ;;  %v15307_v27 = vadd.f32 %v7539_v20, %v7346_v8  ;;  %v7348_v30 = vpop.f32.mrf.mxu0  ;;  %8347 = vmatpush2.bf16.msra.mxu0 %v13110_v51 }
 0x18c   : > { %v7541_v33 = vpop.f32.mrf.mxu1  ;;  %8540 = vmatpush2.bf16.msra.mxu1 %v13113_v54  ;;  %8702 = vmatprep.subr.bf16.mxu0 %v13124_v5 }
 0x18d   : > { %18294 = vst [vmem:[#allocation18_spill] sm:$0xff] %v15307_v27  ;;  %v15311_v37 = vadd.f32 %v7541_v33, %v7348_v30  ;;  %8895 = vmatprep.subr.bf16.mxu1 %v13127_v35  ;;  %v7578_v31 = vpop.f32.mrf.mxu0  ;;  %8043 = vmatmul.mubr.bf16.gmra.mxu0 %v13020_v16  ;;  %v13032_v30 = vld [vmem:[%s14378_s17 + $0xa40] ss:$144 sps:$4 sm:$0xff]   ;;  %v13035_v33 = vld [vmem:[%s14378_s17 + $0xa48] ss:$144 sps:$4 sm:$0xff]  }
 0x18e   : > { %v7771_v49 = vpop.f32.mrf.mxu1  ;;  %8236 = vmatmul.mubr.bf16.gmra.mxu1 %v13023_v15  ;;  %v7579_v12 = vadd.f32 %v7578_v31, %v14929_v42  ;;  %8052 = vmatprep.mubr.bf16.mxu0 %v13034_v40  ;;  %v13046_v27 = vld [vmem:[%s14378_s17 + $0xb64] ss:$144 sps:$4 sm:$0xff]   ;;  %v13049_v15 = vld [vmem:[%s14378_s17 + $0xb6c] ss:$144 sps:$4 sm:$0xff]  }
 0x18f   : > { %18295 = vst [vmem:[#allocation19_spill] sm:$0xff] %v15311_v37  ;;  %8245 = vmatprep.mubr.bf16.mxu1 %v13037_v48  ;;  %v7580_v8 = vpop.f32.mrf.mxu0 }
 0x190   : > { %v7773_v20 = vpop.f32.mrf.mxu1  ;;  %v15314_v51 = vadd.f32 %v7771_v49, %v7579_v12  ;;  %v7581_v54 = vadd.f32 %v7580_v8, %v14931_v45 }
 0x191   : > { %v7582_v5 = vpop.f32.mrf.mxu0 }
 0x192   : > { %v7775_v35 = vpop.f32.mrf.mxu1  ;;  %v15319_v37 = vadd.f32 %v7773_v20, %v7581_v54  ;;  %v7583_v16 = vadd.f32 %v7582_v5, %v14935_v50  ;;  %v13044_v5 = vld [vmem:[%s14378_s17 + $0xb60] ss:$144 sps:$4 sm:$0xff]  }
 0x193   : > { %v7584_v63 = vpop.f32.mrf.mxu0 }
 0x194   : > { %v7777_v42 = vpop.f32.mrf.mxu1  ;;  %v15324_v40 = vadd.f32 %v7775_v35, %v7583_v16  ;;  %v7585_v48 = vadd.f32 %v7584_v63, %v14939_v55  ;;  %v13047_v55 = vld [vmem:[%s14378_s17 + $0xb68] ss:$144 sps:$4 sm:$0xff]   ;;  %v13058_v16 = vld [vmem:[%s14378_s17 + $0xc84] ss:$144 sps:$4 sm:$0xff]  }
 0x195   : > { %v7588_v31 = vpop.f32.mrf.mxu0  ;;  %8053 = vmatmul.mubr.bf16.gmra.mxu0 %v13032_v30 }
 0x196   : > { %v7781_v45 = vpop.f32.mrf.mxu1  ;;  %8246 = vmatmul.mubr.bf16.gmra.mxu1 %v13035_v33  ;;  %v15327_v49 = vadd.f32 %v7777_v42, %v7585_v48  ;;  %v7589_v50 = vadd.f32 %v7588_v31, %v14941_v58  ;;  %8062 = vmatprep.mubr.bf16.mxu0 %v13046_v27  ;;  %v13061_v42 = vld [vmem:[%s14378_s17 + $0xc8c] ss:$144 sps:$4 sm:$0xff]  }
 0x197   : > { %8255 = vmatprep.mubr.bf16.mxu1 %v13049_v15  ;;  %v7590_v12 = vpop.f32.mrf.mxu0 }
 0x198   : > { %v7783_v8 = vpop.f32.mrf.mxu1  ;;  %v15330_v20 = vadd.f32 %v7781_v45, %v7589_v50  ;;  %v7591_v54 = vadd.f32 %v7590_v12, %v14943_v61 }
 0x199   : > { %v7592_v63 = vpop.f32.mrf.mxu0 }
 0x19a   : > { %v7785_v35 = vpop.f32.mrf.mxu1  ;;  %v15335_v30 = vadd.f32 %v7783_v8, %v7591_v54  ;;  %v7593_v33 = vadd.f32 %v7592_v63, %v14947_v2  ;;  %v13056_v63 = vld [vmem:[%s14378_s17 + $0xc80] ss:$144 sps:$4 sm:$0xff]  }
 0x19b   : > { %v7594_v48 = vpop.f32.mrf.mxu0 }
 0x19c   : > { %v7787_v58 = vpop.f32.mrf.mxu1  ;;  %v15340_v27 = vadd.f32 %v7785_v35, %v7593_v33  ;;  %v7595_v15 = vadd.f32 %v7594_v48, %v14951_v7  ;;  %v13059_v7 = vld [vmem:[%s14378_s17 + $0xc88] ss:$144 sps:$4 sm:$0xff]   ;;  %v13070_v48 = vld [vmem:[%s14378_s17 + $0xda4] ss:$144 sps:$4 sm:$0xff]  }
 0x19d   : > { %v7598_v31 = vpop.f32.mrf.mxu0  ;;  %8063 = vmatmul.mubr.bf16.gmra.mxu0 %v13044_v5 }
 0x19e   : > { %v7791_v61 = vpop.f32.mrf.mxu1  ;;  %8256 = vmatmul.mubr.bf16.gmra.mxu1 %v13047_v55  ;;  %v15343_v45 = vadd.f32 %v7787_v58, %v7595_v15  ;;  %v7599_v2 = vadd.f32 %v7598_v31, %v14953_v10  ;;  %8072 = vmatprep.mubr.bf16.mxu0 %v13058_v16  ;;  %v13073_v58 = vld [vmem:[%s14378_s17 + $0xdac] ss:$144 sps:$4 sm:$0xff]  }
 0x19f   : > { %8265 = vmatprep.mubr.bf16.mxu1 %v13061_v42  ;;  %v7600_v50 = vpop.f32.mrf.mxu0 }
 0x1a0   : > { %v7793_v12 = vpop.f32.mrf.mxu1  ;;  %v15346_v8 = vadd.f32 %v7791_v61, %v7599_v2  ;;  %v7601_v54 = vadd.f32 %v7600_v50, %v14955_v13 }
 0x1a1   : > { %v7602_v35 = vpop.f32.mrf.mxu0 }
 0x1a2   : > { %v7795_v33 = vpop.f32.mrf.mxu1  ;;  %v15351_v5 = vadd.f32 %v7793_v12, %v7601_v54  ;;  %v7603_v55 = vadd.f32 %v7602_v35, %v14959_v18  ;;  %v13068_v35 = vld [vmem:[%s14378_s17 + $0xda0] ss:$144 sps:$4 sm:$0xff]  }
 0x1a3   : > { %v7604_v15 = vpop.f32.mrf.mxu0 }
 0x1a4   : > { %v7797_v10 = vpop.f32.mrf.mxu1  ;;  %v15356_v16 = vadd.f32 %v7795_v33, %v7603_v55  ;;  %v7605_v42 = vadd.f32 %v7604_v15, %v14963_v23  ;;  %v13071_v23 = vld [vmem:[%s14378_s17 + $0xda8] ss:$144 sps:$4 sm:$0xff]   ;;  %v13082_v15 = vld [vmem:[%s14378_s17 + $0xec4] ss:$144 sps:$4 sm:$0xff]  }
 0x1a5   : > { %v7608_v31 = vpop.f32.mrf.mxu0  ;;  %8073 = vmatmul.mubr.bf16.gmra.mxu0 %v13056_v63 }
 0x1a6   : > { %v7801_v13 = vpop.f32.mrf.mxu1  ;;  %8266 = vmatmul.mubr.bf16.gmra.mxu1 %v13059_v7  ;;  %v15359_v61 = vadd.f32 %v7797_v10, %v7605_v42  ;;  %v7609_v18 = vadd.f32 %v7608_v31, %v14965_v26  ;;  %8082 = vmatprep.mubr.bf16.mxu0 %v13070_v48  ;;  %v13085_v10 = vld [vmem:[%s14378_s17 + $0xecc] ss:$144 sps:$4 sm:$0xff]  }
 0x1a7   : > { %8275 = vmatprep.mubr.bf16.mxu1 %v13073_v58  ;;  %v7610_v2 = vpop.f32.mrf.mxu0 }
 0x1a8   : > { %v7803_v50 = vpop.f32.mrf.mxu1  ;;  %v15362_v12 = vadd.f32 %v7801_v13, %v7609_v18  ;;  %v7611_v54 = vadd.f32 %v7610_v2, %v14967_v29 }
 0x1a9   : > { %v7612_v33 = vpop.f32.mrf.mxu0 }
 0x1aa   : > { %v7805_v55 = vpop.f32.mrf.mxu1  ;;  %v15367_v63 = vadd.f32 %v7803_v50, %v7611_v54  ;;  %v7613_v7 = vadd.f32 %v7612_v33, %v14971_v34  ;;  %v13080_v33 = vld [vmem:[%s14378_s17 + $0xec0] ss:$144 sps:$4 sm:$0xff]  }
 0x1ab   : > { %v7614_v42 = vpop.f32.mrf.mxu0 }
 0x1ac   : > { %v7807_v26 = vpop.f32.mrf.mxu1  ;;  %v15372_v48 = vadd.f32 %v7805_v55, %v7613_v7  ;;  %v7615_v58 = vadd.f32 %v7614_v42, %v14975_v39  ;;  %v13083_v39 = vld [vmem:[%s14378_s17 + $0xec8] ss:$144 sps:$4 sm:$0xff]   ;;  %v13094_v42 = vld [vmem:[%s14378_s17 + $0xfe4] ss:$144 sps:$4 sm:$0xff]  }
 0x1ad   : > { %v7618_v31 = vpop.f32.mrf.mxu0  ;;  %8083 = vmatmul.mubr.bf16.gmra.mxu0 %v13068_v35 }
 0x1ae   : > { %v7811_v29 = vpop.f32.mrf.mxu1  ;;  %8276 = vmatmul.mubr.bf16.gmra.mxu1 %v13071_v23  ;;  %v15375_v13 = vadd.f32 %v7807_v26, %v7615_v58  ;;  %v7619_v34 = vadd.f32 %v7618_v31, %v14977_v43  ;;  %8092 = vmatprep.mubr.bf16.mxu0 %v13082_v15  ;;  %v13097_v26 = vld [vmem:[%s14378_s17 + $0xfec] ss:$144 sps:$4 sm:$0xff]  }
 0x1af   : > { %8285 = vmatprep.mubr.bf16.mxu1 %v13085_v10  ;;  %v7620_v18 = vpop.f32.mrf.mxu0 }
 0x1b0   : > { %v7813_v2 = vpop.f32.mrf.mxu1  ;;  %v15378_v50 = vadd.f32 %v7811_v29, %v7619_v34  ;;  %v7621_v54 = vadd.f32 %v7620_v18, %v14979_v47 }
 0x1b1   : > { %v7622_v55 = vpop.f32.mrf.mxu0 }
 0x1b2   : > { %v7815_v7 = vpop.f32.mrf.mxu1  ;;  %v15383_v35 = vadd.f32 %v7813_v2, %v7621_v54  ;;  %v7623_v23 = vadd.f32 %v7622_v55, %v14983_v53  ;;  %v13092_v55 = vld [vmem:[%s14378_s17 + $0xfe0] ss:$144 sps:$4 sm:$0xff]  }
 0x1b3   : > { %v7624_v58 = vpop.f32.mrf.mxu0 }
 0x1b4   : > { %v7817_v43 = vpop.f32.mrf.mxu1  ;;  %v15388_v15 = vadd.f32 %v7815_v7, %v7623_v23  ;;  %v7625_v10 = vadd.f32 %v7624_v58, %v14987_v60  ;;  %v13095_v60 = vld [vmem:[%s14378_s17 + $0xfe8] ss:$144 sps:$4 sm:$0xff]   ;;  %v13106_v58 = vld [vmem:[%s14378_s17 + $0x1104] ss:$144 sps:$4 sm:$0xff]  }
 0x1b5   : > { %v7628_v31 = vpop.f32.mrf.mxu0  ;;  %8093 = vmatmul.mubr.bf16.gmra.mxu0 %v13080_v33 }
 0x1b6   : > { %v7821_v47 = vpop.f32.mrf.mxu1  ;;  %8286 = vmatmul.mubr.bf16.gmra.mxu1 %v13083_v39  ;;  %v15391_v29 = vadd.f32 %v7817_v43, %v7625_v10  ;;  %v7629_v53 = vadd.f32 %v7628_v31, %v14989_v0  ;;  %8102 = vmatprep.mubr.bf16.mxu0 %v13094_v42  ;;  %v13109_v43 = vld [vmem:[%s14378_s17 + $0x110c] ss:$144 sps:$4 sm:$0xff]  }
 0x1b7   : > { %8295 = vmatprep.mubr.bf16.mxu1 %v13097_v26  ;;  %v7630_v34 = vpop.f32.mrf.mxu0 }
 0x1b8   : > { %v7823_v18 = vpop.f32.mrf.mxu1  ;;  %v15394_v2 = vadd.f32 %v7821_v47, %v7629_v53  ;;  %v7631_v54 = vadd.f32 %v7630_v34, %v14991_v4 }
 0x1b9   : > { %v7632_v7 = vpop.f32.mrf.mxu0 }
 0x1ba   : > { %v7825_v23 = vpop.f32.mrf.mxu1  ;;  %v15399_v33 = vadd.f32 %v7823_v18, %v7631_v54  ;;  %v7633_v39 = vadd.f32 %v7632_v7, %v14995_v11  ;;  %v13104_v7 = vld [vmem:[%s14378_s17 + $0x1100] ss:$144 sps:$4 sm:$0xff]  }
 0x1bb   : > { %v7634_v10 = vpop.f32.mrf.mxu0 }
 0x1bc   : > { %v7827_v0 = vpop.f32.mrf.mxu1  ;;  %v15404_v42 = vadd.f32 %v7825_v23, %v7633_v39  ;;  %v7635_v26 = vadd.f32 %v7634_v10, %v14999_v17  ;;  %v13107_v17 = vld [vmem:[%s14378_s17 + $0x1108] ss:$144 sps:$4 sm:$0xff]   ;;  %v13118_v10 = vld [vmem:[%s14378_s17 + $0x34] ss:$144 sps:$4 sm:$0xff]  }
 0x1bd   : > { %v7638_v31 = vpop.f32.mrf.mxu0  ;;  %8103 = vmatmul.mubr.bf16.gmra.mxu0 %v13092_v55 }
 0x1be   : > { %v7831_v4 = vpop.f32.mrf.mxu1  ;;  %8296 = vmatmul.mubr.bf16.gmra.mxu1 %v13095_v60  ;;  %v15407_v47 = vadd.f32 %v7827_v0, %v7635_v26  ;;  %v7639_v11 = vadd.f32 %v7638_v31, %v15001_v21  ;;  %8112 = vmatprep.mubr.bf16.mxu0 %v13106_v58  ;;  %v13121_v0 = vld [vmem:[%s14378_s17 + $0x3c] ss:$144 sps:$4 sm:$0xff]  }
 0x1bf   : > { %8305 = vmatprep.mubr.bf16.mxu1 %v13109_v43  ;;  %v7640_v53 = vpop.f32.mrf.mxu0 }
 0x1c0   : > { %v7833_v34 = vpop.f32.mrf.mxu1  ;;  %v15410_v18 = vadd.f32 %v7831_v4, %v7639_v11  ;;  %v7641_v54 = vadd.f32 %v7640_v53, %v15003_v25 }
 0x1c1   : > { %v7642_v23 = vpop.f32.mrf.mxu0 }
 0x1c2   : > { %v7835_v39 = vpop.f32.mrf.mxu1  ;;  %v15415_v55 = vadd.f32 %v7833_v34, %v7641_v54  ;;  %v7643_v60 = vadd.f32 %v7642_v23, %v15007_v32  ;;  %v13116_v34 = vld [vmem:[%s14378_s17 + $0x30] ss:$144 sps:$4 sm:$0xff]   ;;  %v13119_v54 = vld [vmem:[%s14378_s17 + $0x38] ss:$144 sps:$4 sm:$0xff]  }
 0x1c3   : > { %v7644_v21 = vpop.f32.mrf.mxu0 }
 0x1c4   : > { %v7837_v58 = vpop.f32.mrf.mxu1  ;;  %v15420_v43 = vadd.f32 %v7835_v39, %v7643_v60  ;;  %v7645_v26 = vadd.f32 %v7644_v21, %v15011_v38  ;;  %v13133_v21 = vld [vmem:[%s14378_s17 + $0x15c] ss:$144 sps:$4 sm:$0xff]  }
 0x1c5   : > { %v7648_v31 = vpop.f32.mrf.mxu0  ;;  %8113 = vmatmul.mubr.bf16.gmra.mxu0 %v13104_v7  ;;  %v13122_v7 = vld [vmem:[%s18275_s1 + $0x870] ss:$8 sps:$4 sm:$0xff]  }
 0x1c6   : > { %v7841_v25 = vpop.f32.mrf.mxu1  ;;  %8306 = vmatmul.mubr.bf16.gmra.mxu1 %v13107_v17  ;;  %v15423_v4 = vadd.f32 %v7837_v58, %v7645_v26  ;;  %v7649_v11 = vadd.f32 %v7648_v31, %v15013_v44  ;;  %8348 = vmatprep.mubr.bf16.mxu0 %v13118_v10  ;;  %v13125_v17 = vld [vmem:[%s18275_s1 + $0x970] ss:$8 sps:$4 sm:$0xff]   ;;  %v13139_v31 = vld [vmem:[%s18275_s1 + $0x964] ss:$8 sps:$4 sm:$0xff]  }
 0x1c7   : > { %8541 = vmatprep.mubr.bf16.mxu1 %v13121_v0  ;;  %v7650_v32 = vpop.f32.mrf.mxu0  ;;  %v13130_v0 = vld [vmem:[%s14378_s17 + $0x154] ss:$144 sps:$4 sm:$0xff]  }
 0x1c8   : > { %v7843_v53 = vpop.f32.mrf.mxu1  ;;  %v15428_v23 = vadd.f32 %v7841_v25, %v7649_v11  ;;  %v7651_v38 = vadd.f32 %v7650_v32, %v15017_v52  ;;  %v13136_v52 = vld [vmem:[%s18275_s1 + $0x864] ss:$8 sps:$4 sm:$0xff]   ;;  %v13137_v32 = vld [vmem:[%s18275_s1 + $0x960] ss:$8 sps:$4 sm:$0xff]  }
 0x1c9   : > { %v7652_v44 = vpop.f32.mrf.mxu0 }
 0x1ca   : > { %18296 = vst [vmem:[#allocation20_spill] sm:$0xff] %v15428_v23  ;;  %v7845_v39 = vpop.f32.mrf.mxu1  ;;  %v15437_v60 = vadd.f32 %v7843_v53, %v7651_v38  ;;  %v7653_v10 = vadd.f32 %v7652_v44, %v15025_v62  ;;  %v13134_v62 = vld [vmem:[%s18275_s1 + $0x860] ss:$8 sps:$4 sm:$0xff]   ;;  %v13148_v44 = vld [vmem:[%s18275_s1 + $0x854] ss:$8 sps:$4 sm:$0xff]  }
 0x1cb   : > { %v7654_v58 = vpop.f32.mrf.mxu0  ;;  %v13131_v23 = vld [vmem:[%s14378_s17 + $0x158] ss:$144 sps:$4 sm:$0xff]  }
 0x1cc   : > { %18297 = vst [vmem:[#allocation21_spill] sm:$0xff] %v15437_v60  ;;  %v7847_v26 = vpop.f32.mrf.mxu1  ;;  %v15448_v25 = vadd.f32 %v7845_v39, %v7653_v10  ;;  %v7655_v11 = vadd.f32 %v7654_v58, %v15035_v9  ;;  %v13151_v9 = vld [vmem:[%s18275_s1 + $0x954] ss:$8 sps:$4 sm:$0xff]   ;;  %v13128_v60 = vld [vmem:[%s14378_s17 + $0x150] ss:$144 sps:$4 sm:$0xff]  }
 0x1cd   : > { %v7658_v53 = vpop.f32.mrf.mxu0  ;;  %8349 = vmatmul.mubr.bf16.vlgmr.msra.gmra.mxu0 %v13116_v34 }
 0x1ce   : > { %18298 = vst [vmem:[#allocation22_spill] sm:$0xff] %v15448_v25  ;;  %v7851_v38 = vpop.f32.mrf.mxu1  ;;  %8542 = vmatmul.mubr.bf16.vlgmr.msra.gmra.mxu1 %v13119_v54  ;;  %v15463_v39 = vadd.f32 %v7847_v26, %v7655_v11  ;;  %v7659_v10 = vadd.f32 %v7658_v53, %v15049_v22  ;;  %8703 = vmatpush1.bf16.msra.mxu0 %v13122_v7  ;;  %v13142_v7 = vld [vmem:[%s14378_s17 + $0x274] ss:$144 sps:$4 sm:$0xff]  }
 0x1cf   : > { %8896 = vmatpush1.bf16.msra.mxu1 %v13125_v17  ;;  %v7660_v58 = vpop.f32.mrf.mxu0  ;;  %8358 = vmatprep.mubr.bf16.mxu0 %v13130_v0  ;;  %v13145_v17 = vld [vmem:[%s14378_s17 + $0x27c] ss:$144 sps:$4 sm:$0xff]   ;;  %v13146_v0 = vld [vmem:[%s18275_s1 + $0x850] ss:$8 sps:$4 sm:$0xff]  }
 0x1d0   : > { %18299 = vst [vmem:[#allocation23_spill] sm:$0xff] %v15463_v39  ;;  %v7853_v25 = vpop.f32.mrf.mxu1  ;;  %8551 = vmatprep.mubr.bf16.mxu1 %v13133_v21  ;;  %v15466_v34 = vadd.f32 %v7851_v38, %v7659_v10  ;;  %v7661_v54 = vadd.f32 %v7660_v58, %v15051_v28  ;;  %8704 = vmatprep.subr.bf16.mxu0 %v13136_v52  ;;  %v13149_v52 = vld [vmem:[%s18275_s1 + $0x950] ss:$8 sps:$4 sm:$0xff]   ;;  %v13158_v38 = vld [vmem:[%s18275_s1 + $0x840] ss:$8 sps:$4 sm:$0xff]  }
 0x1d1   : > { %8897 = vmatprep.subr.bf16.mxu1 %v13139_v31  ;;  %v7662_v26 = vpop.f32.mrf.mxu0  ;;  %v13163_v31 = vld [vmem:[%s18275_s1 + $0x944] ss:$8 sps:$4 sm:$0xff]  }
 0x1d2   : > { %v7855_v11 = vpop.f32.mrf.mxu1  ;;  %v15471_v39 = vadd.f32 %v7853_v25, %v7661_v54  ;;  %v7663_v22 = vadd.f32 %v7662_v26, %v15055_v36  ;;  %8705 = vmatpush1.bf16.msra.mxu0 %v13134_v62  ;;  %v13160_v36 = vld [vmem:[%s18275_s1 + $0x844] ss:$8 sps:$4 sm:$0xff]  }
 0x1d3   : > { %8898 = vmatpush1.bf16.msra.mxu1 %v13137_v32  ;;  %v7664_v21 = vpop.f32.mrf.mxu0  ;;  %8706 = vmatprep.subr.bf16.mxu0 %v13148_v44  ;;  %v13161_v44 = vld [vmem:[%s18275_s1 + $0x940] ss:$8 sps:$4 sm:$0xff]  }
 0x1d4   : > { %v7857_v28 = vpop.f32.mrf.mxu1  ;;  %8899 = vmatprep.subr.bf16.mxu1 %v13151_v9  ;;  %v15488_v25 = vadd.f32 %v7855_v11, %v7663_v22  ;;  %v7665_v62 = vadd.f32 %v7664_v21, %v15071_v56  ;;  %v13175_v11 = vld [vmem:[%s18275_s1 + $0x934] ss:$8 sps:$4 sm:$0xff]  }
 0x1d5   : > { %v7668_v32 = vpop.f32.mrf.mxu0  ;;  %8359 = vmatmul.mubr.bf16.gmra.mxu0 %v13128_v60  ;;  %v13140_v60 = vld [vmem:[%s14378_s17 + $0x270] ss:$144 sps:$4 sm:$0xff]   ;;  %v13154_v21 = vld [vmem:[%s14378_s17 + $0x394] ss:$144 sps:$4 sm:$0xff]  }
 0x1d6   : > { %v7861_v53 = vpop.f32.mrf.mxu1  ;;  %8552 = vmatmul.mubr.bf16.gmra.mxu1 %v13131_v23  ;;  %v15497_v9 = vadd.f32 %v7857_v28, %v7665_v62  ;;  %v7669_v10 = vadd.f32 %v7668_v32, %v15079_v3  ;;  %8368 = vmatprep.mubr.bf16.mxu0 %v13142_v7  ;;  %v13143_v23 = vld [vmem:[%s14378_s17 + $0x278] ss:$144 sps:$4 sm:$0xff]   ;;  %v13172_v3 = vld [vmem:[%s18275_s1 + $0x834] ss:$8 sps:$4 sm:$0xff]   ;;  %v13184_v62 = vld [vmem:[%s18275_s1 + $0x824] ss:$8 sps:$4 sm:$0xff]  }
 0x1d7   : > { %8561 = vmatprep.mubr.bf16.mxu1 %v13145_v17  ;;  %v7670_v58 = vpop.f32.mrf.mxu0  ;;  %8707 = vmatpush1.bf16.msra.mxu0 %v13146_v0  ;;  %v13157_v28 = vld [vmem:[%s14378_s17 + $0x39c] ss:$144 sps:$4 sm:$0xff]  }
 0x1d8   : > { %v7863_v56 = vpop.f32.mrf.mxu1  ;;  %8900 = vmatpush1.bf16.msra.mxu1 %v13149_v52  ;;  %v15502_v54 = vadd.f32 %v7861_v53, %v7669_v10  ;;  %v7671_v26 = vadd.f32 %v7670_v58, %v15083_v14  ;;  %8708 = vmatprep.subr.bf16.mxu0 %v13160_v36  ;;  %v13170_v14 = vld [vmem:[%s18275_s1 + $0x830] ss:$8 sps:$4 sm:$0xff]   ;;  %v13182_v10 = vld [vmem:[%s18275_s1 + $0x820] ss:$8 sps:$4 sm:$0xff]  }
 0x1d9   : > { %8901 = vmatprep.subr.bf16.mxu1 %v13163_v31  ;;  %v7672_v22 = vpop.f32.mrf.mxu0  ;;  %v13173_v31 = vld [vmem:[%s18275_s1 + $0x930] ss:$8 sps:$4 sm:$0xff]   ;;  %v13185_v58 = vld [vmem:[%s18275_s1 + $0x920] ss:$8 sps:$4 sm:$0xff]  }
 0x1da   : > { %v7865_v7 = vpop.f32.mrf.mxu1  ;;  %v15511_v17 = vadd.f32 %v7863_v56, %v7671_v26  ;;  %v7673_v0 = vadd.f32 %v7672_v22, %v15091_v24  ;;  %v13187_v24 = vld [vmem:[%s18275_s1 + $0x924] ss:$8 sps:$4 sm:$0xff]  }
 0x1db   : > { %v7674_v52 = vpop.f32.mrf.mxu0  ;;  %8709 = vmatpush1.bf16.msra.mxu0 %v13158_v38 }
 0x1dc   : > { %v7867_v36 = vpop.f32.mrf.mxu1  ;;  %8902 = vmatpush1.bf16.msra.mxu1 %v13161_v44  ;;  %v15528_v32 = vadd.f32 %v7865_v7, %v7673_v0  ;;  %v7675_v53 = vadd.f32 %v7674_v52, %v15107_v46  ;;  %8710 = vmatprep.subr.bf16.mxu0 %v13172_v3  ;;  %v13199_v7 = vld [vmem:[%s18275_s1 + $0x914] ss:$8 sps:$4 sm:$0xff]  }
 0x1dd   : > { %8903 = vmatprep.subr.bf16.mxu1 %v13175_v11  ;;  %v7678_v38 = vpop.f32.mrf.mxu0  ;;  %8369 = vmatmul.mubr.bf16.gmra.mxu0 %v13140_v60  ;;  %v13152_v60 = vld [vmem:[%s14378_s17 + $0x390] ss:$144 sps:$4 sm:$0xff]   ;;  %v13166_v52 = vld [vmem:[%s14378_s17 + $0x4b4] ss:$144 sps:$4 sm:$0xff]  }
 0x1de   : > { %v7871_v44 = vpop.f32.mrf.mxu1  ;;  %8562 = vmatmul.mubr.bf16.gmra.mxu1 %v13143_v23  ;;  %v15537_v56 = vadd.f32 %v7867_v36, %v7675_v53  ;;  %v7679_v26 = vadd.f32 %v7678_v38, %v15115_v57  ;;  %8378 = vmatprep.mubr.bf16.mxu0 %v13154_v21  ;;  %v13155_v23 = vld [vmem:[%s14378_s17 + $0x398] ss:$144 sps:$4 sm:$0xff]   ;;  %v13196_v57 = vld [vmem:[%s18275_s1 + $0x814] ss:$8 sps:$4 sm:$0xff]   ;;  %v13208_v53 = vld [vmem:[%s18275_s1 + $0x804] ss:$8 sps:$4 sm:$0xff]  }
 0x1df   : > { %8571 = vmatprep.mubr.bf16.mxu1 %v13157_v28  ;;  %v7680_v46 = vpop.f32.mrf.mxu0  ;;  %8711 = vmatpush1.bf16.msra.mxu0 %v13170_v14  ;;  %v13169_v36 = vld [vmem:[%s14378_s17 + $0x4bc] ss:$144 sps:$4 sm:$0xff]  }
 0x1e0   : > { %v7873_v3 = vpop.f32.mrf.mxu1  ;;  %8904 = vmatpush1.bf16.msra.mxu1 %v13173_v31  ;;  %v15542_v11 = vadd.f32 %v7871_v44, %v7679_v26  ;;  %v7681_v22 = vadd.f32 %v7680_v46, %v15119_v6  ;;  %8712 = vmatprep.subr.bf16.mxu0 %v13184_v62  ;;  %v13194_v6 = vld [vmem:[%s18275_s1 + $0x810] ss:$8 sps:$4 sm:$0xff]   ;;  %v13206_v26 = vld [vmem:[%s18275_s1 + $0x800] ss:$8 sps:$4 sm:$0xff]  }
 0x1e1   : > { %8905 = vmatprep.subr.bf16.mxu1 %v13187_v24  ;;  %v7682_v0 = vpop.f32.mrf.mxu0  ;;  %v13197_v24 = vld [vmem:[%s18275_s1 + $0x910] ss:$8 sps:$4 sm:$0xff]   ;;  %v13209_v46 = vld [vmem:[%s18275_s1 + $0x900] ss:$8 sps:$4 sm:$0xff]  }
 0x1e2   : > { %v7875_v21 = vpop.f32.mrf.mxu1  ;;  %v15551_v28 = vadd.f32 %v7873_v3, %v7681_v22  ;;  %v7683_v14 = vadd.f32 %v7682_v0, %v15127_v19  ;;  %v13211_v19 = vld [vmem:[%s18275_s1 + $0x904] ss:$8 sps:$4 sm:$0xff]  }
 0x1e3   : > { %v7684_v31 = vpop.f32.mrf.mxu0  ;;  %8713 = vmatpush1.bf16.msra.mxu0 %v13182_v10 }
 0x1e4   : > { %v7877_v62 = vpop.f32.mrf.mxu1  ;;  %8906 = vmatpush1.bf16.msra.mxu1 %v13185_v58  ;;  %v15568_v38 = vadd.f32 %v7875_v21, %v7683_v14  ;;  %v7685_v44 = vadd.f32 %v7684_v31, %v15143_v41  ;;  %8714 = vmatprep.subr.bf16.mxu0 %v13196_v57  ;;  %v13223_v21 = vld [vmem:[%s18275_s1 + $0x9f4] ss:$8 sps:$4 sm:$0xff]  }
 0x1e5   : > { %8907 = vmatprep.subr.bf16.mxu1 %v13199_v7  ;;  %v7688_v10 = vpop.f32.mrf.mxu0  ;;  %8379 = vmatmul.mubr.bf16.gmra.mxu0 %v13152_v60  ;;  %v13164_v60 = vld [vmem:[%s14378_s17 + $0x4b0] ss:$144 sps:$4 sm:$0xff]  }
 0x1e6   : > { %v7881_v58 = vpop.f32.mrf.mxu1  ;;  %8572 = vmatmul.mubr.bf16.gmra.mxu1 %v13155_v23  ;;  %v15577_v3 = vadd.f32 %v7877_v62, %v7685_v44  ;;  %v7689_v22 = vadd.f32 %v7688_v10, %v15151_v59  ;;  %8388 = vmatprep.mubr.bf16.mxu0 %v13166_v52  ;;  %v13167_v23 = vld [vmem:[%s14378_s17 + $0x4b8] ss:$144 sps:$4 sm:$0xff]   ;;  %v13220_v59 = vld [vmem:[%s18275_s1 + $0x8f4] ss:$8 sps:$4 sm:$0xff]   ;;  %v13232_v10 = vld [vmem:[%s18275_s1 + $0x8e4] ss:$8 sps:$4 sm:$0xff]  }
 0x1e7   : > { %8581 = vmatprep.mubr.bf16.mxu1 %v13169_v36  ;;  %v7690_v41 = vpop.f32.mrf.mxu0  ;;  %8715 = vmatpush1.bf16.msra.mxu0 %v13194_v6  ;;  %v18300_v6 = vld [vmem:[#allocation2_spill] sm:$0xff]  ;;  %v13221_v44 = vld [vmem:[%s18275_s1 + $0x9f0] ss:$8 sps:$4 sm:$0xff]  }
 0x1e8   : > { %v7883_v57 = vpop.f32.mrf.mxu1  ;;  %8908 = vmatpush1.bf16.msra.mxu1 %v13197_v24  ;;  %v15582_v7 = vadd.f32 %v7881_v58, %v7689_v22  ;;  %v7691_v0 = vadd.f32 %v7690_v41, %v15155_v1  ;;  %8716 = vmatprep.subr.bf16.mxu0 %v13208_v53  ;;  %v13178_v62 = vld [vmem:[%s14378_s17 + $0x5d4] ss:$144 sps:$4 sm:$0xff]   ;;  %v13181_v24 = vld [vmem:[%s14378_s17 + $0x5dc] ss:$144 sps:$4 sm:$0xff]   ;;  %v13218_v1 = vld [vmem:[%s18275_s1 + $0x8f0] ss:$8 sps:$4 sm:$0xff]  }
 0x1e9   : > { %8909 = vmatprep.subr.bf16.mxu1 %v13211_v19  ;;  %v7692_v14 = vpop.f32.mrf.mxu0  ;;  %v13235_v58 = vld [vmem:[%s18275_s1 + $0x9e4] ss:$8 sps:$4 sm:$0xff]  }
 0x1ea   : > { %v7885_v52 = vpop.f32.mrf.mxu1  ;;  %v15591_v36 = vadd.f32 %v7883_v57, %v7691_v0  ;;  %v7693_v31 = vadd.f32 %v7692_v14, %v18300_v6  ;;  %v18302_v41 = vld [vmem:[#allocation3_spill] sm:$0xff]  ;;  %v18304_v6 = vld [vmem:[#allocation4_spill] sm:$0xff] }
 0x1eb   : > { %v7694_v53 = vpop.f32.mrf.mxu0  ;;  %8717 = vmatpush1.bf16.msra.mxu0 %v13206_v26  ;;  %v13230_v0 = vld [vmem:[%s18275_s1 + $0x8e0] ss:$8 sps:$4 sm:$0xff]  }
 0x1ec   : > { %v7887_v19 = vpop.f32.mrf.mxu1  ;;  %8910 = vmatpush1.bf16.msra.mxu1 %v13209_v46  ;;  %v15608_v22 = vadd.f32 %v7885_v52, %v7693_v31  ;;  %v7695_v57 = vadd.f32 %v7694_v53, %v18302_v41  ;;  %8718 = vmatprep.subr.bf16.mxu0 %v13220_v59  ;;  %v13233_v14 = vld [vmem:[%s18275_s1 + $0x9e0] ss:$8 sps:$4 sm:$0xff]   ;;  %v18306_v41 = vld [vmem:[#allocation5_spill] sm:$0xff] }
 0x1ed   : > { %8911 = vmatprep.subr.bf16.mxu1 %v13223_v21  ;;  %v7698_v26 = vpop.f32.mrf.mxu0  ;;  %8389 = vmatmul.mubr.bf16.gmra.mxu0 %v13164_v60  ;;  %v13176_v60 = vld [vmem:[%s14378_s17 + $0x5d0] ss:$144 sps:$4 sm:$0xff]  }
 0x1ee   : > { %18301 = vst [vmem:[#allocation2_spill] sm:$0xff] %v15608_v22  ;;  %v7891_v46 = vpop.f32.mrf.mxu1  ;;  %8582 = vmatmul.mubr.bf16.gmra.mxu1 %v13167_v23  ;;  %v15617_v52 = vadd.f32 %v7887_v19, %v7695_v57  ;;  %v7699_v31 = vadd.f32 %v7698_v26, %v18304_v6  ;;  %8398 = vmatprep.mubr.bf16.mxu0 %v13178_v62  ;;  %v13179_v23 = vld [vmem:[%s14378_s17 + $0x5d8] ss:$144 sps:$4 sm:$0xff]   ;;  %v13244_v19 = vld [vmem:[%s18275_s1 + $0x8d4] ss:$8 sps:$4 sm:$0xff]  }
 0x1ef   : > { %8591 = vmatprep.mubr.bf16.mxu1 %v13181_v24  ;;  %v7700_v59 = vpop.f32.mrf.mxu0  ;;  %8719 = vmatpush2.bf16.msra.mxu0 %v13218_v1  ;;  %v13247_v62 = vld [vmem:[%s18275_s1 + $0x9d4] ss:$8 sps:$4 sm:$0xff]   ;;  %v18308_v1 = vld [vmem:[#allocation6_spill] sm:$0xff] }
 0x1f0   : > { %18303 = vst [vmem:[#allocation3_spill] sm:$0xff] %v15617_v52  ;;  %v7893_v21 = vpop.f32.mrf.mxu1  ;;  %8912 = vmatpush2.bf16.msra.mxu1 %v13221_v44  ;;  %v15622_v53 = vadd.f32 %v7891_v46, %v7699_v31  ;;  %v7701_v22 = vadd.f32 %v7700_v59, %v18306_v41  ;;  %8720 = vmatprep.subr.bf16.mxu0 %v13232_v10  ;;  %v13190_v46 = vld [vmem:[%s14378_s17 + $0x6f4] ss:$144 sps:$4 sm:$0xff]   ;;  %v13193_v6 = vld [vmem:[%s14378_s17 + $0x6fc] ss:$144 sps:$4 sm:$0xff]  }
 0x1f1   : > { %8913 = vmatprep.subr.bf16.mxu1 %v13235_v58  ;;  %v7702_v24 = vpop.f32.mrf.mxu0  ;;  %v13242_v10 = vld [vmem:[%s18275_s1 + $0x8d0] ss:$8 sps:$4 sm:$0xff]  }
 0x1f2   : > { %18305 = vst [vmem:[#allocation4_spill] sm:$0xff] %v15622_v53  ;;  %v7895_v57 = vpop.f32.mrf.mxu1  ;;  %v15631_v26 = vadd.f32 %v7893_v21, %v7701_v22  ;;  %v7703_v44 = vadd.f32 %v7702_v24, %v18308_v1  ;;  %v13245_v59 = vld [vmem:[%s18275_s1 + $0x9d0] ss:$8 sps:$4 sm:$0xff]   ;;  %v13256_v22 = vld [vmem:[%s18275_s1 + $0x8c4] ss:$8 sps:$4 sm:$0xff]  }
 0x1f3   : > { %v7704_v58 = vpop.f32.mrf.mxu0  ;;  %8721 = vmatpush2.bf16.msra.mxu0 %v13230_v0  ;;  %v13259_v21 = vld [vmem:[%s18275_s1 + $0x9c4] ss:$8 sps:$4 sm:$0xff]   ;;  %v13257_v53 = vld [vmem:[%s18275_s1 + $0x9c0] ss:$8 sps:$4 sm:$0xff]  }
 0x1f4   : > { %18307 = vst [vmem:[#allocation5_spill] sm:$0xff] %v15631_v26  ;;  %v7897_v31 = vpop.f32.mrf.mxu1  ;;  %8914 = vmatpush2.bf16.msra.mxu1 %v13233_v14  ;;  %v15648_v41 = vadd.f32 %v7895_v57, %v7703_v44  ;;  %v18310_v24 = vld [vmem:[#allocation7_spill] sm:$0xff]  ;;  %8722 = vmatprep.subr.bf16.mxu0 %v13244_v19  ;;  %v18312_v44 = vld [vmem:[#allocation8_spill] sm:$0xff] }
 0x1f5   : > { %v7705_v1 = vadd.f32 %v7704_v58, %v18310_v24  ;;  %8915 = vmatprep.subr.bf16.mxu1 %v13247_v62  ;;  %v7708_v0 = vpop.f32.mrf.mxu0  ;;  %8399 = vmatmul.mubr.bf16.gmra.mxu0 %v13176_v60  ;;  %v13254_v26 = vld [vmem:[%s18275_s1 + $0x8c0] ss:$8 sps:$4 sm:$0xff]   ;;  %v18314_v24 = vld [vmem:[#allocation9_spill] sm:$0xff] }
 0x1f6   : > { %18309 = vst [vmem:[#allocation6_spill] sm:$0xff] %v15648_v41  ;;  %v7901_v14 = vpop.f32.mrf.mxu1  ;;  %8592 = vmatmul.mubr.bf16.gmra.mxu1 %v13179_v23  ;;  %v7709_v41 = vadd.f32 %v7708_v0, %v18312_v44  ;;  %8408 = vmatprep.mubr.bf16.mxu0 %v13190_v46  ;;  %v13188_v60 = vld [vmem:[%s14378_s17 + $0x6f0] ss:$144 sps:$4 sm:$0xff]   ;;  %v13191_v23 = vld [vmem:[%s14378_s17 + $0x6f8] ss:$144 sps:$4 sm:$0xff]  }
 0x1f7   : > { %v15657_v57 = vadd.f32 %v7897_v31, %v7705_v1  ;;  %8601 = vmatprep.mubr.bf16.mxu1 %v13193_v6  ;;  %v7710_v19 = vpop.f32.mrf.mxu0  ;;  %8723 = vmatpush2.bf16.msra.mxu0 %v13242_v10  ;;  %v13268_v31 = vld [vmem:[%s18275_s1 + $0x8b4] ss:$8 sps:$4 sm:$0xff]   ;;  %v18316_v10 = vld [vmem:[#allocation10_spill] sm:$0xff] }
 0x1f8   : > { %v7903_v62 = vpop.f32.mrf.mxu1  ;;  %8916 = vmatpush2.bf16.msra.mxu1 %v13245_v59  ;;  %v15662_v58 = vadd.f32 %v7901_v14, %v7709_v41  ;;  %v7711_v52 = vadd.f32 %v7710_v19, %v18314_v24  ;;  %8724 = vmatprep.subr.bf16.mxu0 %v13256_v22  ;;  %v13271_v46 = vld [vmem:[%s18275_s1 + $0x9b4] ss:$8 sps:$4 sm:$0xff]   ;;  %v13266_v22 = vld [vmem:[%s18275_s1 + $0x8b0] ss:$8 sps:$4 sm:$0xff]  }
 0x1f9   : > { %18311 = vst [vmem:[#allocation7_spill] sm:$0xff] %v15657_v57  ;;  %8917 = vmatprep.subr.bf16.mxu1 %v13259_v21  ;;  %v7712_v6 = vpop.f32.mrf.mxu0  ;;  %v13202_v41 = vld [vmem:[%s14378_s17 + $0x814] ss:$144 sps:$4 sm:$0xff]   ;;  %v13205_v14 = vld [vmem:[%s14378_s17 + $0x81c] ss:$144 sps:$4 sm:$0xff]  }
 0x1fa   : > { %18313 = vst [vmem:[#allocation8_spill] sm:$0xff] %v15662_v58  ;;  %v7905_v1 = vpop.f32.mrf.mxu1  ;;  %v15671_v0 = vadd.f32 %v7903_v62, %v7711_v52  ;;  %v7713_v59 = vadd.f32 %v7712_v6, %v18316_v10  ;;  %v13269_v19 = vld [vmem:[%s18275_s1 + $0x9b0] ss:$8 sps:$4 sm:$0xff]   ;;  %v13280_v52 = vld [vmem:[%s18275_s1 + $0x8a4] ss:$8 sps:$4 sm:$0xff]  }
 0x1fb   : > { %v7714_v21 = vpop.f32.mrf.mxu0  ;;  %8725 = vmatpush2.bf16.msra.mxu0 %v13254_v26  ;;  %v13283_v62 = vld [vmem:[%s18275_s1 + $0x9a4] ss:$8 sps:$4 sm:$0xff]   ;;  %v13281_v58 = vld [vmem:[%s18275_s1 + $0x9a0] ss:$8 sps:$4 sm:$0xff]  }
 0x1fc   : > { %18315 = vst [vmem:[#allocation9_spill] sm:$0xff] %v15671_v0  ;;  %v7907_v44 = vpop.f32.mrf.mxu1  ;;  %8918 = vmatpush2.bf16.msra.mxu1 %v13257_v53  ;;  %v15688_v24 = vadd.f32 %v7905_v1, %v7713_v59  ;;  %v18318_v6 = vld [vmem:[#allocation11_spill] sm:$0xff]  ;;  %8726 = vmatprep.subr.bf16.mxu0 %v13268_v31  ;;  %v18320_v59 = vld [vmem:[#allocation12_spill] sm:$0xff] }
 0x1fd   : > { %v7715_v10 = vadd.f32 %v7714_v21, %v18318_v6  ;;  %8919 = vmatprep.subr.bf16.mxu1 %v13271_v46  ;;  %v7718_v53 = vpop.f32.mrf.mxu0  ;;  %8409 = vmatmul.mubr.bf16.gmra.mxu0 %v13188_v60  ;;  %v13278_v0 = vld [vmem:[%s18275_s1 + $0x8a0] ss:$8 sps:$4 sm:$0xff]   ;;  %v18322_v6 = vld [vmem:[#allocation13_spill] sm:$0xff] }
 0x1fe   : > { %18317 = vst [vmem:[#allocation10_spill] sm:$0xff] %v15688_v24  ;;  %v7911_v26 = vpop.f32.mrf.mxu1  ;;  %8602 = vmatmul.mubr.bf16.gmra.mxu1 %v13191_v23  ;;  %v7719_v24 = vadd.f32 %v7718_v53, %v18320_v59  ;;  %8418 = vmatprep.mubr.bf16.mxu0 %v13202_v41  ;;  %v13200_v60 = vld [vmem:[%s14378_s17 + $0x810] ss:$144 sps:$4 sm:$0xff]   ;;  %v13203_v23 = vld [vmem:[%s14378_s17 + $0x818] ss:$144 sps:$4 sm:$0xff]  }
 0x1ff   : > { %v15697_v1 = vadd.f32 %v7907_v44, %v7715_v10  ;;  %8611 = vmatprep.mubr.bf16.mxu1 %v13205_v14  ;;  %v7720_v31 = vpop.f32.mrf.mxu0  ;;  %8727 = vmatpush2.bf16.msra.mxu0 %v13266_v22  ;;  %v13292_v44 = vld [vmem:[%s18275_s1 + $0x894] ss:$8 sps:$4 sm:$0xff]   ;;  %v18324_v22 = vld [vmem:[#allocation14_spill] sm:$0xff] }
 0x200   : > { %v7913_v46 = vpop.f32.mrf.mxu1  ;;  %8920 = vmatpush2.bf16.msra.mxu1 %v13269_v19  ;;  %v15702_v21 = vadd.f32 %v7911_v26, %v7719_v24  ;;  %v7721_v57 = vadd.f32 %v7720_v31, %v18322_v6  ;;  %8728 = vmatprep.subr.bf16.mxu0 %v13280_v52  ;;  %v13295_v41 = vld [vmem:[%s18275_s1 + $0x994] ss:$8 sps:$4 sm:$0xff]   ;;  %v13290_v52 = vld [vmem:[%s18275_s1 + $0x890] ss:$8 sps:$4 sm:$0xff]  }
 0x201   : > { %18319 = vst [vmem:[#allocation11_spill] sm:$0xff] %v15697_v1  ;;  %8921 = vmatprep.subr.bf16.mxu1 %v13283_v62  ;;  %v7722_v14 = vpop.f32.mrf.mxu0  ;;  %v13214_v24 = vld [vmem:[%s14378_s17 + $0x934] ss:$144 sps:$4 sm:$0xff]   ;;  %v13217_v26 = vld [vmem:[%s14378_s17 + $0x93c] ss:$144 sps:$4 sm:$0xff]  }
 0x202   : > { %18321 = vst [vmem:[#allocation12_spill] sm:$0xff] %v15702_v21  ;;  %v7915_v10 = vpop.f32.mrf.mxu1  ;;  %v15711_v53 = vadd.f32 %v7913_v46, %v7721_v57  ;;  %v7723_v19 = vadd.f32 %v7722_v14, %v18324_v22  ;;  %v13293_v31 = vld [vmem:[%s18275_s1 + $0x990] ss:$8 sps:$4 sm:$0xff]   ;;  %v13304_v57 = vld [vmem:[%s18275_s1 + $0x884] ss:$8 sps:$4 sm:$0xff]  }
 0x203   : > { %v7724_v62 = vpop.f32.mrf.mxu0  ;;  %8729 = vmatpush2.bf16.msra.mxu0 %v13278_v0  ;;  %v13307_v46 = vld [vmem:[%s18275_s1 + $0x984] ss:$8 sps:$4 sm:$0xff]   ;;  %v13305_v21 = vld [vmem:[%s18275_s1 + $0x980] ss:$8 sps:$4 sm:$0xff]  }
 0x204   : > { %18323 = vst [vmem:[#allocation13_spill] sm:$0xff] %v15711_v53  ;;  %v7917_v59 = vpop.f32.mrf.mxu1  ;;  %8922 = vmatpush2.bf16.msra.mxu1 %v13281_v58  ;;  %v15728_v6 = vadd.f32 %v7915_v10, %v7723_v19  ;;  %v18326_v14 = vld [vmem:[#allocation15_spill] sm:$0xff]  ;;  %8730 = vmatprep.subr.bf16.mxu0 %v13292_v44  ;;  %v18328_v19 = vld [vmem:[#allocation16_spill] sm:$0xff] }
 0x205   : > { %v7725_v22 = vadd.f32 %v7724_v62, %v18326_v14  ;;  %8923 = vmatprep.subr.bf16.mxu1 %v13295_v41  ;;  %v7728_v58 = vpop.f32.mrf.mxu0  ;;  %8419 = vmatmul.mubr.bf16.gmra.mxu0 %v13200_v60  ;;  %v13302_v53 = vld [vmem:[%s18275_s1 + $0x880] ss:$8 sps:$4 sm:$0xff]   ;;  %v18330_v14 = vld [vmem:[#allocation17_spill] sm:$0xff] }
 0x206   : > { %18325 = vst [vmem:[#allocation14_spill] sm:$0xff] %v15728_v6  ;;  %v7921_v0 = vpop.f32.mrf.mxu1  ;;  %8612 = vmatmul.mubr.bf16.gmra.mxu1 %v13203_v23  ;;  %v7729_v6 = vadd.f32 %v7728_v58, %v18328_v19  ;;  %8428 = vmatprep.mubr.bf16.mxu0 %v13214_v24  ;;  %v13212_v60 = vld [vmem:[%s14378_s17 + $0x930] ss:$144 sps:$4 sm:$0xff]   ;;  %v13215_v23 = vld [vmem:[%s14378_s17 + $0x938] ss:$144 sps:$4 sm:$0xff]  }
 0x207   : > { %v15737_v10 = vadd.f32 %v7917_v59, %v7725_v22  ;;  %8621 = vmatprep.mubr.bf16.mxu1 %v13217_v26  ;;  %v7730_v44 = vpop.f32.mrf.mxu0  ;;  %8731 = vmatpush2.bf16.msra.mxu0 %v13290_v52  ;;  %v13316_v59 = vld [vmem:[%s18275_s1 + $0xa74] ss:$8 sps:$4 sm:$0xff]   ;;  %v18331_v52 = vld [vmem:[#allocation18_spill] sm:$0xff] }
 0x208   : > { %v7923_v41 = vpop.f32.mrf.mxu1  ;;  %8924 = vmatpush2.bf16.msra.mxu1 %v13293_v31  ;;  %v15742_v62 = vadd.f32 %v7921_v0, %v7729_v6  ;;  %v7731_v1 = vadd.f32 %v7730_v44, %v18330_v14  ;;  %8732 = vmatprep.subr.bf16.mxu0 %v13304_v57  ;;  %v13319_v24 = vld [vmem:[%s18275_s1 + $0xb74] ss:$8 sps:$4 sm:$0xff]  }
 0x209   : > { %18327 = vst [vmem:[#allocation15_spill] sm:$0xff] %v15737_v10  ;;  %8925 = vmatprep.subr.bf16.mxu1 %v13307_v46  ;;  %v7732_v26 = vpop.f32.mrf.mxu0  ;;  %v13226_v6 = vld [vmem:[%s14378_s17 + $0xa54] ss:$144 sps:$4 sm:$0xff]   ;;  %v13229_v0 = vld [vmem:[%s14378_s17 + $0xa5c] ss:$144 sps:$4 sm:$0xff]  }
 0x20a   : > { %18329 = vst [vmem:[#allocation16_spill] sm:$0xff] %v15742_v62  ;;  %v7925_v22 = vpop.f32.mrf.mxu1  ;;  %v15751_v58 = vadd.f32 %v7923_v41, %v7731_v1  ;;  %v7733_v31 = vadd.f32 %v7732_v26, %v18331_v52  ;;  %v18332_v46 = vld [vmem:[#allocation19_spill] sm:$0xff] }
 0x20b   : > { %v7734_v19 = vpop.f32.mrf.mxu0  ;;  %8733 = vmatpush2.bf16.msra.mxu0 %v13302_v53 }
 0x20c   : > { %v7927_v44 = vpop.f32.mrf.mxu1  ;;  %8926 = vmatpush2.bf16.msra.mxu1 %v13305_v21  ;;  %v15756_v57 = vadd.f32 %v7925_v22, %v7733_v31  ;;  %v7735_v14 = vadd.f32 %v7734_v19, %v18332_v46  ;;  %9088 = vmatprep.subr.bf16.mxu0 %v13316_v59  ;;  %v13224_v59 = vld [vmem:[%s14378_s17 + $0xa50] ss:$144 sps:$4 sm:$0xff]   ;;  %v13238_v19 = vld [vmem:[%s14378_s17 + $0xb74] ss:$144 sps:$4 sm:$0xff]  }
 0x20d   : > { %9281 = vmatprep.subr.bf16.mxu1 %v13319_v24  ;;  %v7964_v62 = vpop.f32.mrf.mxu0  ;;  %8429 = vmatmul.mubr.bf16.gmra.mxu0 %v13212_v60  ;;  %v13227_v24 = vld [vmem:[%s14378_s17 + $0xa58] ss:$144 sps:$4 sm:$0xff]  }
 0x20e   : > { %v8157_v10 = vpop.f32.mrf.mxu1  ;;  %8622 = vmatmul.mubr.bf16.gmra.mxu1 %v13215_v23  ;;  %v15759_v1 = vadd.f32 %v7927_v44, %v7735_v14  ;;  %v7965_v41 = vadd.f32 %v7964_v62, %v15314_v51  ;;  %8438 = vmatprep.mubr.bf16.mxu0 %v13226_v6  ;;  %v13241_v44 = vld [vmem:[%s14378_s17 + $0xb7c] ss:$144 sps:$4 sm:$0xff]  }
 0x20f   : > { %8631 = vmatprep.mubr.bf16.mxu1 %v13229_v0  ;;  %v7966_v21 = vpop.f32.mrf.mxu0 }
 0x210   : > { %v8159_v53 = vpop.f32.mrf.mxu1  ;;  %v15762_v26 = vadd.f32 %v8157_v10, %v7965_v41  ;;  %v7967_v22 = vadd.f32 %v7966_v21, %v15319_v37 }
 0x211   : > { %v7968_v52 = vpop.f32.mrf.mxu0 }
 0x212   : > { %v8161_v31 = vpop.f32.mrf.mxu1  ;;  %v15767_v60 = vadd.f32 %v8159_v53, %v7967_v22  ;;  %v7969_v23 = vadd.f32 %v7968_v52, %v15324_v40  ;;  %v13236_v22 = vld [vmem:[%s14378_s17 + $0xb70] ss:$144 sps:$4 sm:$0xff]  }
 0x213   : > { %v7970_v46 = vpop.f32.mrf.mxu0 }
 0x214   : > { %v8163_v51 = vpop.f32.mrf.mxu1  ;;  %v15772_v62 = vadd.f32 %v8161_v31, %v7969_v23  ;;  %v7971_v10 = vadd.f32 %v7970_v46, %v15327_v49  ;;  %v13239_v49 = vld [vmem:[%s14378_s17 + $0xb78] ss:$144 sps:$4 sm:$0xff]   ;;  %v13250_v23 = vld [vmem:[%s14378_s17 + $0xc94] ss:$144 sps:$4 sm:$0xff]   ;;  %v13253_v46 = vld [vmem:[%s14378_s17 + $0xc9c] ss:$144 sps:$4 sm:$0xff]  }
 0x215   : > { %v7974_v6 = vpop.f32.mrf.mxu0  ;;  %8439 = vmatmul.mubr.bf16.gmra.mxu0 %v13224_v59 }
 0x216   : > { %v8167_v37 = vpop.f32.mrf.mxu1  ;;  %8632 = vmatmul.mubr.bf16.gmra.mxu1 %v13227_v24  ;;  %v15775_v0 = vadd.f32 %v8163_v51, %v7971_v10  ;;  %v7975_v40 = vadd.f32 %v7974_v6, %v15330_v20  ;;  %8448 = vmatprep.mubr.bf16.mxu0 %v13238_v19 }
 0x217   : > { %8641 = vmatprep.mubr.bf16.mxu1 %v13241_v44  ;;  %v7976_v14 = vpop.f32.mrf.mxu0 }
 0x218   : > { %v8169_v41 = vpop.f32.mrf.mxu1  ;;  %v15778_v21 = vadd.f32 %v8167_v37, %v7975_v40  ;;  %v7977_v53 = vadd.f32 %v7976_v14, %v15335_v30 }
 0x219   : > { %v7978_v52 = vpop.f32.mrf.mxu0 }
 0x21a   : > { %v8171_v31 = vpop.f32.mrf.mxu1  ;;  %v15783_v59 = vadd.f32 %v8169_v41, %v7977_v53  ;;  %v7979_v24 = vadd.f32 %v7978_v52, %v15340_v27  ;;  %v13248_v53 = vld [vmem:[%s14378_s17 + $0xc90] ss:$144 sps:$4 sm:$0xff]  }
 0x21b   : > { %v7980_v51 = vpop.f32.mrf.mxu0 }
 0x21c   : > { %v8173_v20 = vpop.f32.mrf.mxu1  ;;  %v15788_v19 = vadd.f32 %v8171_v31, %v7979_v24  ;;  %v7981_v44 = vadd.f32 %v7980_v51, %v15343_v45  ;;  %v13251_v45 = vld [vmem:[%s14378_s17 + $0xc98] ss:$144 sps:$4 sm:$0xff]   ;;  %v13262_v24 = vld [vmem:[%s14378_s17 + $0xdb4] ss:$144 sps:$4 sm:$0xff]   ;;  %v13265_v51 = vld [vmem:[%s14378_s17 + $0xdbc] ss:$144 sps:$4 sm:$0xff]  }
 0x21d   : > { %v7984_v10 = vpop.f32.mrf.mxu0  ;;  %8449 = vmatmul.mubr.bf16.gmra.mxu0 %v13236_v22 }
 0x21e   : > { %v8177_v30 = vpop.f32.mrf.mxu1  ;;  %8642 = vmatmul.mubr.bf16.gmra.mxu1 %v13239_v49  ;;  %v15791_v6 = vadd.f32 %v8173_v20, %v7981_v44  ;;  %v7985_v27 = vadd.f32 %v7984_v10, %v15346_v8  ;;  %8458 = vmatprep.mubr.bf16.mxu0 %v13250_v23 }
 0x21f   : > { %8651 = vmatprep.mubr.bf16.mxu1 %v13253_v46  ;;  %v7986_v37 = vpop.f32.mrf.mxu0 }
 0x220   : > { %v8179_v40 = vpop.f32.mrf.mxu1  ;;  %v15794_v14 = vadd.f32 %v8177_v30, %v7985_v27  ;;  %v7987_v41 = vadd.f32 %v7986_v37, %v15351_v5 }
 0x221   : > { %v7988_v52 = vpop.f32.mrf.mxu0 }
 0x222   : > { %v8181_v31 = vpop.f32.mrf.mxu1  ;;  %v15799_v22 = vadd.f32 %v8179_v40, %v7987_v41  ;;  %v7989_v49 = vadd.f32 %v7988_v52, %v15356_v16  ;;  %v13260_v41 = vld [vmem:[%s14378_s17 + $0xdb0] ss:$144 sps:$4 sm:$0xff]  }
 0x223   : > { %v7990_v20 = vpop.f32.mrf.mxu0 }
 0x224   : > { %v8183_v8 = vpop.f32.mrf.mxu1  ;;  %v15804_v23 = vadd.f32 %v8181_v31, %v7989_v49  ;;  %v7991_v46 = vadd.f32 %v7990_v20, %v15359_v61  ;;  %v13263_v61 = vld [vmem:[%s14378_s17 + $0xdb8] ss:$144 sps:$4 sm:$0xff]   ;;  %v13274_v49 = vld [vmem:[%s14378_s17 + $0xed4] ss:$144 sps:$4 sm:$0xff]   ;;  %v13277_v20 = vld [vmem:[%s14378_s17 + $0xedc] ss:$144 sps:$4 sm:$0xff]  }
 0x225   : > { %v7994_v44 = vpop.f32.mrf.mxu0  ;;  %8459 = vmatmul.mubr.bf16.gmra.mxu0 %v13248_v53 }
 0x226   : > { %v8187_v5 = vpop.f32.mrf.mxu1  ;;  %8652 = vmatmul.mubr.bf16.gmra.mxu1 %v13251_v45  ;;  %v15807_v10 = vadd.f32 %v8183_v8, %v7991_v46  ;;  %v7995_v16 = vadd.f32 %v7994_v44, %v15362_v12  ;;  %8468 = vmatprep.mubr.bf16.mxu0 %v13262_v24 }
 0x227   : > { %8661 = vmatprep.mubr.bf16.mxu1 %v13265_v51  ;;  %v7996_v30 = vpop.f32.mrf.mxu0 }
 0x228   : > { %v8189_v27 = vpop.f32.mrf.mxu1  ;;  %v15810_v37 = vadd.f32 %v8187_v5, %v7995_v16  ;;  %v7997_v40 = vadd.f32 %v7996_v30, %v15367_v63 }
 0x229   : > { %v7998_v52 = vpop.f32.mrf.mxu0 }
 0x22a   : > { %v8191_v31 = vpop.f32.mrf.mxu1  ;;  %v15815_v53 = vadd.f32 %v8189_v27, %v7997_v40  ;;  %v7999_v45 = vadd.f32 %v7998_v52, %v15372_v48  ;;  %v13272_v40 = vld [vmem:[%s14378_s17 + $0xed0] ss:$144 sps:$4 sm:$0xff]  }
 0x22b   : > { %v8000_v8 = vpop.f32.mrf.mxu0 }
 0x22c   : > { %v8193_v12 = vpop.f32.mrf.mxu1  ;;  %v15820_v24 = vadd.f32 %v8191_v31, %v7999_v45  ;;  %v8001_v51 = vadd.f32 %v8000_v8, %v15375_v13  ;;  %v13275_v13 = vld [vmem:[%s14378_s17 + $0xed8] ss:$144 sps:$4 sm:$0xff]   ;;  %v13286_v45 = vld [vmem:[%s14378_s17 + $0xff4] ss:$144 sps:$4 sm:$0xff]   ;;  %v13289_v8 = vld [vmem:[%s14378_s17 + $0xffc] ss:$144 sps:$4 sm:$0xff]  }
 0x22d   : > { %v8004_v46 = vpop.f32.mrf.mxu0  ;;  %8469 = vmatmul.mubr.bf16.gmra.mxu0 %v13260_v41 }
 0x22e   : > { %v8197_v63 = vpop.f32.mrf.mxu1  ;;  %8662 = vmatmul.mubr.bf16.gmra.mxu1 %v13263_v61  ;;  %v15823_v44 = vadd.f32 %v8193_v12, %v8001_v51  ;;  %v8005_v48 = vadd.f32 %v8004_v46, %v15378_v50  ;;  %8478 = vmatprep.mubr.bf16.mxu0 %v13274_v49 }
 0x22f   : > { %8671 = vmatprep.mubr.bf16.mxu1 %v13277_v20  ;;  %v8006_v5 = vpop.f32.mrf.mxu0 }
 0x230   : > { %v8199_v16 = vpop.f32.mrf.mxu1  ;;  %v15826_v30 = vadd.f32 %v8197_v63, %v8005_v48  ;;  %v8007_v27 = vadd.f32 %v8006_v5, %v15383_v35 }
 0x231   : > { %v8008_v52 = vpop.f32.mrf.mxu0 }
 0x232   : > { %v8201_v31 = vpop.f32.mrf.mxu1  ;;  %v15831_v41 = vadd.f32 %v8199_v16, %v8007_v27  ;;  %v8009_v61 = vadd.f32 %v8008_v52, %v15388_v15  ;;  %v13284_v27 = vld [vmem:[%s14378_s17 + $0xff0] ss:$144 sps:$4 sm:$0xff]  }
 0x233   : > { %v8010_v12 = vpop.f32.mrf.mxu0 }
 0x234   : > { %v8203_v50 = vpop.f32.mrf.mxu1  ;;  %v15836_v49 = vadd.f32 %v8201_v31, %v8009_v61  ;;  %v8011_v20 = vadd.f32 %v8010_v12, %v15391_v29  ;;  %v13287_v29 = vld [vmem:[%s14378_s17 + $0xff8] ss:$144 sps:$4 sm:$0xff]   ;;  %v13298_v61 = vld [vmem:[%s14378_s17 + $0x1114] ss:$144 sps:$4 sm:$0xff]   ;;  %v13301_v12 = vld [vmem:[%s14378_s17 + $0x111c] ss:$144 sps:$4 sm:$0xff]  }
 0x235   : > { %v8014_v51 = vpop.f32.mrf.mxu0  ;;  %8479 = vmatmul.mubr.bf16.gmra.mxu0 %v13272_v40 }
 0x236   : > { %v8207_v35 = vpop.f32.mrf.mxu1  ;;  %8672 = vmatmul.mubr.bf16.gmra.mxu1 %v13275_v13  ;;  %v15839_v46 = vadd.f32 %v8203_v50, %v8011_v20  ;;  %v8015_v15 = vadd.f32 %v8014_v51, %v15394_v2  ;;  %8488 = vmatprep.mubr.bf16.mxu0 %v13286_v45 }
 0x237   : > { %8681 = vmatprep.mubr.bf16.mxu1 %v13289_v8  ;;  %v8016_v63 = vpop.f32.mrf.mxu0 }
 0x238   : > { %v8209_v48 = vpop.f32.mrf.mxu1  ;;  %v15842_v5 = vadd.f32 %v8207_v35, %v8015_v15  ;;  %v8017_v16 = vadd.f32 %v8016_v63, %v15399_v33 }
 0x239   : > { %v8018_v52 = vpop.f32.mrf.mxu0 }
 0x23a   : > { %v8211_v31 = vpop.f32.mrf.mxu1  ;;  %v15847_v40 = vadd.f32 %v8209_v48, %v8017_v16  ;;  %v8019_v13 = vadd.f32 %v8018_v52, %v15404_v42  ;;  %v13296_v16 = vld [vmem:[%s14378_s17 + $0x1110] ss:$144 sps:$4 sm:$0xff]  }
 0x23b   : > { %v8020_v50 = vpop.f32.mrf.mxu0 }
 0x23c   : > { %v8213_v2 = vpop.f32.mrf.mxu1  ;;  %v15852_v45 = vadd.f32 %v8211_v31, %v8019_v13  ;;  %v8021_v8 = vadd.f32 %v8020_v50, %v15407_v47  ;;  %v13299_v47 = vld [vmem:[%s14378_s17 + $0x1118] ss:$144 sps:$4 sm:$0xff]   ;;  %v13310_v13 = vld [vmem:[%s14378_s17 + $0x44] ss:$144 sps:$4 sm:$0xff]   ;;  %v13313_v50 = vld [vmem:[%s14378_s17 + $0x4c] ss:$144 sps:$4 sm:$0xff]  }
 0x23d   : > { %v8024_v20 = vpop.f32.mrf.mxu0  ;;  %8489 = vmatmul.mubr.bf16.gmra.mxu0 %v13284_v27 }
 0x23e   : > { %v8217_v33 = vpop.f32.mrf.mxu1  ;;  %8682 = vmatmul.mubr.bf16.gmra.mxu1 %v13287_v29  ;;  %v15855_v51 = vadd.f32 %v8213_v2, %v8021_v8  ;;  %v8025_v42 = vadd.f32 %v8024_v20, %v15410_v18  ;;  %8498 = vmatprep.mubr.bf16.mxu0 %v13298_v61 }
 0x23f   : > { %8691 = vmatprep.mubr.bf16.mxu1 %v13301_v12  ;;  %v8026_v35 = vpop.f32.mrf.mxu0 }
 0x240   : > { %v8219_v15 = vpop.f32.mrf.mxu1  ;;  %v15858_v63 = vadd.f32 %v8217_v33, %v8025_v42  ;;  %v8027_v48 = vadd.f32 %v8026_v35, %v15415_v55  ;;  %v18336_v33 = vld [vmem:[#allocation20_spill] sm:$0xff] }
 0x241   : > { %v8028_v52 = vpop.f32.mrf.mxu0 }
 0x242   : > { %v8221_v31 = vpop.f32.mrf.mxu1  ;;  %v15863_v27 = vadd.f32 %v8219_v15, %v8027_v48  ;;  %v8029_v29 = vadd.f32 %v8028_v52, %v15420_v43  ;;  %v13308_v15 = vld [vmem:[%s14378_s17 + $0x40] ss:$144 sps:$4 sm:$0xff]   ;;  %v13311_v48 = vld [vmem:[%s14378_s17 + $0x48] ss:$144 sps:$4 sm:$0xff]  }
 0x243   : > { %v8030_v18 = vpop.f32.mrf.mxu0 }
 0x244   : > { %18333 = vst [vmem:[#allocation17_spill] sm:$0xff] %v15863_v27  ;;  %v8223_v61 = vpop.f32.mrf.mxu1  ;;  %v15868_v12 = vadd.f32 %v8221_v31, %v8029_v29  ;;  %v8031_v2 = vadd.f32 %v8030_v18, %v15423_v4  ;;  %v18338_v31 = vld [vmem:[#allocation21_spill] sm:$0xff] }
 0x245   : > { %v8034_v8 = vpop.f32.mrf.mxu0  ;;  %8499 = vmatmul.mubr.bf16.gmra.mxu0 %v13296_v16  ;;  %v13314_v16 = vld [vmem:[%s18275_s1 + $0xa70] ss:$8 sps:$4 sm:$0xff]  }
 0x246   : > { %18334 = vst [vmem:[#allocation18_spill] sm:$0xff] %v15868_v12  ;;  %v8227_v55 = vpop.f32.mrf.mxu1  ;;  %8692 = vmatmul.mubr.bf16.gmra.mxu1 %v13299_v47  ;;  %v15871_v20 = vadd.f32 %v8223_v61, %v8031_v2  ;;  %v8035_v42 = vadd.f32 %v8034_v8, %v18336_v33  ;;  %8734 = vmatprep.mubr.bf16.mxu0 %v13310_v13  ;;  %v13317_v47 = vld [vmem:[%s18275_s1 + $0xb70] ss:$8 sps:$4 sm:$0xff]   ;;  %v13322_v2 = vld [vmem:[%s14378_s17 + $0x164] ss:$144 sps:$4 sm:$0xff]  }
 0x247   : > { %8927 = vmatprep.mubr.bf16.mxu1 %v13313_v50  ;;  %v8036_v43 = vpop.f32.mrf.mxu0  ;;  %v18340_v50 = vld [vmem:[#allocation22_spill] sm:$0xff]  ;;  %v13325_v8 = vld [vmem:[%s14378_s17 + $0x16c] ss:$144 sps:$4 sm:$0xff]   ;;  %v13323_v27 = vld [vmem:[%s14378_s17 + $0x168] ss:$144 sps:$4 sm:$0xff]  }
 0x248   : > { %18335 = vst [vmem:[#allocation19_spill] sm:$0xff] %v15871_v20  ;;  %v8229_v35 = vpop.f32.mrf.mxu1  ;;  %v15876_v52 = vadd.f32 %v8227_v55, %v8035_v42  ;;  %v8037_v4 = vadd.f32 %v8036_v43, %v18338_v31  ;;  %v13328_v42 = vld [vmem:[%s18275_s1 + $0xa64] ss:$8 sps:$4 sm:$0xff]   ;;  %v13320_v12 = vld [vmem:[%s14378_s17 + $0x160] ss:$144 sps:$4 sm:$0xff]  }
 0x249   : > { %v8038_v29 = vpop.f32.mrf.mxu0  ;;  %v13331_v43 = vld [vmem:[%s18275_s1 + $0xb64] ss:$8 sps:$4 sm:$0xff]  }
 0x24a   : > { %18337 = vst [vmem:[#allocation20_spill] sm:$0xff] %v15876_v52  ;;  %v8231_v18 = vpop.f32.mrf.mxu1  ;;  %v15885_v13 = vadd.f32 %v8229_v35, %v8037_v4  ;;  %v8039_v61 = vadd.f32 %v8038_v29, %v18340_v50  ;;  %v18342_v52 = vld [vmem:[#allocation23_spill] sm:$0xff] }
 0x24b   : > { %v8040_v55 = vpop.f32.mrf.mxu0  ;;  %v13326_v35 = vld [vmem:[%s18275_s1 + $0xa60] ss:$8 sps:$4 sm:$0xff]  }
 0x24c   : > { %18339 = vst [vmem:[#allocation21_spill] sm:$0xff] %v15885_v13  ;;  %v8233_v33 = vpop.f32.mrf.mxu1  ;;  %v15896_v31 = vadd.f32 %v8231_v18, %v8039_v61  ;;  %v8041_v20 = vadd.f32 %v8040_v55, %v18342_v52  ;;  %v13329_v4 = vld [vmem:[%s18275_s1 + $0xb60] ss:$8 sps:$4 sm:$0xff]   ;;  %v13340_v18 = vld [vmem:[%s18275_s1 + $0xa54] ss:$8 sps:$4 sm:$0xff]  }
 0x24d   : > { %v8044_v29 = vpop.f32.mrf.mxu0  ;;  %8735 = vmatmul.mubr.bf16.vlgmr.msra.gmra.mxu0 %v13308_v15  ;;  %v13343_v52 = vld [vmem:[%s18275_s1 + $0xb54] ss:$8 sps:$4 sm:$0xff]  }
 0x24e   : > { %18341 = vst [vmem:[#allocation22_spill] sm:$0xff] %v15896_v31  ;;  %v8237_v50 = vpop.f32.mrf.mxu1  ;;  %8928 = vmatmul.mubr.bf16.vlgmr.msra.gmra.mxu1 %v13311_v48  ;;  %v15911_v61 = vadd.f32 %v8233_v33, %v8041_v20  ;;  %v8045_v55 = vadd.f32 %v8044_v29, %v15466_v34  ;;  %9089 = vmatpush1.bf16.msra.mxu0 %v13314_v16  ;;  %v13334_v16 = vld [vmem:[%s14378_s17 + $0x284] ss:$144 sps:$4 sm:$0xff]   ;;  %v13350_v29 = vld [vmem:[%s18275_s1 + $0xa40] ss:$8 sps:$4 sm:$0xff]  }
 0x24f   : > { %9282 = vmatpush1.bf16.msra.mxu1 %v13317_v47  ;;  %v8046_v31 = vpop.f32.mrf.mxu0  ;;  %8744 = vmatprep.mubr.bf16.mxu0 %v13322_v2  ;;  %v13337_v47 = vld [vmem:[%s14378_s17 + $0x28c] ss:$144 sps:$4 sm:$0xff]   ;;  %v13338_v2 = vld [vmem:[%s18275_s1 + $0xa50] ss:$8 sps:$4 sm:$0xff]  }
 0x250   : > { %18343 = vst [vmem:[#allocation23_spill] sm:$0xff] %v15911_v61  ;;  %v8239_v13 = vpop.f32.mrf.mxu1  ;;  %8937 = vmatprep.mubr.bf16.mxu1 %v13325_v8  ;;  %v15914_v15 = vadd.f32 %v8237_v50, %v8045_v55  ;;  %v8047_v48 = vadd.f32 %v8046_v31, %v15471_v39  ;;  %9090 = vmatprep.subr.bf16.mxu0 %v13328_v42  ;;  %v13341_v42 = vld [vmem:[%s18275_s1 + $0xb50] ss:$8 sps:$4 sm:$0xff]   ;;  %v13353_v50 = vld [vmem:[%s18275_s1 + $0xb40] ss:$8 sps:$4 sm:$0xff]  }
 0x251   : > { %9283 = vmatprep.subr.bf16.mxu1 %v13331_v43  ;;  %v8048_v20 = vpop.f32.mrf.mxu0 }
 0x252   : > { %v8241_v33 = vpop.f32.mrf.mxu1  ;;  %v15919_v61 = vadd.f32 %v8239_v13, %v8047_v48  ;;  %v8049_v34 = vadd.f32 %v8048_v20, %v15488_v25  ;;  %9091 = vmatpush1.bf16.msra.mxu0 %v13326_v35  ;;  %v13352_v25 = vld [vmem:[%s18275_s1 + $0xa44] ss:$8 sps:$4 sm:$0xff]  }
 0x253   : > { %9284 = vmatpush1.bf16.msra.mxu1 %v13329_v4  ;;  %v8050_v8 = vpop.f32.mrf.mxu0  ;;  %9092 = vmatprep.subr.bf16.mxu0 %v13340_v18  ;;  %v13355_v13 = vld [vmem:[%s18275_s1 + $0xb44] ss:$8 sps:$4 sm:$0xff]  }
 0x254   : > { %v8243_v39 = vpop.f32.mrf.mxu1  ;;  %9285 = vmatprep.subr.bf16.mxu1 %v13343_v52  ;;  %v15936_v43 = vadd.f32 %v8241_v33, %v8049_v34  ;;  %v8051_v31 = vadd.f32 %v8050_v8, %v15497_v9  ;;  %v13367_v33 = vld [vmem:[%s18275_s1 + $0xb34] ss:$8 sps:$4 sm:$0xff]  }
 0x255   : > { %v8054_v35 = vpop.f32.mrf.mxu0  ;;  %8745 = vmatmul.mubr.bf16.gmra.mxu0 %v13320_v12  ;;  %v13332_v12 = vld [vmem:[%s14378_s17 + $0x280] ss:$144 sps:$4 sm:$0xff]   ;;  %v13346_v8 = vld [vmem:[%s14378_s17 + $0x3a4] ss:$144 sps:$4 sm:$0xff]  }
 0x256   : > { %v8247_v4 = vpop.f32.mrf.mxu1  ;;  %8938 = vmatmul.mubr.bf16.gmra.mxu1 %v13323_v27  ;;  %v15945_v18 = vadd.f32 %v8243_v39, %v8051_v31  ;;  %v8055_v52 = vadd.f32 %v8054_v35, %v15502_v54  ;;  %8754 = vmatprep.mubr.bf16.mxu0 %v13334_v16  ;;  %v13335_v27 = vld [vmem:[%s14378_s17 + $0x288] ss:$144 sps:$4 sm:$0xff]   ;;  %v13364_v54 = vld [vmem:[%s18275_s1 + $0xa34] ss:$8 sps:$4 sm:$0xff]   ;;  %v13376_v31 = vld [vmem:[%s18275_s1 + $0xa24] ss:$8 sps:$4 sm:$0xff]  }
 0x257   : > { %8947 = vmatprep.mubr.bf16.mxu1 %v13337_v47  ;;  %v8056_v55 = vpop.f32.mrf.mxu0  ;;  %9093 = vmatpush1.bf16.msra.mxu0 %v13338_v2  ;;  %v13349_v39 = vld [vmem:[%s14378_s17 + $0x3ac] ss:$144 sps:$4 sm:$0xff]  }
 0x258   : > { %v8249_v9 = vpop.f32.mrf.mxu1  ;;  %9286 = vmatpush1.bf16.msra.mxu1 %v13341_v42  ;;  %v15950_v48 = vadd.f32 %v8247_v4, %v8055_v52  ;;  %v8057_v20 = vadd.f32 %v8056_v55, %v15511_v17  ;;  %9094 = vmatprep.subr.bf16.mxu0 %v13352_v25  ;;  %v13362_v17 = vld [vmem:[%s18275_s1 + $0xa30] ss:$8 sps:$4 sm:$0xff]   ;;  %v13374_v52 = vld [vmem:[%s18275_s1 + $0xa20] ss:$8 sps:$4 sm:$0xff]  }
 0x259   : > { %9287 = vmatprep.subr.bf16.mxu1 %v13355_v13  ;;  %v8058_v34 = vpop.f32.mrf.mxu0  ;;  %v13365_v13 = vld [vmem:[%s18275_s1 + $0xb30] ss:$8 sps:$4 sm:$0xff]   ;;  %v13377_v55 = vld [vmem:[%s18275_s1 + $0xb20] ss:$8 sps:$4 sm:$0xff]  }
 0x25a   : > { %v8251_v16 = vpop.f32.mrf.mxu1  ;;  %v15959_v47 = vadd.f32 %v8249_v9, %v8057_v20  ;;  %v8059_v2 = vadd.f32 %v8058_v34, %v15528_v32  ;;  %v13379_v32 = vld [vmem:[%s18275_s1 + $0xb24] ss:$8 sps:$4 sm:$0xff]  }
 0x25b   : > { %v8060_v42 = vpop.f32.mrf.mxu0  ;;  %9095 = vmatpush1.bf16.msra.mxu0 %v13350_v29 }
 0x25c   : > { %v8253_v25 = vpop.f32.mrf.mxu1  ;;  %9288 = vmatpush1.bf16.msra.mxu1 %v13353_v50  ;;  %v15976_v35 = vadd.f32 %v8251_v16, %v8059_v2  ;;  %v8061_v4 = vadd.f32 %v8060_v42, %v15537_v56  ;;  %9096 = vmatprep.subr.bf16.mxu0 %v13364_v54  ;;  %v13391_v16 = vld [vmem:[%s18275_s1 + $0xb14] ss:$8 sps:$4 sm:$0xff]  }
 0x25d   : > { %9289 = vmatprep.subr.bf16.mxu1 %v13367_v33  ;;  %v8064_v29 = vpop.f32.mrf.mxu0  ;;  %8755 = vmatmul.mubr.bf16.gmra.mxu0 %v13332_v12  ;;  %v13344_v12 = vld [vmem:[%s14378_s17 + $0x3a0] ss:$144 sps:$4 sm:$0xff]   ;;  %v13358_v42 = vld [vmem:[%s14378_s17 + $0x4c4] ss:$144 sps:$4 sm:$0xff]  }
 0x25e   : > { %v8257_v50 = vpop.f32.mrf.mxu1  ;;  %8948 = vmatmul.mubr.bf16.gmra.mxu1 %v13335_v27  ;;  %v15985_v9 = vadd.f32 %v8253_v25, %v8061_v4  ;;  %v8065_v20 = vadd.f32 %v8064_v29, %v15542_v11  ;;  %8764 = vmatprep.mubr.bf16.mxu0 %v13346_v8  ;;  %v13347_v27 = vld [vmem:[%s14378_s17 + $0x3a8] ss:$144 sps:$4 sm:$0xff]   ;;  %v13388_v11 = vld [vmem:[%s18275_s1 + $0xa14] ss:$8 sps:$4 sm:$0xff]   ;;  %v13400_v4 = vld [vmem:[%s18275_s1 + $0xa04] ss:$8 sps:$4 sm:$0xff]  }
 0x25f   : > { %8957 = vmatprep.mubr.bf16.mxu1 %v13349_v39  ;;  %v8066_v56 = vpop.f32.mrf.mxu0  ;;  %9097 = vmatpush1.bf16.msra.mxu0 %v13362_v17  ;;  %v13361_v25 = vld [vmem:[%s14378_s17 + $0x4cc] ss:$144 sps:$4 sm:$0xff]  }
 0x260   : > { %v8259_v54 = vpop.f32.mrf.mxu1  ;;  %9290 = vmatpush1.bf16.msra.mxu1 %v13365_v13  ;;  %v15990_v33 = vadd.f32 %v8257_v50, %v8065_v20  ;;  %v8067_v34 = vadd.f32 %v8066_v56, %v15551_v28  ;;  %9098 = vmatprep.subr.bf16.mxu0 %v13376_v31  ;;  %v13386_v28 = vld [vmem:[%s18275_s1 + $0xa10] ss:$8 sps:$4 sm:$0xff]   ;;  %v13398_v20 = vld [vmem:[%s18275_s1 + $0xa00] ss:$8 sps:$4 sm:$0xff]  }
 0x261   : > { %9291 = vmatprep.subr.bf16.mxu1 %v13379_v32  ;;  %v8068_v2 = vpop.f32.mrf.mxu0  ;;  %v13389_v32 = vld [vmem:[%s18275_s1 + $0xb10] ss:$8 sps:$4 sm:$0xff]   ;;  %v13401_v56 = vld [vmem:[%s18275_s1 + $0xb00] ss:$8 sps:$4 sm:$0xff]  }
 0x262   : > { %v8261_v8 = vpop.f32.mrf.mxu1  ;;  %v15999_v39 = vadd.f32 %v8259_v54, %v8067_v34  ;;  %v8069_v17 = vadd.f32 %v8068_v2, %v15568_v38  ;;  %v13403_v38 = vld [vmem:[%s18275_s1 + $0xb04] ss:$8 sps:$4 sm:$0xff]  }
 0x263   : > { %v8070_v13 = vpop.f32.mrf.mxu0  ;;  %9099 = vmatpush1.bf16.msra.mxu0 %v13374_v52 }
 0x264   : > { %v8263_v31 = vpop.f32.mrf.mxu1  ;;  %9292 = vmatpush1.bf16.msra.mxu1 %v13377_v55  ;;  %v16016_v29 = vadd.f32 %v8261_v8, %v8069_v17  ;;  %v8071_v50 = vadd.f32 %v8070_v13, %v15577_v3  ;;  %9100 = vmatprep.subr.bf16.mxu0 %v13388_v11  ;;  %v13415_v8 = vld [vmem:[%s18275_s1 + $0xbf4] ss:$8 sps:$4 sm:$0xff]  }
 0x265   : > { %9293 = vmatprep.subr.bf16.mxu1 %v13391_v16  ;;  %v8074_v52 = vpop.f32.mrf.mxu0  ;;  %8765 = vmatmul.mubr.bf16.gmra.mxu0 %v13344_v12  ;;  %v13356_v12 = vld [vmem:[%s14378_s17 + $0x4c0] ss:$144 sps:$4 sm:$0xff]  }
 0x266   : > { %v8267_v55 = vpop.f32.mrf.mxu1  ;;  %8958 = vmatmul.mubr.bf16.gmra.mxu1 %v13347_v27  ;;  %v16025_v54 = vadd.f32 %v8263_v31, %v8071_v50  ;;  %v8075_v34 = vadd.f32 %v8074_v52, %v15582_v7  ;;  %8774 = vmatprep.mubr.bf16.mxu0 %v13358_v42  ;;  %v13359_v27 = vld [vmem:[%s14378_s17 + $0x4c8] ss:$144 sps:$4 sm:$0xff]   ;;  %v13412_v7 = vld [vmem:[%s18275_s1 + $0xaf4] ss:$8 sps:$4 sm:$0xff]   ;;  %v13424_v52 = vld [vmem:[%s18275_s1 + $0xae4] ss:$8 sps:$4 sm:$0xff]  }
 0x267   : > { %8967 = vmatprep.mubr.bf16.mxu1 %v13361_v25  ;;  %v8076_v3 = vpop.f32.mrf.mxu0  ;;  %9101 = vmatpush1.bf16.msra.mxu0 %v13386_v28  ;;  %v18344_v28 = vld [vmem:[#allocation2_spill] sm:$0xff]  ;;  %v13413_v50 = vld [vmem:[%s18275_s1 + $0xbf0] ss:$8 sps:$4 sm:$0xff]  }
 0x268   : > { %v8269_v11 = vpop.f32.mrf.mxu1  ;;  %9294 = vmatpush1.bf16.msra.mxu1 %v13389_v32  ;;  %v16030_v16 = vadd.f32 %v8267_v55, %v8075_v34  ;;  %v8077_v2 = vadd.f32 %v8076_v3, %v15591_v36  ;;  %9102 = vmatprep.subr.bf16.mxu0 %v13400_v4  ;;  %v13370_v31 = vld [vmem:[%s14378_s17 + $0x5e4] ss:$144 sps:$4 sm:$0xff]   ;;  %v13373_v32 = vld [vmem:[%s14378_s17 + $0x5ec] ss:$144 sps:$4 sm:$0xff]   ;;  %v13410_v36 = vld [vmem:[%s18275_s1 + $0xaf0] ss:$8 sps:$4 sm:$0xff]  }
 0x269   : > { %9295 = vmatprep.subr.bf16.mxu1 %v13403_v38  ;;  %v8078_v17 = vpop.f32.mrf.mxu0  ;;  %v13427_v55 = vld [vmem:[%s18275_s1 + $0xbe4] ss:$8 sps:$4 sm:$0xff]  }
 0x26a   : > { %v8271_v42 = vpop.f32.mrf.mxu1  ;;  %v16039_v25 = vadd.f32 %v8269_v11, %v8077_v2  ;;  %v8079_v13 = vadd.f32 %v8078_v17, %v18344_v28  ;;  %v18346_v3 = vld [vmem:[#allocation3_spill] sm:$0xff]  ;;  %v18348_v28 = vld [vmem:[#allocation4_spill] sm:$0xff] }
 0x26b   : > { %v8080_v4 = vpop.f32.mrf.mxu0  ;;  %9103 = vmatpush1.bf16.msra.mxu0 %v13398_v20  ;;  %v13422_v2 = vld [vmem:[%s18275_s1 + $0xae0] ss:$8 sps:$4 sm:$0xff]  }
 0x26c   : > { %v8273_v38 = vpop.f32.mrf.mxu1  ;;  %9296 = vmatpush1.bf16.msra.mxu1 %v13401_v56  ;;  %v16056_v34 = vadd.f32 %v8271_v42, %v8079_v13  ;;  %v8081_v11 = vadd.f32 %v8080_v4, %v18346_v3  ;;  %9104 = vmatprep.subr.bf16.mxu0 %v13412_v7  ;;  %v13425_v17 = vld [vmem:[%s18275_s1 + $0xbe0] ss:$8 sps:$4 sm:$0xff]   ;;  %v18350_v3 = vld [vmem:[#allocation5_spill] sm:$0xff] }
 0x26d   : > { %9297 = vmatprep.subr.bf16.mxu1 %v13415_v8  ;;  %v8084_v20 = vpop.f32.mrf.mxu0  ;;  %8775 = vmatmul.mubr.bf16.gmra.mxu0 %v13356_v12  ;;  %v13368_v12 = vld [vmem:[%s14378_s17 + $0x5e0] ss:$144 sps:$4 sm:$0xff]  }
 0x26e   : > { %18345 = vst [vmem:[#allocation2_spill] sm:$0xff] %v16056_v34  ;;  %v8277_v56 = vpop.f32.mrf.mxu1  ;;  %8968 = vmatmul.mubr.bf16.gmra.mxu1 %v13359_v27  ;;  %v16065_v42 = vadd.f32 %v8273_v38, %v8081_v11  ;;  %v8085_v13 = vadd.f32 %v8084_v20, %v18348_v28  ;;  %8784 = vmatprep.mubr.bf16.mxu0 %v13370_v31  ;;  %v13371_v27 = vld [vmem:[%s14378_s17 + $0x5e8] ss:$144 sps:$4 sm:$0xff]   ;;  %v13436_v38 = vld [vmem:[%s18275_s1 + $0xad4] ss:$8 sps:$4 sm:$0xff]  }
 0x26f   : > { %8977 = vmatprep.mubr.bf16.mxu1 %v13373_v32  ;;  %v8086_v7 = vpop.f32.mrf.mxu0  ;;  %9105 = vmatpush2.bf16.msra.mxu0 %v13410_v36  ;;  %v13439_v31 = vld [vmem:[%s18275_s1 + $0xbd4] ss:$8 sps:$4 sm:$0xff]   ;;  %v18352_v36 = vld [vmem:[#allocation6_spill] sm:$0xff] }
 0x270   : > { %18347 = vst [vmem:[#allocation3_spill] sm:$0xff] %v16065_v42  ;;  %v8279_v8 = vpop.f32.mrf.mxu1  ;;  %9298 = vmatpush2.bf16.msra.mxu1 %v13413_v50  ;;  %v16070_v4 = vadd.f32 %v8277_v56, %v8085_v13  ;;  %v8087_v34 = vadd.f32 %v8086_v7, %v18350_v3  ;;  %9106 = vmatprep.subr.bf16.mxu0 %v13424_v52  ;;  %v13382_v56 = vld [vmem:[%s14378_s17 + $0x704] ss:$144 sps:$4 sm:$0xff]   ;;  %v13385_v28 = vld [vmem:[%s14378_s17 + $0x70c] ss:$144 sps:$4 sm:$0xff]  }
 0x271   : > { %9299 = vmatprep.subr.bf16.mxu1 %v13427_v55  ;;  %v8088_v32 = vpop.f32.mrf.mxu0  ;;  %v13434_v52 = vld [vmem:[%s18275_s1 + $0xad0] ss:$8 sps:$4 sm:$0xff]  }
 0x272   : > { %18349 = vst [vmem:[#allocation4_spill] sm:$0xff] %v16070_v4  ;;  %v8281_v11 = vpop.f32.mrf.mxu1  ;;  %v16079_v20 = vadd.f32 %v8279_v8, %v8087_v34  ;;  %v8089_v50 = vadd.f32 %v8088_v32, %v18352_v36  ;;  %v13437_v7 = vld [vmem:[%s18275_s1 + $0xbd0] ss:$8 sps:$4 sm:$0xff]   ;;  %v13448_v34 = vld [vmem:[%s18275_s1 + $0xac4] ss:$8 sps:$4 sm:$0xff]  }
 0x273   : > { %v8090_v55 = vpop.f32.mrf.mxu0  ;;  %9107 = vmatpush2.bf16.msra.mxu0 %v13422_v2  ;;  %v13451_v8 = vld [vmem:[%s18275_s1 + $0xbc4] ss:$8 sps:$4 sm:$0xff]   ;;  %v13449_v4 = vld [vmem:[%s18275_s1 + $0xbc0] ss:$8 sps:$4 sm:$0xff]  }
 0x274   : > { %18351 = vst [vmem:[#allocation5_spill] sm:$0xff] %v16079_v20  ;;  %v8283_v13 = vpop.f32.mrf.mxu1  ;;  %9300 = vmatpush2.bf16.msra.mxu1 %v13425_v17  ;;  %v16096_v3 = vadd.f32 %v8281_v11, %v8089_v50  ;;  %v18354_v32 = vld [vmem:[#allocation7_spill] sm:$0xff]  ;;  %9108 = vmatprep.subr.bf16.mxu0 %v13436_v38  ;;  %v18356_v50 = vld [vmem:[#allocation8_spill] sm:$0xff] }
 0x275   : > { %v8091_v36 = vadd.f32 %v8090_v55, %v18354_v32  ;;  %9301 = vmatprep.subr.bf16.mxu1 %v13439_v31  ;;  %v8094_v2 = vpop.f32.mrf.mxu0  ;;  %8785 = vmatmul.mubr.bf16.gmra.mxu0 %v13368_v12  ;;  %v13446_v20 = vld [vmem:[%s18275_s1 + $0xac0] ss:$8 sps:$4 sm:$0xff]   ;;  %v18358_v32 = vld [vmem:[#allocation9_spill] sm:$0xff] }
 0x276   : > { %18353 = vst [vmem:[#allocation6_spill] sm:$0xff] %v16096_v3  ;;  %v8287_v17 = vpop.f32.mrf.mxu1  ;;  %8978 = vmatmul.mubr.bf16.gmra.mxu1 %v13371_v27  ;;  %v8095_v3 = vadd.f32 %v8094_v2, %v18356_v50  ;;  %8794 = vmatprep.mubr.bf16.mxu0 %v13382_v56  ;;  %v13380_v12 = vld [vmem:[%s14378_s17 + $0x700] ss:$144 sps:$4 sm:$0xff]   ;;  %v13383_v27 = vld [vmem:[%s14378_s17 + $0x708] ss:$144 sps:$4 sm:$0xff]  }
 0x277   : > { %v16105_v11 = vadd.f32 %v8283_v13, %v8091_v36  ;;  %8987 = vmatprep.mubr.bf16.mxu1 %v13385_v28  ;;  %v8096_v38 = vpop.f32.mrf.mxu0  ;;  %9109 = vmatpush2.bf16.msra.mxu0 %v13434_v52  ;;  %v13460_v13 = vld [vmem:[%s18275_s1 + $0xab4] ss:$8 sps:$4 sm:$0xff]   ;;  %v18360_v52 = vld [vmem:[#allocation10_spill] sm:$0xff] }
 0x278   : > { %v8289_v31 = vpop.f32.mrf.mxu1  ;;  %9302 = vmatpush2.bf16.msra.mxu1 %v13437_v7  ;;  %v16110_v55 = vadd.f32 %v8287_v17, %v8095_v3  ;;  %v8097_v42 = vadd.f32 %v8096_v38, %v18358_v32  ;;  %9110 = vmatprep.subr.bf16.mxu0 %v13448_v34  ;;  %v13463_v56 = vld [vmem:[%s18275_s1 + $0xbb4] ss:$8 sps:$4 sm:$0xff]   ;;  %v13458_v34 = vld [vmem:[%s18275_s1 + $0xab0] ss:$8 sps:$4 sm:$0xff]  }
 0x279   : > { %18355 = vst [vmem:[#allocation7_spill] sm:$0xff] %v16105_v11  ;;  %9303 = vmatprep.subr.bf16.mxu1 %v13451_v8  ;;  %v8098_v28 = vpop.f32.mrf.mxu0  ;;  %v13394_v3 = vld [vmem:[%s14378_s17 + $0x824] ss:$144 sps:$4 sm:$0xff]   ;;  %v13397_v17 = vld [vmem:[%s14378_s17 + $0x82c] ss:$144 sps:$4 sm:$0xff]  }
 0x27a   : > { %18357 = vst [vmem:[#allocation8_spill] sm:$0xff] %v16110_v55  ;;  %v8291_v36 = vpop.f32.mrf.mxu1  ;;  %v16119_v2 = vadd.f32 %v8289_v31, %v8097_v42  ;;  %v8099_v7 = vadd.f32 %v8098_v28, %v18360_v52  ;;  %v13461_v38 = vld [vmem:[%s18275_s1 + $0xbb0] ss:$8 sps:$4 sm:$0xff]   ;;  %v13472_v42 = vld [vmem:[%s18275_s1 + $0xaa4] ss:$8 sps:$4 sm:$0xff]  }
 0x27b   : > { %v8100_v8 = vpop.f32.mrf.mxu0  ;;  %9111 = vmatpush2.bf16.msra.mxu0 %v13446_v20  ;;  %v13475_v31 = vld [vmem:[%s18275_s1 + $0xba4] ss:$8 sps:$4 sm:$0xff]   ;;  %v13473_v55 = vld [vmem:[%s18275_s1 + $0xba0] ss:$8 sps:$4 sm:$0xff]  }
 0x27c   : > { %18359 = vst [vmem:[#allocation9_spill] sm:$0xff] %v16119_v2  ;;  %v8293_v50 = vpop.f32.mrf.mxu1  ;;  %9304 = vmatpush2.bf16.msra.mxu1 %v13449_v4  ;;  %v16136_v32 = vadd.f32 %v8291_v36, %v8099_v7  ;;  %v18362_v28 = vld [vmem:[#allocation11_spill] sm:$0xff]  ;;  %9112 = vmatprep.subr.bf16.mxu0 %v13460_v13  ;;  %v18364_v7 = vld [vmem:[#allocation12_spill] sm:$0xff] }
 0x27d   : > { %v8101_v52 = vadd.f32 %v8100_v8, %v18362_v28  ;;  %9305 = vmatprep.subr.bf16.mxu1 %v13463_v56  ;;  %v8104_v4 = vpop.f32.mrf.mxu0  ;;  %8795 = vmatmul.mubr.bf16.gmra.mxu0 %v13380_v12  ;;  %v13470_v2 = vld [vmem:[%s18275_s1 + $0xaa0] ss:$8 sps:$4 sm:$0xff]   ;;  %v18366_v28 = vld [vmem:[#allocation13_spill] sm:$0xff] }
 0x27e   : > { %18361 = vst [vmem:[#allocation10_spill] sm:$0xff] %v16136_v32  ;;  %v8297_v20 = vpop.f32.mrf.mxu1  ;;  %8988 = vmatmul.mubr.bf16.gmra.mxu1 %v13383_v27  ;;  %v8105_v32 = vadd.f32 %v8104_v4, %v18364_v7  ;;  %8804 = vmatprep.mubr.bf16.mxu0 %v13394_v3  ;;  %v13392_v12 = vld [vmem:[%s14378_s17 + $0x820] ss:$144 sps:$4 sm:$0xff]   ;;  %v13395_v27 = vld [vmem:[%s14378_s17 + $0x828] ss:$144 sps:$4 sm:$0xff]  }
 0x27f   : > { %v16145_v36 = vadd.f32 %v8293_v50, %v8101_v52  ;;  %8997 = vmatprep.mubr.bf16.mxu1 %v13397_v17  ;;  %v8106_v13 = vpop.f32.mrf.mxu0  ;;  %9113 = vmatpush2.bf16.msra.mxu0 %v13458_v34  ;;  %v13484_v50 = vld [vmem:[%s18275_s1 + $0xa94] ss:$8 sps:$4 sm:$0xff]   ;;  %v18368_v34 = vld [vmem:[#allocation14_spill] sm:$0xff] }
 0x280   : > { %v8299_v56 = vpop.f32.mrf.mxu1  ;;  %9306 = vmatpush2.bf16.msra.mxu1 %v13461_v38  ;;  %v16150_v8 = vadd.f32 %v8297_v20, %v8105_v32  ;;  %v8107_v11 = vadd.f32 %v8106_v13, %v18366_v28  ;;  %9114 = vmatprep.subr.bf16.mxu0 %v13472_v42  ;;  %v13487_v3 = vld [vmem:[%s18275_s1 + $0xb94] ss:$8 sps:$4 sm:$0xff]   ;;  %v13482_v42 = vld [vmem:[%s18275_s1 + $0xa90] ss:$8 sps:$4 sm:$0xff]  }
 0x281   : > { %18363 = vst [vmem:[#allocation11_spill] sm:$0xff] %v16145_v36  ;;  %9307 = vmatprep.subr.bf16.mxu1 %v13475_v31  ;;  %v8108_v17 = vpop.f32.mrf.mxu0  ;;  %v13406_v32 = vld [vmem:[%s14378_s17 + $0x944] ss:$144 sps:$4 sm:$0xff]   ;;  %v13409_v20 = vld [vmem:[%s14378_s17 + $0x94c] ss:$144 sps:$4 sm:$0xff]  }
 0x282   : > { %18365 = vst [vmem:[#allocation12_spill] sm:$0xff] %v16150_v8  ;;  %v8301_v52 = vpop.f32.mrf.mxu1  ;;  %v16159_v4 = vadd.f32 %v8299_v56, %v8107_v11  ;;  %v8109_v38 = vadd.f32 %v8108_v17, %v18368_v34  ;;  %v13485_v13 = vld [vmem:[%s18275_s1 + $0xb90] ss:$8 sps:$4 sm:$0xff]   ;;  %v13496_v11 = vld [vmem:[%s18275_s1 + $0xa84] ss:$8 sps:$4 sm:$0xff]  }
 0x283   : > { %v8110_v31 = vpop.f32.mrf.mxu0  ;;  %9115 = vmatpush2.bf16.msra.mxu0 %v13470_v2  ;;  %v13499_v56 = vld [vmem:[%s18275_s1 + $0xb84] ss:$8 sps:$4 sm:$0xff]   ;;  %v13497_v8 = vld [vmem:[%s18275_s1 + $0xb80] ss:$8 sps:$4 sm:$0xff]  }
 0x284   : > { %18367 = vst [vmem:[#allocation13_spill] sm:$0xff] %v16159_v4  ;;  %v8303_v7 = vpop.f32.mrf.mxu1  ;;  %9308 = vmatpush2.bf16.msra.mxu1 %v13473_v55  ;;  %v16176_v28 = vadd.f32 %v8301_v52, %v8109_v38  ;;  %v18369_v17 = vld [vmem:[#allocation15_spill] sm:$0xff]  ;;  %9116 = vmatprep.subr.bf16.mxu0 %v13484_v50  ;;  %v18370_v52 = vld [vmem:[#allocation16_spill] sm:$0xff] }
 0x285   : > { %v8111_v34 = vadd.f32 %v8110_v31, %v18369_v17  ;;  %9309 = vmatprep.subr.bf16.mxu1 %v13487_v3  ;;  %v8114_v2 = vpop.f32.mrf.mxu0  ;;  %8805 = vmatmul.mubr.bf16.gmra.mxu0 %v13392_v12  ;;  %v13494_v4 = vld [vmem:[%s18275_s1 + $0xa80] ss:$8 sps:$4 sm:$0xff]   ;;  %v13508_v31 = vld [vmem:[%s18275_s1 + $0xc74] ss:$8 sps:$4 sm:$0xff]  }
 0x286   : > { %v8307_v55 = vpop.f32.mrf.mxu1  ;;  %8998 = vmatmul.mubr.bf16.gmra.mxu1 %v13395_v27  ;;  %v8115_v38 = vadd.f32 %v8114_v2, %v18370_v52  ;;  %8814 = vmatprep.mubr.bf16.mxu0 %v13406_v32  ;;  %v13511_v32 = vld [vmem:[%s18275_s1 + $0xd74] ss:$8 sps:$4 sm:$0xff]   ;;  %v13404_v17 = vld [vmem:[%s14378_s17 + $0x940] ss:$144 sps:$4 sm:$0xff]  }
 0x287   : > { %v16185_v36 = vadd.f32 %v8303_v7, %v8111_v34  ;;  %9007 = vmatprep.mubr.bf16.mxu1 %v13409_v20  ;;  %v8116_v50 = vpop.f32.mrf.mxu0  ;;  %9117 = vmatpush2.bf16.msra.mxu0 %v13482_v42  ;;  %v13407_v34 = vld [vmem:[%s14378_s17 + $0x948] ss:$144 sps:$4 sm:$0xff]   ;;  %v13418_v2 = vld [vmem:[%s14378_s17 + $0xa64] ss:$144 sps:$4 sm:$0xff]  }
 0x288   : > { %v8309_v12 = vpop.f32.mrf.mxu1  ;;  %9310 = vmatpush2.bf16.msra.mxu1 %v13485_v13  ;;  %v16188_v27 = vadd.f32 %v8307_v55, %v8115_v38  ;;  %v8117_v3 = vadd.f32 %v8116_v50, %v15751_v58  ;;  %9118 = vmatprep.subr.bf16.mxu0 %v13496_v11  ;;  %v13421_v58 = vld [vmem:[%s14378_s17 + $0xa6c] ss:$144 sps:$4 sm:$0xff]  }
 0x289   : > { %9311 = vmatprep.subr.bf16.mxu1 %v13499_v56  ;;  %v8118_v20 = vpop.f32.mrf.mxu0 }
 0x28a   : > { %v8311_v7 = vpop.f32.mrf.mxu1  ;;  %v16199_v42 = vadd.f32 %v8309_v12, %v8117_v3  ;;  %v8119_v13 = vadd.f32 %v8118_v20, %v15756_v57  ;;  %v13416_v20 = vld [vmem:[%s14378_s17 + $0xa60] ss:$144 sps:$4 sm:$0xff]  }
 0x28b   : > { %v8120_v11 = vpop.f32.mrf.mxu0  ;;  %9119 = vmatpush2.bf16.msra.mxu0 %v13494_v4 }
 0x28c   : > { %v8313_v56 = vpop.f32.mrf.mxu1  ;;  %9312 = vmatpush2.bf16.msra.mxu1 %v13497_v8  ;;  %v16204_v55 = vadd.f32 %v8311_v7, %v8119_v13  ;;  %v8121_v52 = vadd.f32 %v8120_v11, %v15759_v1  ;;  %9474 = vmatprep.subr.bf16.mxu0 %v13508_v31  ;;  %v13419_v7 = vld [vmem:[%s14378_s17 + $0xa68] ss:$144 sps:$4 sm:$0xff]   ;;  %v13430_v13 = vld [vmem:[%s14378_s17 + $0xb84] ss:$144 sps:$4 sm:$0xff]   ;;  %v13433_v11 = vld [vmem:[%s14378_s17 + $0xb8c] ss:$144 sps:$4 sm:$0xff]  }
 0x28d   : > { %9667 = vmatprep.subr.bf16.mxu1 %v13511_v32  ;;  %v8350_v38 = vpop.f32.mrf.mxu0  ;;  %8815 = vmatmul.mubr.bf16.gmra.mxu0 %v13404_v17 }
 0x28e   : > { %v8543_v50 = vpop.f32.mrf.mxu1  ;;  %9008 = vmatmul.mubr.bf16.gmra.mxu1 %v13407_v34  ;;  %v16207_v57 = vadd.f32 %v8313_v56, %v8121_v52  ;;  %v8351_v12 = vadd.f32 %v8350_v38, %v15762_v26  ;;  %8824 = vmatprep.mubr.bf16.mxu0 %v13418_v2 }
 0x28f   : > { %9017 = vmatprep.mubr.bf16.mxu1 %v13421_v58  ;;  %v8352_v8 = vpop.f32.mrf.mxu0 }
 0x290   : > { %v8545_v4 = vpop.f32.mrf.mxu1  ;;  %v16210_v3 = vadd.f32 %v8543_v50, %v8351_v12  ;;  %v8353_v1 = vadd.f32 %v8352_v8, %v15767_v60 }
 0x291   : > { %v8354_v31 = vpop.f32.mrf.mxu0 }
 0x292   : > { %v8547_v32 = vpop.f32.mrf.mxu1  ;;  %v16215_v17 = vadd.f32 %v8545_v4, %v8353_v1  ;;  %v8355_v34 = vadd.f32 %v8354_v31, %v15772_v62  ;;  %v13428_v31 = vld [vmem:[%s14378_s17 + $0xb80] ss:$144 sps:$4 sm:$0xff]  }
 0x293   : > { %v8356_v56 = vpop.f32.mrf.mxu0 }
 0x294   : > { %v8549_v26 = vpop.f32.mrf.mxu1  ;;  %v16220_v2 = vadd.f32 %v8547_v32, %v8355_v34  ;;  %v8357_v58 = vadd.f32 %v8356_v56, %v15775_v0  ;;  %v13431_v32 = vld [vmem:[%s14378_s17 + $0xb88] ss:$144 sps:$4 sm:$0xff]   ;;  %v13442_v34 = vld [vmem:[%s14378_s17 + $0xca4] ss:$144 sps:$4 sm:$0xff]   ;;  %v13445_v56 = vld [vmem:[%s14378_s17 + $0xcac] ss:$144 sps:$4 sm:$0xff]  }
 0x295   : > { %v8360_v52 = vpop.f32.mrf.mxu0  ;;  %8825 = vmatmul.mubr.bf16.gmra.mxu0 %v13416_v20 }
 0x296   : > { %v8553_v60 = vpop.f32.mrf.mxu1  ;;  %9018 = vmatmul.mubr.bf16.gmra.mxu1 %v13419_v7  ;;  %v16223_v38 = vadd.f32 %v8549_v26, %v8357_v58  ;;  %v8361_v62 = vadd.f32 %v8360_v52, %v15778_v21  ;;  %8834 = vmatprep.mubr.bf16.mxu0 %v13430_v13 }
 0x297   : > { %9027 = vmatprep.mubr.bf16.mxu1 %v13433_v11  ;;  %v8362_v50 = vpop.f32.mrf.mxu0 }
 0x298   : > { %v8555_v12 = vpop.f32.mrf.mxu1  ;;  %v16226_v8 = vadd.f32 %v8553_v60, %v8361_v62  ;;  %v8363_v4 = vadd.f32 %v8362_v50, %v15783_v59 }
 0x299   : > { %v8364_v0 = vpop.f32.mrf.mxu0 }
 0x29a   : > { %v8557_v1 = vpop.f32.mrf.mxu1  ;;  %v16231_v20 = vadd.f32 %v8555_v12, %v8363_v4  ;;  %v8365_v7 = vadd.f32 %v8364_v0, %v15788_v19  ;;  %v13440_v0 = vld [vmem:[%s14378_s17 + $0xca0] ss:$144 sps:$4 sm:$0xff]  }
 0x29b   : > { %v8366_v26 = vpop.f32.mrf.mxu0 }
 0x29c   : > { %v8559_v21 = vpop.f32.mrf.mxu1  ;;  %v16236_v13 = vadd.f32 %v8557_v1, %v8365_v7  ;;  %v8367_v11 = vadd.f32 %v8366_v26, %v15791_v6  ;;  %v13443_v1 = vld [vmem:[%s14378_s17 + $0xca8] ss:$144 sps:$4 sm:$0xff]   ;;  %v13454_v7 = vld [vmem:[%s14378_s17 + $0xdc4] ss:$144 sps:$4 sm:$0xff]   ;;  %v13457_v26 = vld [vmem:[%s14378_s17 + $0xdcc] ss:$144 sps:$4 sm:$0xff]  }
 0x29d   : > { %v8370_v58 = vpop.f32.mrf.mxu0  ;;  %8835 = vmatmul.mubr.bf16.gmra.mxu0 %v13428_v31 }
 0x29e   : > { %v8563_v59 = vpop.f32.mrf.mxu1  ;;  %9028 = vmatmul.mubr.bf16.gmra.mxu1 %v13431_v32  ;;  %v16239_v52 = vadd.f32 %v8559_v21, %v8367_v11  ;;  %v8371_v19 = vadd.f32 %v8370_v58, %v15794_v14  ;;  %8844 = vmatprep.mubr.bf16.mxu0 %v13442_v34 }
 0x29f   : > { %9037 = vmatprep.mubr.bf16.mxu1 %v13445_v56  ;;  %v8372_v60 = vpop.f32.mrf.mxu0 }
 0x2a0   : > { %v8565_v62 = vpop.f32.mrf.mxu1  ;;  %v16242_v50 = vadd.f32 %v8563_v59, %v8371_v19  ;;  %v8373_v12 = vadd.f32 %v8372_v60, %v15799_v22 }
 0x2a1   : > { %v8374_v6 = vpop.f32.mrf.mxu0 }
 0x2a2   : > { %v8567_v4 = vpop.f32.mrf.mxu1  ;;  %v16247_v31 = vadd.f32 %v8565_v62, %v8373_v12  ;;  %v8375_v32 = vadd.f32 %v8374_v6, %v15804_v23  ;;  %v13452_v6 = vld [vmem:[%s14378_s17 + $0xdc0] ss:$144 sps:$4 sm:$0xff]  }
 0x2a3   : > { %v8376_v21 = vpop.f32.mrf.mxu0 }
 0x2a4   : > { %v8569_v14 = vpop.f32.mrf.mxu1  ;;  %v16252_v34 = vadd.f32 %v8567_v4, %v8375_v32  ;;  %v8377_v56 = vadd.f32 %v8376_v21, %v15807_v10  ;;  %v13455_v4 = vld [vmem:[%s14378_s17 + $0xdc8] ss:$144 sps:$4 sm:$0xff]   ;;  %v13466_v32 = vld [vmem:[%s14378_s17 + $0xee4] ss:$144 sps:$4 sm:$0xff]   ;;  %v13469_v21 = vld [vmem:[%s14378_s17 + $0xeec] ss:$144 sps:$4 sm:$0xff]  }
 0x2a5   : > { %v8380_v11 = vpop.f32.mrf.mxu0  ;;  %8845 = vmatmul.mubr.bf16.gmra.mxu0 %v13440_v0 }
 0x2a6   : > { %v8573_v22 = vpop.f32.mrf.mxu1  ;;  %9038 = vmatmul.mubr.bf16.gmra.mxu1 %v13443_v1  ;;  %v16255_v58 = vadd.f32 %v8569_v14, %v8377_v56  ;;  %v8381_v23 = vadd.f32 %v8380_v11, %v15810_v37  ;;  %8854 = vmatprep.mubr.bf16.mxu0 %v13454_v7 }
 0x2a7   : > { %9047 = vmatprep.mubr.bf16.mxu1 %v13457_v26  ;;  %v8382_v59 = vpop.f32.mrf.mxu0 }
 0x2a8   : > { %v8575_v19 = vpop.f32.mrf.mxu1  ;;  %v16258_v60 = vadd.f32 %v8573_v22, %v8381_v23  ;;  %v8383_v62 = vadd.f32 %v8382_v59, %v15815_v53 }
 0x2a9   : > { %v8384_v10 = vpop.f32.mrf.mxu0 }
 0x2aa   : > { %v8577_v12 = vpop.f32.mrf.mxu1  ;;  %v16263_v0 = vadd.f32 %v8575_v19, %v8383_v62  ;;  %v8385_v1 = vadd.f32 %v8384_v10, %v15820_v24  ;;  %v13464_v10 = vld [vmem:[%s14378_s17 + $0xee0] ss:$144 sps:$4 sm:$0xff]  }
 0x2ab   : > { %v8386_v14 = vpop.f32.mrf.mxu0 }
 0x2ac   : > { %v8579_v37 = vpop.f32.mrf.mxu1  ;;  %v16268_v7 = vadd.f32 %v8577_v12, %v8385_v1  ;;  %v8387_v26 = vadd.f32 %v8386_v14, %v15823_v44  ;;  %v13467_v12 = vld [vmem:[%s14378_s17 + $0xee8] ss:$144 sps:$4 sm:$0xff]   ;;  %v13478_v1 = vld [vmem:[%s14378_s17 + $0x1004] ss:$144 sps:$4 sm:$0xff]   ;;  %v13481_v14 = vld [vmem:[%s14378_s17 + $0x100c] ss:$144 sps:$4 sm:$0xff]  }
 0x2ad   : > { %v8390_v56 = vpop.f32.mrf.mxu0  ;;  %8855 = vmatmul.mubr.bf16.gmra.mxu0 %v13452_v6 }
 0x2ae   : > { %v8583_v53 = vpop.f32.mrf.mxu1  ;;  %9048 = vmatmul.mubr.bf16.gmra.mxu1 %v13455_v4  ;;  %v16271_v11 = vadd.f32 %v8579_v37, %v8387_v26  ;;  %v8391_v24 = vadd.f32 %v8390_v56, %v15826_v30  ;;  %8864 = vmatprep.mubr.bf16.mxu0 %v13466_v32 }
 0x2af   : > { %9057 = vmatprep.mubr.bf16.mxu1 %v13469_v21  ;;  %v8392_v22 = vpop.f32.mrf.mxu0 }
 0x2b0   : > { %v8585_v23 = vpop.f32.mrf.mxu1  ;;  %v16274_v59 = vadd.f32 %v8583_v53, %v8391_v24  ;;  %v8393_v19 = vadd.f32 %v8392_v22, %v15831_v41 }
 0x2b1   : > { %v8394_v44 = vpop.f32.mrf.mxu0 }
 0x2b2   : > { %v8587_v62 = vpop.f32.mrf.mxu1  ;;  %v16279_v6 = vadd.f32 %v8585_v23, %v8393_v19  ;;  %v8395_v4 = vadd.f32 %v8394_v44, %v15836_v49  ;;  %v13476_v44 = vld [vmem:[%s14378_s17 + $0x1000] ss:$144 sps:$4 sm:$0xff]  }
 0x2b3   : > { %v8396_v37 = vpop.f32.mrf.mxu0 }
 0x2b4   : > { %v8589_v30 = vpop.f32.mrf.mxu1  ;;  %v16284_v32 = vadd.f32 %v8587_v62, %v8395_v4  ;;  %v8397_v21 = vadd.f32 %v8396_v37, %v15839_v46  ;;  %v13479_v62 = vld [vmem:[%s14378_s17 + $0x1008] ss:$144 sps:$4 sm:$0xff]   ;;  %v13490_v4 = vld [vmem:[%s14378_s17 + $0x1124] ss:$144 sps:$4 sm:$0xff]   ;;  %v13493_v37 = vld [vmem:[%s14378_s17 + $0x112c] ss:$144 sps:$4 sm:$0xff]  }
 0x2b5   : > { %v8400_v26 = vpop.f32.mrf.mxu0  ;;  %8865 = vmatmul.mubr.bf16.gmra.mxu0 %v13464_v10 }
 0x2b6   : > { %v8593_v41 = vpop.f32.mrf.mxu1  ;;  %9058 = vmatmul.mubr.bf16.gmra.mxu1 %v13467_v12  ;;  %v16287_v56 = vadd.f32 %v8589_v30, %v8397_v21  ;;  %v8401_v49 = vadd.f32 %v8400_v26, %v15842_v5  ;;  %8874 = vmatprep.mubr.bf16.mxu0 %v13478_v1 }
 0x2b7   : > { %9067 = vmatprep.mubr.bf16.mxu1 %v13481_v14  ;;  %v8402_v53 = vpop.f32.mrf.mxu0 }
 0x2b8   : > { %v8595_v24 = vpop.f32.mrf.mxu1  ;;  %v16290_v22 = vadd.f32 %v8593_v41, %v8401_v49  ;;  %v8403_v23 = vadd.f32 %v8402_v53, %v15847_v40 }
 0x2b9   : > { %v8404_v46 = vpop.f32.mrf.mxu0 }
 0x2ba   : > { %v8597_v19 = vpop.f32.mrf.mxu1  ;;  %v16295_v10 = vadd.f32 %v8595_v24, %v8403_v23  ;;  %v8405_v12 = vadd.f32 %v8404_v46, %v15852_v45  ;;  %v18373_v24 = vld [vmem:[#allocation17_spill] sm:$0xff] }
 0x2bb   : > { %v8406_v30 = vpop.f32.mrf.mxu0 }
 0x2bc   : > { %v8599_v5 = vpop.f32.mrf.mxu1  ;;  %v16300_v1 = vadd.f32 %v8597_v19, %v8405_v12  ;;  %v8407_v14 = vadd.f32 %v8406_v30, %v15855_v51  ;;  %v13488_v19 = vld [vmem:[%s14378_s17 + $0x1120] ss:$144 sps:$4 sm:$0xff]   ;;  %v13491_v12 = vld [vmem:[%s14378_s17 + $0x1128] ss:$144 sps:$4 sm:$0xff]  }
 0x2bd   : > { %v8410_v21 = vpop.f32.mrf.mxu0  ;;  %8875 = vmatmul.mubr.bf16.gmra.mxu0 %v13476_v44 }
 0x2be   : > { %v8603_v40 = vpop.f32.mrf.mxu1  ;;  %9068 = vmatmul.mubr.bf16.gmra.mxu1 %v13479_v62  ;;  %v16303_v26 = vadd.f32 %v8599_v5, %v8407_v14  ;;  %v8411_v45 = vadd.f32 %v8410_v21, %v15858_v63  ;;  %8884 = vmatprep.mubr.bf16.mxu0 %v13490_v4  ;;  %v18375_v62 = vld [vmem:[#allocation18_spill] sm:$0xff]  ;;  %v13505_v14 = vld [vmem:[%s14378_s17 + $0x5c] ss:$144 sps:$4 sm:$0xff]  }
 0x2bf   : > { %9077 = vmatprep.mubr.bf16.mxu1 %v13493_v37  ;;  %v8412_v41 = vpop.f32.mrf.mxu0  ;;  %v13502_v5 = vld [vmem:[%s14378_s17 + $0x54] ss:$144 sps:$4 sm:$0xff]   ;;  %v18377_v37 = vld [vmem:[#allocation19_spill] sm:$0xff] }
 0x2c0   : > { %18371 = vst [vmem:[#allocation14_spill] sm:$0xff] %v16303_v26  ;;  %v8605_v49 = vpop.f32.mrf.mxu1  ;;  %v16306_v53 = vadd.f32 %v8603_v40, %v8411_v45  ;;  %v8413_v23 = vadd.f32 %v8412_v41, %v18373_v24 }
 0x2c1   : > { %v8414_v51 = vpop.f32.mrf.mxu0 }
 0x2c2   : > { %18372 = vst [vmem:[#allocation15_spill] sm:$0xff] %v16306_v53  ;;  %v8607_v46 = vpop.f32.mrf.mxu1  ;;  %v16311_v44 = vadd.f32 %v8605_v49, %v8413_v23  ;;  %v8415_v30 = vadd.f32 %v8414_v51, %v18375_v62  ;;  %v18379_v49 = vld [vmem:[#allocation20_spill] sm:$0xff]  ;;  %v18381_v62 = vld [vmem:[#allocation21_spill] sm:$0xff] }
 0x2c3   : > { %v8416_v26 = vpop.f32.mrf.mxu0 }
 0x2c4   : > { %18374 = vst [vmem:[#allocation16_spill] sm:$0xff] %v16311_v44  ;;  %v8609_v63 = vpop.f32.mrf.mxu1  ;;  %v16316_v4 = vadd.f32 %v8607_v46, %v8415_v30  ;;  %v8417_v21 = vadd.f32 %v8416_v26, %v18377_v37  ;;  %v13503_v44 = vld [vmem:[%s14378_s17 + $0x58] ss:$144 sps:$4 sm:$0xff]  }
 0x2c5   : > { %v8420_v40 = vpop.f32.mrf.mxu0  ;;  %8885 = vmatmul.mubr.bf16.gmra.mxu0 %v13488_v19 }
 0x2c6   : > { %18376 = vst [vmem:[#allocation17_spill] sm:$0xff] %v16316_v4  ;;  %v8613_v45 = vpop.f32.mrf.mxu1  ;;  %9078 = vmatmul.mubr.bf16.gmra.mxu1 %v13491_v12  ;;  %v16319_v41 = vadd.f32 %v8609_v63, %v8417_v21  ;;  %v8421_v24 = vadd.f32 %v8420_v40, %v18379_v49  ;;  %9120 = vmatprep.mubr.bf16.mxu0 %v13502_v5  ;;  %v13500_v4 = vld [vmem:[%s14378_s17 + $0x50] ss:$144 sps:$4 sm:$0xff]   ;;  %v13517_v49 = vld [vmem:[%s14378_s17 + $0x17c] ss:$144 sps:$4 sm:$0xff]  }
 0x2c7   : > { %9313 = vmatprep.mubr.bf16.mxu1 %v13505_v14  ;;  %v8422_v23 = vpop.f32.mrf.mxu0  ;;  %v18383_v12 = vld [vmem:[#allocation22_spill] sm:$0xff]  ;;  %v13506_v5 = vld [vmem:[%s18275_s1 + $0xc70] ss:$8 sps:$4 sm:$0xff]  }
 0x2c8   : > { %18378 = vst [vmem:[#allocation18_spill] sm:$0xff] %v16319_v41  ;;  %v8615_v51 = vpop.f32.mrf.mxu1  ;;  %v16322_v46 = vadd.f32 %v8613_v45, %v8421_v24  ;;  %v8423_v30 = vadd.f32 %v8422_v23, %v18381_v62  ;;  %v13509_v14 = vld [vmem:[%s18275_s1 + $0xd70] ss:$8 sps:$4 sm:$0xff]   ;;  %v13514_v45 = vld [vmem:[%s14378_s17 + $0x174] ss:$144 sps:$4 sm:$0xff]   ;;  %v18385_v23 = vld [vmem:[#allocation23_spill] sm:$0xff] }
 0x2c9   : > { %v8424_v26 = vpop.f32.mrf.mxu0 }
 0x2ca   : > { %18380 = vst [vmem:[#allocation19_spill] sm:$0xff] %v16322_v46  ;;  %v8617_v37 = vpop.f32.mrf.mxu1  ;;  %v16327_v19 = vadd.f32 %v8615_v51, %v8423_v30  ;;  %v8425_v63 = vadd.f32 %v8424_v26, %v18383_v12  ;;  %v13520_v51 = vld [vmem:[%s18275_s1 + $0xc64] ss:$8 sps:$4 sm:$0xff]  }
 0x2cb   : > { %v8426_v21 = vpop.f32.mrf.mxu0  ;;  %v13523_v30 = vld [vmem:[%s18275_s1 + $0xd64] ss:$8 sps:$4 sm:$0xff]  }
 0x2cc   : > { %18382 = vst [vmem:[#allocation20_spill] sm:$0xff] %v16327_v19  ;;  %v8619_v40 = vpop.f32.mrf.mxu1  ;;  %v16338_v24 = vadd.f32 %v8617_v37, %v8425_v63  ;;  %v8427_v62 = vadd.f32 %v8426_v21, %v18385_v23  ;;  %v13518_v37 = vld [vmem:[%s18275_s1 + $0xc60] ss:$8 sps:$4 sm:$0xff]  }
 0x2cd   : > { %v8430_v26 = vpop.f32.mrf.mxu0  ;;  %9121 = vmatmul.mubr.bf16.vlgmr.msra.gmra.mxu0 %v13500_v4  ;;  %v13521_v63 = vld [vmem:[%s18275_s1 + $0xd60] ss:$8 sps:$4 sm:$0xff]  }
 0x2ce   : > { %18384 = vst [vmem:[#allocation21_spill] sm:$0xff] %v16338_v24  ;;  %v8623_v12 = vpop.f32.mrf.mxu1  ;;  %9314 = vmatmul.mubr.bf16.vlgmr.msra.gmra.mxu1 %v13503_v44  ;;  %v16347_v19 = vadd.f32 %v8619_v40, %v8427_v62  ;;  %v8431_v46 = vadd.f32 %v8430_v26, %v15914_v15  ;;  %9475 = vmatpush1.bf16.msra.mxu0 %v13506_v5  ;;  %v13532_v15 = vld [vmem:[%s18275_s1 + $0xc54] ss:$8 sps:$4 sm:$0xff]   ;;  %v13515_v62 = vld [vmem:[%s14378_s17 + $0x178] ss:$144 sps:$4 sm:$0xff]  }
 0x2cf   : > { %9668 = vmatpush1.bf16.msra.mxu1 %v13509_v14  ;;  %v8432_v21 = vpop.f32.mrf.mxu0  ;;  %9130 = vmatprep.mubr.bf16.mxu0 %v13514_v45  ;;  %v13535_v44 = vld [vmem:[%s18275_s1 + $0xd54] ss:$8 sps:$4 sm:$0xff]   ;;  %v13512_v45 = vld [vmem:[%s14378_s17 + $0x170] ss:$144 sps:$4 sm:$0xff]  }
 0x2d0   : > { %18386 = vst [vmem:[#allocation22_spill] sm:$0xff] %v16347_v19  ;;  %v8625_v23 = vpop.f32.mrf.mxu1  ;;  %9323 = vmatprep.mubr.bf16.mxu1 %v13517_v49  ;;  %v16362_v4 = vadd.f32 %v8623_v12, %v8431_v46  ;;  %v8433_v5 = vadd.f32 %v8432_v21, %v15919_v61  ;;  %9476 = vmatprep.subr.bf16.mxu0 %v13520_v51  ;;  %v13526_v19 = vld [vmem:[%s14378_s17 + $0x294] ss:$144 sps:$4 sm:$0xff]   ;;  %v13529_v24 = vld [vmem:[%s14378_s17 + $0x29c] ss:$144 sps:$4 sm:$0xff]  }
 0x2d1   : > { %9669 = vmatprep.subr.bf16.mxu1 %v13523_v30  ;;  %v8434_v14 = vpop.f32.mrf.mxu0  ;;  %v13530_v61 = vld [vmem:[%s18275_s1 + $0xc50] ss:$8 sps:$4 sm:$0xff]   ;;  %v13544_v30 = vld [vmem:[%s18275_s1 + $0xc44] ss:$8 sps:$4 sm:$0xff]  }
 0x2d2   : > { %v8627_v40 = vpop.f32.mrf.mxu1  ;;  %v16367_v49 = vadd.f32 %v8625_v23, %v8433_v5  ;;  %v8435_v26 = vadd.f32 %v8434_v14, %v15936_v43  ;;  %9477 = vmatpush1.bf16.msra.mxu0 %v13518_v37  ;;  %v13533_v46 = vld [vmem:[%s18275_s1 + $0xd50] ss:$8 sps:$4 sm:$0xff]   ;;  %v13547_v12 = vld [vmem:[%s18275_s1 + $0xd44] ss:$8 sps:$4 sm:$0xff]  }
 0x2d3   : > { %9670 = vmatpush1.bf16.msra.mxu1 %v13521_v63  ;;  %v8436_v41 = vpop.f32.mrf.mxu0  ;;  %9478 = vmatprep.subr.bf16.mxu0 %v13532_v15  ;;  %v13542_v15 = vld [vmem:[%s18275_s1 + $0xc40] ss:$8 sps:$4 sm:$0xff]  }
 0x2d4   : > { %v8629_v53 = vpop.f32.mrf.mxu1  ;;  %9671 = vmatprep.subr.bf16.mxu1 %v13535_v44  ;;  %v16378_v51 = vadd.f32 %v8627_v40, %v8435_v26  ;;  %v8437_v43 = vadd.f32 %v8436_v41, %v15945_v18  ;;  %v13524_v40 = vld [vmem:[%s14378_s17 + $0x290] ss:$144 sps:$4 sm:$0xff]  }
 0x2d5   : > { %v8440_v37 = vpop.f32.mrf.mxu0  ;;  %9131 = vmatmul.mubr.bf16.gmra.mxu0 %v13512_v45  ;;  %v13527_v45 = vld [vmem:[%s14378_s17 + $0x298] ss:$144 sps:$4 sm:$0xff]  }
 0x2d6   : > { %v8633_v63 = vpop.f32.mrf.mxu1  ;;  %9324 = vmatmul.mubr.bf16.gmra.mxu1 %v13515_v62  ;;  %v16387_v21 = vadd.f32 %v8629_v53, %v8437_v43  ;;  %v8441_v23 = vadd.f32 %v8440_v37, %v15950_v48  ;;  %9140 = vmatprep.mubr.bf16.mxu0 %v13526_v19  ;;  %v13545_v53 = vld [vmem:[%s18275_s1 + $0xd40] ss:$8 sps:$4 sm:$0xff]   ;;  %v13556_v19 = vld [vmem:[%s18275_s1 + $0xc34] ss:$8 sps:$4 sm:$0xff]  }
 0x2d7   : > { %9333 = vmatprep.mubr.bf16.mxu1 %v13529_v24  ;;  %v8442_v18 = vpop.f32.mrf.mxu0  ;;  %9479 = vmatpush1.bf16.msra.mxu0 %v13530_v61  ;;  %v13559_v24 = vld [vmem:[%s18275_s1 + $0xd34] ss:$8 sps:$4 sm:$0xff]  }
 0x2d8   : > { %v8635_v41 = vpop.f32.mrf.mxu1  ;;  %9672 = vmatpush1.bf16.msra.mxu1 %v13533_v46  ;;  %v16396_v44 = vadd.f32 %v8633_v63, %v8441_v23  ;;  %v8443_v48 = vadd.f32 %v8442_v18, %v15959_v47  ;;  %9480 = vmatprep.subr.bf16.mxu0 %v13544_v30  ;;  %v13538_v61 = vld [vmem:[%s14378_s17 + $0x3b4] ss:$144 sps:$4 sm:$0xff]   ;;  %v13541_v47 = vld [vmem:[%s14378_s17 + $0x3bc] ss:$144 sps:$4 sm:$0xff]   ;;  %v13554_v30 = vld [vmem:[%s18275_s1 + $0xc30] ss:$8 sps:$4 sm:$0xff]  }
 0x2d9   : > { %9673 = vmatprep.subr.bf16.mxu1 %v13547_v12  ;;  %v8444_v5 = vpop.f32.mrf.mxu0  ;;  %v13557_v12 = vld [vmem:[%s18275_s1 + $0xd30] ss:$8 sps:$4 sm:$0xff]   ;;  %v13571_v23 = vld [vmem:[%s18275_s1 + $0xd24] ss:$8 sps:$4 sm:$0xff]  }
 0x2da   : > { %v8637_v14 = vpop.f32.mrf.mxu1  ;;  %v16407_v62 = vadd.f32 %v8635_v41, %v8443_v48  ;;  %v8445_v26 = vadd.f32 %v8444_v5, %v15976_v35  ;;  %v13568_v35 = vld [vmem:[%s18275_s1 + $0xc24] ss:$8 sps:$4 sm:$0xff]  }
 0x2db   : > { %v8446_v46 = vpop.f32.mrf.mxu0  ;;  %9481 = vmatpush1.bf16.msra.mxu0 %v13542_v15 }
 0x2dc   : > { %v8639_v43 = vpop.f32.mrf.mxu1  ;;  %9674 = vmatpush1.bf16.msra.mxu1 %v13545_v53  ;;  %v16418_v37 = vadd.f32 %v8637_v14, %v8445_v26  ;;  %v8447_v63 = vadd.f32 %v8446_v46, %v15985_v9  ;;  %9482 = vmatprep.subr.bf16.mxu0 %v13556_v19  ;;  %v13566_v19 = vld [vmem:[%s18275_s1 + $0xc20] ss:$8 sps:$4 sm:$0xff]   ;;  %v13580_v14 = vld [vmem:[%s18275_s1 + $0xc14] ss:$8 sps:$4 sm:$0xff]  }
 0x2dd   : > { %9675 = vmatprep.subr.bf16.mxu1 %v13559_v24  ;;  %v8450_v18 = vpop.f32.mrf.mxu0  ;;  %9141 = vmatmul.mubr.bf16.gmra.mxu0 %v13524_v40  ;;  %v13569_v24 = vld [vmem:[%s18275_s1 + $0xd20] ss:$8 sps:$4 sm:$0xff]   ;;  %v13583_v40 = vld [vmem:[%s18275_s1 + $0xd14] ss:$8 sps:$4 sm:$0xff]  }
 0x2de   : > { %v8643_v41 = vpop.f32.mrf.mxu1  ;;  %9334 = vmatmul.mubr.bf16.gmra.mxu1 %v13527_v45  ;;  %v16427_v15 = vadd.f32 %v8639_v43, %v8447_v63  ;;  %v8451_v53 = vadd.f32 %v8450_v18, %v15990_v33  ;;  %9150 = vmatprep.mubr.bf16.mxu0 %v13538_v61  ;;  %v13536_v61 = vld [vmem:[%s14378_s17 + $0x3b0] ss:$144 sps:$4 sm:$0xff]  }
 0x2df   : > { %9343 = vmatprep.mubr.bf16.mxu1 %v13541_v47  ;;  %v8452_v9 = vpop.f32.mrf.mxu0  ;;  %9483 = vmatpush1.bf16.msra.mxu0 %v13554_v30  ;;  %v13539_v47 = vld [vmem:[%s14378_s17 + $0x3b8] ss:$144 sps:$4 sm:$0xff]   ;;  %v13550_v30 = vld [vmem:[%s14378_s17 + $0x4d4] ss:$144 sps:$4 sm:$0xff]  }
 0x2e0   : > { %v8645_v48 = vpop.f32.mrf.mxu1  ;;  %9676 = vmatpush1.bf16.msra.mxu1 %v13557_v12  ;;  %v16436_v5 = vadd.f32 %v8643_v41, %v8451_v53  ;;  %v8453_v33 = vadd.f32 %v8452_v9, %v15999_v39  ;;  %9484 = vmatprep.subr.bf16.mxu0 %v13568_v35  ;;  %v13553_v39 = vld [vmem:[%s14378_s17 + $0x4dc] ss:$144 sps:$4 sm:$0xff]   ;;  %v13578_v35 = vld [vmem:[%s18275_s1 + $0xc10] ss:$8 sps:$4 sm:$0xff]  }
 0x2e1   : > { %9677 = vmatprep.subr.bf16.mxu1 %v13571_v23  ;;  %v8454_v45 = vpop.f32.mrf.mxu0  ;;  %v13581_v23 = vld [vmem:[%s18275_s1 + $0xd10] ss:$8 sps:$4 sm:$0xff]   ;;  %v13595_v53 = vld [vmem:[%s18275_s1 + $0xd04] ss:$8 sps:$4 sm:$0xff]  }
 0x2e2   : > { %v8647_v26 = vpop.f32.mrf.mxu1  ;;  %v16447_v46 = vadd.f32 %v8645_v48, %v8453_v33  ;;  %v8455_v43 = vadd.f32 %v8454_v45, %v16016_v29  ;;  %v13592_v29 = vld [vmem:[%s18275_s1 + $0xc04] ss:$8 sps:$4 sm:$0xff]  }
 0x2e3   : > { %v8456_v12 = vpop.f32.mrf.mxu0  ;;  %9485 = vmatpush1.bf16.msra.mxu0 %v13566_v19 }
 0x2e4   : > { %v8649_v63 = vpop.f32.mrf.mxu1  ;;  %9678 = vmatpush1.bf16.msra.mxu1 %v13569_v24  ;;  %v16458_v18 = vadd.f32 %v8647_v26, %v8455_v43  ;;  %v8457_v41 = vadd.f32 %v8456_v12, %v16025_v54  ;;  %9486 = vmatprep.subr.bf16.mxu0 %v13580_v14  ;;  %v13590_v14 = vld [vmem:[%s18275_s1 + $0xc00] ss:$8 sps:$4 sm:$0xff]   ;;  %v13604_v26 = vld [vmem:[%s18275_s1 + $0xcf4] ss:$8 sps:$4 sm:$0xff]  }
 0x2e5   : > { %9679 = vmatprep.subr.bf16.mxu1 %v13583_v40  ;;  %v8460_v9 = vpop.f32.mrf.mxu0  ;;  %9151 = vmatmul.mubr.bf16.gmra.mxu0 %v13536_v61  ;;  %v13593_v40 = vld [vmem:[%s18275_s1 + $0xd00] ss:$8 sps:$4 sm:$0xff]   ;;  %v13607_v61 = vld [vmem:[%s18275_s1 + $0xdf4] ss:$8 sps:$4 sm:$0xff]  }
 0x2e6   : > { %v8653_v48 = vpop.f32.mrf.mxu1  ;;  %9344 = vmatmul.mubr.bf16.gmra.mxu1 %v13539_v47  ;;  %v16467_v19 = vadd.f32 %v8649_v63, %v8457_v41  ;;  %v8461_v24 = vadd.f32 %v8460_v9, %v16030_v16  ;;  %9160 = vmatprep.mubr.bf16.mxu0 %v13550_v30  ;;  %v13548_v30 = vld [vmem:[%s14378_s17 + $0x4d0] ss:$144 sps:$4 sm:$0xff]  }
 0x2e7   : > { %9353 = vmatprep.mubr.bf16.mxu1 %v13553_v39  ;;  %v8462_v54 = vpop.f32.mrf.mxu0  ;;  %9487 = vmatpush1.bf16.msra.mxu0 %v13578_v35  ;;  %v13551_v39 = vld [vmem:[%s14378_s17 + $0x4d8] ss:$144 sps:$4 sm:$0xff]   ;;  %v18387_v63 = vld [vmem:[#allocation2_spill] sm:$0xff] }
 0x2e8   : > { %v8655_v33 = vpop.f32.mrf.mxu1  ;;  %9680 = vmatpush1.bf16.msra.mxu1 %v13581_v23  ;;  %v16476_v45 = vadd.f32 %v8653_v48, %v8461_v24  ;;  %v8463_v16 = vadd.f32 %v8462_v54, %v16039_v25  ;;  %9488 = vmatprep.subr.bf16.mxu0 %v13592_v29  ;;  %v13562_v23 = vld [vmem:[%s14378_s17 + $0x5f4] ss:$144 sps:$4 sm:$0xff]   ;;  %v13565_v25 = vld [vmem:[%s14378_s17 + $0x5fc] ss:$144 sps:$4 sm:$0xff]   ;;  %v13605_v9 = vld [vmem:[%s18275_s1 + $0xdf0] ss:$8 sps:$4 sm:$0xff]  }
 0x2e9   : > { %9681 = vmatprep.subr.bf16.mxu1 %v13595_v53  ;;  %v8464_v47 = vpop.f32.mrf.mxu0  ;;  %v13602_v53 = vld [vmem:[%s18275_s1 + $0xcf0] ss:$8 sps:$4 sm:$0xff]   ;;  %v18388_v24 = vld [vmem:[#allocation3_spill] sm:$0xff] }
 0x2ea   : > { %v8657_v43 = vpop.f32.mrf.mxu1  ;;  %v16487_v12 = vadd.f32 %v8655_v33, %v8463_v16  ;;  %v8465_v35 = vadd.f32 %v8464_v47, %v18387_v63  ;;  %v13616_v33 = vld [vmem:[%s18275_s1 + $0xce4] ss:$8 sps:$4 sm:$0xff]  }
 0x2eb   : > { %v8466_v41 = vpop.f32.mrf.mxu0  ;;  %9489 = vmatpush1.bf16.msra.mxu0 %v13590_v14  ;;  %v13619_v14 = vld [vmem:[%s18275_s1 + $0xde4] ss:$8 sps:$4 sm:$0xff]  }
 0x2ec   : > { %v8659_v29 = vpop.f32.mrf.mxu1  ;;  %9682 = vmatpush1.bf16.msra.mxu1 %v13593_v40  ;;  %v16498_v48 = vadd.f32 %v8657_v43, %v8465_v35  ;;  %v8467_v54 = vadd.f32 %v8466_v41, %v18388_v24  ;;  %9490 = vmatprep.subr.bf16.mxu0 %v13604_v26  ;;  %v18390_v43 = vld [vmem:[#allocation4_spill] sm:$0xff]  ;;  %v13614_v35 = vld [vmem:[%s18275_s1 + $0xce0] ss:$8 sps:$4 sm:$0xff]  }
 0x2ed   : > { %9683 = vmatprep.subr.bf16.mxu1 %v13607_v61  ;;  %v8470_v40 = vpop.f32.mrf.mxu0  ;;  %9161 = vmatmul.mubr.bf16.gmra.mxu0 %v13548_v30  ;;  %v13617_v30 = vld [vmem:[%s18275_s1 + $0xde0] ss:$8 sps:$4 sm:$0xff]  }
 0x2ee   : > { %v8663_v16 = vpop.f32.mrf.mxu1  ;;  %9354 = vmatmul.mubr.bf16.gmra.mxu1 %v13551_v39  ;;  %v16507_v47 = vadd.f32 %v8659_v29, %v8467_v54  ;;  %v8471_v63 = vadd.f32 %v8470_v40, %v18390_v43  ;;  %9170 = vmatprep.mubr.bf16.mxu0 %v13562_v23  ;;  %v18392_v23 = vld [vmem:[#allocation5_spill] sm:$0xff]  ;;  %v13560_v24 = vld [vmem:[%s14378_s17 + $0x5f0] ss:$144 sps:$4 sm:$0xff]  }
 0x2ef   : > { %9363 = vmatprep.mubr.bf16.mxu1 %v13565_v25  ;;  %v8472_v26 = vpop.f32.mrf.mxu0  ;;  %9491 = vmatpush2.bf16.msra.mxu0 %v13602_v53  ;;  %v13628_v25 = vld [vmem:[%s18275_s1 + $0xcd4] ss:$8 sps:$4 sm:$0xff]   ;;  %v13563_v54 = vld [vmem:[%s14378_s17 + $0x5f8] ss:$144 sps:$4 sm:$0xff]  }
 0x2f0   : > { %18389 = vst [vmem:[#allocation23_spill] sm:$0xff] %v16507_v47  ;;  %v8665_v61 = vpop.f32.mrf.mxu1  ;;  %9684 = vmatpush2.bf16.msra.mxu1 %v13605_v9  ;;  %v16516_v39 = vadd.f32 %v8663_v16, %v8471_v63  ;;  %v8473_v41 = vadd.f32 %v8472_v26, %v18392_v23  ;;  %9492 = vmatprep.subr.bf16.mxu0 %v13616_v33  ;;  %v13631_v29 = vld [vmem:[%s18275_s1 + $0xdd4] ss:$8 sps:$4 sm:$0xff]   ;;  %v18394_v16 = vld [vmem:[#allocation6_spill] sm:$0xff]  ;;  %v13626_v23 = vld [vmem:[%s18275_s1 + $0xcd0] ss:$8 sps:$4 sm:$0xff]  }
 0x2f1   : > { %9685 = vmatprep.subr.bf16.mxu1 %v13619_v14  ;;  %v8474_v53 = vpop.f32.mrf.mxu0  ;;  %v13574_v63 = vld [vmem:[%s14378_s17 + $0x714] ss:$144 sps:$4 sm:$0xff]   ;;  %v13577_v26 = vld [vmem:[%s14378_s17 + $0x71c] ss:$144 sps:$4 sm:$0xff]  }
 0x2f2   : > { %18391 = vst [vmem:[#allocation2_spill] sm:$0xff] %v16516_v39  ;;  %v8667_v9 = vpop.f32.mrf.mxu1  ;;  %v16527_v40 = vadd.f32 %v8665_v61, %v8473_v41  ;;  %v8475_v43 = vadd.f32 %v8474_v53, %v18394_v16  ;;  %v13629_v39 = vld [vmem:[%s18275_s1 + $0xdd0] ss:$8 sps:$4 sm:$0xff]   ;;  %v18396_v61 = vld [vmem:[#allocation7_spill] sm:$0xff] }
 0x2f3   : > { %v8476_v33 = vpop.f32.mrf.mxu0  ;;  %9493 = vmatpush2.bf16.msra.mxu0 %v13614_v35  ;;  %v13640_v53 = vld [vmem:[%s18275_s1 + $0xcc4] ss:$8 sps:$4 sm:$0xff]  }
 0x2f4   : > { %18393 = vst [vmem:[#allocation3_spill] sm:$0xff] %v16527_v40  ;;  %v8669_v14 = vpop.f32.mrf.mxu1  ;;  %9686 = vmatpush2.bf16.msra.mxu1 %v13617_v30  ;;  %v16538_v47 = vadd.f32 %v8667_v9, %v8475_v43  ;;  %v8477_v41 = vadd.f32 %v8476_v33, %v18396_v61  ;;  %9494 = vmatprep.subr.bf16.mxu0 %v13628_v25  ;;  %v13643_v35 = vld [vmem:[%s18275_s1 + $0xdc4] ss:$8 sps:$4 sm:$0xff]   ;;  %v18398_v9 = vld [vmem:[#allocation8_spill] sm:$0xff]  ;;  %v13638_v33 = vld [vmem:[%s18275_s1 + $0xcc0] ss:$8 sps:$4 sm:$0xff]  }
 0x2f5   : > { %9687 = vmatprep.subr.bf16.mxu1 %v13631_v29  ;;  %v8480_v30 = vpop.f32.mrf.mxu0  ;;  %9171 = vmatmul.mubr.bf16.gmra.mxu0 %v13560_v24  ;;  %v13641_v24 = vld [vmem:[%s18275_s1 + $0xdc0] ss:$8 sps:$4 sm:$0xff]  }
 0x2f6   : > { %18395 = vst [vmem:[#allocation4_spill] sm:$0xff] %v16538_v47  ;;  %v8673_v16 = vpop.f32.mrf.mxu1  ;;  %9364 = vmatmul.mubr.bf16.gmra.mxu1 %v13563_v54  ;;  %v16547_v40 = vadd.f32 %v8669_v14, %v8477_v41  ;;  %v8481_v43 = vadd.f32 %v8480_v30, %v18398_v9  ;;  %9180 = vmatprep.mubr.bf16.mxu0 %v13574_v63  ;;  %v18400_v63 = vld [vmem:[#allocation9_spill] sm:$0xff]  ;;  %v13572_v41 = vld [vmem:[%s14378_s17 + $0x710] ss:$144 sps:$4 sm:$0xff]  }
 0x2f7   : > { %9373 = vmatprep.mubr.bf16.mxu1 %v13577_v26  ;;  %v8482_v25 = vpop.f32.mrf.mxu0  ;;  %9495 = vmatpush2.bf16.msra.mxu0 %v13626_v23  ;;  %v13652_v26 = vld [vmem:[%s18275_s1 + $0xcb4] ss:$8 sps:$4 sm:$0xff]   ;;  %v13575_v30 = vld [vmem:[%s14378_s17 + $0x718] ss:$144 sps:$4 sm:$0xff]  }
 0x2f8   : > { %18397 = vst [vmem:[#allocation5_spill] sm:$0xff] %v16547_v40  ;;  %v8675_v29 = vpop.f32.mrf.mxu1  ;;  %9688 = vmatpush2.bf16.msra.mxu1 %v13629_v39  ;;  %v16556_v54 = vadd.f32 %v8673_v16, %v8481_v43  ;;  %v8483_v14 = vadd.f32 %v8482_v25, %v18400_v63  ;;  %9496 = vmatprep.subr.bf16.mxu0 %v13640_v53  ;;  %v13655_v39 = vld [vmem:[%s18275_s1 + $0xdb4] ss:$8 sps:$4 sm:$0xff]   ;;  %v18402_v16 = vld [vmem:[#allocation10_spill] sm:$0xff]  ;;  %v13650_v63 = vld [vmem:[%s18275_s1 + $0xcb0] ss:$8 sps:$4 sm:$0xff]  }
 0x2f9   : > { %9689 = vmatprep.subr.bf16.mxu1 %v13643_v35  ;;  %v8484_v23 = vpop.f32.mrf.mxu0  ;;  %v13589_v25 = vld [vmem:[%s14378_s17 + $0x83c] ss:$144 sps:$4 sm:$0xff]   ;;  %v13653_v40 = vld [vmem:[%s18275_s1 + $0xdb0] ss:$8 sps:$4 sm:$0xff]  }
 0x2fa   : > { %18399 = vst [vmem:[#allocation6_spill] sm:$0xff] %v16556_v54  ;;  %v8677_v61 = vpop.f32.mrf.mxu1  ;;  %v16567_v9 = vadd.f32 %v8675_v29, %v8483_v14  ;;  %v8485_v43 = vadd.f32 %v8484_v23, %v18402_v16  ;;  %v13586_v54 = vld [vmem:[%s14378_s17 + $0x834] ss:$144 sps:$4 sm:$0xff]   ;;  %v18403_v29 = vld [vmem:[#allocation11_spill] sm:$0xff] }
 0x2fb   : > { %v8486_v53 = vpop.f32.mrf.mxu0  ;;  %9497 = vmatpush2.bf16.msra.mxu0 %v13638_v33  ;;  %v13664_v23 = vld [vmem:[%s18275_s1 + $0xca4] ss:$8 sps:$4 sm:$0xff]  }
 0x2fc   : > { %18401 = vst [vmem:[#allocation7_spill] sm:$0xff] %v16567_v9  ;;  %v8679_v35 = vpop.f32.mrf.mxu1  ;;  %9690 = vmatpush2.bf16.msra.mxu1 %v13641_v24  ;;  %v16578_v47 = vadd.f32 %v8677_v61, %v8485_v43  ;;  %v8487_v14 = vadd.f32 %v8486_v53, %v18403_v29  ;;  %9498 = vmatprep.subr.bf16.mxu0 %v13652_v26  ;;  %v13667_v33 = vld [vmem:[%s18275_s1 + $0xda4] ss:$8 sps:$4 sm:$0xff]   ;;  %v18405_v61 = vld [vmem:[#allocation12_spill] sm:$0xff]  ;;  %v13662_v53 = vld [vmem:[%s18275_s1 + $0xca0] ss:$8 sps:$4 sm:$0xff]  }
 0x2fd   : > { %9691 = vmatprep.subr.bf16.mxu1 %v13655_v39  ;;  %v8490_v24 = vpop.f32.mrf.mxu0  ;;  %9181 = vmatmul.mubr.bf16.gmra.mxu0 %v13572_v41  ;;  %v13665_v41 = vld [vmem:[%s18275_s1 + $0xda0] ss:$8 sps:$4 sm:$0xff]  }
 0x2fe   : > { %v8683_v16 = vpop.f32.mrf.mxu1  ;;  %9374 = vmatmul.mubr.bf16.gmra.mxu1 %v13575_v30  ;;  %v16587_v9 = vadd.f32 %v8679_v35, %v8487_v14  ;;  %v8491_v43 = vadd.f32 %v8490_v24, %v18405_v61  ;;  %9190 = vmatprep.mubr.bf16.mxu0 %v13586_v54  ;;  %v18407_v54 = vld [vmem:[#allocation13_spill] sm:$0xff]  ;;  %v13584_v14 = vld [vmem:[%s14378_s17 + $0x830] ss:$144 sps:$4 sm:$0xff]  }
 0x2ff   : > { %9383 = vmatprep.mubr.bf16.mxu1 %v13589_v25  ;;  %v8492_v26 = vpop.f32.mrf.mxu0  ;;  %9499 = vmatpush2.bf16.msra.mxu0 %v13650_v63  ;;  %v13676_v25 = vld [vmem:[%s18275_s1 + $0xc94] ss:$8 sps:$4 sm:$0xff]   ;;  %v13587_v24 = vld [vmem:[%s14378_s17 + $0x838] ss:$144 sps:$4 sm:$0xff]  }
 0x300   : > { %18404 = vst [vmem:[#allocation8_spill] sm:$0xff] %v16587_v9  ;;  %v8685_v39 = vpop.f32.mrf.mxu1  ;;  %9692 = vmatpush2.bf16.msra.mxu1 %v13653_v40  ;;  %v16596_v30 = vadd.f32 %v8683_v16, %v8491_v43  ;;  %v8493_v35 = vadd.f32 %v8492_v26, %v18407_v54  ;;  %9500 = vmatprep.subr.bf16.mxu0 %v13664_v23  ;;  %v13679_v40 = vld [vmem:[%s18275_s1 + $0xd94] ss:$8 sps:$4 sm:$0xff]   ;;  %v13674_v54 = vld [vmem:[%s18275_s1 + $0xc90] ss:$8 sps:$4 sm:$0xff]  }
 0x301   : > { %9693 = vmatprep.subr.bf16.mxu1 %v13667_v33  ;;  %v8494_v63 = vpop.f32.mrf.mxu0  ;;  %v13598_v43 = vld [vmem:[%s14378_s17 + $0x954] ss:$144 sps:$4 sm:$0xff]   ;;  %v13601_v26 = vld [vmem:[%s14378_s17 + $0x95c] ss:$144 sps:$4 sm:$0xff]  }
 0x302   : > { %18406 = vst [vmem:[#allocation9_spill] sm:$0xff] %v16596_v30  ;;  %v8687_v29 = vpop.f32.mrf.mxu1  ;;  %v16607_v61 = vadd.f32 %v8685_v39, %v8493_v35  ;;  %v8495_v16 = vadd.f32 %v8494_v63, %v16176_v28  ;;  %v13677_v30 = vld [vmem:[%s18275_s1 + $0xd90] ss:$8 sps:$4 sm:$0xff]   ;;  %v13688_v28 = vld [vmem:[%s18275_s1 + $0xc84] ss:$8 sps:$4 sm:$0xff]  }
 0x303   : > { %v8496_v23 = vpop.f32.mrf.mxu0  ;;  %9501 = vmatpush2.bf16.msra.mxu0 %v13662_v53  ;;  %v13691_v53 = vld [vmem:[%s18275_s1 + $0xd84] ss:$8 sps:$4 sm:$0xff]  }
 0x304   : > { %v8689_v33 = vpop.f32.mrf.mxu1  ;;  %9694 = vmatpush2.bf16.msra.mxu1 %v13665_v41  ;;  %v16618_v9 = vadd.f32 %v8687_v29, %v8495_v16  ;;  %v8497_v39 = vadd.f32 %v8496_v23, %v16185_v36  ;;  %9502 = vmatprep.subr.bf16.mxu0 %v13676_v25  ;;  %v13700_v16 = vld [vmem:[%s18275_s1 + $0xe74] ss:$8 sps:$4 sm:$0xff]   ;;  %v13596_v23 = vld [vmem:[%s14378_s17 + $0x950] ss:$144 sps:$4 sm:$0xff]  }
 0x305   : > { %9695 = vmatprep.subr.bf16.mxu1 %v13679_v40  ;;  %v8500_v41 = vpop.f32.mrf.mxu0  ;;  %9191 = vmatmul.mubr.bf16.gmra.mxu0 %v13584_v14  ;;  %v13686_v40 = vld [vmem:[%s18275_s1 + $0xc80] ss:$8 sps:$4 sm:$0xff]  }
 0x306   : > { %v8693_v35 = vpop.f32.mrf.mxu1  ;;  %9384 = vmatmul.mubr.bf16.gmra.mxu1 %v13587_v24  ;;  %v16627_v63 = vadd.f32 %v8689_v33, %v8497_v39  ;;  %v8501_v29 = vadd.f32 %v8500_v41, %v16188_v27  ;;  %9200 = vmatprep.mubr.bf16.mxu0 %v13598_v43  ;;  %v13689_v14 = vld [vmem:[%s18275_s1 + $0xd80] ss:$8 sps:$4 sm:$0xff]   ;;  %v13610_v41 = vld [vmem:[%s14378_s17 + $0xa74] ss:$144 sps:$4 sm:$0xff]  }
 0x307   : > { %9393 = vmatprep.mubr.bf16.mxu1 %v13601_v26  ;;  %v8502_v36 = vpop.f32.mrf.mxu0  ;;  %9503 = vmatpush2.bf16.msra.mxu0 %v13674_v54  ;;  %v13599_v33 = vld [vmem:[%s14378_s17 + $0x958] ss:$144 sps:$4 sm:$0xff]  }
 0x308   : > { %v8695_v25 = vpop.f32.mrf.mxu1  ;;  %9696 = vmatpush2.bf16.msra.mxu1 %v13677_v30  ;;  %v16636_v24 = vadd.f32 %v8693_v35, %v8501_v29  ;;  %v8503_v27 = vadd.f32 %v8502_v36, %v16199_v42  ;;  %9504 = vmatprep.subr.bf16.mxu0 %v13688_v28  ;;  %v13703_v30 = vld [vmem:[%s18275_s1 + $0xf74] ss:$8 sps:$4 sm:$0xff]  }
 0x309   : > { %9697 = vmatprep.subr.bf16.mxu1 %v13691_v53  ;;  %v8504_v43 = vpop.f32.mrf.mxu0  ;;  %v13613_v42 = vld [vmem:[%s14378_s17 + $0xa7c] ss:$144 sps:$4 sm:$0xff]  }
 0x30a   : > { %18408 = vst [vmem:[#allocation10_spill] sm:$0xff] %v16636_v24  ;;  %v8697_v26 = vpop.f32.mrf.mxu1  ;;  %v16647_v54 = vadd.f32 %v8695_v25, %v8503_v27  ;;  %v8505_v39 = vadd.f32 %v8504_v43, %v16204_v55  ;;  %v13608_v43 = vld [vmem:[%s14378_s17 + $0xa70] ss:$144 sps:$4 sm:$0xff]  }
 0x30b   : > { %v8506_v28 = vpop.f32.mrf.mxu0  ;;  %9505 = vmatpush2.bf16.msra.mxu0 %v13686_v40 }
 0x30c   : > { %v8699_v53 = vpop.f32.mrf.mxu1  ;;  %9698 = vmatpush2.bf16.msra.mxu1 %v13689_v14  ;;  %v16652_v35 = vadd.f32 %v8697_v26, %v8505_v39  ;;  %v8507_v29 = vadd.f32 %v8506_v28, %v16207_v57  ;;  %9860 = vmatprep.subr.bf16.mxu0 %v13700_v16  ;;  %v13611_v26 = vld [vmem:[%s14378_s17 + $0xa78] ss:$144 sps:$4 sm:$0xff]   ;;  %v13622_v39 = vld [vmem:[%s14378_s17 + $0xb94] ss:$144 sps:$4 sm:$0xff]   ;;  %v13625_v28 = vld [vmem:[%s14378_s17 + $0xb9c] ss:$144 sps:$4 sm:$0xff]  }
 0x30d   : > { %10053 = vmatprep.subr.bf16.mxu1 %v13703_v30  ;;  %v8736_v36 = vpop.f32.mrf.mxu0  ;;  %9201 = vmatmul.mubr.bf16.gmra.mxu0 %v13596_v23 }
 0x30e   : > { %v8929_v24 = vpop.f32.mrf.mxu1  ;;  %9394 = vmatmul.mubr.bf16.gmra.mxu1 %v13599_v33  ;;  %v16655_v55 = vadd.f32 %v8699_v53, %v8507_v29  ;;  %v8737_v25 = vadd.f32 %v8736_v36, %v16210_v3  ;;  %9210 = vmatprep.mubr.bf16.mxu0 %v13610_v41 }
 0x30f   : > { %9403 = vmatprep.mubr.bf16.mxu1 %v13613_v42  ;;  %v8738_v40 = vpop.f32.mrf.mxu0 }
 0x310   : > { %v8931_v14 = vpop.f32.mrf.mxu1  ;;  %v16658_v27 = vadd.f32 %v8929_v24, %v8737_v25  ;;  %v8739_v57 = vadd.f32 %v8738_v40, %v16215_v17 }
 0x311   : > { %v8740_v16 = vpop.f32.mrf.mxu0 }
 0x312   : > { %v8933_v30 = vpop.f32.mrf.mxu1  ;;  %v16663_v23 = vadd.f32 %v8931_v14, %v8739_v57  ;;  %v8741_v33 = vadd.f32 %v8740_v16, %v16220_v2  ;;  %v13620_v16 = vld [vmem:[%s14378_s17 + $0xb90] ss:$144 sps:$4 sm:$0xff]  }
 0x313   : > { %v8742_v53 = vpop.f32.mrf.mxu0 }
 0x314   : > { %v8935_v3 = vpop.f32.mrf.mxu1  ;;  %v16668_v41 = vadd.f32 %v8933_v30, %v8741_v33  ;;  %v8743_v24 = vadd.f32 %v8742_v53, %v16223_v38  ;;  %v13623_v30 = vld [vmem:[%s14378_s17 + $0xb98] ss:$144 sps:$4 sm:$0xff]   ;;  %v13634_v33 = vld [vmem:[%s14378_s17 + $0xcb4] ss:$144 sps:$4 sm:$0xff]   ;;  %v13637_v53 = vld [vmem:[%s14378_s17 + $0xcbc] ss:$144 sps:$4 sm:$0xff]  }
 0x315   : > { %v8746_v42 = vpop.f32.mrf.mxu0  ;;  %9211 = vmatmul.mubr.bf16.gmra.mxu0 %v13608_v43 }
 0x316   : > { %v8939_v17 = vpop.f32.mrf.mxu1  ;;  %9404 = vmatmul.mubr.bf16.gmra.mxu1 %v13611_v26  ;;  %v16671_v29 = vadd.f32 %v8935_v3, %v8743_v24  ;;  %v8747_v2 = vadd.f32 %v8746_v42, %v16226_v8  ;;  %9220 = vmatprep.mubr.bf16.mxu0 %v13622_v39 }
 0x317   : > { %9413 = vmatprep.mubr.bf16.mxu1 %v13625_v28  ;;  %v8748_v36 = vpop.f32.mrf.mxu0 }
 0x318   : > { %v8941_v25 = vpop.f32.mrf.mxu1  ;;  %v16674_v40 = vadd.f32 %v8939_v17, %v8747_v2  ;;  %v8749_v14 = vadd.f32 %v8748_v36, %v16231_v20 }
 0x319   : > { %v8750_v38 = vpop.f32.mrf.mxu0 }
 0x31a   : > { %v8943_v57 = vpop.f32.mrf.mxu1  ;;  %v16679_v43 = vadd.f32 %v8941_v25, %v8749_v14  ;;  %v8751_v26 = vadd.f32 %v8750_v38, %v16236_v13  ;;  %v13632_v38 = vld [vmem:[%s14378_s17 + $0xcb0] ss:$144 sps:$4 sm:$0xff]  }
 0x31b   : > { %v8752_v3 = vpop.f32.mrf.mxu0 }
 0x31c   : > { %v8945_v8 = vpop.f32.mrf.mxu1  ;;  %v16684_v39 = vadd.f32 %v8943_v57, %v8751_v26  ;;  %v8753_v28 = vadd.f32 %v8752_v3, %v16239_v52  ;;  %v13635_v57 = vld [vmem:[%s14378_s17 + $0xcb8] ss:$144 sps:$4 sm:$0xff]   ;;  %v13646_v26 = vld [vmem:[%s14378_s17 + $0xdd4] ss:$144 sps:$4 sm:$0xff]   ;;  %v13649_v3 = vld [vmem:[%s14378_s17 + $0xddc] ss:$144 sps:$4 sm:$0xff]  }
 0x31d   : > { %v8756_v24 = vpop.f32.mrf.mxu0  ;;  %9221 = vmatmul.mubr.bf16.gmra.mxu0 %v13620_v16 }
 0x31e   : > { %v8949_v20 = vpop.f32.mrf.mxu1  ;;  %9414 = vmatmul.mubr.bf16.gmra.mxu1 %v13623_v30  ;;  %v16687_v42 = vadd.f32 %v8945_v8, %v8753_v28  ;;  %v8757_v13 = vadd.f32 %v8756_v24, %v16242_v50  ;;  %9230 = vmatprep.mubr.bf16.mxu0 %v13634_v33 }
 0x31f   : > { %9423 = vmatprep.mubr.bf16.mxu1 %v13637_v53  ;;  %v8758_v17 = vpop.f32.mrf.mxu0 }
 0x320   : > { %v8951_v2 = vpop.f32.mrf.mxu1  ;;  %v16690_v36 = vadd.f32 %v8949_v20, %v8757_v13  ;;  %v8759_v25 = vadd.f32 %v8758_v17, %v16247_v31 }
 0x321   : > { %v8760_v52 = vpop.f32.mrf.mxu0 }
 0x322   : > { %v8953_v14 = vpop.f32.mrf.mxu1  ;;  %v16695_v16 = vadd.f32 %v8951_v2, %v8759_v25  ;;  %v8761_v30 = vadd.f32 %v8760_v52, %v16252_v34  ;;  %v13644_v52 = vld [vmem:[%s14378_s17 + $0xdd0] ss:$144 sps:$4 sm:$0xff]  }
 0x323   : > { %v8762_v8 = vpop.f32.mrf.mxu0 }
 0x324   : > { %v8955_v50 = vpop.f32.mrf.mxu1  ;;  %v16700_v33 = vadd.f32 %v8953_v14, %v8761_v30  ;;  %v8763_v53 = vadd.f32 %v8762_v8, %v16255_v58  ;;  %v13647_v14 = vld [vmem:[%s14378_s17 + $0xdd8] ss:$144 sps:$4 sm:$0xff]   ;;  %v13658_v30 = vld [vmem:[%s14378_s17 + $0xef4] ss:$144 sps:$4 sm:$0xff]   ;;  %v13661_v8 = vld [vmem:[%s14378_s17 + $0xefc] ss:$144 sps:$4 sm:$0xff]  }
 0x325   : > { %v8766_v28 = vpop.f32.mrf.mxu0  ;;  %9231 = vmatmul.mubr.bf16.gmra.mxu0 %v13632_v38 }
 0x326   : > { %v8959_v31 = vpop.f32.mrf.mxu1  ;;  %9424 = vmatmul.mubr.bf16.gmra.mxu1 %v13635_v57  ;;  %v16703_v24 = vadd.f32 %v8955_v50, %v8763_v53  ;;  %v8767_v34 = vadd.f32 %v8766_v28, %v16258_v60  ;;  %9240 = vmatprep.mubr.bf16.mxu0 %v13646_v26 }
 0x327   : > { %9433 = vmatprep.mubr.bf16.mxu1 %v13649_v3  ;;  %v8768_v20 = vpop.f32.mrf.mxu0 }
 0x328   : > { %v8961_v13 = vpop.f32.mrf.mxu1  ;;  %v16706_v17 = vadd.f32 %v8959_v31, %v8767_v34  ;;  %v8769_v2 = vadd.f32 %v8768_v20, %v16263_v0 }
 0x329   : > { %v8770_v58 = vpop.f32.mrf.mxu0 }
 0x32a   : > { %v8963_v25 = vpop.f32.mrf.mxu1  ;;  %v16711_v38 = vadd.f32 %v8961_v13, %v8769_v2  ;;  %v8771_v57 = vadd.f32 %v8770_v58, %v16268_v7  ;;  %v13656_v58 = vld [vmem:[%s14378_s17 + $0xef0] ss:$144 sps:$4 sm:$0xff]  }
 0x32b   : > { %v8772_v50 = vpop.f32.mrf.mxu0 }
 0x32c   : > { %v8965_v60 = vpop.f32.mrf.mxu1  ;;  %v16716_v26 = vadd.f32 %v8963_v25, %v8771_v57  ;;  %v8773_v3 = vadd.f32 %v8772_v50, %v16271_v11  ;;  %v13659_v25 = vld [vmem:[%s14378_s17 + $0xef8] ss:$144 sps:$4 sm:$0xff]   ;;  %v13670_v57 = vld [vmem:[%s14378_s17 + $0x1014] ss:$144 sps:$4 sm:$0xff]   ;;  %v13673_v50 = vld [vmem:[%s14378_s17 + $0x101c] ss:$144 sps:$4 sm:$0xff]  }
 0x32d   : > { %v8776_v53 = vpop.f32.mrf.mxu0  ;;  %9241 = vmatmul.mubr.bf16.gmra.mxu0 %v13644_v52 }
 0x32e   : > { %v8969_v0 = vpop.f32.mrf.mxu1  ;;  %9434 = vmatmul.mubr.bf16.gmra.mxu1 %v13647_v14  ;;  %v16719_v28 = vadd.f32 %v8965_v60, %v8773_v3  ;;  %v8777_v7 = vadd.f32 %v8776_v53, %v16274_v59  ;;  %9250 = vmatprep.mubr.bf16.mxu0 %v13658_v30 }
 0x32f   : > { %9443 = vmatprep.mubr.bf16.mxu1 %v13661_v8  ;;  %v8778_v31 = vpop.f32.mrf.mxu0 }
 0x330   : > { %v8971_v34 = vpop.f32.mrf.mxu1  ;;  %v16722_v20 = vadd.f32 %v8969_v0, %v8777_v7  ;;  %v8779_v13 = vadd.f32 %v8778_v31, %v16279_v6 }
 0x331   : > { %v8780_v11 = vpop.f32.mrf.mxu0 }
 0x332   : > { %v8973_v2 = vpop.f32.mrf.mxu1  ;;  %v16727_v52 = vadd.f32 %v8971_v34, %v8779_v13  ;;  %v8781_v14 = vadd.f32 %v8780_v11, %v16284_v32  ;;  %v13668_v11 = vld [vmem:[%s14378_s17 + $0x1010] ss:$144 sps:$4 sm:$0xff]  }
 0x333   : > { %v8782_v60 = vpop.f32.mrf.mxu0 }
 0x334   : > { %v8975_v59 = vpop.f32.mrf.mxu1  ;;  %v16732_v30 = vadd.f32 %v8973_v2, %v8781_v14  ;;  %v8783_v8 = vadd.f32 %v8782_v60, %v16287_v56  ;;  %v13671_v2 = vld [vmem:[%s14378_s17 + $0x1018] ss:$144 sps:$4 sm:$0xff]   ;;  %v13682_v14 = vld [vmem:[%s14378_s17 + $0x1134] ss:$144 sps:$4 sm:$0xff]   ;;  %v13685_v60 = vld [vmem:[%s14378_s17 + $0x113c] ss:$144 sps:$4 sm:$0xff]  }
 0x335   : > { %v8786_v3 = vpop.f32.mrf.mxu0  ;;  %9251 = vmatmul.mubr.bf16.gmra.mxu0 %v13656_v58 }
 0x336   : > { %v8979_v6 = vpop.f32.mrf.mxu1  ;;  %9444 = vmatmul.mubr.bf16.gmra.mxu1 %v13659_v25  ;;  %v16735_v53 = vadd.f32 %v8975_v59, %v8783_v8  ;;  %v8787_v32 = vadd.f32 %v8786_v3, %v16290_v22  ;;  %9260 = vmatprep.mubr.bf16.mxu0 %v13670_v57 }
 0x337   : > { %9453 = vmatprep.mubr.bf16.mxu1 %v13673_v50  ;;  %v8788_v0 = vpop.f32.mrf.mxu0  ;;  %v18411_v50 = vld [vmem:[#allocation14_spill] sm:$0xff] }
 0x338   : > { %v8981_v7 = vpop.f32.mrf.mxu1  ;;  %v16738_v31 = vadd.f32 %v8979_v6, %v8787_v32  ;;  %v8789_v34 = vadd.f32 %v8788_v0, %v16295_v10  ;;  %v18413_v32 = vld [vmem:[#allocation15_spill] sm:$0xff] }
 0x339   : > { %v8790_v56 = vpop.f32.mrf.mxu0 }
 0x33a   : > { %v8983_v13 = vpop.f32.mrf.mxu1  ;;  %v16743_v58 = vadd.f32 %v8981_v7, %v8789_v34  ;;  %v8791_v25 = vadd.f32 %v8790_v56, %v16300_v1  ;;  %v18415_v56 = vld [vmem:[#allocation16_spill] sm:$0xff] }
 0x33b   : > { %v8792_v59 = vpop.f32.mrf.mxu0 }
 0x33c   : > { %18409 = vst [vmem:[#allocation11_spill] sm:$0xff] %v16743_v58  ;;  %v8985_v22 = vpop.f32.mrf.mxu1  ;;  %v16748_v57 = vadd.f32 %v8983_v13, %v8791_v25  ;;  %v8793_v8 = vadd.f32 %v8792_v59, %v18411_v50  ;;  %v13680_v50 = vld [vmem:[%s14378_s17 + $0x1130] ss:$144 sps:$4 sm:$0xff]  }
 0x33d   : > { %v8796_v3 = vpop.f32.mrf.mxu0  ;;  %9261 = vmatmul.mubr.bf16.gmra.mxu0 %v13668_v11 }
 0x33e   : > { %18410 = vst [vmem:[#allocation12_spill] sm:$0xff] %v16748_v57  ;;  %v8989_v10 = vpop.f32.mrf.mxu1  ;;  %9454 = vmatmul.mubr.bf16.gmra.mxu1 %v13671_v2  ;;  %v16751_v6 = vadd.f32 %v8985_v22, %v8793_v8  ;;  %v8797_v1 = vadd.f32 %v8796_v3, %v18413_v32  ;;  %9270 = vmatprep.mubr.bf16.mxu0 %v13682_v14  ;;  %v13683_v57 = vld [vmem:[%s14378_s17 + $0x1138] ss:$144 sps:$4 sm:$0xff]   ;;  %v13694_v22 = vld [vmem:[%s14378_s17 + $0x64] ss:$144 sps:$4 sm:$0xff]  }
 0x33f   : > { %9463 = vmatprep.mubr.bf16.mxu1 %v13685_v60  ;;  %v8798_v0 = vpop.f32.mrf.mxu0  ;;  %v18417_v2 = vld [vmem:[#allocation17_spill] sm:$0xff]  ;;  %v18419_v60 = vld [vmem:[#allocation18_spill] sm:$0xff] }
 0x340   : > { %18412 = vst [vmem:[#allocation13_spill] sm:$0xff] %v16751_v6  ;;  %v8991_v7 = vpop.f32.mrf.mxu1  ;;  %v16754_v34 = vadd.f32 %v8989_v10, %v8797_v1  ;;  %v8799_v13 = vadd.f32 %v8798_v0, %v18415_v56  ;;  %v13697_v8 = vld [vmem:[%s14378_s17 + $0x6c] ss:$144 sps:$4 sm:$0xff]  }
 0x341   : > { %v8800_v25 = vpop.f32.mrf.mxu0 }
 0x342   : > { %18414 = vst [vmem:[#allocation14_spill] sm:$0xff] %v16754_v34  ;;  %v8993_v59 = vpop.f32.mrf.mxu1  ;;  %v16759_v11 = vadd.f32 %v8991_v7, %v8799_v13  ;;  %v8801_v58 = vadd.f32 %v8800_v25, %v18417_v2  ;;  %v18421_v7 = vld [vmem:[#allocation19_spill] sm:$0xff] }
 0x343   : > { %v8802_v6 = vpop.f32.mrf.mxu0 }
 0x344   : > { %18416 = vst [vmem:[#allocation15_spill] sm:$0xff] %v16759_v11  ;;  %v8995_v3 = vpop.f32.mrf.mxu1  ;;  %v16764_v14 = vadd.f32 %v8993_v59, %v8801_v58  ;;  %v8803_v10 = vadd.f32 %v8802_v6, %v18419_v60  ;;  %v18423_v59 = vld [vmem:[#allocation20_spill] sm:$0xff]  ;;  %v13695_v11 = vld [vmem:[%s14378_s17 + $0x68] ss:$144 sps:$4 sm:$0xff]  }
 0x345   : > { %v8806_v32 = vpop.f32.mrf.mxu0  ;;  %9271 = vmatmul.mubr.bf16.gmra.mxu0 %v13680_v50 }
 0x346   : > { %18418 = vst [vmem:[#allocation16_spill] sm:$0xff] %v16764_v14  ;;  %v8999_v1 = vpop.f32.mrf.mxu1  ;;  %9464 = vmatmul.mubr.bf16.gmra.mxu1 %v13683_v57  ;;  %v16767_v0 = vadd.f32 %v8995_v3, %v8803_v10  ;;  %v8807_v56 = vadd.f32 %v8806_v32, %v18421_v7  ;;  %9506 = vmatprep.mubr.bf16.mxu0 %v13694_v22  ;;  %v13692_v14 = vld [vmem:[%s14378_s17 + $0x60] ss:$144 sps:$4 sm:$0xff]   ;;  %v18425_v57 = vld [vmem:[#allocation21_spill] sm:$0xff] }
 0x347   : > { %9699 = vmatprep.mubr.bf16.mxu1 %v13697_v8  ;;  %v8808_v13 = vpop.f32.mrf.mxu0  ;;  %v13698_v22 = vld [vmem:[%s18275_s1 + $0xe70] ss:$8 sps:$4 sm:$0xff]   ;;  %v13709_v7 = vld [vmem:[%s14378_s17 + $0x18c] ss:$144 sps:$4 sm:$0xff]  }
 0x348   : > { %18420 = vst [vmem:[#allocation17_spill] sm:$0xff] %v16767_v0  ;;  %v9001_v25 = vpop.f32.mrf.mxu1  ;;  %v16770_v58 = vadd.f32 %v8999_v1, %v8807_v56  ;;  %v8809_v2 = vadd.f32 %v8808_v13, %v18423_v59  ;;  %v13701_v8 = vld [vmem:[%s18275_s1 + $0xf70] ss:$8 sps:$4 sm:$0xff]   ;;  %v13706_v1 = vld [vmem:[%s14378_s17 + $0x184] ss:$144 sps:$4 sm:$0xff]  }
 0x349   : > { %v8810_v6 = vpop.f32.mrf.mxu0  ;;  %v18427_v13 = vld [vmem:[#allocation22_spill] sm:$0xff] }
 0x34a   : > { %18422 = vst [vmem:[#allocation18_spill] sm:$0xff] %v16770_v58  ;;  %v9003_v60 = vpop.f32.mrf.mxu1  ;;  %v16775_v50 = vadd.f32 %v9001_v25, %v8809_v2  ;;  %v8811_v3 = vadd.f32 %v8810_v6, %v18425_v57  ;;  %v13712_v25 = vld [vmem:[%s18275_s1 + $0xe64] ss:$8 sps:$4 sm:$0xff]  }
 0x34b   : > { %v8812_v10 = vpop.f32.mrf.mxu0  ;;  %v13715_v2 = vld [vmem:[%s18275_s1 + $0xf64] ss:$8 sps:$4 sm:$0xff]  }
 0x34c   : > { %18424 = vst [vmem:[#allocation19_spill] sm:$0xff] %v16775_v50  ;;  %v9005_v32 = vpop.f32.mrf.mxu1  ;;  %v16786_v56 = vadd.f32 %v9003_v60, %v8811_v3  ;;  %v8813_v59 = vadd.f32 %v8812_v10, %v18427_v13  ;;  %v13710_v60 = vld [vmem:[%s18275_s1 + $0xe60] ss:$8 sps:$4 sm:$0xff]  }
 0x34d   : > { %v8816_v6 = vpop.f32.mrf.mxu0  ;;  %9507 = vmatmul.mubr.bf16.vlgmr.msra.gmra.mxu0 %v13692_v14  ;;  %v13713_v3 = vld [vmem:[%s18275_s1 + $0xf60] ss:$8 sps:$4 sm:$0xff]  }
 0x34e   : > { %18426 = vst [vmem:[#allocation20_spill] sm:$0xff] %v16786_v56  ;;  %v9009_v57 = vpop.f32.mrf.mxu1  ;;  %9700 = vmatmul.mubr.bf16.vlgmr.msra.gmra.mxu1 %v13695_v11  ;;  %v16795_v50 = vadd.f32 %v9005_v32, %v8813_v59  ;;  %v8817_v58 = vadd.f32 %v8816_v6, %v16362_v4  ;;  %9861 = vmatpush1.bf16.msra.mxu0 %v13698_v22  ;;  %v13724_v4 = vld [vmem:[%s18275_s1 + $0xe54] ss:$8 sps:$4 sm:$0xff]   ;;  %v13707_v59 = vld [vmem:[%s14378_s17 + $0x188] ss:$144 sps:$4 sm:$0xff]  }
 0x34f   : > { %10054 = vmatpush1.bf16.msra.mxu1 %v13701_v8  ;;  %v8818_v10 = vpop.f32.mrf.mxu0  ;;  %9516 = vmatprep.mubr.bf16.mxu0 %v13706_v1  ;;  %v13727_v11 = vld [vmem:[%s18275_s1 + $0xf54] ss:$8 sps:$4 sm:$0xff]   ;;  %v13704_v1 = vld [vmem:[%s14378_s17 + $0x180] ss:$144 sps:$4 sm:$0xff]  }
 0x350   : > { %18428 = vst [vmem:[#allocation21_spill] sm:$0xff] %v16795_v50  ;;  %v9011_v13 = vpop.f32.mrf.mxu1  ;;  %9709 = vmatprep.mubr.bf16.mxu1 %v13709_v7  ;;  %v16810_v14 = vadd.f32 %v9009_v57, %v8817_v58  ;;  %v8819_v22 = vadd.f32 %v8818_v10, %v16367_v49  ;;  %9862 = vmatprep.subr.bf16.mxu0 %v13712_v25  ;;  %v13718_v50 = vld [vmem:[%s14378_s17 + $0x2a4] ss:$144 sps:$4 sm:$0xff]   ;;  %v13721_v56 = vld [vmem:[%s14378_s17 + $0x2ac] ss:$144 sps:$4 sm:$0xff]  }
 0x351   : > { %10055 = vmatprep.subr.bf16.mxu1 %v13715_v2  ;;  %v8820_v8 = vpop.f32.mrf.mxu0  ;;  %v13722_v49 = vld [vmem:[%s18275_s1 + $0xe50] ss:$8 sps:$4 sm:$0xff]   ;;  %v13736_v2 = vld [vmem:[%s18275_s1 + $0xe44] ss:$8 sps:$4 sm:$0xff]  }
 0x352   : > { %v9013_v32 = vpop.f32.mrf.mxu1  ;;  %v16815_v7 = vadd.f32 %v9011_v13, %v8819_v22  ;;  %v8821_v6 = vadd.f32 %v8820_v8, %v16378_v51  ;;  %9863 = vmatpush1.bf16.msra.mxu0 %v13710_v60  ;;  %v13725_v58 = vld [vmem:[%s18275_s1 + $0xf50] ss:$8 sps:$4 sm:$0xff]   ;;  %v13739_v57 = vld [vmem:[%s18275_s1 + $0xf44] ss:$8 sps:$4 sm:$0xff]  }
 0x353   : > { %10056 = vmatpush1.bf16.msra.mxu1 %v13713_v3  ;;  %v8822_v0 = vpop.f32.mrf.mxu0  ;;  %9864 = vmatprep.subr.bf16.mxu0 %v13724_v4  ;;  %v13734_v4 = vld [vmem:[%s18275_s1 + $0xe40] ss:$8 sps:$4 sm:$0xff]  }
 0x354   : > { %v9015_v34 = vpop.f32.mrf.mxu1  ;;  %10057 = vmatprep.subr.bf16.mxu1 %v13727_v11  ;;  %v16826_v25 = vadd.f32 %v9013_v32, %v8821_v6  ;;  %v8823_v51 = vadd.f32 %v8822_v0, %v16387_v21  ;;  %v13716_v32 = vld [vmem:[%s14378_s17 + $0x2a0] ss:$144 sps:$4 sm:$0xff]  }
 0x355   : > { %v8826_v60 = vpop.f32.mrf.mxu0  ;;  %9517 = vmatmul.mubr.bf16.gmra.mxu0 %v13704_v1  ;;  %v13719_v1 = vld [vmem:[%s14378_s17 + $0x2a8] ss:$144 sps:$4 sm:$0xff]  }
 0x356   : > { %v9019_v3 = vpop.f32.mrf.mxu1  ;;  %9710 = vmatmul.mubr.bf16.gmra.mxu1 %v13707_v59  ;;  %v16835_v10 = vadd.f32 %v9015_v34, %v8823_v51  ;;  %v8827_v13 = vadd.f32 %v8826_v60, %v16396_v44  ;;  %9526 = vmatprep.mubr.bf16.mxu0 %v13718_v50  ;;  %v13737_v34 = vld [vmem:[%s18275_s1 + $0xf40] ss:$8 sps:$4 sm:$0xff]   ;;  %v13748_v50 = vld [vmem:[%s18275_s1 + $0xe34] ss:$8 sps:$4 sm:$0xff]  }
 0x357   : > { %9719 = vmatprep.mubr.bf16.mxu1 %v13721_v56  ;;  %v8828_v21 = vpop.f32.mrf.mxu0  ;;  %9865 = vmatpush1.bf16.msra.mxu0 %v13722_v49  ;;  %v13751_v56 = vld [vmem:[%s18275_s1 + $0xf34] ss:$8 sps:$4 sm:$0xff]  }
 0x358   : > { %v9021_v0 = vpop.f32.mrf.mxu1  ;;  %10058 = vmatpush1.bf16.msra.mxu1 %v13725_v58  ;;  %v16844_v11 = vadd.f32 %v9019_v3, %v8827_v13  ;;  %v8829_v44 = vadd.f32 %v8828_v21, %v16407_v62  ;;  %9866 = vmatprep.subr.bf16.mxu0 %v13736_v2  ;;  %v13730_v49 = vld [vmem:[%s14378_s17 + $0x3c4] ss:$144 sps:$4 sm:$0xff]   ;;  %v13733_v62 = vld [vmem:[%s14378_s17 + $0x3cc] ss:$144 sps:$4 sm:$0xff]   ;;  %v13746_v2 = vld [vmem:[%s18275_s1 + $0xe30] ss:$8 sps:$4 sm:$0xff]  }
 0x359   : > { %10059 = vmatprep.subr.bf16.mxu1 %v13739_v57  ;;  %v8830_v22 = vpop.f32.mrf.mxu0  ;;  %v13749_v57 = vld [vmem:[%s18275_s1 + $0xf30] ss:$8 sps:$4 sm:$0xff]   ;;  %v13763_v13 = vld [vmem:[%s18275_s1 + $0xf24] ss:$8 sps:$4 sm:$0xff]  }
 0x35a   : > { %v9023_v8 = vpop.f32.mrf.mxu1  ;;  %v16855_v59 = vadd.f32 %v9021_v0, %v8829_v44  ;;  %v8831_v6 = vadd.f32 %v8830_v22, %v16418_v37  ;;  %v13760_v37 = vld [vmem:[%s18275_s1 + $0xe24] ss:$8 sps:$4 sm:$0xff]  }
 0x35b   : > { %v8832_v58 = vpop.f32.mrf.mxu0  ;;  %9867 = vmatpush1.bf16.msra.mxu0 %v13734_v4 }
 0x35c   : > { %v9025_v51 = vpop.f32.mrf.mxu1  ;;  %10060 = vmatpush1.bf16.msra.mxu1 %v13737_v34  ;;  %v16866_v60 = vadd.f32 %v9023_v8, %v8831_v6  ;;  %v8833_v3 = vadd.f32 %v8832_v58, %v16427_v15  ;;  %9868 = vmatprep.subr.bf16.mxu0 %v13748_v50  ;;  %v13758_v50 = vld [vmem:[%s18275_s1 + $0xe20] ss:$8 sps:$4 sm:$0xff]   ;;  %v13772_v8 = vld [vmem:[%s18275_s1 + $0xe14] ss:$8 sps:$4 sm:$0xff]  }
 0x35d   : > { %10061 = vmatprep.subr.bf16.mxu1 %v13751_v56  ;;  %v8836_v21 = vpop.f32.mrf.mxu0  ;;  %9527 = vmatmul.mubr.bf16.gmra.mxu0 %v13716_v32  ;;  %v13761_v56 = vld [vmem:[%s18275_s1 + $0xf20] ss:$8 sps:$4 sm:$0xff]   ;;  %v13775_v32 = vld [vmem:[%s18275_s1 + $0xf14] ss:$8 sps:$4 sm:$0xff]  }
 0x35e   : > { %v9029_v0 = vpop.f32.mrf.mxu1  ;;  %9720 = vmatmul.mubr.bf16.gmra.mxu1 %v13719_v1  ;;  %v16875_v4 = vadd.f32 %v9025_v51, %v8833_v3  ;;  %v8837_v34 = vadd.f32 %v8836_v21, %v16436_v5  ;;  %9536 = vmatprep.mubr.bf16.mxu0 %v13730_v49  ;;  %v13728_v49 = vld [vmem:[%s14378_s17 + $0x3c0] ss:$144 sps:$4 sm:$0xff]  }
 0x35f   : > { %9729 = vmatprep.mubr.bf16.mxu1 %v13733_v62  ;;  %v8838_v15 = vpop.f32.mrf.mxu0  ;;  %9869 = vmatpush1.bf16.msra.mxu0 %v13746_v2  ;;  %v13731_v62 = vld [vmem:[%s14378_s17 + $0x3c8] ss:$144 sps:$4 sm:$0xff]   ;;  %v13742_v2 = vld [vmem:[%s14378_s17 + $0x4e4] ss:$144 sps:$4 sm:$0xff]  }
 0x360   : > { %v9031_v44 = vpop.f32.mrf.mxu1  ;;  %10062 = vmatpush1.bf16.msra.mxu1 %v13749_v57  ;;  %v16884_v22 = vadd.f32 %v9029_v0, %v8837_v34  ;;  %v8839_v5 = vadd.f32 %v8838_v15, %v16447_v46  ;;  %9870 = vmatprep.subr.bf16.mxu0 %v13760_v37  ;;  %v13745_v46 = vld [vmem:[%s14378_s17 + $0x4ec] ss:$144 sps:$4 sm:$0xff]   ;;  %v13770_v37 = vld [vmem:[%s18275_s1 + $0xe10] ss:$8 sps:$4 sm:$0xff]  }
 0x361   : > { %10063 = vmatprep.subr.bf16.mxu1 %v13763_v13  ;;  %v8840_v1 = vpop.f32.mrf.mxu0  ;;  %v13773_v13 = vld [vmem:[%s18275_s1 + $0xf10] ss:$8 sps:$4 sm:$0xff]   ;;  %v13787_v34 = vld [vmem:[%s18275_s1 + $0xf04] ss:$8 sps:$4 sm:$0xff]  }
 0x362   : > { %v9033_v6 = vpop.f32.mrf.mxu1  ;;  %v16895_v58 = vadd.f32 %v9031_v44, %v8839_v5  ;;  %v8841_v51 = vadd.f32 %v8840_v1, %v16458_v18  ;;  %v13784_v18 = vld [vmem:[%s18275_s1 + $0xe04] ss:$8 sps:$4 sm:$0xff]  }
 0x363   : > { %v8842_v57 = vpop.f32.mrf.mxu0  ;;  %9871 = vmatpush1.bf16.msra.mxu0 %v13758_v50 }
 0x364   : > { %v9035_v3 = vpop.f32.mrf.mxu1  ;;  %10064 = vmatpush1.bf16.msra.mxu1 %v13761_v56  ;;  %v16906_v21 = vadd.f32 %v9033_v6, %v8841_v51  ;;  %v8843_v0 = vadd.f32 %v8842_v57, %v16467_v19  ;;  %9872 = vmatprep.subr.bf16.mxu0 %v13772_v8  ;;  %v13782_v8 = vld [vmem:[%s18275_s1 + $0xe00] ss:$8 sps:$4 sm:$0xff]   ;;  %v13796_v6 = vld [vmem:[%s18275_s1 + $0xef4] ss:$8 sps:$4 sm:$0xff]  }
 0x365   : > { %10065 = vmatprep.subr.bf16.mxu1 %v13775_v32  ;;  %v8846_v15 = vpop.f32.mrf.mxu0  ;;  %9537 = vmatmul.mubr.bf16.gmra.mxu0 %v13728_v49  ;;  %v13785_v32 = vld [vmem:[%s18275_s1 + $0xf00] ss:$8 sps:$4 sm:$0xff]   ;;  %v13799_v49 = vld [vmem:[%s18275_s1 + $0xff4] ss:$8 sps:$4 sm:$0xff]  }
 0x366   : > { %v9039_v44 = vpop.f32.mrf.mxu1  ;;  %9730 = vmatmul.mubr.bf16.gmra.mxu1 %v13731_v62  ;;  %v16915_v50 = vadd.f32 %v9035_v3, %v8843_v0  ;;  %v8847_v56 = vadd.f32 %v8846_v15, %v16476_v45  ;;  %9546 = vmatprep.mubr.bf16.mxu0 %v13742_v2  ;;  %v13740_v2 = vld [vmem:[%s14378_s17 + $0x4e0] ss:$144 sps:$4 sm:$0xff]  }
 0x367   : > { %9739 = vmatprep.mubr.bf16.mxu1 %v13745_v46  ;;  %v8848_v19 = vpop.f32.mrf.mxu0  ;;  %9873 = vmatpush1.bf16.msra.mxu0 %v13770_v37  ;;  %v13743_v46 = vld [vmem:[%s14378_s17 + $0x4e8] ss:$144 sps:$4 sm:$0xff]   ;;  %v13754_v37 = vld [vmem:[%s14378_s17 + $0x604] ss:$144 sps:$4 sm:$0xff]  }
 0x368   : > { %v9041_v5 = vpop.f32.mrf.mxu1  ;;  %10066 = vmatpush1.bf16.msra.mxu1 %v13773_v13  ;;  %v16924_v1 = vadd.f32 %v9039_v44, %v8847_v56  ;;  %v8849_v45 = vadd.f32 %v8848_v19, %v16487_v12  ;;  %9874 = vmatprep.subr.bf16.mxu0 %v13784_v18  ;;  %v13757_v12 = vld [vmem:[%s14378_s17 + $0x60c] ss:$144 sps:$4 sm:$0xff]   ;;  %v13794_v18 = vld [vmem:[%s18275_s1 + $0xef0] ss:$8 sps:$4 sm:$0xff]  }
 0x369   : > { %10067 = vmatprep.subr.bf16.mxu1 %v13787_v34  ;;  %v8850_v62 = vpop.f32.mrf.mxu0  ;;  %v13797_v34 = vld [vmem:[%s18275_s1 + $0xff0] ss:$8 sps:$4 sm:$0xff]   ;;  %v18429_v44 = vld [vmem:[#allocation23_spill] sm:$0xff] }
 0x36a   : > { %v9043_v51 = vpop.f32.mrf.mxu1  ;;  %v16935_v57 = vadd.f32 %v9041_v5, %v8849_v45  ;;  %v8851_v3 = vadd.f32 %v8850_v62, %v16498_v48  ;;  %v13808_v48 = vld [vmem:[%s18275_s1 + $0xee4] ss:$8 sps:$4 sm:$0xff]  }
 0x36b   : > { %v8852_v13 = vpop.f32.mrf.mxu0  ;;  %9875 = vmatpush1.bf16.msra.mxu0 %v13782_v8  ;;  %v13811_v19 = vld [vmem:[%s18275_s1 + $0xfe4] ss:$8 sps:$4 sm:$0xff]  }
 0x36c   : > { %v9045_v0 = vpop.f32.mrf.mxu1  ;;  %10068 = vmatpush1.bf16.msra.mxu1 %v13785_v32  ;;  %v16946_v15 = vadd.f32 %v9043_v51, %v8851_v3  ;;  %v8853_v56 = vadd.f32 %v8852_v13, %v18429_v44  ;;  %9876 = vmatprep.subr.bf16.mxu0 %v13796_v6  ;;  %v18430_v45 = vld [vmem:[#allocation2_spill] sm:$0xff]  ;;  %v18432_v3 = vld [vmem:[#allocation3_spill] sm:$0xff]  ;;  %v13823_v13 = vld [vmem:[%s18275_s1 + $0xfd4] ss:$8 sps:$4 sm:$0xff]  }
 0x36d   : > { %10069 = vmatprep.subr.bf16.mxu1 %v13799_v49  ;;  %v8856_v5 = vpop.f32.mrf.mxu0  ;;  %9547 = vmatmul.mubr.bf16.gmra.mxu0 %v13740_v2  ;;  %v13806_v51 = vld [vmem:[%s18275_s1 + $0xee0] ss:$8 sps:$4 sm:$0xff]  }
 0x36e   : > { %v9049_v8 = vpop.f32.mrf.mxu1  ;;  %9740 = vmatmul.mubr.bf16.gmra.mxu1 %v13743_v46  ;;  %v16955_v32 = vadd.f32 %v9045_v0, %v8853_v56  ;;  %v8857_v62 = vadd.f32 %v8856_v5, %v18430_v45  ;;  %9556 = vmatprep.mubr.bf16.mxu0 %v13754_v37  ;;  %v13809_v2 = vld [vmem:[%s18275_s1 + $0xfe0] ss:$8 sps:$4 sm:$0xff]   ;;  %v18434_v5 = vld [vmem:[#allocation4_spill] sm:$0xff] }
 0x36f   : > { %9749 = vmatprep.mubr.bf16.mxu1 %v13757_v12  ;;  %v8858_v6 = vpop.f32.mrf.mxu0  ;;  %9877 = vmatpush2.bf16.msra.mxu0 %v13794_v18  ;;  %v13820_v12 = vld [vmem:[%s18275_s1 + $0xed4] ss:$8 sps:$4 sm:$0xff]   ;;  %v13755_v44 = vld [vmem:[%s14378_s17 + $0x608] ss:$144 sps:$4 sm:$0xff]  }
 0x370   : > { %v9051_v49 = vpop.f32.mrf.mxu1  ;;  %10070 = vmatpush2.bf16.msra.mxu1 %v13797_v34  ;;  %v16964_v46 = vadd.f32 %v9049_v8, %v8857_v62  ;;  %v8859_v37 = vadd.f32 %v8858_v6, %v18432_v3  ;;  %9878 = vmatprep.subr.bf16.mxu0 %v13808_v48  ;;  %v13752_v34 = vld [vmem:[%s14378_s17 + $0x600] ss:$144 sps:$4 sm:$0xff]   ;;  %v13766_v45 = vld [vmem:[%s14378_s17 + $0x724] ss:$144 sps:$4 sm:$0xff]   ;;  %v13769_v62 = vld [vmem:[%s14378_s17 + $0x72c] ss:$144 sps:$4 sm:$0xff]  }
 0x371   : > { %10071 = vmatprep.subr.bf16.mxu1 %v13811_v19  ;;  %v8860_v0 = vpop.f32.mrf.mxu0  ;;  %v13818_v6 = vld [vmem:[%s18275_s1 + $0xed0] ss:$8 sps:$4 sm:$0xff]  }
 0x372   : > { %18431 = vst [vmem:[#allocation22_spill] sm:$0xff] %v16964_v46  ;;  %v9053_v18 = vpop.f32.mrf.mxu1  ;;  %v16975_v56 = vadd.f32 %v9051_v49, %v8859_v37  ;;  %v8861_v8 = vadd.f32 %v8860_v0, %v18434_v5  ;;  %v13821_v3 = vld [vmem:[%s18275_s1 + $0xfd0] ss:$8 sps:$4 sm:$0xff]   ;;  %v13832_v0 = vld [vmem:[%s18275_s1 + $0xec4] ss:$8 sps:$4 sm:$0xff]  }
 0x373   : > { %v8862_v48 = vpop.f32.mrf.mxu0  ;;  %9879 = vmatpush2.bf16.msra.mxu0 %v13806_v51  ;;  %v18435_v49 = vld [vmem:[#allocation5_spill] sm:$0xff]  ;;  %v13835_v51 = vld [vmem:[%s18275_s1 + $0xfc4] ss:$8 sps:$4 sm:$0xff]  }
 0x374   : > { %18433 = vst [vmem:[#allocation23_spill] sm:$0xff] %v16975_v56  ;;  %v9055_v19 = vpop.f32.mrf.mxu1  ;;  %10072 = vmatpush2.bf16.msra.mxu1 %v13809_v2  ;;  %v16986_v46 = vadd.f32 %v9053_v18, %v8861_v8  ;;  %v8863_v37 = vadd.f32 %v8862_v48, %v18435_v49  ;;  %9880 = vmatprep.subr.bf16.mxu0 %v13820_v12  ;;  %v18437_v18 = vld [vmem:[#allocation6_spill] sm:$0xff] }
 0x375   : > { %10073 = vmatprep.subr.bf16.mxu1 %v13823_v13  ;;  %v8866_v2 = vpop.f32.mrf.mxu0  ;;  %9557 = vmatmul.mubr.bf16.gmra.mxu0 %v13752_v34  ;;  %v13830_v48 = vld [vmem:[%s18275_s1 + $0xec0] ss:$8 sps:$4 sm:$0xff]  }
 0x376   : > { %v9059_v5 = vpop.f32.mrf.mxu1  ;;  %9750 = vmatmul.mubr.bf16.gmra.mxu1 %v13755_v44  ;;  %v16995_v56 = vadd.f32 %v9055_v19, %v8863_v37  ;;  %v8867_v8 = vadd.f32 %v8866_v2, %v18437_v18  ;;  %9566 = vmatprep.mubr.bf16.mxu0 %v13766_v45  ;;  %v13833_v34 = vld [vmem:[%s18275_s1 + $0xfc0] ss:$8 sps:$4 sm:$0xff]  }
 0x377   : > { %9759 = vmatprep.mubr.bf16.mxu1 %v13769_v62  ;;  %v8868_v12 = vpop.f32.mrf.mxu0  ;;  %9881 = vmatpush2.bf16.msra.mxu0 %v13818_v6  ;;  %v18439_v45 = vld [vmem:[#allocation7_spill] sm:$0xff]  ;;  %v13844_v62 = vld [vmem:[%s18275_s1 + $0xeb4] ss:$8 sps:$4 sm:$0xff]   ;;  %v13764_v37 = vld [vmem:[%s14378_s17 + $0x720] ss:$144 sps:$4 sm:$0xff]  }
 0x378   : > { %18436 = vst [vmem:[#allocation2_spill] sm:$0xff] %v16995_v56  ;;  %v9061_v13 = vpop.f32.mrf.mxu1  ;;  %10074 = vmatpush2.bf16.msra.mxu1 %v13821_v3  ;;  %v17004_v44 = vadd.f32 %v9059_v5, %v8867_v8  ;;  %v8869_v19 = vadd.f32 %v8868_v12, %v18439_v45  ;;  %9882 = vmatprep.subr.bf16.mxu0 %v13832_v0  ;;  %v13847_v6 = vld [vmem:[%s18275_s1 + $0xfb4] ss:$8 sps:$4 sm:$0xff]   ;;  %v13767_v2 = vld [vmem:[%s14378_s17 + $0x728] ss:$144 sps:$4 sm:$0xff]  }
 0x379   : > { %10075 = vmatprep.subr.bf16.mxu1 %v13835_v51  ;;  %v8870_v3 = vpop.f32.mrf.mxu0  ;;  %v13778_v8 = vld [vmem:[%s14378_s17 + $0x844] ss:$144 sps:$4 sm:$0xff]   ;;  %v13781_v12 = vld [vmem:[%s14378_s17 + $0x84c] ss:$144 sps:$4 sm:$0xff]   ;;  %v13842_v45 = vld [vmem:[%s18275_s1 + $0xeb0] ss:$8 sps:$4 sm:$0xff]  }
 0x37a   : > { %18438 = vst [vmem:[#allocation3_spill] sm:$0xff] %v17004_v44  ;;  %v9063_v49 = vpop.f32.mrf.mxu1  ;;  %v17015_v18 = vadd.f32 %v9061_v13, %v8869_v19  ;;  %v8871_v5 = vadd.f32 %v8870_v3, %v16578_v47  ;;  %v13845_v44 = vld [vmem:[%s18275_s1 + $0xfb0] ss:$8 sps:$4 sm:$0xff]   ;;  %v13856_v47 = vld [vmem:[%s18275_s1 + $0xea4] ss:$8 sps:$4 sm:$0xff]  }
 0x37b   : > { %v8872_v0 = vpop.f32.mrf.mxu0  ;;  %9883 = vmatpush2.bf16.msra.mxu0 %v13830_v48  ;;  %v18441_v13 = vld [vmem:[#allocation8_spill] sm:$0xff]  ;;  %v13859_v48 = vld [vmem:[%s18275_s1 + $0xfa4] ss:$8 sps:$4 sm:$0xff]  }
 0x37c   : > { %18440 = vst [vmem:[#allocation4_spill] sm:$0xff] %v17015_v18  ;;  %v9065_v51 = vpop.f32.mrf.mxu1  ;;  %10076 = vmatpush2.bf16.msra.mxu1 %v13833_v34  ;;  %v17026_v56 = vadd.f32 %v9063_v49, %v8871_v5  ;;  %v8873_v19 = vadd.f32 %v8872_v0, %v18441_v13  ;;  %9884 = vmatprep.subr.bf16.mxu0 %v13844_v62  ;;  %v18442_v49 = vld [vmem:[#allocation9_spill] sm:$0xff]  ;;  %v13854_v0 = vld [vmem:[%s18275_s1 + $0xea0] ss:$8 sps:$4 sm:$0xff]  }
 0x37d   : > { %10077 = vmatprep.subr.bf16.mxu1 %v13847_v6  ;;  %v8876_v34 = vpop.f32.mrf.mxu0  ;;  %9567 = vmatmul.mubr.bf16.gmra.mxu0 %v13764_v37  ;;  %v13857_v37 = vld [vmem:[%s18275_s1 + $0xfa0] ss:$8 sps:$4 sm:$0xff]  }
 0x37e   : > { %v9069_v3 = vpop.f32.mrf.mxu1  ;;  %9760 = vmatmul.mubr.bf16.gmra.mxu1 %v13767_v2  ;;  %v17035_v18 = vadd.f32 %v9065_v51, %v8873_v19  ;;  %v8877_v5 = vadd.f32 %v8876_v34, %v18442_v49  ;;  %9576 = vmatprep.mubr.bf16.mxu0 %v13778_v8  ;;  %v13776_v13 = vld [vmem:[%s14378_s17 + $0x840] ss:$144 sps:$4 sm:$0xff]   ;;  %v13779_v19 = vld [vmem:[%s14378_s17 + $0x848] ss:$144 sps:$4 sm:$0xff]   ;;  %v13790_v49 = vld [vmem:[%s14378_s17 + $0x964] ss:$144 sps:$4 sm:$0xff]  }
 0x37f   : > { %9769 = vmatprep.mubr.bf16.mxu1 %v13781_v12  ;;  %v8878_v62 = vpop.f32.mrf.mxu0  ;;  %9885 = vmatpush2.bf16.msra.mxu0 %v13842_v45  ;;  %v13868_v12 = vld [vmem:[%s18275_s1 + $0xe94] ss:$8 sps:$4 sm:$0xff]  }
 0x380   : > { %v9071_v6 = vpop.f32.mrf.mxu1  ;;  %10078 = vmatpush2.bf16.msra.mxu1 %v13845_v44  ;;  %v17044_v2 = vadd.f32 %v9069_v3, %v8877_v5  ;;  %v8879_v8 = vadd.f32 %v8878_v62, %v16607_v61  ;;  %9886 = vmatprep.subr.bf16.mxu0 %v13856_v47  ;;  %v13871_v44 = vld [vmem:[%s18275_s1 + $0xf94] ss:$8 sps:$4 sm:$0xff]   ;;  %v13866_v5 = vld [vmem:[%s18275_s1 + $0xe90] ss:$8 sps:$4 sm:$0xff]  }
 0x381   : > { %10079 = vmatprep.subr.bf16.mxu1 %v13859_v48  ;;  %v8880_v51 = vpop.f32.mrf.mxu0  ;;  %v13793_v61 = vld [vmem:[%s14378_s17 + $0x96c] ss:$144 sps:$4 sm:$0xff]   ;;  %v13869_v62 = vld [vmem:[%s18275_s1 + $0xf90] ss:$8 sps:$4 sm:$0xff]  }
 0x382   : > { %18443 = vst [vmem:[#allocation5_spill] sm:$0xff] %v17044_v2  ;;  %v9073_v45 = vpop.f32.mrf.mxu1  ;;  %v17055_v34 = vadd.f32 %v9071_v6, %v8879_v8  ;;  %v8881_v3 = vadd.f32 %v8880_v51, %v16618_v9  ;;  %v13880_v9 = vld [vmem:[%s18275_s1 + $0xe84] ss:$8 sps:$4 sm:$0xff]  }
 0x383   : > { %v8882_v47 = vpop.f32.mrf.mxu0  ;;  %9887 = vmatpush2.bf16.msra.mxu0 %v13854_v0  ;;  %v13883_v0 = vld [vmem:[%s18275_s1 + $0xf84] ss:$8 sps:$4 sm:$0xff]  }
 0x384   : > { %v9075_v48 = vpop.f32.mrf.mxu1  ;;  %10080 = vmatpush2.bf16.msra.mxu1 %v13857_v37  ;;  %v17066_v2 = vadd.f32 %v9073_v45, %v8881_v3  ;;  %v8883_v6 = vadd.f32 %v8882_v47, %v16627_v63  ;;  %9888 = vmatprep.subr.bf16.mxu0 %v13868_v12  ;;  %v18445_v45 = vld [vmem:[#allocation10_spill] sm:$0xff]  ;;  %v13895_v47 = vld [vmem:[%s18275_s1 + $0x1174] ss:$8 sps:$4 sm:$0xff]  }
 0x385   : > { %10081 = vmatprep.subr.bf16.mxu1 %v13871_v44  ;;  %v8886_v37 = vpop.f32.mrf.mxu0  ;;  %9577 = vmatmul.mubr.bf16.gmra.mxu0 %v13776_v13  ;;  %v13878_v44 = vld [vmem:[%s18275_s1 + $0xe80] ss:$8 sps:$4 sm:$0xff]  }
 0x386   : > { %v9079_v8 = vpop.f32.mrf.mxu1  ;;  %9770 = vmatmul.mubr.bf16.gmra.mxu1 %v13779_v19  ;;  %v17075_v51 = vadd.f32 %v9075_v48, %v8883_v6  ;;  %v8887_v3 = vadd.f32 %v8886_v37, %v18445_v45  ;;  %9586 = vmatprep.mubr.bf16.mxu0 %v13790_v49  ;;  %v13881_v13 = vld [vmem:[%s18275_s1 + $0xf80] ss:$8 sps:$4 sm:$0xff]   ;;  %v13802_v45 = vld [vmem:[%s14378_s17 + $0xa84] ss:$144 sps:$4 sm:$0xff]  }
 0x387   : > { %9779 = vmatprep.mubr.bf16.mxu1 %v13793_v61  ;;  %v8888_v63 = vpop.f32.mrf.mxu0  ;;  %9889 = vmatpush2.bf16.msra.mxu0 %v13866_v5  ;;  %v13892_v61 = vld [vmem:[%s18275_s1 + $0x1074] ss:$8 sps:$4 sm:$0xff]   ;;  %v13791_v6 = vld [vmem:[%s14378_s17 + $0x968] ss:$144 sps:$4 sm:$0xff]  }
 0x388   : > { %18444 = vst [vmem:[#allocation6_spill] sm:$0xff] %v17075_v51  ;;  %v9081_v12 = vpop.f32.mrf.mxu1  ;;  %10082 = vmatpush2.bf16.msra.mxu1 %v13869_v62  ;;  %v17084_v19 = vadd.f32 %v9079_v8, %v8887_v3  ;;  %v8889_v49 = vadd.f32 %v8888_v63, %v16647_v54  ;;  %9890 = vmatprep.subr.bf16.mxu0 %v13880_v9  ;;  %v13788_v62 = vld [vmem:[%s14378_s17 + $0x960] ss:$144 sps:$4 sm:$0xff]   ;;  %v13805_v54 = vld [vmem:[%s14378_s17 + $0xa8c] ss:$144 sps:$4 sm:$0xff]  }
 0x389   : > { %10083 = vmatprep.subr.bf16.mxu1 %v13883_v0  ;;  %v8890_v48 = vpop.f32.mrf.mxu0 }
 0x38a   : > { %18446 = vst [vmem:[#allocation7_spill] sm:$0xff] %v17084_v19  ;;  %v9083_v5 = vpop.f32.mrf.mxu1  ;;  %v17095_v37 = vadd.f32 %v9081_v12, %v8889_v49  ;;  %v8891_v8 = vadd.f32 %v8890_v48, %v16652_v35  ;;  %v13800_v48 = vld [vmem:[%s14378_s17 + $0xa80] ss:$144 sps:$4 sm:$0xff]  }
 0x38b   : > { %v8892_v9 = vpop.f32.mrf.mxu0  ;;  %9891 = vmatpush2.bf16.msra.mxu0 %v13878_v44 }
 0x38c   : > { %v9085_v0 = vpop.f32.mrf.mxu1  ;;  %10084 = vmatpush2.bf16.msra.mxu1 %v13881_v13  ;;  %v17100_v3 = vadd.f32 %v9083_v5, %v8891_v8  ;;  %v8893_v63 = vadd.f32 %v8892_v9, %v16655_v55  ;;  %10246 = vmatprep.subr.bf16.mxu0 %v13892_v61  ;;  %v13803_v5 = vld [vmem:[%s14378_s17 + $0xa88] ss:$144 sps:$4 sm:$0xff]   ;;  %v13814_v8 = vld [vmem:[%s14378_s17 + $0xba4] ss:$144 sps:$4 sm:$0xff]   ;;  %v13817_v9 = vld [vmem:[%s14378_s17 + $0xbac] ss:$144 sps:$4 sm:$0xff]  }
 0x38d   : > { %10439 = vmatprep.subr.bf16.mxu1 %v13895_v47  ;;  %v9122_v19 = vpop.f32.mrf.mxu0  ;;  %9587 = vmatmul.mubr.bf16.gmra.mxu0 %v13788_v62 }
 0x38e   : > { %v9315_v51 = vpop.f32.mrf.mxu1  ;;  %9780 = vmatmul.mubr.bf16.gmra.mxu1 %v13791_v6  ;;  %v17103_v35 = vadd.f32 %v9085_v0, %v8893_v63  ;;  %v9123_v12 = vadd.f32 %v9122_v19, %v16658_v27  ;;  %9596 = vmatprep.mubr.bf16.mxu0 %v13802_v45 }
 0x38f   : > { %9789 = vmatprep.mubr.bf16.mxu1 %v13805_v54  ;;  %v9124_v44 = vpop.f32.mrf.mxu0 }
 0x390   : > { %v9317_v13 = vpop.f32.mrf.mxu1  ;;  %v17106_v49 = vadd.f32 %v9315_v51, %v9123_v12  ;;  %v9125_v55 = vadd.f32 %v9124_v44, %v16663_v23 }
 0x391   : > { %v9126_v61 = vpop.f32.mrf.mxu0 }
 0x392   : > { %v9319_v47 = vpop.f32.mrf.mxu1  ;;  %v17111_v62 = vadd.f32 %v9317_v13, %v9125_v55  ;;  %v9127_v6 = vadd.f32 %v9126_v61, %v16668_v41  ;;  %v13812_v61 = vld [vmem:[%s14378_s17 + $0xba0] ss:$144 sps:$4 sm:$0xff]  }
 0x393   : > { %v9128_v0 = vpop.f32.mrf.mxu0 }
 0x394   : > { %v9321_v27 = vpop.f32.mrf.mxu1  ;;  %v17116_v19 = vadd.f32 %v9319_v47, %v9127_v6  ;;  %v9129_v51 = vadd.f32 %v9128_v0, %v16671_v29  ;;  %v13815_v47 = vld [vmem:[%s14378_s17 + $0xba8] ss:$144 sps:$4 sm:$0xff]   ;;  %v13826_v6 = vld [vmem:[%s14378_s17 + $0xcc4] ss:$144 sps:$4 sm:$0xff]   ;;  %v13829_v0 = vld [vmem:[%s14378_s17 + $0xccc] ss:$144 sps:$4 sm:$0xff]  }
 0x395   : > { %v9132_v45 = vpop.f32.mrf.mxu0  ;;  %9597 = vmatmul.mubr.bf16.gmra.mxu0 %v13800_v48 }
 0x396   : > { %v9325_v23 = vpop.f32.mrf.mxu1  ;;  %9790 = vmatmul.mubr.bf16.gmra.mxu1 %v13803_v5  ;;  %v17119_v54 = vadd.f32 %v9321_v27, %v9129_v51  ;;  %v9133_v41 = vadd.f32 %v9132_v45, %v16674_v40  ;;  %9606 = vmatprep.mubr.bf16.mxu0 %v13814_v8 }
 0x397   : > { %9799 = vmatprep.mubr.bf16.mxu1 %v13817_v9  ;;  %v9134_v63 = vpop.f32.mrf.mxu0 }
 0x398   : > { %v9327_v12 = vpop.f32.mrf.mxu1  ;;  %v17122_v44 = vadd.f32 %v9325_v23, %v9133_v41  ;;  %v9135_v13 = vadd.f32 %v9134_v63, %v16679_v43 }
 0x399   : > { %v9136_v29 = vpop.f32.mrf.mxu0 }
 0x39a   : > { %v9329_v55 = vpop.f32.mrf.mxu1  ;;  %v17127_v48 = vadd.f32 %v9327_v12, %v9135_v13  ;;  %v9137_v5 = vadd.f32 %v9136_v29, %v16684_v39  ;;  %v13824_v29 = vld [vmem:[%s14378_s17 + $0xcc0] ss:$144 sps:$4 sm:$0xff]  }
 0x39b   : > { %v9138_v27 = vpop.f32.mrf.mxu0 }
 0x39c   : > { %v9331_v40 = vpop.f32.mrf.mxu1  ;;  %v17132_v8 = vadd.f32 %v9329_v55, %v9137_v5  ;;  %v9139_v9 = vadd.f32 %v9138_v27, %v16687_v42  ;;  %v13827_v55 = vld [vmem:[%s14378_s17 + $0xcc8] ss:$144 sps:$4 sm:$0xff]   ;;  %v13838_v5 = vld [vmem:[%s14378_s17 + $0xde4] ss:$144 sps:$4 sm:$0xff]   ;;  %v13841_v27 = vld [vmem:[%s14378_s17 + $0xdec] ss:$144 sps:$4 sm:$0xff]  }
 0x39d   : > { %v9142_v51 = vpop.f32.mrf.mxu0  ;;  %9607 = vmatmul.mubr.bf16.gmra.mxu0 %v13812_v61 }
 0x39e   : > { %v9335_v43 = vpop.f32.mrf.mxu1  ;;  %9800 = vmatmul.mubr.bf16.gmra.mxu1 %v13815_v47  ;;  %v17135_v45 = vadd.f32 %v9331_v40, %v9139_v9  ;;  %v9143_v39 = vadd.f32 %v9142_v51, %v16690_v36  ;;  %9616 = vmatprep.mubr.bf16.mxu0 %v13826_v6 }
 0x39f   : > { %9809 = vmatprep.mubr.bf16.mxu1 %v13829_v0  ;;  %v9144_v23 = vpop.f32.mrf.mxu0 }
 0x3a0   : > { %v9337_v41 = vpop.f32.mrf.mxu1  ;;  %v17138_v63 = vadd.f32 %v9335_v43, %v9143_v39  ;;  %v9145_v12 = vadd.f32 %v9144_v23, %v16695_v16 }
 0x3a1   : > { %v9146_v42 = vpop.f32.mrf.mxu0 }
 0x3a2   : > { %v9339_v13 = vpop.f32.mrf.mxu1  ;;  %v17143_v61 = vadd.f32 %v9337_v41, %v9145_v12  ;;  %v9147_v47 = vadd.f32 %v9146_v42, %v16700_v33  ;;  %v13836_v42 = vld [vmem:[%s14378_s17 + $0xde0] ss:$144 sps:$4 sm:$0xff]  }
 0x3a3   : > { %v9148_v40 = vpop.f32.mrf.mxu0 }
 0x3a4   : > { %v9341_v36 = vpop.f32.mrf.mxu1  ;;  %v17148_v6 = vadd.f32 %v9339_v13, %v9147_v47  ;;  %v9149_v0 = vadd.f32 %v9148_v40, %v16703_v24  ;;  %v13839_v13 = vld [vmem:[%s14378_s17 + $0xde8] ss:$144 sps:$4 sm:$0xff]   ;;  %v13850_v47 = vld [vmem:[%s14378_s17 + $0xf04] ss:$144 sps:$4 sm:$0xff]   ;;  %v13853_v40 = vld [vmem:[%s14378_s17 + $0xf0c] ss:$144 sps:$4 sm:$0xff]  }
 0x3a5   : > { %v9152_v9 = vpop.f32.mrf.mxu0  ;;  %9617 = vmatmul.mubr.bf16.gmra.mxu0 %v13824_v29 }
 0x3a6   : > { %v9345_v16 = vpop.f32.mrf.mxu1  ;;  %9810 = vmatmul.mubr.bf16.gmra.mxu1 %v13827_v55  ;;  %v17151_v51 = vadd.f32 %v9341_v36, %v9149_v0  ;;  %v9153_v33 = vadd.f32 %v9152_v9, %v16706_v17  ;;  %9626 = vmatprep.mubr.bf16.mxu0 %v13838_v5 }
 0x3a7   : > { %9819 = vmatprep.mubr.bf16.mxu1 %v13841_v27  ;;  %v9154_v43 = vpop.f32.mrf.mxu0 }
 0x3a8   : > { %v9347_v39 = vpop.f32.mrf.mxu1  ;;  %v17154_v23 = vadd.f32 %v9345_v16, %v9153_v33  ;;  %v9155_v41 = vadd.f32 %v9154_v43, %v16711_v38 }
 0x3a9   : > { %v9156_v24 = vpop.f32.mrf.mxu0 }
 0x3aa   : > { %v9349_v12 = vpop.f32.mrf.mxu1  ;;  %v17159_v29 = vadd.f32 %v9347_v39, %v9155_v41  ;;  %v9157_v55 = vadd.f32 %v9156_v24, %v16716_v26  ;;  %v13848_v24 = vld [vmem:[%s14378_s17 + $0xf00] ss:$144 sps:$4 sm:$0xff]  }
 0x3ab   : > { %v9158_v36 = vpop.f32.mrf.mxu0 }
 0x3ac   : > { %v9351_v17 = vpop.f32.mrf.mxu1  ;;  %v17164_v5 = vadd.f32 %v9349_v12, %v9157_v55  ;;  %v9159_v27 = vadd.f32 %v9158_v36, %v16719_v28  ;;  %v13851_v12 = vld [vmem:[%s14378_s17 + $0xf08] ss:$144 sps:$4 sm:$0xff]   ;;  %v13862_v55 = vld [vmem:[%s14378_s17 + $0x1024] ss:$144 sps:$4 sm:$0xff]   ;;  %v13865_v36 = vld [vmem:[%s14378_s17 + $0x102c] ss:$144 sps:$4 sm:$0xff]  }
 0x3ad   : > { %v9162_v0 = vpop.f32.mrf.mxu0  ;;  %9627 = vmatmul.mubr.bf16.gmra.mxu0 %v13836_v42 }
 0x3ae   : > { %v9355_v38 = vpop.f32.mrf.mxu1  ;;  %9820 = vmatmul.mubr.bf16.gmra.mxu1 %v13839_v13  ;;  %v17167_v9 = vadd.f32 %v9351_v17, %v9159_v27  ;;  %v9163_v26 = vadd.f32 %v9162_v0, %v16722_v20  ;;  %9636 = vmatprep.mubr.bf16.mxu0 %v13850_v47 }
 0x3af   : > { %9829 = vmatprep.mubr.bf16.mxu1 %v13853_v40  ;;  %v9164_v16 = vpop.f32.mrf.mxu0 }
 0x3b0   : > { %v9357_v33 = vpop.f32.mrf.mxu1  ;;  %v17170_v43 = vadd.f32 %v9355_v38, %v9163_v26  ;;  %v9165_v39 = vadd.f32 %v9164_v16, %v16727_v52 }
 0x3b1   : > { %v9166_v28 = vpop.f32.mrf.mxu0 }
 0x3b2   : > { %v9359_v41 = vpop.f32.mrf.mxu1  ;;  %v17175_v42 = vadd.f32 %v9357_v33, %v9165_v39  ;;  %v9167_v13 = vadd.f32 %v9166_v28, %v16732_v30  ;;  %v18449_v33 = vld [vmem:[#allocation11_spill] sm:$0xff] }
 0x3b3   : > { %v9168_v17 = vpop.f32.mrf.mxu0 }
 0x3b4   : > { %v9361_v20 = vpop.f32.mrf.mxu1  ;;  %v17180_v47 = vadd.f32 %v9359_v41, %v9167_v13  ;;  %v9169_v40 = vadd.f32 %v9168_v17, %v16735_v53  ;;  %v13860_v41 = vld [vmem:[%s14378_s17 + $0x1020] ss:$144 sps:$4 sm:$0xff]   ;;  %v13863_v13 = vld [vmem:[%s14378_s17 + $0x1028] ss:$144 sps:$4 sm:$0xff]  }
 0x3b5   : > { %v9172_v27 = vpop.f32.mrf.mxu0  ;;  %9637 = vmatmul.mubr.bf16.gmra.mxu0 %v13848_v24 }
 0x3b6   : > { %v9365_v52 = vpop.f32.mrf.mxu1  ;;  %9830 = vmatmul.mubr.bf16.gmra.mxu1 %v13851_v12  ;;  %v17183_v0 = vadd.f32 %v9361_v20, %v9169_v40  ;;  %v9173_v30 = vadd.f32 %v9172_v27, %v16738_v31  ;;  %9646 = vmatprep.mubr.bf16.mxu0 %v13862_v55  ;;  %v18451_v12 = vld [vmem:[#allocation12_spill] sm:$0xff]  ;;  %v13877_v40 = vld [vmem:[%s14378_s17 + $0x114c] ss:$144 sps:$4 sm:$0xff]  }
 0x3b7   : > { %9839 = vmatprep.mubr.bf16.mxu1 %v13865_v36  ;;  %v9174_v38 = vpop.f32.mrf.mxu0  ;;  %v13874_v20 = vld [vmem:[%s14378_s17 + $0x1144] ss:$144 sps:$4 sm:$0xff]   ;;  %v18453_v36 = vld [vmem:[#allocation13_spill] sm:$0xff] }
 0x3b8   : > { %18447 = vst [vmem:[#allocation8_spill] sm:$0xff] %v17183_v0  ;;  %v9367_v26 = vpop.f32.mrf.mxu1  ;;  %v17186_v16 = vadd.f32 %v9365_v52, %v9173_v30  ;;  %v9175_v39 = vadd.f32 %v9174_v38, %v18449_v33 }
 0x3b9   : > { %v9176_v53 = vpop.f32.mrf.mxu0 }
 0x3ba   : > { %18448 = vst [vmem:[#allocation9_spill] sm:$0xff] %v17186_v16  ;;  %v9369_v28 = vpop.f32.mrf.mxu1  ;;  %v17191_v24 = vadd.f32 %v9367_v26, %v9175_v39  ;;  %v9177_v17 = vadd.f32 %v9176_v53, %v18451_v12  ;;  %v18455_v26 = vld [vmem:[#allocation14_spill] sm:$0xff]  ;;  %v18457_v12 = vld [vmem:[#allocation15_spill] sm:$0xff] }
 0x3bb   : > { %v9178_v0 = vpop.f32.mrf.mxu0 }
 0x3bc   : > { %18450 = vst [vmem:[#allocation10_spill] sm:$0xff] %v17191_v24  ;;  %v9371_v31 = vpop.f32.mrf.mxu1  ;;  %v17196_v55 = vadd.f32 %v9369_v28, %v9177_v17  ;;  %v9179_v27 = vadd.f32 %v9178_v0, %v18453_v36  ;;  %v13875_v24 = vld [vmem:[%s14378_s17 + $0x1148] ss:$144 sps:$4 sm:$0xff]  }
 0x3bd   : > { %v9182_v52 = vpop.f32.mrf.mxu0  ;;  %9647 = vmatmul.mubr.bf16.gmra.mxu0 %v13860_v41 }
 0x3be   : > { %18452 = vst [vmem:[#allocation11_spill] sm:$0xff] %v17196_v55  ;;  %v9375_v30 = vpop.f32.mrf.mxu1  ;;  %9840 = vmatmul.mubr.bf16.gmra.mxu1 %v13863_v13  ;;  %v17199_v38 = vadd.f32 %v9371_v31, %v9179_v27  ;;  %v9183_v33 = vadd.f32 %v9182_v52, %v18455_v26  ;;  %9656 = vmatprep.mubr.bf16.mxu0 %v13874_v20  ;;  %v13872_v55 = vld [vmem:[%s14378_s17 + $0x1140] ss:$144 sps:$4 sm:$0xff]   ;;  %v13886_v31 = vld [vmem:[%s14378_s17 + $0x74] ss:$144 sps:$4 sm:$0xff]  }
 0x3bf   : > { %9849 = vmatprep.mubr.bf16.mxu1 %v13877_v40  ;;  %v9184_v39 = vpop.f32.mrf.mxu0  ;;  %v18459_v13 = vld [vmem:[#allocation16_spill] sm:$0xff]  ;;  %v13889_v27 = vld [vmem:[%s14378_s17 + $0x7c] ss:$144 sps:$4 sm:$0xff]  }
 0x3c0   : > { %18454 = vst [vmem:[#allocation12_spill] sm:$0xff] %v17199_v38  ;;  %v9377_v53 = vpop.f32.mrf.mxu1  ;;  %v17202_v28 = vadd.f32 %v9375_v30, %v9183_v33  ;;  %v9185_v17 = vadd.f32 %v9184_v39, %v18457_v12  ;;  %v18461_v40 = vld [vmem:[#allocation17_spill] sm:$0xff] }
 0x3c1   : > { %v9186_v0 = vpop.f32.mrf.mxu0 }
 0x3c2   : > { %18456 = vst [vmem:[#allocation13_spill] sm:$0xff] %v17202_v28  ;;  %v9379_v36 = vpop.f32.mrf.mxu1  ;;  %v17207_v41 = vadd.f32 %v9377_v53, %v9185_v17  ;;  %v9187_v16 = vadd.f32 %v9186_v0, %v18459_v13  ;;  %v18463_v53 = vld [vmem:[#allocation18_spill] sm:$0xff] }
 0x3c3   : > { %v9188_v38 = vpop.f32.mrf.mxu0 }
 0x3c4   : > { %18458 = vst [vmem:[#allocation14_spill] sm:$0xff] %v17207_v41  ;;  %v9381_v52 = vpop.f32.mrf.mxu1  ;;  %v17212_v20 = vadd.f32 %v9379_v36, %v9187_v16  ;;  %v9189_v30 = vadd.f32 %v9188_v38, %v18461_v40  ;;  %v18465_v36 = vld [vmem:[#allocation19_spill] sm:$0xff] }
 0x3c5   : > { %v9192_v26 = vpop.f32.mrf.mxu0  ;;  %9657 = vmatmul.mubr.bf16.gmra.mxu0 %v13872_v55  ;;  %v13887_v41 = vld [vmem:[%s14378_s17 + $0x78] ss:$144 sps:$4 sm:$0xff]  }
 0x3c6   : > { %18460 = vst [vmem:[#allocation15_spill] sm:$0xff] %v17212_v20  ;;  %v9385_v33 = vpop.f32.mrf.mxu1  ;;  %9850 = vmatmul.mubr.bf16.gmra.mxu1 %v13875_v24  ;;  %v17215_v39 = vadd.f32 %v9381_v52, %v9189_v30  ;;  %v9193_v12 = vadd.f32 %v9192_v26, %v18463_v53  ;;  %9892 = vmatprep.mubr.bf16.mxu0 %v13886_v31  ;;  %v13884_v20 = vld [vmem:[%s14378_s17 + $0x70] ss:$144 sps:$4 sm:$0xff]   ;;  %v13901_v53 = vld [vmem:[%s14378_s17 + $0x19c] ss:$144 sps:$4 sm:$0xff]  }
 0x3c7   : > { %10085 = vmatprep.mubr.bf16.mxu1 %v13889_v27  ;;  %v9194_v17 = vpop.f32.mrf.mxu0  ;;  %v18467_v24 = vld [vmem:[#allocation20_spill] sm:$0xff] }
 0x3c8   : > { %18462 = vst [vmem:[#allocation16_spill] sm:$0xff] %v17215_v39  ;;  %v9387_v0 = vpop.f32.mrf.mxu1  ;;  %v17218_v16 = vadd.f32 %v9385_v33, %v9193_v12  ;;  %v9195_v13 = vadd.f32 %v9194_v17, %v18465_v36  ;;  %v13890_v31 = vld [vmem:[%s18275_s1 + $0x1070] ss:$8 sps:$4 sm:$0xff]   ;;  %v13898_v33 = vld [vmem:[%s14378_s17 + $0x194] ss:$144 sps:$4 sm:$0xff]  }
 0x3c9   : > { %v9196_v38 = vpop.f32.mrf.mxu0  ;;  %v13893_v27 = vld [vmem:[%s18275_s1 + $0x1170] ss:$8 sps:$4 sm:$0xff]  }
 0x3ca   : > { %18464 = vst [vmem:[#allocation17_spill] sm:$0xff] %v17218_v16  ;;  %v9389_v40 = vpop.f32.mrf.mxu1  ;;  %v17223_v55 = vadd.f32 %v9387_v0, %v9195_v13  ;;  %v9197_v52 = vadd.f32 %v9196_v38, %v18467_v24  ;;  %v18469_v17 = vld [vmem:[#allocation21_spill] sm:$0xff]  ;;  %v13904_v0 = vld [vmem:[%s18275_s1 + $0x1064] ss:$8 sps:$4 sm:$0xff]  }
 0x3cb   : > { %v9198_v30 = vpop.f32.mrf.mxu0  ;;  %v13907_v13 = vld [vmem:[%s18275_s1 + $0x1164] ss:$8 sps:$4 sm:$0xff]  }
 0x3cc   : > { %18466 = vst [vmem:[#allocation18_spill] sm:$0xff] %v17223_v55  ;;  %v9391_v26 = vpop.f32.mrf.mxu1  ;;  %v17234_v12 = vadd.f32 %v9389_v40, %v9197_v52  ;;  %v9199_v36 = vadd.f32 %v9198_v30, %v18469_v17  ;;  %v13902_v40 = vld [vmem:[%s18275_s1 + $0x1060] ss:$8 sps:$4 sm:$0xff]  }
 0x3cd   : > { %v9202_v38 = vpop.f32.mrf.mxu0  ;;  %9893 = vmatmul.mubr.bf16.vlgmr.msra.gmra.mxu0 %v13884_v20  ;;  %v13905_v52 = vld [vmem:[%s18275_s1 + $0x1160] ss:$8 sps:$4 sm:$0xff]  }
 0x3ce   : > { %18468 = vst [vmem:[#allocation19_spill] sm:$0xff] %v17234_v12  ;;  %v9395_v24 = vpop.f32.mrf.mxu1  ;;  %10086 = vmatmul.mubr.bf16.vlgmr.msra.gmra.mxu1 %v13887_v41  ;;  %v17243_v55 = vadd.f32 %v9391_v26, %v9199_v36  ;;  %v9203_v16 = vadd.f32 %v9202_v38, %v16810_v14  ;;  %10247 = vmatpush1.bf16.msra.mxu0 %v13890_v31  ;;  %v13916_v14 = vld [vmem:[%s18275_s1 + $0x1054] ss:$8 sps:$4 sm:$0xff]   ;;  %v13899_v36 = vld [vmem:[%s14378_s17 + $0x198] ss:$144 sps:$4 sm:$0xff]  }
 0x3cf   : > { %10440 = vmatpush1.bf16.msra.mxu1 %v13893_v27  ;;  %v9204_v30 = vpop.f32.mrf.mxu0  ;;  %9902 = vmatprep.mubr.bf16.mxu0 %v13898_v33  ;;  %v13919_v41 = vld [vmem:[%s18275_s1 + $0x1154] ss:$8 sps:$4 sm:$0xff]   ;;  %v13896_v33 = vld [vmem:[%s14378_s17 + $0x190] ss:$144 sps:$4 sm:$0xff]  }
 0x3d0   : > { %18470 = vst [vmem:[#allocation20_spill] sm:$0xff] %v17243_v55  ;;  %v9397_v17 = vpop.f32.mrf.mxu1  ;;  %10095 = vmatprep.mubr.bf16.mxu1 %v13901_v53  ;;  %v17258_v20 = vadd.f32 %v9395_v24, %v9203_v16  ;;  %v9205_v31 = vadd.f32 %v9204_v30, %v16815_v7  ;;  %10248 = vmatprep.subr.bf16.mxu0 %v13904_v0  ;;  %v13910_v55 = vld [vmem:[%s14378_s17 + $0x2b4] ss:$144 sps:$4 sm:$0xff]   ;;  %v13913_v12 = vld [vmem:[%s14378_s17 + $0x2bc] ss:$144 sps:$4 sm:$0xff]  }
 0x3d1   : > { %10441 = vmatprep.subr.bf16.mxu1 %v13907_v13  ;;  %v9206_v27 = vpop.f32.mrf.mxu0  ;;  %v13914_v7 = vld [vmem:[%s18275_s1 + $0x1050] ss:$8 sps:$4 sm:$0xff]   ;;  %v13928_v13 = vld [vmem:[%s18275_s1 + $0x1044] ss:$8 sps:$4 sm:$0xff]  }
 0x3d2   : > { %v9399_v26 = vpop.f32.mrf.mxu1  ;;  %v17263_v53 = vadd.f32 %v9397_v17, %v9205_v31  ;;  %v9207_v38 = vadd.f32 %v9206_v27, %v16826_v25  ;;  %10249 = vmatpush1.bf16.msra.mxu0 %v13902_v40  ;;  %v13917_v16 = vld [vmem:[%s18275_s1 + $0x1150] ss:$8 sps:$4 sm:$0xff]   ;;  %v13931_v24 = vld [vmem:[%s18275_s1 + $0x1144] ss:$8 sps:$4 sm:$0xff]  }
 0x3d3   : > { %10442 = vmatpush1.bf16.msra.mxu1 %v13905_v52  ;;  %v9208_v39 = vpop.f32.mrf.mxu0  ;;  %10250 = vmatprep.subr.bf16.mxu0 %v13916_v14  ;;  %v13926_v14 = vld [vmem:[%s18275_s1 + $0x1040] ss:$8 sps:$4 sm:$0xff]  }
 0x3d4   : > { %v9401_v28 = vpop.f32.mrf.mxu1  ;;  %10443 = vmatprep.subr.bf16.mxu1 %v13919_v41  ;;  %v17274_v0 = vadd.f32 %v9399_v26, %v9207_v38  ;;  %v9209_v25 = vadd.f32 %v9208_v39, %v16835_v10  ;;  %v13908_v26 = vld [vmem:[%s14378_s17 + $0x2b0] ss:$144 sps:$4 sm:$0xff]  }
 0x3d5   : > { %v9212_v40 = vpop.f32.mrf.mxu0  ;;  %9903 = vmatmul.mubr.bf16.gmra.mxu0 %v13896_v33  ;;  %v13911_v33 = vld [vmem:[%s14378_s17 + $0x2b8] ss:$144 sps:$4 sm:$0xff]  }
 0x3d6   : > { %v9405_v52 = vpop.f32.mrf.mxu1  ;;  %10096 = vmatmul.mubr.bf16.gmra.mxu1 %v13899_v36  ;;  %v17283_v30 = vadd.f32 %v9401_v28, %v9209_v25  ;;  %v9213_v17 = vadd.f32 %v9212_v40, %v16844_v11  ;;  %9912 = vmatprep.mubr.bf16.mxu0 %v13910_v55  ;;  %v13929_v28 = vld [vmem:[%s18275_s1 + $0x1140] ss:$8 sps:$4 sm:$0xff]   ;;  %v13940_v55 = vld [vmem:[%s18275_s1 + $0x1034] ss:$8 sps:$4 sm:$0xff]  }
 0x3d7   : > { %10105 = vmatprep.mubr.bf16.mxu1 %v13913_v12  ;;  %v9214_v10 = vpop.f32.mrf.mxu0  ;;  %10251 = vmatpush1.bf16.msra.mxu0 %v13914_v7  ;;  %v13943_v12 = vld [vmem:[%s18275_s1 + $0x1134] ss:$8 sps:$4 sm:$0xff]  }
 0x3d8   : > { %v9407_v39 = vpop.f32.mrf.mxu1  ;;  %10444 = vmatpush1.bf16.msra.mxu1 %v13917_v16  ;;  %v17292_v41 = vadd.f32 %v9405_v52, %v9213_v17  ;;  %v9215_v11 = vadd.f32 %v9214_v10, %v16855_v59  ;;  %10252 = vmatprep.subr.bf16.mxu0 %v13928_v13  ;;  %v13922_v7 = vld [vmem:[%s14378_s17 + $0x3d4] ss:$144 sps:$4 sm:$0xff]   ;;  %v13925_v59 = vld [vmem:[%s14378_s17 + $0x3dc] ss:$144 sps:$4 sm:$0xff]   ;;  %v13938_v13 = vld [vmem:[%s18275_s1 + $0x1030] ss:$8 sps:$4 sm:$0xff]  }
 0x3d9   : > { %10445 = vmatprep.subr.bf16.mxu1 %v13931_v24  ;;  %v9216_v31 = vpop.f32.mrf.mxu0  ;;  %v13941_v24 = vld [vmem:[%s18275_s1 + $0x1130] ss:$8 sps:$4 sm:$0xff]   ;;  %v13955_v17 = vld [vmem:[%s18275_s1 + $0x1124] ss:$8 sps:$4 sm:$0xff]  }
 0x3da   : > { %v9409_v27 = vpop.f32.mrf.mxu1  ;;  %v17303_v36 = vadd.f32 %v9407_v39, %v9215_v11  ;;  %v9217_v38 = vadd.f32 %v9216_v31, %v16866_v60  ;;  %v13952_v60 = vld [vmem:[%s18275_s1 + $0x1024] ss:$8 sps:$4 sm:$0xff]  }
 0x3db   : > { %v9218_v16 = vpop.f32.mrf.mxu0  ;;  %10253 = vmatpush1.bf16.msra.mxu0 %v13926_v14 }
 0x3dc   : > { %v9411_v25 = vpop.f32.mrf.mxu1  ;;  %10446 = vmatpush1.bf16.msra.mxu1 %v13929_v28  ;;  %v17314_v40 = vadd.f32 %v9409_v27, %v9217_v38  ;;  %v9219_v52 = vadd.f32 %v9218_v16, %v16875_v4  ;;  %10254 = vmatprep.subr.bf16.mxu0 %v13940_v55  ;;  %v13950_v55 = vld [vmem:[%s18275_s1 + $0x1020] ss:$8 sps:$4 sm:$0xff]   ;;  %v13964_v27 = vld [vmem:[%s18275_s1 + $0x1014] ss:$8 sps:$4 sm:$0xff]  }
 0x3dd   : > { %10447 = vmatprep.subr.bf16.mxu1 %v13943_v12  ;;  %v9222_v10 = vpop.f32.mrf.mxu0  ;;  %9913 = vmatmul.mubr.bf16.gmra.mxu0 %v13908_v26  ;;  %v13953_v12 = vld [vmem:[%s18275_s1 + $0x1120] ss:$8 sps:$4 sm:$0xff]   ;;  %v13967_v26 = vld [vmem:[%s18275_s1 + $0x1114] ss:$8 sps:$4 sm:$0xff]  }
 0x3de   : > { %v9415_v39 = vpop.f32.mrf.mxu1  ;;  %10106 = vmatmul.mubr.bf16.gmra.mxu1 %v13911_v33  ;;  %v17323_v14 = vadd.f32 %v9411_v25, %v9219_v52  ;;  %v9223_v28 = vadd.f32 %v9222_v10, %v16884_v22  ;;  %9922 = vmatprep.mubr.bf16.mxu0 %v13922_v7  ;;  %v13920_v7 = vld [vmem:[%s14378_s17 + $0x3d0] ss:$144 sps:$4 sm:$0xff]  }
 0x3df   : > { %10115 = vmatprep.mubr.bf16.mxu1 %v13925_v59  ;;  %v9224_v4 = vpop.f32.mrf.mxu0  ;;  %10255 = vmatpush1.bf16.msra.mxu0 %v13938_v13  ;;  %v13923_v59 = vld [vmem:[%s14378_s17 + $0x3d8] ss:$144 sps:$4 sm:$0xff]   ;;  %v13934_v13 = vld [vmem:[%s14378_s17 + $0x4f4] ss:$144 sps:$4 sm:$0xff]  }
 0x3e0   : > { %v9417_v11 = vpop.f32.mrf.mxu1  ;;  %10448 = vmatpush1.bf16.msra.mxu1 %v13941_v24  ;;  %v17332_v31 = vadd.f32 %v9415_v39, %v9223_v28  ;;  %v9225_v22 = vadd.f32 %v9224_v4, %v16895_v58  ;;  %10256 = vmatprep.subr.bf16.mxu0 %v13952_v60  ;;  %v13937_v58 = vld [vmem:[%s14378_s17 + $0x4fc] ss:$144 sps:$4 sm:$0xff]   ;;  %v13962_v60 = vld [vmem:[%s18275_s1 + $0x1010] ss:$8 sps:$4 sm:$0xff]  }
 0x3e1   : > { %10449 = vmatprep.subr.bf16.mxu1 %v13955_v17  ;;  %v9226_v33 = vpop.f32.mrf.mxu0  ;;  %v13965_v17 = vld [vmem:[%s18275_s1 + $0x1110] ss:$8 sps:$4 sm:$0xff]   ;;  %v13979_v28 = vld [vmem:[%s18275_s1 + $0x1104] ss:$8 sps:$4 sm:$0xff]  }
 0x3e2   : > { %v9419_v38 = vpop.f32.mrf.mxu1  ;;  %v17343_v16 = vadd.f32 %v9417_v11, %v9225_v22  ;;  %v9227_v25 = vadd.f32 %v9226_v33, %v16906_v21  ;;  %v13976_v21 = vld [vmem:[%s18275_s1 + $0x1004] ss:$8 sps:$4 sm:$0xff]  }
 0x3e3   : > { %v9228_v24 = vpop.f32.mrf.mxu0  ;;  %10257 = vmatpush1.bf16.msra.mxu0 %v13950_v55 }
 0x3e4   : > { %v9421_v52 = vpop.f32.mrf.mxu1  ;;  %10450 = vmatpush1.bf16.msra.mxu1 %v13953_v12  ;;  %v17354_v10 = vadd.f32 %v9419_v38, %v9227_v25  ;;  %v9229_v39 = vadd.f32 %v9228_v24, %v16915_v50  ;;  %10258 = vmatprep.subr.bf16.mxu0 %v13964_v27  ;;  %v13974_v27 = vld [vmem:[%s18275_s1 + $0x1000] ss:$8 sps:$4 sm:$0xff]   ;;  %v13988_v38 = vld [vmem:[%s18275_s1 + $0x10f4] ss:$8 sps:$4 sm:$0xff]  }
 0x3e5   : > { %10451 = vmatprep.subr.bf16.mxu1 %v13967_v26  ;;  %v9232_v4 = vpop.f32.mrf.mxu0  ;;  %9923 = vmatmul.mubr.bf16.gmra.mxu0 %v13920_v7  ;;  %v13977_v26 = vld [vmem:[%s18275_s1 + $0x1100] ss:$8 sps:$4 sm:$0xff]   ;;  %v13991_v7 = vld [vmem:[%s18275_s1 + $0x11f4] ss:$8 sps:$4 sm:$0xff]  }
 0x3e6   : > { %v9425_v11 = vpop.f32.mrf.mxu1  ;;  %10116 = vmatmul.mubr.bf16.gmra.mxu1 %v13923_v59  ;;  %v17363_v55 = vadd.f32 %v9421_v52, %v9229_v39  ;;  %v9233_v12 = vadd.f32 %v9232_v4, %v16924_v1  ;;  %9932 = vmatprep.mubr.bf16.mxu0 %v13934_v13  ;;  %v13932_v13 = vld [vmem:[%s14378_s17 + $0x4f0] ss:$144 sps:$4 sm:$0xff]  }
 0x3e7   : > { %10125 = vmatprep.mubr.bf16.mxu1 %v13937_v58  ;;  %v9234_v50 = vpop.f32.mrf.mxu0  ;;  %10259 = vmatpush1.bf16.msra.mxu0 %v13962_v60  ;;  %v13935_v58 = vld [vmem:[%s14378_s17 + $0x4f8] ss:$144 sps:$4 sm:$0xff]   ;;  %v13946_v60 = vld [vmem:[%s14378_s17 + $0x614] ss:$144 sps:$4 sm:$0xff]  }
 0x3e8   : > { %v9427_v22 = vpop.f32.mrf.mxu1  ;;  %10452 = vmatpush1.bf16.msra.mxu1 %v13965_v17  ;;  %v17372_v33 = vadd.f32 %v9425_v11, %v9233_v12  ;;  %v9235_v1 = vadd.f32 %v9234_v50, %v16935_v57  ;;  %10260 = vmatprep.subr.bf16.mxu0 %v13976_v21  ;;  %v13949_v57 = vld [vmem:[%s14378_s17 + $0x61c] ss:$144 sps:$4 sm:$0xff]   ;;  %v13986_v21 = vld [vmem:[%s18275_s1 + $0x10f0] ss:$8 sps:$4 sm:$0xff]  }
 0x3e9   : > { %10453 = vmatprep.subr.bf16.mxu1 %v13979_v28  ;;  %v9236_v59 = vpop.f32.mrf.mxu0  ;;  %v13989_v28 = vld [vmem:[%s18275_s1 + $0x11f0] ss:$8 sps:$4 sm:$0xff]   ;;  %v14003_v12 = vld [vmem:[%s18275_s1 + $0x11e4] ss:$8 sps:$4 sm:$0xff]  }
 0x3ea   : > { %v9429_v25 = vpop.f32.mrf.mxu1  ;;  %v17383_v24 = vadd.f32 %v9427_v22, %v9235_v1  ;;  %v9237_v52 = vadd.f32 %v9236_v59, %v16946_v15  ;;  %v14000_v15 = vld [vmem:[%s18275_s1 + $0x10e4] ss:$8 sps:$4 sm:$0xff]   ;;  %v14001_v59 = vld [vmem:[%s18275_s1 + $0x11e0] ss:$8 sps:$4 sm:$0xff]  }
 0x3eb   : > { %v9238_v17 = vpop.f32.mrf.mxu0  ;;  %10261 = vmatpush1.bf16.msra.mxu0 %v13974_v27 }
 0x3ec   : > { %v9431_v39 = vpop.f32.mrf.mxu1  ;;  %10454 = vmatpush1.bf16.msra.mxu1 %v13977_v26  ;;  %v17394_v4 = vadd.f32 %v9429_v25, %v9237_v52  ;;  %v9239_v11 = vadd.f32 %v9238_v17, %v16955_v32  ;;  %10262 = vmatprep.subr.bf16.mxu0 %v13988_v38  ;;  %v18471_v26 = vld [vmem:[#allocation22_spill] sm:$0xff]  ;;  %v14012_v52 = vld [vmem:[%s18275_s1 + $0x10d4] ss:$8 sps:$4 sm:$0xff]  }
 0x3ed   : > { %10455 = vmatprep.subr.bf16.mxu1 %v13991_v7  ;;  %v9242_v50 = vpop.f32.mrf.mxu0  ;;  %9933 = vmatmul.mubr.bf16.gmra.mxu0 %v13932_v13  ;;  %v13998_v7 = vld [vmem:[%s18275_s1 + $0x10e0] ss:$8 sps:$4 sm:$0xff]  }
 0x3ee   : > { %v9435_v22 = vpop.f32.mrf.mxu1  ;;  %10126 = vmatmul.mubr.bf16.gmra.mxu1 %v13935_v58  ;;  %v17403_v27 = vadd.f32 %v9431_v39, %v9239_v11  ;;  %v9243_v1 = vadd.f32 %v9242_v50, %v18471_v26  ;;  %9942 = vmatprep.mubr.bf16.mxu0 %v13946_v60  ;;  %v18472_v13 = vld [vmem:[#allocation23_spill] sm:$0xff]  ;;  %v14015_v60 = vld [vmem:[%s18275_s1 + $0x11d4] ss:$8 sps:$4 sm:$0xff]   ;;  %v13944_v39 = vld [vmem:[%s14378_s17 + $0x610] ss:$144 sps:$4 sm:$0xff]  }
 0x3ef   : > { %10135 = vmatprep.mubr.bf16.mxu1 %v13949_v57  ;;  %v9244_v32 = vpop.f32.mrf.mxu0  ;;  %10263 = vmatpush2.bf16.msra.mxu0 %v13986_v21  ;;  %v13947_v21 = vld [vmem:[%s14378_s17 + $0x618] ss:$144 sps:$4 sm:$0xff]   ;;  %v13958_v50 = vld [vmem:[%s14378_s17 + $0x734] ss:$144 sps:$4 sm:$0xff]  }
 0x3f0   : > { %v9437_v38 = vpop.f32.mrf.mxu1  ;;  %10456 = vmatpush2.bf16.msra.mxu1 %v13989_v28  ;;  %v17412_v25 = vadd.f32 %v9435_v22, %v9243_v1  ;;  %v9245_v58 = vadd.f32 %v9244_v32, %v18472_v13  ;;  %10264 = vmatprep.subr.bf16.mxu0 %v14000_v15  ;;  %v13961_v22 = vld [vmem:[%s14378_s17 + $0x73c] ss:$144 sps:$4 sm:$0xff]   ;;  %v14010_v26 = vld [vmem:[%s18275_s1 + $0x10d0] ss:$8 sps:$4 sm:$0xff]  }
 0x3f1   : > { %10457 = vmatprep.subr.bf16.mxu1 %v14003_v12  ;;  %v9246_v57 = vpop.f32.mrf.mxu0  ;;  %v14013_v1 = vld [vmem:[%s18275_s1 + $0x11d0] ss:$8 sps:$4 sm:$0xff]  }
 0x3f2   : > { %v9439_v17 = vpop.f32.mrf.mxu1  ;;  %v17423_v28 = vadd.f32 %v9437_v38, %v9245_v58  ;;  %v9247_v11 = vadd.f32 %v9246_v57, %v16986_v46  ;;  %v18473_v38 = vld [vmem:[#allocation2_spill] sm:$0xff] }
 0x3f3   : > { %v9248_v15 = vpop.f32.mrf.mxu0  ;;  %10265 = vmatpush2.bf16.msra.mxu0 %v13998_v7  ;;  %v14024_v46 = vld [vmem:[%s18275_s1 + $0x10c4] ss:$8 sps:$4 sm:$0xff]  }
 0x3f4   : > { %v9441_v12 = vpop.f32.mrf.mxu1  ;;  %10458 = vmatpush2.bf16.msra.mxu1 %v14001_v59  ;;  %v17434_v32 = vadd.f32 %v9439_v17, %v9247_v11  ;;  %v9249_v13 = vadd.f32 %v9248_v15, %v18473_v38  ;;  %10266 = vmatprep.subr.bf16.mxu0 %v14012_v52  ;;  %v14027_v7 = vld [vmem:[%s18275_s1 + $0x11c4] ss:$8 sps:$4 sm:$0xff]   ;;  %v14022_v15 = vld [vmem:[%s18275_s1 + $0x10c0] ss:$8 sps:$4 sm:$0xff]  }
 0x3f5   : > { %10459 = vmatprep.subr.bf16.mxu1 %v14015_v60  ;;  %v9252_v59 = vpop.f32.mrf.mxu0  ;;  %9943 = vmatmul.mubr.bf16.gmra.mxu0 %v13944_v39  ;;  %v18475_v17 = vld [vmem:[#allocation3_spill] sm:$0xff] }
 0x3f6   : > { %v9445_v58 = vpop.f32.mrf.mxu1  ;;  %10136 = vmatmul.mubr.bf16.gmra.mxu1 %v13947_v21  ;;  %v17443_v57 = vadd.f32 %v9441_v12, %v9249_v13  ;;  %v9253_v11 = vadd.f32 %v9252_v59, %v18475_v17  ;;  %9952 = vmatprep.mubr.bf16.mxu0 %v13958_v50  ;;  %v14025_v39 = vld [vmem:[%s18275_s1 + $0x11c0] ss:$8 sps:$4 sm:$0xff]   ;;  %v18477_v50 = vld [vmem:[#allocation4_spill] sm:$0xff] }
 0x3f7   : > { %10145 = vmatprep.mubr.bf16.mxu1 %v13961_v22  ;;  %v9254_v52 = vpop.f32.mrf.mxu0  ;;  %10267 = vmatpush2.bf16.msra.mxu0 %v14010_v26  ;;  %v14036_v22 = vld [vmem:[%s18275_s1 + $0x10b4] ss:$8 sps:$4 sm:$0xff]   ;;  %v13956_v13 = vld [vmem:[%s14378_s17 + $0x730] ss:$144 sps:$4 sm:$0xff]   ;;  %v13959_v59 = vld [vmem:[%s14378_s17 + $0x738] ss:$144 sps:$4 sm:$0xff]  }
 0x3f8   : > { %18474 = vst [vmem:[#allocation21_spill] sm:$0xff] %v17443_v57  ;;  %v9447_v60 = vpop.f32.mrf.mxu1  ;;  %10460 = vmatpush2.bf16.msra.mxu1 %v14013_v1  ;;  %v17452_v21 = vadd.f32 %v9445_v58, %v9253_v11  ;;  %v9255_v12 = vadd.f32 %v9254_v52, %v18477_v50  ;;  %10268 = vmatprep.subr.bf16.mxu0 %v14024_v46  ;;  %v14039_v26 = vld [vmem:[%s18275_s1 + $0x11b4] ss:$8 sps:$4 sm:$0xff]   ;;  %v14034_v50 = vld [vmem:[%s18275_s1 + $0x10b0] ss:$8 sps:$4 sm:$0xff]  }
 0x3f9   : > { %10461 = vmatprep.subr.bf16.mxu1 %v14027_v7  ;;  %v9256_v1 = vpop.f32.mrf.mxu0  ;;  %v13970_v11 = vld [vmem:[%s14378_s17 + $0x854] ss:$144 sps:$4 sm:$0xff]   ;;  %v13973_v52 = vld [vmem:[%s14378_s17 + $0x85c] ss:$144 sps:$4 sm:$0xff]  }
 0x3fa   : > { %18476 = vst [vmem:[#allocation22_spill] sm:$0xff] %v17452_v21  ;;  %v9449_v38 = vpop.f32.mrf.mxu1  ;;  %v17463_v17 = vadd.f32 %v9447_v60, %v9255_v12  ;;  %v9257_v58 = vadd.f32 %v9256_v1, %v17026_v56  ;;  %v14037_v21 = vld [vmem:[%s18275_s1 + $0x11b0] ss:$8 sps:$4 sm:$0xff]   ;;  %v14048_v56 = vld [vmem:[%s18275_s1 + $0x10a4] ss:$8 sps:$4 sm:$0xff]  }
 0x3fb   : > { %v9258_v46 = vpop.f32.mrf.mxu0  ;;  %10269 = vmatpush2.bf16.msra.mxu0 %v14022_v15  ;;  %v14051_v15 = vld [vmem:[%s18275_s1 + $0x11a4] ss:$8 sps:$4 sm:$0xff]  }
 0x3fc   : > { %v9451_v7 = vpop.f32.mrf.mxu1  ;;  %10462 = vmatpush2.bf16.msra.mxu1 %v14025_v39  ;;  %v17474_v57 = vadd.f32 %v9449_v38, %v9257_v58  ;;  %v9259_v60 = vadd.f32 %v9258_v46, %v17035_v18  ;;  %10270 = vmatprep.subr.bf16.mxu0 %v14036_v22  ;;  %v18478_v38 = vld [vmem:[#allocation5_spill] sm:$0xff] }
 0x3fd   : > { %10463 = vmatprep.subr.bf16.mxu1 %v14039_v26  ;;  %v9262_v39 = vpop.f32.mrf.mxu0  ;;  %9953 = vmatmul.mubr.bf16.gmra.mxu0 %v13956_v13  ;;  %v14046_v26 = vld [vmem:[%s18275_s1 + $0x10a0] ss:$8 sps:$4 sm:$0xff]  }
 0x3fe   : > { %v9455_v12 = vpop.f32.mrf.mxu1  ;;  %10146 = vmatmul.mubr.bf16.gmra.mxu1 %v13959_v59  ;;  %v17483_v1 = vadd.f32 %v9451_v7, %v9259_v60  ;;  %v9263_v58 = vadd.f32 %v9262_v39, %v18478_v38  ;;  %9962 = vmatprep.mubr.bf16.mxu0 %v13970_v11  ;;  %v14049_v13 = vld [vmem:[%s18275_s1 + $0x11a0] ss:$8 sps:$4 sm:$0xff]   ;;  %v13982_v38 = vld [vmem:[%s14378_s17 + $0x974] ss:$144 sps:$4 sm:$0xff]  }
 0x3ff   : > { %10155 = vmatprep.mubr.bf16.mxu1 %v13973_v52  ;;  %v9264_v18 = vpop.f32.mrf.mxu0  ;;  %10271 = vmatpush2.bf16.msra.mxu0 %v14034_v50  ;;  %v14060_v52 = vld [vmem:[%s18275_s1 + $0x1094] ss:$8 sps:$4 sm:$0xff]   ;;  %v13968_v50 = vld [vmem:[%s14378_s17 + $0x850] ss:$144 sps:$4 sm:$0xff]   ;;  %v13971_v60 = vld [vmem:[%s14378_s17 + $0x858] ss:$144 sps:$4 sm:$0xff]  }
 0x400   : > { %v9457_v22 = vpop.f32.mrf.mxu1  ;;  %10464 = vmatpush2.bf16.msra.mxu1 %v14037_v21  ;;  %v17492_v59 = vadd.f32 %v9455_v12, %v9263_v58  ;;  %v9265_v11 = vadd.f32 %v9264_v18, %v17055_v34  ;;  %10272 = vmatprep.subr.bf16.mxu0 %v14048_v56  ;;  %v14063_v21 = vld [vmem:[%s18275_s1 + $0x1194] ss:$8 sps:$4 sm:$0xff]   ;;  %v14058_v58 = vld [vmem:[%s18275_s1 + $0x1090] ss:$8 sps:$4 sm:$0xff]  }
 0x401   : > { %10465 = vmatprep.subr.bf16.mxu1 %v14051_v15  ;;  %v9266_v46 = vpop.f32.mrf.mxu0  ;;  %v13985_v34 = vld [vmem:[%s14378_s17 + $0x97c] ss:$144 sps:$4 sm:$0xff]   ;;  %v14061_v18 = vld [vmem:[%s18275_s1 + $0x1190] ss:$8 sps:$4 sm:$0xff]  }
 0x402   : > { %18479 = vst [vmem:[#allocation23_spill] sm:$0xff] %v17492_v59  ;;  %v9459_v7 = vpop.f32.mrf.mxu1  ;;  %v17503_v39 = vadd.f32 %v9457_v22, %v9265_v11  ;;  %v9267_v12 = vadd.f32 %v9266_v46, %v17066_v2  ;;  %v18482_v22 = vld [vmem:[#allocation6_spill] sm:$0xff] }
 0x403   : > { %v9268_v56 = vpop.f32.mrf.mxu0  ;;  %10273 = vmatpush2.bf16.msra.mxu0 %v14046_v26  ;;  %v14072_v2 = vld [vmem:[%s18275_s1 + $0x1084] ss:$8 sps:$4 sm:$0xff]  }
 0x404   : > { %18480 = vst [vmem:[#allocation2_spill] sm:$0xff] %v17503_v39  ;;  %v9461_v15 = vpop.f32.mrf.mxu1  ;;  %10466 = vmatpush2.bf16.msra.mxu1 %v14049_v13  ;;  %v17514_v59 = vadd.f32 %v9459_v7, %v9267_v12  ;;  %v9269_v11 = vadd.f32 %v9268_v56, %v18482_v22  ;;  %10274 = vmatprep.subr.bf16.mxu0 %v14060_v52  ;;  %v14075_v26 = vld [vmem:[%s18275_s1 + $0x1184] ss:$8 sps:$4 sm:$0xff]   ;;  %v14070_v56 = vld [vmem:[%s18275_s1 + $0x1080] ss:$8 sps:$4 sm:$0xff]  }
 0x405   : > { %10467 = vmatprep.subr.bf16.mxu1 %v14063_v21  ;;  %v9272_v13 = vpop.f32.mrf.mxu0  ;;  %9963 = vmatmul.mubr.bf16.gmra.mxu0 %v13968_v50  ;;  %v18484_v7 = vld [vmem:[#allocation7_spill] sm:$0xff]  ;;  %v13980_v22 = vld [vmem:[%s14378_s17 + $0x970] ss:$144 sps:$4 sm:$0xff]  }
 0x406   : > { %18481 = vst [vmem:[#allocation3_spill] sm:$0xff] %v17514_v59  ;;  %v9465_v46 = vpop.f32.mrf.mxu1  ;;  %10156 = vmatmul.mubr.bf16.gmra.mxu1 %v13971_v60  ;;  %v17523_v39 = vadd.f32 %v9461_v15, %v9269_v11  ;;  %v9273_v12 = vadd.f32 %v9272_v13, %v18484_v7  ;;  %9972 = vmatprep.mubr.bf16.mxu0 %v13982_v38  ;;  %v14073_v50 = vld [vmem:[%s18275_s1 + $0x1180] ss:$8 sps:$4 sm:$0xff]   ;;  %v13994_v13 = vld [vmem:[%s14378_s17 + $0xa94] ss:$144 sps:$4 sm:$0xff]  }
 0x407   : > { %10165 = vmatprep.mubr.bf16.mxu1 %v13985_v34  ;;  %v9274_v52 = vpop.f32.mrf.mxu0  ;;  %10275 = vmatpush2.bf16.msra.mxu0 %v14058_v58  ;;  %v13983_v11 = vld [vmem:[%s14378_s17 + $0x978] ss:$144 sps:$4 sm:$0xff]   ;;  %v13997_v7 = vld [vmem:[%s14378_s17 + $0xa9c] ss:$144 sps:$4 sm:$0xff]  }
 0x408   : > { %18483 = vst [vmem:[#allocation4_spill] sm:$0xff] %v17523_v39  ;;  %v9467_v21 = vpop.f32.mrf.mxu1  ;;  %10468 = vmatpush2.bf16.msra.mxu1 %v14061_v18  ;;  %v17532_v60 = vadd.f32 %v9465_v46, %v9273_v12  ;;  %v9275_v15 = vadd.f32 %v9274_v52, %v17095_v37  ;;  %10276 = vmatprep.subr.bf16.mxu0 %v14072_v2 }
 0x409   : > { %10469 = vmatprep.subr.bf16.mxu1 %v14075_v26  ;;  %v9276_v38 = vpop.f32.mrf.mxu0 }
 0x40a   : > { %v9469_v34 = vpop.f32.mrf.mxu1  ;;  %v17537_v58 = vadd.f32 %v9467_v21, %v9275_v15  ;;  %v9277_v18 = vadd.f32 %v9276_v38, %v17100_v3  ;;  %v13992_v15 = vld [vmem:[%s14378_s17 + $0xa90] ss:$144 sps:$4 sm:$0xff]   ;;  %v13995_v38 = vld [vmem:[%s14378_s17 + $0xa98] ss:$144 sps:$4 sm:$0xff]  }
 0x40b   : > { %v9278_v39 = vpop.f32.mrf.mxu0  ;;  %10277 = vmatpush2.bf16.msra.mxu0 %v14070_v56 }
 0x40c   : > { %v9471_v59 = vpop.f32.mrf.mxu1  ;;  %10470 = vmatpush2.bf16.msra.mxu1 %v14073_v50  ;;  %v17542_v46 = vadd.f32 %v9469_v34, %v9277_v18  ;;  %v9279_v37 = vadd.f32 %v9278_v39, %v17103_v35 }
 0x40d   : > { %v9508_v2 = vpop.f32.mrf.mxu0  ;;  %9973 = vmatmul.mubr.bf16.gmra.mxu0 %v13980_v22 }
 0x40e   : > { %v9701_v26 = vpop.f32.mrf.mxu1  ;;  %10166 = vmatmul.mubr.bf16.gmra.mxu1 %v13983_v11  ;;  %v17545_v12 = vadd.f32 %v9471_v59, %v9279_v37  ;;  %v9509_v3 = vadd.f32 %v9508_v2, %v17106_v49  ;;  %9982 = vmatprep.mubr.bf16.mxu0 %v13994_v13  ;;  %v14006_v59 = vld [vmem:[%s14378_s17 + $0xbb4] ss:$144 sps:$4 sm:$0xff]   ;;  %v14009_v11 = vld [vmem:[%s14378_s17 + $0xbbc] ss:$144 sps:$4 sm:$0xff]  }
 0x40f   : > { %10175 = vmatprep.mubr.bf16.mxu1 %v13997_v7  ;;  %v9510_v52 = vpop.f32.mrf.mxu0 }
 0x410   : > { %v9703_v21 = vpop.f32.mrf.mxu1  ;;  %v17548_v56 = vadd.f32 %v9701_v26, %v9509_v3  ;;  %v9511_v50 = vadd.f32 %v9510_v52, %v17111_v62 }
 0x411   : > { %v9512_v35 = vpop.f32.mrf.mxu0 }
 0x412   : > { %v9705_v39 = vpop.f32.mrf.mxu1  ;;  %v17553_v34 = vadd.f32 %v9703_v21, %v9511_v50  ;;  %v9513_v22 = vadd.f32 %v9512_v35, %v17116_v19  ;;  %v14004_v35 = vld [vmem:[%s14378_s17 + $0xbb0] ss:$144 sps:$4 sm:$0xff]  }
 0x413   : > { %v9514_v18 = vpop.f32.mrf.mxu0 }
 0x414   : > { %v9707_v49 = vpop.f32.mrf.mxu1  ;;  %v17558_v13 = vadd.f32 %v9705_v39, %v9513_v22  ;;  %v9515_v7 = vadd.f32 %v9514_v18, %v17119_v54  ;;  %v14007_v39 = vld [vmem:[%s14378_s17 + $0xbb8] ss:$144 sps:$4 sm:$0xff]   ;;  %v14018_v22 = vld [vmem:[%s14378_s17 + $0xcd4] ss:$144 sps:$4 sm:$0xff]   ;;  %v14021_v18 = vld [vmem:[%s14378_s17 + $0xcdc] ss:$144 sps:$4 sm:$0xff]  }
 0x415   : > { %v9518_v37 = vpop.f32.mrf.mxu0  ;;  %9983 = vmatmul.mubr.bf16.gmra.mxu0 %v13992_v15 }
 0x416   : > { %v9711_v62 = vpop.f32.mrf.mxu1  ;;  %10176 = vmatmul.mubr.bf16.gmra.mxu1 %v13995_v38  ;;  %v17561_v2 = vadd.f32 %v9707_v49, %v9515_v7  ;;  %v9519_v19 = vadd.f32 %v9518_v37, %v17122_v44  ;;  %9992 = vmatprep.mubr.bf16.mxu0 %v14006_v59 }
 0x417   : > { %10185 = vmatprep.mubr.bf16.mxu1 %v14009_v11  ;;  %v9520_v26 = vpop.f32.mrf.mxu0 }
 0x418   : > { %v9713_v3 = vpop.f32.mrf.mxu1  ;;  %v17564_v52 = vadd.f32 %v9711_v62, %v9519_v19  ;;  %v9521_v21 = vadd.f32 %v9520_v26, %v17127_v48 }
 0x419   : > { %v9522_v54 = vpop.f32.mrf.mxu0 }
 0x41a   : > { %v9715_v50 = vpop.f32.mrf.mxu1  ;;  %v17569_v15 = vadd.f32 %v9713_v3, %v9521_v21  ;;  %v9523_v38 = vadd.f32 %v9522_v54, %v17132_v8  ;;  %v14016_v54 = vld [vmem:[%s14378_s17 + $0xcd0] ss:$144 sps:$4 sm:$0xff]  }
 0x41b   : > { %v9524_v49 = vpop.f32.mrf.mxu0 }
 0x41c   : > { %v9717_v44 = vpop.f32.mrf.mxu1  ;;  %v17574_v59 = vadd.f32 %v9715_v50, %v9523_v38  ;;  %v9525_v11 = vadd.f32 %v9524_v49, %v17135_v45  ;;  %v14019_v50 = vld [vmem:[%s14378_s17 + $0xcd8] ss:$144 sps:$4 sm:$0xff]   ;;  %v14030_v38 = vld [vmem:[%s14378_s17 + $0xdf4] ss:$144 sps:$4 sm:$0xff]   ;;  %v14033_v49 = vld [vmem:[%s14378_s17 + $0xdfc] ss:$144 sps:$4 sm:$0xff]  }
 0x41d   : > { %v9528_v7 = vpop.f32.mrf.mxu0  ;;  %9993 = vmatmul.mubr.bf16.gmra.mxu0 %v14004_v35 }
 0x41e   : > { %v9721_v48 = vpop.f32.mrf.mxu1  ;;  %10186 = vmatmul.mubr.bf16.gmra.mxu1 %v14007_v39  ;;  %v17577_v37 = vadd.f32 %v9717_v44, %v9525_v11  ;;  %v9529_v8 = vadd.f32 %v9528_v7, %v17138_v63  ;;  %10002 = vmatprep.mubr.bf16.mxu0 %v14018_v22 }
 0x41f   : > { %10195 = vmatprep.mubr.bf16.mxu1 %v14021_v18  ;;  %v9530_v62 = vpop.f32.mrf.mxu0 }
 0x420   : > { %v9723_v19 = vpop.f32.mrf.mxu1  ;;  %v17580_v26 = vadd.f32 %v9721_v48, %v9529_v8  ;;  %v9531_v3 = vadd.f32 %v9530_v62, %v17143_v61 }
 0x421   : > { %v9532_v45 = vpop.f32.mrf.mxu0 }
 0x422   : > { %v9725_v21 = vpop.f32.mrf.mxu1  ;;  %v17585_v35 = vadd.f32 %v9723_v19, %v9531_v3  ;;  %v9533_v39 = vadd.f32 %v9532_v45, %v17148_v6  ;;  %v14028_v45 = vld [vmem:[%s14378_s17 + $0xdf0] ss:$144 sps:$4 sm:$0xff]  }
 0x423   : > { %v9534_v44 = vpop.f32.mrf.mxu0 }
 0x424   : > { %v9727_v63 = vpop.f32.mrf.mxu1  ;;  %v17590_v22 = vadd.f32 %v9725_v21, %v9533_v39  ;;  %v9535_v18 = vadd.f32 %v9534_v44, %v17151_v51  ;;  %v14031_v21 = vld [vmem:[%s14378_s17 + $0xdf8] ss:$144 sps:$4 sm:$0xff]   ;;  %v14042_v39 = vld [vmem:[%s14378_s17 + $0xf14] ss:$144 sps:$4 sm:$0xff]   ;;  %v14045_v44 = vld [vmem:[%s14378_s17 + $0xf1c] ss:$144 sps:$4 sm:$0xff]  }
 0x425   : > { %v9538_v11 = vpop.f32.mrf.mxu0  ;;  %10003 = vmatmul.mubr.bf16.gmra.mxu0 %v14016_v54 }
 0x426   : > { %v9731_v61 = vpop.f32.mrf.mxu1  ;;  %10196 = vmatmul.mubr.bf16.gmra.mxu1 %v14019_v50  ;;  %v17593_v7 = vadd.f32 %v9727_v63, %v9535_v18  ;;  %v9539_v6 = vadd.f32 %v9538_v11, %v17154_v23  ;;  %10012 = vmatprep.mubr.bf16.mxu0 %v14030_v38 }
 0x427   : > { %10205 = vmatprep.mubr.bf16.mxu1 %v14033_v49  ;;  %v9540_v48 = vpop.f32.mrf.mxu0 }
 0x428   : > { %v9733_v8 = vpop.f32.mrf.mxu1  ;;  %v17596_v62 = vadd.f32 %v9731_v61, %v9539_v6  ;;  %v9541_v19 = vadd.f32 %v9540_v48, %v17159_v29 }
 0x429   : > { %v9542_v51 = vpop.f32.mrf.mxu0 }
 0x42a   : > { %v9735_v3 = vpop.f32.mrf.mxu1  ;;  %v17601_v54 = vadd.f32 %v9733_v8, %v9541_v19  ;;  %v9543_v50 = vadd.f32 %v9542_v51, %v17164_v5  ;;  %v14040_v51 = vld [vmem:[%s14378_s17 + $0xf10] ss:$144 sps:$4 sm:$0xff]  }
 0x42b   : > { %v9544_v63 = vpop.f32.mrf.mxu0 }
 0x42c   : > { %v9737_v23 = vpop.f32.mrf.mxu1  ;;  %v17606_v38 = vadd.f32 %v9735_v3, %v9543_v50  ;;  %v9545_v49 = vadd.f32 %v9544_v63, %v17167_v9  ;;  %v14043_v3 = vld [vmem:[%s14378_s17 + $0xf18] ss:$144 sps:$4 sm:$0xff]   ;;  %v14054_v50 = vld [vmem:[%s14378_s17 + $0x1034] ss:$144 sps:$4 sm:$0xff]   ;;  %v14057_v63 = vld [vmem:[%s14378_s17 + $0x103c] ss:$144 sps:$4 sm:$0xff]  }
 0x42d   : > { %v9548_v18 = vpop.f32.mrf.mxu0  ;;  %10013 = vmatmul.mubr.bf16.gmra.mxu0 %v14028_v45 }
 0x42e   : > { %v9741_v29 = vpop.f32.mrf.mxu1  ;;  %10206 = vmatmul.mubr.bf16.gmra.mxu1 %v14031_v21  ;;  %v17609_v11 = vadd.f32 %v9737_v23, %v9545_v49  ;;  %v9549_v5 = vadd.f32 %v9548_v18, %v17170_v43  ;;  %10022 = vmatprep.mubr.bf16.mxu0 %v14042_v39 }
 0x42f   : > { %10215 = vmatprep.mubr.bf16.mxu1 %v14045_v44  ;;  %v9550_v61 = vpop.f32.mrf.mxu0  ;;  %v18487_v44 = vld [vmem:[#allocation8_spill] sm:$0xff] }
 0x430   : > { %v9743_v6 = vpop.f32.mrf.mxu1  ;;  %v17612_v48 = vadd.f32 %v9741_v29, %v9549_v5  ;;  %v9551_v8 = vadd.f32 %v9550_v61, %v17175_v42  ;;  %v18489_v5 = vld [vmem:[#allocation9_spill] sm:$0xff] }
 0x431   : > { %v9552_v9 = vpop.f32.mrf.mxu0 }
 0x432   : > { %v9745_v19 = vpop.f32.mrf.mxu1  ;;  %v17617_v45 = vadd.f32 %v9743_v6, %v9551_v8  ;;  %v9553_v21 = vadd.f32 %v9552_v9, %v17180_v47  ;;  %v18491_v9 = vld [vmem:[#allocation10_spill] sm:$0xff] }
 0x433   : > { %v9554_v23 = vpop.f32.mrf.mxu0 }
 0x434   : > { %18485 = vst [vmem:[#allocation5_spill] sm:$0xff] %v17617_v45  ;;  %v9747_v43 = vpop.f32.mrf.mxu1  ;;  %v17622_v39 = vadd.f32 %v9745_v19, %v9553_v21  ;;  %v9555_v49 = vadd.f32 %v9554_v23, %v18487_v44  ;;  %v14052_v44 = vld [vmem:[%s14378_s17 + $0x1030] ss:$144 sps:$4 sm:$0xff]  }
 0x435   : > { %v9558_v18 = vpop.f32.mrf.mxu0  ;;  %10023 = vmatmul.mubr.bf16.gmra.mxu0 %v14040_v51 }
 0x436   : > { %18486 = vst [vmem:[#allocation6_spill] sm:$0xff] %v17622_v39  ;;  %v9751_v42 = vpop.f32.mrf.mxu1  ;;  %10216 = vmatmul.mubr.bf16.gmra.mxu1 %v14043_v3  ;;  %v17625_v29 = vadd.f32 %v9747_v43, %v9555_v49  ;;  %v9559_v47 = vadd.f32 %v9558_v18, %v18489_v5  ;;  %10032 = vmatprep.mubr.bf16.mxu0 %v14054_v50  ;;  %v14055_v39 = vld [vmem:[%s14378_s17 + $0x1038] ss:$144 sps:$4 sm:$0xff]   ;;  %v14066_v43 = vld [vmem:[%s14378_s17 + $0x1154] ss:$144 sps:$4 sm:$0xff]  }
 0x437   : > { %10225 = vmatprep.mubr.bf16.mxu1 %v14057_v63  ;;  %v9560_v61 = vpop.f32.mrf.mxu0  ;;  %v18493_v3 = vld [vmem:[#allocation11_spill] sm:$0xff]  ;;  %v18495_v63 = vld [vmem:[#allocation12_spill] sm:$0xff] }
 0x438   : > { %18488 = vst [vmem:[#allocation7_spill] sm:$0xff] %v17625_v29  ;;  %v9753_v6 = vpop.f32.mrf.mxu1  ;;  %v17628_v8 = vadd.f32 %v9751_v42, %v9559_v47  ;;  %v9561_v19 = vadd.f32 %v9560_v61, %v18491_v9  ;;  %v14069_v49 = vld [vmem:[%s14378_s17 + $0x115c] ss:$144 sps:$4 sm:$0xff]  }
 0x439   : > { %v9562_v21 = vpop.f32.mrf.mxu0 }
 0x43a   : > { %18490 = vst [vmem:[#allocation8_spill] sm:$0xff] %v17628_v8  ;;  %v9755_v23 = vpop.f32.mrf.mxu1  ;;  %v17633_v51 = vadd.f32 %v9753_v6, %v9561_v19  ;;  %v9563_v45 = vadd.f32 %v9562_v21, %v18493_v3  ;;  %v18497_v6 = vld [vmem:[#allocation13_spill] sm:$0xff] }
 0x43b   : > { %v9564_v29 = vpop.f32.mrf.mxu0 }
 0x43c   : > { %18492 = vst [vmem:[#allocation9_spill] sm:$0xff] %v17633_v51  ;;  %v9757_v18 = vpop.f32.mrf.mxu1  ;;  %v17638_v50 = vadd.f32 %v9755_v23, %v9563_v45  ;;  %v9565_v42 = vadd.f32 %v9564_v29, %v18495_v63  ;;  %v18499_v23 = vld [vmem:[#allocation14_spill] sm:$0xff]  ;;  %v14067_v51 = vld [vmem:[%s14378_s17 + $0x1158] ss:$144 sps:$4 sm:$0xff]  }
 0x43d   : > { %v9568_v5 = vpop.f32.mrf.mxu0  ;;  %10033 = vmatmul.mubr.bf16.gmra.mxu0 %v14052_v44 }
 0x43e   : > { %18494 = vst [vmem:[#allocation10_spill] sm:$0xff] %v17638_v50  ;;  %v9761_v47 = vpop.f32.mrf.mxu1  ;;  %10226 = vmatmul.mubr.bf16.gmra.mxu1 %v14055_v39  ;;  %v17641_v61 = vadd.f32 %v9757_v18, %v9565_v42  ;;  %v9569_v9 = vadd.f32 %v9568_v5, %v18497_v6  ;;  %10042 = vmatprep.mubr.bf16.mxu0 %v14066_v43  ;;  %v14064_v50 = vld [vmem:[%s14378_s17 + $0x1150] ss:$144 sps:$4 sm:$0xff]   ;;  %v18501_v39 = vld [vmem:[#allocation15_spill] sm:$0xff]  ;;  %v14078_v18 = vld [vmem:[%s14378_s17 + $0x84] ss:$144 sps:$4 sm:$0xff]  }
 0x43f   : > { %10235 = vmatprep.mubr.bf16.mxu1 %v14069_v49  ;;  %v9570_v19 = vpop.f32.mrf.mxu0  ;;  %v14081_v42 = vld [vmem:[%s14378_s17 + $0x8c] ss:$144 sps:$4 sm:$0xff]   ;;  %v18503_v49 = vld [vmem:[#allocation16_spill] sm:$0xff] }
 0x440   : > { %18496 = vst [vmem:[#allocation11_spill] sm:$0xff] %v17641_v61  ;;  %v9763_v21 = vpop.f32.mrf.mxu1  ;;  %v17644_v45 = vadd.f32 %v9761_v47, %v9569_v9  ;;  %v9571_v3 = vadd.f32 %v9570_v19, %v18499_v23 }
 0x441   : > { %v9572_v29 = vpop.f32.mrf.mxu0 }
 0x442   : > { %18498 = vst [vmem:[#allocation12_spill] sm:$0xff] %v17644_v45  ;;  %v9765_v63 = vpop.f32.mrf.mxu1  ;;  %v17649_v44 = vadd.f32 %v9763_v21, %v9571_v3  ;;  %v9573_v8 = vadd.f32 %v9572_v29, %v18501_v39  ;;  %v18505_v21 = vld [vmem:[#allocation17_spill] sm:$0xff] }
 0x443   : > { %v9574_v61 = vpop.f32.mrf.mxu0 }
 0x444   : > { %18500 = vst [vmem:[#allocation13_spill] sm:$0xff] %v17649_v44  ;;  %v9767_v5 = vpop.f32.mrf.mxu1  ;;  %v17654_v43 = vadd.f32 %v9765_v63, %v9573_v8  ;;  %v9575_v47 = vadd.f32 %v9574_v61, %v18503_v49  ;;  %v18506_v63 = vld [vmem:[#allocation18_spill] sm:$0xff]  ;;  %v14079_v44 = vld [vmem:[%s14378_s17 + $0x88] ss:$144 sps:$4 sm:$0xff]  }
 0x445   : > { %v9578_v6 = vpop.f32.mrf.mxu0  ;;  %10043 = vmatmul.mubr.bf16.gmra.mxu0 %v14064_v50 }
 0x446   : > { %18502 = vst [vmem:[#allocation14_spill] sm:$0xff] %v17654_v43  ;;  %v9771_v9 = vpop.f32.mrf.mxu1  ;;  %10236 = vmatmul.mubr.bf16.gmra.mxu1 %v14067_v51  ;;  %v17657_v19 = vadd.f32 %v9767_v5, %v9575_v47  ;;  %v9579_v23 = vadd.f32 %v9578_v6, %v18505_v21  ;;  %10278 = vmatprep.mubr.bf16.mxu0 %v14078_v18  ;;  %v14076_v43 = vld [vmem:[%s14378_s17 + $0x80] ss:$144 sps:$4 sm:$0xff]   ;;  %v18507_v51 = vld [vmem:[#allocation19_spill] sm:$0xff]  ;;  %v14084_v5 = vld [vmem:[%s14378_s17 + $0x1a4] ss:$144 sps:$4 sm:$0xff]  }
 0x447   : > { %10471 = vmatprep.mubr.bf16.mxu1 %v14081_v42  ;;  %v9580_v3 = vpop.f32.mrf.mxu0  ;;  %v14087_v47 = vld [vmem:[%s14378_s17 + $0x1ac] ss:$144 sps:$4 sm:$0xff]   ;;  %v18508_v42 = vld [vmem:[#allocation20_spill] sm:$0xff] }
 0x448   : > { %18504 = vst [vmem:[#allocation15_spill] sm:$0xff] %v17657_v19  ;;  %v9773_v29 = vpop.f32.mrf.mxu1  ;;  %v17660_v8 = vadd.f32 %v9771_v9, %v9579_v23  ;;  %v9581_v39 = vadd.f32 %v9580_v3, %v18506_v63 }
 0x449   : > { %v9582_v61 = vpop.f32.mrf.mxu0 }
 0x44a   : > { %v9775_v49 = vpop.f32.mrf.mxu1  ;;  %v17665_v50 = vadd.f32 %v9773_v29, %v9581_v39  ;;  %v9583_v45 = vadd.f32 %v9582_v61, %v18507_v51  ;;  %v14082_v51 = vld [vmem:[%s14378_s17 + $0x1a0] ss:$144 sps:$4 sm:$0xff]  }
 0x44b   : > { %v9584_v19 = vpop.f32.mrf.mxu0 }
 0x44c   : > { %v9777_v6 = vpop.f32.mrf.mxu1  ;;  %v17670_v18 = vadd.f32 %v9775_v49, %v9583_v45  ;;  %v9585_v9 = vadd.f32 %v9584_v19, %v18508_v42  ;;  %v14085_v42 = vld [vmem:[%s14378_s17 + $0x1a8] ss:$144 sps:$4 sm:$0xff]  }
 0x44d   : > { %v9588_v21 = vpop.f32.mrf.mxu0  ;;  %10279 = vmatmul.mubr.bf16.vlgmr.msra.gmra.mxu0 %v14076_v43 }
 0x44e   : > { %v9781_v23 = vpop.f32.mrf.mxu1  ;;  %10472 = vmatmul.mubr.bf16.vlgmr.msra.gmra.mxu1 %v14079_v44  ;;  %v17673_v3 = vadd.f32 %v9777_v6, %v9585_v9  ;;  %v9589_v29 = vadd.f32 %v9588_v21, %v17258_v20  ;;  %10288 = vmatprep.mubr.bf16.mxu0 %v14084_v5  ;;  %v14090_v6 = vld [vmem:[%s14378_s17 + $0x2c4] ss:$144 sps:$4 sm:$0xff]   ;;  %v14093_v9 = vld [vmem:[%s14378_s17 + $0x2cc] ss:$144 sps:$4 sm:$0xff]  }
 0x44f   : > { %10481 = vmatprep.mubr.bf16.mxu1 %v14087_v47  ;;  %v9590_v63 = vpop.f32.mrf.mxu0 }
 0x450   : > { %18509 = vst [vmem:[#allocation16_spill] sm:$0xff] %v17673_v3  ;;  %v9783_v39 = vpop.f32.mrf.mxu1  ;;  %v17676_v45 = vadd.f32 %v9781_v23, %v9589_v29  ;;  %v9591_v61 = vadd.f32 %v9590_v63, %v17263_v53 }
 0x451   : > { %v9592_v19 = vpop.f32.mrf.mxu0 }
 0x452   : > { %v9785_v49 = vpop.f32.mrf.mxu1  ;;  %v17681_v43 = vadd.f32 %v9783_v39, %v9591_v61  ;;  %v9593_v44 = vadd.f32 %v9592_v19, %v17274_v0  ;;  %v14088_v19 = vld [vmem:[%s14378_s17 + $0x2c0] ss:$144 sps:$4 sm:$0xff]  }
 0x453   : > { %v9594_v3 = vpop.f32.mrf.mxu0 }
 0x454   : > { %v9787_v20 = vpop.f32.mrf.mxu1  ;;  %v17686_v5 = vadd.f32 %v9785_v49, %v9593_v44  ;;  %v9595_v47 = vadd.f32 %v9594_v3, %v17283_v30  ;;  %v14091_v49 = vld [vmem:[%s14378_s17 + $0x2c8] ss:$144 sps:$4 sm:$0xff]   ;;  %v14096_v44 = vld [vmem:[%s14378_s17 + $0x3e4] ss:$144 sps:$4 sm:$0xff]  }
 0x455   : > { %v9598_v21 = vpop.f32.mrf.mxu0  ;;  %10289 = vmatmul.mubr.bf16.gmra.mxu0 %v14082_v51 }
 0x456   : > { %v9791_v53 = vpop.f32.mrf.mxu1  ;;  %10482 = vmatmul.mubr.bf16.gmra.mxu1 %v14085_v42  ;;  %v17689_v23 = vadd.f32 %v9787_v20, %v9595_v47  ;;  %v9599_v0 = vadd.f32 %v9598_v21, %v17292_v41  ;;  %10298 = vmatprep.mubr.bf16.mxu0 %v14090_v6  ;;  %v14099_v20 = vld [vmem:[%s14378_s17 + $0x3ec] ss:$144 sps:$4 sm:$0xff]  }
 0x457   : > { %10491 = vmatprep.mubr.bf16.mxu1 %v14093_v9  ;;  %v9600_v29 = vpop.f32.mrf.mxu0 }
 0x458   : > { %v9793_v63 = vpop.f32.mrf.mxu1  ;;  %v17692_v39 = vadd.f32 %v9791_v53, %v9599_v0  ;;  %v9601_v61 = vadd.f32 %v9600_v29, %v17303_v36 }
 0x459   : > { %v9602_v30 = vpop.f32.mrf.mxu0 }
 0x45a   : > { %v9795_v3 = vpop.f32.mrf.mxu1  ;;  %v17697_v51 = vadd.f32 %v9793_v63, %v9601_v61  ;;  %v9603_v42 = vadd.f32 %v9602_v30, %v17314_v40 }
 0x45b   : > { %v9604_v47 = vpop.f32.mrf.mxu0 }
 0x45c   : > { %v9797_v41 = vpop.f32.mrf.mxu1  ;;  %v17702_v6 = vadd.f32 %v9795_v3, %v9603_v42  ;;  %v9605_v9 = vadd.f32 %v9604_v47, %v17323_v14  ;;  %v14094_v3 = vld [vmem:[%s14378_s17 + $0x3e0] ss:$144 sps:$4 sm:$0xff]   ;;  %v14097_v42 = vld [vmem:[%s14378_s17 + $0x3e8] ss:$144 sps:$4 sm:$0xff]   ;;  %v14102_v47 = vld [vmem:[%s14378_s17 + $0x504] ss:$144 sps:$4 sm:$0xff]  }
 0x45d   : > { %v9608_v21 = vpop.f32.mrf.mxu0  ;;  %10299 = vmatmul.mubr.bf16.gmra.mxu0 %v14088_v19 }
 0x45e   : > { %v9801_v36 = vpop.f32.mrf.mxu1  ;;  %10492 = vmatmul.mubr.bf16.gmra.mxu1 %v14091_v49  ;;  %v17705_v53 = vadd.f32 %v9797_v41, %v9605_v9  ;;  %v9609_v40 = vadd.f32 %v9608_v21, %v17332_v31  ;;  %10308 = vmatprep.mubr.bf16.mxu0 %v14096_v44  ;;  %v14105_v41 = vld [vmem:[%s14378_s17 + $0x50c] ss:$144 sps:$4 sm:$0xff]  }
 0x45f   : > { %10501 = vmatprep.mubr.bf16.mxu1 %v14099_v20  ;;  %v9610_v0 = vpop.f32.mrf.mxu0 }
 0x460   : > { %v9803_v29 = vpop.f32.mrf.mxu1  ;;  %v17708_v63 = vadd.f32 %v9801_v36, %v9609_v40  ;;  %v9611_v61 = vadd.f32 %v9610_v0, %v17343_v16 }
 0x461   : > { %v9612_v14 = vpop.f32.mrf.mxu0 }
 0x462   : > { %v9805_v30 = vpop.f32.mrf.mxu1  ;;  %v17713_v19 = vadd.f32 %v9803_v29, %v9611_v61  ;;  %v9613_v49 = vadd.f32 %v9612_v14, %v17354_v10 }
 0x463   : > { %v9614_v9 = vpop.f32.mrf.mxu0 }
 0x464   : > { %v9807_v31 = vpop.f32.mrf.mxu1  ;;  %v17718_v44 = vadd.f32 %v9805_v30, %v9613_v49  ;;  %v9615_v20 = vadd.f32 %v9614_v9, %v17363_v55  ;;  %v14100_v30 = vld [vmem:[%s14378_s17 + $0x500] ss:$144 sps:$4 sm:$0xff]   ;;  %v14103_v49 = vld [vmem:[%s14378_s17 + $0x508] ss:$144 sps:$4 sm:$0xff]   ;;  %v14108_v9 = vld [vmem:[%s14378_s17 + $0x624] ss:$144 sps:$4 sm:$0xff]  }
 0x465   : > { %v9618_v21 = vpop.f32.mrf.mxu0  ;;  %10309 = vmatmul.mubr.bf16.gmra.mxu0 %v14094_v3 }
 0x466   : > { %v9811_v16 = vpop.f32.mrf.mxu1  ;;  %10502 = vmatmul.mubr.bf16.gmra.mxu1 %v14097_v42  ;;  %v17721_v36 = vadd.f32 %v9807_v31, %v9615_v20  ;;  %v9619_v10 = vadd.f32 %v9618_v21, %v17372_v33  ;;  %10318 = vmatprep.mubr.bf16.mxu0 %v14102_v47  ;;  %v14111_v31 = vld [vmem:[%s14378_s17 + $0x62c] ss:$144 sps:$4 sm:$0xff]  }
 0x467   : > { %10511 = vmatprep.mubr.bf16.mxu1 %v14105_v41  ;;  %v9620_v40 = vpop.f32.mrf.mxu0 }
 0x468   : > { %v9813_v0 = vpop.f32.mrf.mxu1  ;;  %v17724_v29 = vadd.f32 %v9811_v16, %v9619_v10  ;;  %v9621_v61 = vadd.f32 %v9620_v40, %v17383_v24 }
 0x469   : > { %v9622_v55 = vpop.f32.mrf.mxu0 }
 0x46a   : > { %v9815_v14 = vpop.f32.mrf.mxu1  ;;  %v17729_v3 = vadd.f32 %v9813_v0, %v9621_v61  ;;  %v9623_v42 = vadd.f32 %v9622_v55, %v17394_v4 }
 0x46b   : > { %v9624_v20 = vpop.f32.mrf.mxu0 }
 0x46c   : > { %v9817_v33 = vpop.f32.mrf.mxu1  ;;  %v17734_v47 = vadd.f32 %v9815_v14, %v9623_v42  ;;  %v9625_v41 = vadd.f32 %v9624_v20, %v17403_v27  ;;  %v14106_v14 = vld [vmem:[%s14378_s17 + $0x620] ss:$144 sps:$4 sm:$0xff]   ;;  %v14109_v42 = vld [vmem:[%s14378_s17 + $0x628] ss:$144 sps:$4 sm:$0xff]   ;;  %v14114_v20 = vld [vmem:[%s14378_s17 + $0x744] ss:$144 sps:$4 sm:$0xff]  }
 0x46d   : > { %v9628_v21 = vpop.f32.mrf.mxu0  ;;  %10319 = vmatmul.mubr.bf16.gmra.mxu0 %v14100_v30 }
 0x46e   : > { %v9821_v24 = vpop.f32.mrf.mxu1  ;;  %10512 = vmatmul.mubr.bf16.gmra.mxu1 %v14103_v49  ;;  %v17737_v16 = vadd.f32 %v9817_v33, %v9625_v41  ;;  %v9629_v4 = vadd.f32 %v9628_v21, %v17412_v25  ;;  %10328 = vmatprep.mubr.bf16.mxu0 %v14108_v9  ;;  %v14117_v33 = vld [vmem:[%s14378_s17 + $0x74c] ss:$144 sps:$4 sm:$0xff]  }
 0x46f   : > { %10521 = vmatprep.mubr.bf16.mxu1 %v14111_v31  ;;  %v9630_v10 = vpop.f32.mrf.mxu0  ;;  %v18511_v31 = vld [vmem:[#allocation21_spill] sm:$0xff] }
 0x470   : > { %v9823_v40 = vpop.f32.mrf.mxu1  ;;  %v17740_v0 = vadd.f32 %v9821_v24, %v9629_v4  ;;  %v9631_v61 = vadd.f32 %v9630_v10, %v17423_v28  ;;  %v18513_v10 = vld [vmem:[#allocation22_spill] sm:$0xff] }
 0x471   : > { %v9632_v27 = vpop.f32.mrf.mxu0 }
 0x472   : > { %v9825_v55 = vpop.f32.mrf.mxu1  ;;  %v17745_v30 = vadd.f32 %v9823_v40, %v9631_v61  ;;  %v9633_v49 = vadd.f32 %v9632_v27, %v17434_v32 }
 0x473   : > { %v9634_v41 = vpop.f32.mrf.mxu0 }
 0x474   : > { %v9827_v25 = vpop.f32.mrf.mxu1  ;;  %v17750_v9 = vadd.f32 %v9825_v55, %v9633_v49  ;;  %v9635_v21 = vadd.f32 %v9634_v41, %v18511_v31  ;;  %v14112_v31 = vld [vmem:[%s14378_s17 + $0x740] ss:$144 sps:$4 sm:$0xff]  }
 0x475   : > { %v9638_v24 = vpop.f32.mrf.mxu0  ;;  %10329 = vmatmul.mubr.bf16.gmra.mxu0 %v14106_v14 }
 0x476   : > { %18510 = vst [vmem:[#allocation17_spill] sm:$0xff] %v17750_v9  ;;  %v9831_v28 = vpop.f32.mrf.mxu1  ;;  %10522 = vmatmul.mubr.bf16.gmra.mxu1 %v14109_v42  ;;  %v17753_v4 = vadd.f32 %v9827_v25, %v9635_v21  ;;  %v9639_v32 = vadd.f32 %v9638_v24, %v18513_v10  ;;  %10338 = vmatprep.mubr.bf16.mxu0 %v14114_v20  ;;  %v14115_v9 = vld [vmem:[%s14378_s17 + $0x748] ss:$144 sps:$4 sm:$0xff]   ;;  %v14120_v25 = vld [vmem:[%s14378_s17 + $0x864] ss:$144 sps:$4 sm:$0xff]  }
 0x477   : > { %10531 = vmatprep.mubr.bf16.mxu1 %v14117_v33  ;;  %v9640_v40 = vpop.f32.mrf.mxu0  ;;  %v14123_v21 = vld [vmem:[%s14378_s17 + $0x86c] ss:$144 sps:$4 sm:$0xff]  }
 0x478   : > { %18512 = vst [vmem:[#allocation18_spill] sm:$0xff] %v17753_v4  ;;  %v9833_v61 = vpop.f32.mrf.mxu1  ;;  %v17756_v27 = vadd.f32 %v9831_v28, %v9639_v32  ;;  %v9641_v55 = vadd.f32 %v9640_v40, %v17463_v17  ;;  %v18517_v32 = vld [vmem:[#allocation23_spill] sm:$0xff] }
 0x479   : > { %v9642_v49 = vpop.f32.mrf.mxu0 }
 0x47a   : > { %v9835_v41 = vpop.f32.mrf.mxu1  ;;  %v17761_v14 = vadd.f32 %v9833_v61, %v9641_v55  ;;  %v9643_v42 = vadd.f32 %v9642_v49, %v17474_v57  ;;  %v18518_v49 = vld [vmem:[#allocation2_spill] sm:$0xff] }
 0x47b   : > { %v9644_v4 = vpop.f32.mrf.mxu0 }
 0x47c   : > { %18514 = vst [vmem:[#allocation19_spill] sm:$0xff] %v17761_v14  ;;  %v9837_v24 = vpop.f32.mrf.mxu1  ;;  %v17766_v20 = vadd.f32 %v9835_v41, %v9643_v42  ;;  %v9645_v33 = vadd.f32 %v9644_v4, %v17483_v1  ;;  %v14118_v42 = vld [vmem:[%s14378_s17 + $0x860] ss:$144 sps:$4 sm:$0xff]  }
 0x47d   : > { %v9648_v28 = vpop.f32.mrf.mxu0  ;;  %10339 = vmatmul.mubr.bf16.gmra.mxu0 %v14112_v31 }
 0x47e   : > { %18515 = vst [vmem:[#allocation20_spill] sm:$0xff] %v17766_v20  ;;  %v9841_v17 = vpop.f32.mrf.mxu1  ;;  %10532 = vmatmul.mubr.bf16.gmra.mxu1 %v14115_v9  ;;  %v17769_v10 = vadd.f32 %v9837_v24, %v9645_v33  ;;  %v9649_v57 = vadd.f32 %v9648_v28, %v18517_v32  ;;  %10348 = vmatprep.mubr.bf16.mxu0 %v14120_v25  ;;  %v14121_v20 = vld [vmem:[%s14378_s17 + $0x868] ss:$144 sps:$4 sm:$0xff]   ;;  %v14126_v24 = vld [vmem:[%s14378_s17 + $0x984] ss:$144 sps:$4 sm:$0xff]  }
 0x47f   : > { %10541 = vmatprep.mubr.bf16.mxu1 %v14123_v21  ;;  %v9650_v40 = vpop.f32.mrf.mxu0  ;;  %v18519_v9 = vld [vmem:[#allocation3_spill] sm:$0xff]  ;;  %v18520_v21 = vld [vmem:[#allocation4_spill] sm:$0xff] }
 0x480   : > { %18516 = vst [vmem:[#allocation21_spill] sm:$0xff] %v17769_v10  ;;  %v9843_v61 = vpop.f32.mrf.mxu1  ;;  %v17772_v55 = vadd.f32 %v9841_v17, %v9649_v57  ;;  %v9651_v41 = vadd.f32 %v9650_v40, %v18518_v49  ;;  %v14129_v33 = vld [vmem:[%s14378_s17 + $0x98c] ss:$144 sps:$4 sm:$0xff]  }
 0x481   : > { %v9652_v1 = vpop.f32.mrf.mxu0 }
 0x482   : > { %v9845_v4 = vpop.f32.mrf.mxu1  ;;  %v17777_v31 = vadd.f32 %v9843_v61, %v9651_v41  ;;  %v9653_v14 = vadd.f32 %v9652_v1, %v18519_v9  ;;  %v14124_v9 = vld [vmem:[%s14378_s17 + $0x980] ss:$144 sps:$4 sm:$0xff]  }
 0x483   : > { %v9654_v10 = vpop.f32.mrf.mxu0 }
 0x484   : > { %v9847_v28 = vpop.f32.mrf.mxu1  ;;  %v17782_v25 = vadd.f32 %v9845_v4, %v9653_v14  ;;  %v9655_v17 = vadd.f32 %v9654_v10, %v18520_v21  ;;  %v14127_v21 = vld [vmem:[%s14378_s17 + $0x988] ss:$144 sps:$4 sm:$0xff]  }
 0x485   : > { %v9658_v32 = vpop.f32.mrf.mxu0  ;;  %10349 = vmatmul.mubr.bf16.gmra.mxu0 %v14118_v42 }
 0x486   : > { %v9851_v57 = vpop.f32.mrf.mxu1  ;;  %10542 = vmatmul.mubr.bf16.gmra.mxu1 %v14121_v20  ;;  %v17785_v40 = vadd.f32 %v9847_v28, %v9655_v17  ;;  %v9659_v61 = vadd.f32 %v9658_v32, %v17532_v60  ;;  %10358 = vmatprep.mubr.bf16.mxu0 %v14126_v24  ;;  %v14132_v28 = vld [vmem:[%s14378_s17 + $0xaa4] ss:$144 sps:$4 sm:$0xff]   ;;  %v14135_v17 = vld [vmem:[%s14378_s17 + $0xaac] ss:$144 sps:$4 sm:$0xff]  }
 0x487   : > { %10551 = vmatprep.mubr.bf16.mxu1 %v14129_v33  ;;  %v9660_v49 = vpop.f32.mrf.mxu0 }
 0x488   : > { %18521 = vst [vmem:[#allocation22_spill] sm:$0xff] %v17785_v40  ;;  %v9853_v41 = vpop.f32.mrf.mxu1  ;;  %v17788_v14 = vadd.f32 %v9851_v57, %v9659_v61  ;;  %v9661_v1 = vadd.f32 %v9660_v49, %v17537_v58 }
 0x489   : > { %v9662_v10 = vpop.f32.mrf.mxu0 }
 0x48a   : > { %v9855_v4 = vpop.f32.mrf.mxu1  ;;  %v17793_v42 = vadd.f32 %v9853_v41, %v9661_v1  ;;  %v9663_v20 = vadd.f32 %v9662_v10, %v17542_v46  ;;  %v14130_v10 = vld [vmem:[%s14378_s17 + $0xaa0] ss:$144 sps:$4 sm:$0xff]  }
 0x48b   : > { %v9664_v40 = vpop.f32.mrf.mxu0 }
 0x48c   : > { %v9857_v60 = vpop.f32.mrf.mxu1  ;;  %v17798_v24 = vadd.f32 %v9855_v4, %v9663_v20  ;;  %v9665_v33 = vadd.f32 %v9664_v40, %v17545_v12  ;;  %v14133_v4 = vld [vmem:[%s14378_s17 + $0xaa8] ss:$144 sps:$4 sm:$0xff]   ;;  %v14138_v20 = vld [vmem:[%s14378_s17 + $0xbc4] ss:$144 sps:$4 sm:$0xff]  }
 0x48d   : > { %v9894_v32 = vpop.f32.mrf.mxu0  ;;  %10359 = vmatmul.mubr.bf16.gmra.mxu0 %v14124_v9 }
 0x48e   : > { %v10087_v58 = vpop.f32.mrf.mxu1  ;;  %10552 = vmatmul.mubr.bf16.gmra.mxu1 %v14127_v21  ;;  %v17801_v57 = vadd.f32 %v9857_v60, %v9665_v33  ;;  %v9895_v46 = vadd.f32 %v9894_v32, %v17548_v56  ;;  %10368 = vmatprep.mubr.bf16.mxu0 %v14132_v28  ;;  %v14141_v60 = vld [vmem:[%s14378_s17 + $0xbcc] ss:$144 sps:$4 sm:$0xff]  }
 0x48f   : > { %10561 = vmatprep.mubr.bf16.mxu1 %v14135_v17  ;;  %v9896_v61 = vpop.f32.mrf.mxu0 }
 0x490   : > { %v10089_v49 = vpop.f32.mrf.mxu1  ;;  %v17804_v41 = vadd.f32 %v10087_v58, %v9895_v46  ;;  %v9897_v1 = vadd.f32 %v9896_v61, %v17553_v34 }
 0x491   : > { %v9898_v12 = vpop.f32.mrf.mxu0 }
 0x492   : > { %v10091_v40 = vpop.f32.mrf.mxu1  ;;  %v17809_v9 = vadd.f32 %v10089_v49, %v9897_v1  ;;  %v9899_v21 = vadd.f32 %v9898_v12, %v17558_v13 }
 0x493   : > { %v9900_v33 = vpop.f32.mrf.mxu0 }
 0x494   : > { %v10093_v56 = vpop.f32.mrf.mxu1  ;;  %v17814_v28 = vadd.f32 %v10091_v40, %v9899_v21  ;;  %v9901_v17 = vadd.f32 %v9900_v33, %v17561_v2  ;;  %v14136_v40 = vld [vmem:[%s14378_s17 + $0xbc0] ss:$144 sps:$4 sm:$0xff]   ;;  %v14139_v21 = vld [vmem:[%s14378_s17 + $0xbc8] ss:$144 sps:$4 sm:$0xff]   ;;  %v14144_v33 = vld [vmem:[%s14378_s17 + $0xce4] ss:$144 sps:$4 sm:$0xff]  }
 0x495   : > { %v9904_v32 = vpop.f32.mrf.mxu0  ;;  %10369 = vmatmul.mubr.bf16.gmra.mxu0 %v14130_v10 }
 0x496   : > { %v10097_v34 = vpop.f32.mrf.mxu1  ;;  %10562 = vmatmul.mubr.bf16.gmra.mxu1 %v14133_v4  ;;  %v17817_v58 = vadd.f32 %v10093_v56, %v9901_v17  ;;  %v9905_v13 = vadd.f32 %v9904_v32, %v17564_v52  ;;  %10378 = vmatprep.mubr.bf16.mxu0 %v14138_v20  ;;  %v14147_v56 = vld [vmem:[%s14378_s17 + $0xcec] ss:$144 sps:$4 sm:$0xff]  }
 0x497   : > { %10571 = vmatprep.mubr.bf16.mxu1 %v14141_v60  ;;  %v9906_v46 = vpop.f32.mrf.mxu0 }
 0x498   : > { %v10099_v61 = vpop.f32.mrf.mxu1  ;;  %v17820_v49 = vadd.f32 %v10097_v34, %v9905_v13  ;;  %v9907_v1 = vadd.f32 %v9906_v46, %v17569_v15 }
 0x499   : > { %v9908_v2 = vpop.f32.mrf.mxu0 }
 0x49a   : > { %v10101_v12 = vpop.f32.mrf.mxu1  ;;  %v17825_v10 = vadd.f32 %v10099_v61, %v9907_v1  ;;  %v9909_v4 = vadd.f32 %v9908_v2, %v17574_v59 }
 0x49b   : > { %v9910_v17 = vpop.f32.mrf.mxu0 }
 0x49c   : > { %v10103_v52 = vpop.f32.mrf.mxu1  ;;  %v17830_v20 = vadd.f32 %v10101_v12, %v9909_v4  ;;  %v9911_v60 = vadd.f32 %v9910_v17, %v17577_v37  ;;  %v14142_v12 = vld [vmem:[%s14378_s17 + $0xce0] ss:$144 sps:$4 sm:$0xff]   ;;  %v14145_v4 = vld [vmem:[%s14378_s17 + $0xce8] ss:$144 sps:$4 sm:$0xff]   ;;  %v14150_v17 = vld [vmem:[%s14378_s17 + $0xe04] ss:$144 sps:$4 sm:$0xff]  }
 0x49d   : > { %v9914_v32 = vpop.f32.mrf.mxu0  ;;  %10379 = vmatmul.mubr.bf16.gmra.mxu0 %v14136_v40 }
 0x49e   : > { %v10107_v15 = vpop.f32.mrf.mxu1  ;;  %10572 = vmatmul.mubr.bf16.gmra.mxu1 %v14139_v21  ;;  %v17833_v34 = vadd.f32 %v10103_v52, %v9911_v60  ;;  %v9915_v59 = vadd.f32 %v9914_v32, %v17580_v26  ;;  %10388 = vmatprep.mubr.bf16.mxu0 %v14144_v33  ;;  %v14153_v52 = vld [vmem:[%s14378_s17 + $0xe0c] ss:$144 sps:$4 sm:$0xff]  }
 0x49f   : > { %10581 = vmatprep.mubr.bf16.mxu1 %v14147_v56  ;;  %v9916_v13 = vpop.f32.mrf.mxu0 }
 0x4a0   : > { %v10109_v46 = vpop.f32.mrf.mxu1  ;;  %v17836_v61 = vadd.f32 %v10107_v15, %v9915_v59  ;;  %v9917_v1 = vadd.f32 %v9916_v13, %v17585_v35 }
 0x4a1   : > { %v9918_v37 = vpop.f32.mrf.mxu0 }
 0x4a2   : > { %v10111_v2 = vpop.f32.mrf.mxu1  ;;  %v17841_v40 = vadd.f32 %v10109_v46, %v9917_v1  ;;  %v9919_v21 = vadd.f32 %v9918_v37, %v17590_v22 }
 0x4a3   : > { %v9920_v60 = vpop.f32.mrf.mxu0 }
 0x4a4   : > { %v10113_v26 = vpop.f32.mrf.mxu1  ;;  %v17846_v33 = vadd.f32 %v10111_v2, %v9919_v21  ;;  %v9921_v56 = vadd.f32 %v9920_v60, %v17593_v7  ;;  %v14148_v2 = vld [vmem:[%s14378_s17 + $0xe00] ss:$144 sps:$4 sm:$0xff]   ;;  %v14151_v21 = vld [vmem:[%s14378_s17 + $0xe08] ss:$144 sps:$4 sm:$0xff]   ;;  %v14156_v60 = vld [vmem:[%s14378_s17 + $0xf24] ss:$144 sps:$4 sm:$0xff]  }
 0x4a5   : > { %v9924_v32 = vpop.f32.mrf.mxu0  ;;  %10389 = vmatmul.mubr.bf16.gmra.mxu0 %v14142_v12 }
 0x4a6   : > { %v10117_v35 = vpop.f32.mrf.mxu1  ;;  %10582 = vmatmul.mubr.bf16.gmra.mxu1 %v14145_v4  ;;  %v17849_v15 = vadd.f32 %v10113_v26, %v9921_v56  ;;  %v9925_v22 = vadd.f32 %v9924_v32, %v17596_v62  ;;  %10398 = vmatprep.mubr.bf16.mxu0 %v14150_v17  ;;  %v14159_v26 = vld [vmem:[%s14378_s17 + $0xf2c] ss:$144 sps:$4 sm:$0xff]  }
 0x4a7   : > { %10591 = vmatprep.mubr.bf16.mxu1 %v14153_v52  ;;  %v9926_v59 = vpop.f32.mrf.mxu0 }
 0x4a8   : > { %v10119_v13 = vpop.f32.mrf.mxu1  ;;  %v17852_v46 = vadd.f32 %v10117_v35, %v9925_v22  ;;  %v9927_v1 = vadd.f32 %v9926_v59, %v17601_v54 }
 0x4a9   : > { %v9928_v7 = vpop.f32.mrf.mxu0 }
 0x4aa   : > { %v10121_v37 = vpop.f32.mrf.mxu1  ;;  %v17857_v12 = vadd.f32 %v10119_v13, %v9927_v1  ;;  %v9929_v4 = vadd.f32 %v9928_v7, %v17606_v38  ;;  %v18525_v1 = vld [vmem:[#allocation5_spill] sm:$0xff] }
 0x4ab   : > { %v9930_v56 = vpop.f32.mrf.mxu0 }
 0x4ac   : > { %v10123_v62 = vpop.f32.mrf.mxu1  ;;  %v17862_v17 = vadd.f32 %v10121_v37, %v9929_v4  ;;  %v9931_v52 = vadd.f32 %v9930_v56, %v17609_v11  ;;  %v14154_v4 = vld [vmem:[%s14378_s17 + $0xf20] ss:$144 sps:$4 sm:$0xff]   ;;  %v14157_v56 = vld [vmem:[%s14378_s17 + $0xf28] ss:$144 sps:$4 sm:$0xff]  }
 0x4ad   : > { %v9934_v32 = vpop.f32.mrf.mxu0  ;;  %10399 = vmatmul.mubr.bf16.gmra.mxu0 %v14148_v2 }
 0x4ae   : > { %18522 = vst [vmem:[#allocation23_spill] sm:$0xff] %v17862_v17  ;;  %v10127_v54 = vpop.f32.mrf.mxu1  ;;  %10592 = vmatmul.mubr.bf16.gmra.mxu1 %v14151_v21  ;;  %v17865_v35 = vadd.f32 %v10123_v62, %v9931_v52  ;;  %v9935_v38 = vadd.f32 %v9934_v32, %v17612_v48  ;;  %10408 = vmatprep.mubr.bf16.mxu0 %v14156_v60  ;;  %v18527_v21 = vld [vmem:[#allocation6_spill] sm:$0xff]  ;;  %v14165_v52 = vld [vmem:[%s14378_s17 + $0x104c] ss:$144 sps:$4 sm:$0xff]  }
 0x4af   : > { %10601 = vmatprep.mubr.bf16.mxu1 %v14159_v26  ;;  %v9936_v22 = vpop.f32.mrf.mxu0  ;;  %v14162_v62 = vld [vmem:[%s14378_s17 + $0x1044] ss:$144 sps:$4 sm:$0xff]   ;;  %v18529_v26 = vld [vmem:[#allocation7_spill] sm:$0xff] }
 0x4b0   : > { %18523 = vst [vmem:[#allocation2_spill] sm:$0xff] %v17865_v35  ;;  %v10129_v59 = vpop.f32.mrf.mxu1  ;;  %v17868_v13 = vadd.f32 %v10127_v54, %v9935_v38  ;;  %v9937_v7 = vadd.f32 %v9936_v22, %v18525_v1 }
 0x4b1   : > { %v9938_v11 = vpop.f32.mrf.mxu0 }
 0x4b2   : > { %18524 = vst [vmem:[#allocation3_spill] sm:$0xff] %v17868_v13  ;;  %v10131_v37 = vpop.f32.mrf.mxu1  ;;  %v17873_v2 = vadd.f32 %v10129_v59, %v9937_v7  ;;  %v9939_v17 = vadd.f32 %v9938_v11, %v18527_v21  ;;  %v18531_v59 = vld [vmem:[#allocation8_spill] sm:$0xff] }
 0x4b3   : > { %v9940_v35 = vpop.f32.mrf.mxu0 }
 0x4b4   : > { %18526 = vst [vmem:[#allocation4_spill] sm:$0xff] %v17873_v2  ;;  %v10133_v48 = vpop.f32.mrf.mxu1  ;;  %v17878_v60 = vadd.f32 %v10131_v37, %v9939_v17  ;;  %v9941_v32 = vadd.f32 %v9940_v35, %v18529_v26  ;;  %v18533_v37 = vld [vmem:[#allocation9_spill] sm:$0xff] }
 0x4b5   : > { %v9944_v54 = vpop.f32.mrf.mxu0  ;;  %10409 = vmatmul.mubr.bf16.gmra.mxu0 %v14154_v4  ;;  %v14163_v2 = vld [vmem:[%s14378_s17 + $0x1048] ss:$144 sps:$4 sm:$0xff]  }
 0x4b6   : > { %18528 = vst [vmem:[#allocation5_spill] sm:$0xff] %v17878_v60  ;;  %v10137_v38 = vpop.f32.mrf.mxu1  ;;  %10602 = vmatmul.mubr.bf16.gmra.mxu1 %v14157_v56  ;;  %v17881_v22 = vadd.f32 %v10133_v48, %v9941_v32  ;;  %v9945_v1 = vadd.f32 %v9944_v54, %v18531_v59  ;;  %10418 = vmatprep.mubr.bf16.mxu0 %v14162_v62  ;;  %v14160_v60 = vld [vmem:[%s14378_s17 + $0x1040] ss:$144 sps:$4 sm:$0xff]   ;;  %v14168_v48 = vld [vmem:[%s14378_s17 + $0x1164] ss:$144 sps:$4 sm:$0xff]  }
 0x4b7   : > { %10611 = vmatprep.mubr.bf16.mxu1 %v14165_v52  ;;  %v9946_v7 = vpop.f32.mrf.mxu0  ;;  %v18535_v56 = vld [vmem:[#allocation10_spill] sm:$0xff]  ;;  %v14171_v32 = vld [vmem:[%s14378_s17 + $0x116c] ss:$144 sps:$4 sm:$0xff]  }
 0x4b8   : > { %18530 = vst [vmem:[#allocation6_spill] sm:$0xff] %v17881_v22  ;;  %v10139_v11 = vpop.f32.mrf.mxu1  ;;  %v17884_v17 = vadd.f32 %v10137_v38, %v9945_v1  ;;  %v9947_v21 = vadd.f32 %v9946_v7, %v18533_v37  ;;  %v18537_v52 = vld [vmem:[#allocation11_spill] sm:$0xff] }
 0x4b9   : > { %v9948_v35 = vpop.f32.mrf.mxu0 }
 0x4ba   : > { %18532 = vst [vmem:[#allocation7_spill] sm:$0xff] %v17884_v17  ;;  %v10141_v26 = vpop.f32.mrf.mxu1  ;;  %v17889_v4 = vadd.f32 %v10139_v11, %v9947_v21  ;;  %v9949_v13 = vadd.f32 %v9948_v35, %v18535_v56  ;;  %v18539_v11 = vld [vmem:[#allocation12_spill] sm:$0xff] }
 0x4bb   : > { %v9950_v22 = vpop.f32.mrf.mxu0 }
 0x4bc   : > { %18534 = vst [vmem:[#allocation8_spill] sm:$0xff] %v17889_v4  ;;  %v10143_v54 = vpop.f32.mrf.mxu1  ;;  %v17894_v62 = vadd.f32 %v10141_v26, %v9949_v13  ;;  %v9951_v38 = vadd.f32 %v9950_v22, %v18537_v52  ;;  %v18540_v13 = vld [vmem:[#allocation13_spill] sm:$0xff]  ;;  %v14166_v22 = vld [vmem:[%s14378_s17 + $0x1160] ss:$144 sps:$4 sm:$0xff]  }
 0x4bd   : > { %v9954_v59 = vpop.f32.mrf.mxu0  ;;  %10419 = vmatmul.mubr.bf16.gmra.mxu0 %v14160_v60  ;;  %v14169_v52 = vld [vmem:[%s14378_s17 + $0x1168] ss:$144 sps:$4 sm:$0xff]   ;;  %v18541_v60 = vld [vmem:[#allocation14_spill] sm:$0xff] }
 0x4be   : > { %18536 = vst [vmem:[#allocation9_spill] sm:$0xff] %v17894_v62  ;;  %v10147_v1 = vpop.f32.mrf.mxu1  ;;  %10612 = vmatmul.mubr.bf16.gmra.mxu1 %v14163_v2  ;;  %v17897_v7 = vadd.f32 %v10143_v54, %v9951_v38  ;;  %v9955_v37 = vadd.f32 %v9954_v59, %v18539_v11  ;;  %10428 = vmatprep.mubr.bf16.mxu0 %v14168_v48  ;;  %v18542_v48 = vld [vmem:[#allocation15_spill] sm:$0xff] }
 0x4bf   : > { %10621 = vmatprep.mubr.bf16.mxu1 %v14171_v32  ;;  %v9956_v21 = vpop.f32.mrf.mxu0 }
 0x4c0   : > { %18538 = vst [vmem:[#allocation10_spill] sm:$0xff] %v17897_v7  ;;  %v10149_v35 = vpop.f32.mrf.mxu1  ;;  %v17900_v56 = vadd.f32 %v10147_v1, %v9955_v37  ;;  %v9957_v26 = vadd.f32 %v9956_v21, %v18540_v13 }
 0x4c1   : > { %v9958_v62 = vpop.f32.mrf.mxu0 }
 0x4c2   : > { %v10151_v4 = vpop.f32.mrf.mxu1  ;;  %v17905_v17 = vadd.f32 %v10149_v35, %v9957_v26  ;;  %v9959_v2 = vadd.f32 %v9958_v62, %v18541_v60 }
 0x4c3   : > { %v9960_v54 = vpop.f32.mrf.mxu0 }
 0x4c4   : > { %v10153_v38 = vpop.f32.mrf.mxu1  ;;  %v17908_v7 = vadd.f32 %v10151_v4, %v9959_v2  ;;  %v9961_v32 = vadd.f32 %v9960_v54, %v18542_v48 }
 0x4c5   : > { %v9964_v59 = vpop.f32.mrf.mxu0  ;;  %10429 = vmatmul.mubr.bf16.gmra.mxu0 %v14166_v22 }
 0x4c6   : > { %v10157_v11 = vpop.f32.mrf.mxu1  ;;  %10622 = vmatmul.mubr.bf16.gmra.mxu1 %v14169_v52  ;;  %v17911_v1 = vadd.f32 %v10153_v38, %v9961_v32  ;;  %v9965_v37 = vadd.f32 %v9964_v59, %v17660_v8  ;;  %v18543_v52 = vld [vmem:[#allocation16_spill] sm:$0xff] }
 0x4c7   : > { %v9966_v21 = vpop.f32.mrf.mxu0 }
 0x4c8   : > { %v10159_v13 = vpop.f32.mrf.mxu1  ;;  %v17914_v35 = vadd.f32 %v10157_v11, %v9965_v37  ;;  %v9967_v62 = vadd.f32 %v9966_v21, %v17665_v50 }
 0x4c9   : > { %v9968_v26 = vpop.f32.mrf.mxu0 }
 0x4ca   : > { %v10161_v60 = vpop.f32.mrf.mxu1  ;;  %v17917_v4 = vadd.f32 %v10159_v13, %v9967_v62  ;;  %v9969_v2 = vadd.f32 %v9968_v26, %v17670_v18 }
 0x4cb   : > { %v9970_v54 = vpop.f32.mrf.mxu0 }
 0x4cc   : > { %v10163_v48 = vpop.f32.mrf.mxu1  ;;  %v17920_v22 = vadd.f32 %v10161_v60, %v9969_v2  ;;  %v9971_v38 = vadd.f32 %v9970_v54, %v18543_v52 }
 0x4cd   : > { %v9974_v32 = vpop.f32.mrf.mxu0 }
 0x4ce   : > { %v10167_v8 = vpop.f32.mrf.mxu1  ;;  %v17923_v59 = vadd.f32 %v10163_v48, %v9971_v38  ;;  %v9975_v11 = vadd.f32 %v9974_v32, %v17676_v45 }
 0x4cf   : > { %v9976_v37 = vpop.f32.mrf.mxu0 }
 0x4d0   : > { %v10169_v50 = vpop.f32.mrf.mxu1  ;;  %v17926_v21 = vadd.f32 %v10167_v8, %v9975_v11  ;;  %v9977_v13 = vadd.f32 %v9976_v37, %v17681_v43 }
 0x4d1   : > { %v9978_v62 = vpop.f32.mrf.mxu0 }
 0x4d2   : > { %v10171_v18 = vpop.f32.mrf.mxu1  ;;  %v17929_v26 = vadd.f32 %v10169_v50, %v9977_v13  ;;  %v9979_v60 = vadd.f32 %v9978_v62, %v17686_v5 }
 0x4d3   : > { %v9980_v2 = vpop.f32.mrf.mxu0 }
 0x4d4   : > { %v10173_v54 = vpop.f32.mrf.mxu1  ;;  %v17932_v52 = vadd.f32 %v10171_v18, %v9979_v60  ;;  %v9981_v48 = vadd.f32 %v9980_v2, %v17689_v23 }
 0x4d5   : > { %v9984_v38 = vpop.f32.mrf.mxu0 }
 0x4d6   : > { %v10177_v45 = vpop.f32.mrf.mxu1  ;;  %v17935_v32 = vadd.f32 %v10173_v54, %v9981_v48  ;;  %v9985_v8 = vadd.f32 %v9984_v38, %v17692_v39 }
 0x4d7   : > { %v9986_v11 = vpop.f32.mrf.mxu0 }
 0x4d8   : > { %v10179_v43 = vpop.f32.mrf.mxu1  ;;  %v17938_v37 = vadd.f32 %v10177_v45, %v9985_v8  ;;  %v9987_v50 = vadd.f32 %v9986_v11, %v17697_v51 }
 0x4d9   : > { %v9988_v13 = vpop.f32.mrf.mxu0 }
 0x4da   : > { %v10181_v5 = vpop.f32.mrf.mxu1  ;;  %v17941_v62 = vadd.f32 %v10179_v43, %v9987_v50  ;;  %v9989_v18 = vadd.f32 %v9988_v13, %v17702_v6 }
 0x4db   : > { %v9990_v60 = vpop.f32.mrf.mxu0 }
 0x4dc   : > { %v10183_v23 = vpop.f32.mrf.mxu1  ;;  %v17944_v2 = vadd.f32 %v10181_v5, %v9989_v18  ;;  %v9991_v54 = vadd.f32 %v9990_v60, %v17705_v53 }
 0x4dd   : > { %v9994_v48 = vpop.f32.mrf.mxu0 }
 0x4de   : > { %v10187_v39 = vpop.f32.mrf.mxu1  ;;  %v17947_v38 = vadd.f32 %v10183_v23, %v9991_v54  ;;  %v9995_v45 = vadd.f32 %v9994_v48, %v17708_v63 }
 0x4df   : > { %v9996_v8 = vpop.f32.mrf.mxu0 }
 0x4e0   : > { %v10189_v51 = vpop.f32.mrf.mxu1  ;;  %v17950_v11 = vadd.f32 %v10187_v39, %v9995_v45  ;;  %v9997_v43 = vadd.f32 %v9996_v8, %v17713_v19 }
 0x4e1   : > { %v9998_v50 = vpop.f32.mrf.mxu0 }
 0x4e2   : > { %v10191_v6 = vpop.f32.mrf.mxu1  ;;  %v17953_v13 = vadd.f32 %v10189_v51, %v9997_v43  ;;  %v9999_v5 = vadd.f32 %v9998_v50, %v17718_v44 }
 0x4e3   : > { %v10000_v18 = vpop.f32.mrf.mxu0 }
 0x4e4   : > { %v10193_v53 = vpop.f32.mrf.mxu1  ;;  %v17956_v60 = vadd.f32 %v10191_v6, %v9999_v5  ;;  %v10001_v23 = vadd.f32 %v10000_v18, %v17721_v36 }
 0x4e5   : > { %v10004_v54 = vpop.f32.mrf.mxu0 }
 0x4e6   : > { %v10197_v63 = vpop.f32.mrf.mxu1  ;;  %v17959_v48 = vadd.f32 %v10193_v53, %v10001_v23  ;;  %v10005_v39 = vadd.f32 %v10004_v54, %v17724_v29 }
 0x4e7   : > { %v10006_v45 = vpop.f32.mrf.mxu0 }
 0x4e8   : > { %v10199_v19 = vpop.f32.mrf.mxu1  ;;  %v17962_v8 = vadd.f32 %v10197_v63, %v10005_v39  ;;  %v10007_v51 = vadd.f32 %v10006_v45, %v17729_v3 }
 0x4e9   : > { %v10008_v43 = vpop.f32.mrf.mxu0 }
 0x4ea   : > { %v10201_v44 = vpop.f32.mrf.mxu1  ;;  %v17965_v50 = vadd.f32 %v10199_v19, %v10007_v51  ;;  %v10009_v6 = vadd.f32 %v10008_v43, %v17734_v47 }
 0x4eb   : > { %v10010_v5 = vpop.f32.mrf.mxu0 }
 0x4ec   : > { %v10203_v36 = vpop.f32.mrf.mxu1  ;;  %v17968_v18 = vadd.f32 %v10201_v44, %v10009_v6  ;;  %v10011_v53 = vadd.f32 %v10010_v5, %v17737_v16  ;;  %v18547_v44 = vld [vmem:[#allocation17_spill] sm:$0xff] }
 0x4ed   : > { %v10014_v23 = vpop.f32.mrf.mxu0 }
 0x4ee   : > { %18544 = vst [vmem:[#allocation11_spill] sm:$0xff] %v17968_v18  ;;  %v10207_v29 = vpop.f32.mrf.mxu1  ;;  %v17971_v54 = vadd.f32 %v10203_v36, %v10011_v53  ;;  %v10015_v63 = vadd.f32 %v10014_v23, %v17740_v0  ;;  %v18549_v36 = vld [vmem:[#allocation18_spill] sm:$0xff] }
 0x4ef   : > { %v10016_v39 = vpop.f32.mrf.mxu0 }
 0x4f0   : > { %18545 = vst [vmem:[#allocation12_spill] sm:$0xff] %v17971_v54  ;;  %v10209_v3 = vpop.f32.mrf.mxu1  ;;  %v17974_v45 = vadd.f32 %v10207_v29, %v10015_v63  ;;  %v10017_v19 = vadd.f32 %v10016_v39, %v17745_v30 }
 0x4f1   : > { %v10018_v51 = vpop.f32.mrf.mxu0 }
 0x4f2   : > { %v10211_v47 = vpop.f32.mrf.mxu1  ;;  %v17977_v43 = vadd.f32 %v10209_v3, %v10017_v19  ;;  %v10019_v6 = vadd.f32 %v10018_v51, %v18547_v44  ;;  %v18551_v3 = vld [vmem:[#allocation19_spill] sm:$0xff] }
 0x4f3   : > { %v10020_v18 = vpop.f32.mrf.mxu0 }
 0x4f4   : > { %18546 = vst [vmem:[#allocation13_spill] sm:$0xff] %v17977_v43  ;;  %v10213_v16 = vpop.f32.mrf.mxu1  ;;  %v17980_v5 = vadd.f32 %v10211_v47, %v10019_v6  ;;  %v10021_v53 = vadd.f32 %v10020_v18, %v18549_v36  ;;  %v18552_v47 = vld [vmem:[#allocation20_spill] sm:$0xff] }
 0x4f5   : > { %v10024_v54 = vpop.f32.mrf.mxu0 }
 0x4f6   : > { %18548 = vst [vmem:[#allocation14_spill] sm:$0xff] %v17980_v5  ;;  %v10217_v0 = vpop.f32.mrf.mxu1  ;;  %v17983_v23 = vadd.f32 %v10213_v16, %v10021_v53  ;;  %v10025_v29 = vadd.f32 %v10024_v54, %v17756_v27  ;;  %v18554_v16 = vld [vmem:[#allocation21_spill] sm:$0xff] }
 0x4f7   : > { %v10026_v63 = vpop.f32.mrf.mxu0 }
 0x4f8   : > { %18550 = vst [vmem:[#allocation15_spill] sm:$0xff] %v17983_v23  ;;  %v10219_v30 = vpop.f32.mrf.mxu1  ;;  %v17986_v39 = vadd.f32 %v10217_v0, %v10025_v29  ;;  %v10027_v19 = vadd.f32 %v10026_v63, %v18551_v3 }
 0x4f9   : > { %v10028_v43 = vpop.f32.mrf.mxu0 }
 0x4fa   : > { %v10221_v51 = vpop.f32.mrf.mxu1  ;;  %v17989_v44 = vadd.f32 %v10219_v30, %v10027_v19  ;;  %v10029_v6 = vadd.f32 %v10028_v43, %v18552_v47 }
 0x4fb   : > { %v10030_v5 = vpop.f32.mrf.mxu0 }
 0x4fc   : > { %v10223_v18 = vpop.f32.mrf.mxu1  ;;  %v17992_v36 = vadd.f32 %v10221_v51, %v10029_v6  ;;  %v10031_v53 = vadd.f32 %v10030_v5, %v18554_v16  ;;  %v10634_v6 = vlaneseq }
 0x4fd   : > { %v10034_v23 = vpop.f32.mrf.mxu0 }
 0x4fe   : > { %18553 = vst [vmem:[#allocation16_spill] sm:$0xff] %v17992_v36  ;;  %v10227_v27 = vpop.f32.mrf.mxu1  ;;  %v17995_v54 = vadd.f32 %v10223_v18, %v10031_v53  ;;  %v10035_v0 = vadd.f32 %v10034_v23, %v17772_v55  ;;  %v18557_v18 = vld [vmem:[#allocation22_spill] sm:$0xff] }
 0x4ff   : > { %v10036_v29 = vpop.f32.mrf.mxu0 }
 0x500   : > { %18555 = vst [vmem:[#allocation17_spill] sm:$0xff] %v17995_v54  ;;  %v10229_v63 = vpop.f32.mrf.mxu1  ;;  %v17998_v3 = vadd.f32 %v10227_v27, %v10035_v0  ;;  %v10037_v30 = vadd.f32 %v10036_v29, %v17777_v31  ;;  %v10635_v31 = vshrl.u32 %v10634_v6, 7 }
 0x501   : > { %v10038_v19 = vpop.f32.mrf.mxu0 }
 0x502   : > { %v10231_v43 = vpop.f32.mrf.mxu1  ;;  %v18001_v47 = vadd.f32 %v10229_v63, %v10037_v30  ;;  %v10039_v51 = vadd.f32 %v10038_v19, %v17782_v25 }
 0x503   : > { %v10040_v5 = vpop.f32.mrf.mxu0 }
 0x504   : > { %18556 = vst [vmem:[#allocation18_spill] sm:$0xff] %v18001_v47  ;;  %v10233_v16 = vpop.f32.mrf.mxu1  ;;  %v18004_v36 = vadd.f32 %v10231_v43, %v10039_v51  ;;  %v10041_v53 = vadd.f32 %v10040_v5, %v18557_v18  ;;  %v10636_v51 = vsub.s32 0, %v10635_v31 }
 0x505   : > { %v10044_v55 = vpop.f32.mrf.mxu0 }
 0x506   : > { %v10237_v23 = vpop.f32.mrf.mxu1  ;;  %v18007_v54 = vadd.f32 %v10233_v16, %v10041_v53  ;;  %v10045_v27 = vadd.f32 %v10044_v55, %v17788_v14  ;;  %v10632_v14 = vld [vmem:[%s18276_s2] ss:$2 sm:$0x3]  ;;  %v10640_v53 = vsub.s32 1, %v10635_v31 }
 0x507   : > { %v10046_v0 = vpop.f32.mrf.mxu0 }
 0x508   : > { %v10239_v29 = vpop.f32.mrf.mxu1  ;;  %v18010_v63 = vadd.f32 %v10237_v23, %v10045_v27  ;;  %v10047_v25 = vadd.f32 %v10046_v0, %v17793_v42  ;;  %v12351_v23 = vld [vmem:[%s18276_s2 + $0x1] ss:$2 sm:$0x3]  ;;  %v18028_v0 = vrot.slane %v10632_v14, %v10636_v51  ;;  %v18033_v31 = vrot.slane %v10632_v14, %v10640_v53 }
 0x509   : > { %v10048_v30 = vpop.f32.mrf.mxu0 }
 0x50a   : > { %v10241_v19 = vpop.f32.mrf.mxu1  ;;  %v18013_v47 = vadd.f32 %v10239_v29, %v10047_v25  ;;  %v10049_v43 = vadd.f32 %v10048_v30, %v17798_v24 }
 0x50b   : > { %v10050_v5 = vpop.f32.mrf.mxu0 }
 0x50c   : > { %18558 = vst [vmem:[#allocation19_spill] sm:$0xff] %v18013_v47  ;;  %v10243_v18 = vpop.f32.mrf.mxu1  ;;  %v18019_v6 = vadd.f32 %v10241_v19, %v10049_v43  ;;  %v10051_v16 = vadd.f32 %v10050_v5, %v17801_v57  ;;  %v18030_v19 = vrot.slane %v12351_v23, %v10636_v51 }
 0x50d   : > { %v10280_v55 = vpop.f32.mrf.mxu0 }
 0x50e   : > { %18559 = vst [vmem:[#allocation20_spill] sm:$0xff] %v18019_v6  ;;  %v10473_v42 = vpop.f32.mrf.mxu1  ;;  %v18025_v27 = vadd.f32 %v10243_v18, %v10051_v16  ;;  %v10281_v24 = vadd.f32 %v10280_v55, %v17804_v41  ;;  %v18036_v16 = vrot.slane %v12351_v23, %v10640_v53 }
 0x50f   : > { %v10282_v29 = vpop.f32.mrf.mxu0 }
 0x510   : > { %18560 = vst [vmem:[#allocation21_spill] sm:$0xff] %v18025_v27  ;;  %v10475_v25 = vpop.f32.mrf.mxu1  ;;  %v10474_v30 = vadd.f32 %v10473_v42, %v10281_v24  ;;  %v10283_v57 = vadd.f32 %v10282_v29, %v17809_v9 }
 0x511   : > { %v10284_v43 = vpop.f32.mrf.mxu0 }
 0x512   : > { %v10477_v5 = vpop.f32.mrf.mxu1  ;;  %v10644_v6 = vmul.f32 %v18028_v0, %v10474_v30  ;;  %v10476_v18 = vadd.f32 %v10475_v25, %v10283_v57  ;;  %v10285_v41 = vadd.f32 %v10284_v43, %v17814_v28 }
 0x513   : > { %v10286_v55 = vpop.f32.mrf.mxu0 }
 0x514   : > { %v10479_v27 = vpop.f32.mrf.mxu1  ;;  %v10721_v42 = vadd.f32 %v18030_v19, %v10644_v6  ;;  %v10645_v51 = vmul.f32 %v18033_v31, %v10476_v18  ;;  %v10478_v24 = vadd.f32 %v10477_v5, %v10285_v41  ;;  %v10287_v9 = vadd.f32 %v10286_v55, %v17817_v58 }
 0x515   : > { %v10290_v14 = vpop.f32.mrf.mxu0 }
 0x516   : > { %v10483_v29 = vpop.f32.mrf.mxu1  ;;  %v10722_v47 = vadd.f32 %v18036_v16, %v10645_v51  ;;  %v10646_v25 = vmul.f32 %v18028_v0, %v10478_v24  ;;  %v10480_v53 = vadd.f32 %v10479_v27, %v10287_v9  ;;  %v10785_v23 = vmax.f32 %v10721_v42, 0.0 }
 0x517   : > { %v10291_v28 = vadd.f32 %v10290_v14, %v17820_v49  ;;  %v10292_v30 = vpop.f32.mrf.mxu0 }
 0x518   : > { %v10485_v57 = vpop.f32.mrf.mxu1  ;;  %v10786_v43 = vmax.f32 %v10722_v47, 0.0  ;;  %v10723_v6 = vadd.f32 %v18030_v19, %v10646_v25  ;;  %v10647_v5 = vmul.f32 %v18033_v31, %v10480_v53  ;;  %v10293_v58 = vadd.f32 %v10292_v30, %v17825_v10 }
 0x519   : > { %v10484_v18 = vadd.f32 %v10483_v29, %v10291_v28  ;;  %v10294_v27 = vpop.f32.mrf.mxu0 }
 0x51a   : > { %v10487_v41 = vpop.f32.mrf.mxu1  ;;  %v12387_v55 = vpack.c.bf16 %v10786_v43, %v10785_v23  ;;  %v10724_v49 = vadd.f32 %v18036_v16, %v10647_v5  ;;  %v10486_v42 = vadd.f32 %v10485_v57, %v10293_v58  ;;  %v10295_v51 = vadd.f32 %v10294_v27, %v17830_v20 }
 0x51b   : > { %v10648_v47 = vmul.f32 %v18028_v0, %v10484_v18  ;;  %v10296_v24 = vpop.f32.mrf.mxu0  ;;  %v10787_v10 = vmax.f32 %v10723_v6, 0.0 }
 0x51c   : > { %v10489_v9 = vpop.f32.mrf.mxu1  ;;  %11041 = vst [vmem:[%s18052_s30] sm:$0xff] %v12387_v55  ;;  %v10788_v14 = vmax.f32 %v10724_v49, 0.0  ;;  %v10649_v25 = vmul.f32 %v18033_v31, %v10486_v42  ;;  %v10297_v29 = vadd.f32 %v10296_v24, %v17833_v34  ;;  %v10488_v23 = vadd.f32 %v10487_v41, %v10295_v51 }
 0x51d   : > { %v10725_v53 = vadd.f32 %v18030_v19, %v10648_v47  ;;  %v10300_v28 = vpop.f32.mrf.mxu0 }
 0x51e   : > { %v10493_v30 = vpop.f32.mrf.mxu1  ;;  %v12388_v57 = vpack.c.bf16 %v10788_v14, %v10787_v10  ;;  %v10726_v43 = vadd.f32 %v18036_v16, %v10649_v25  ;;  %v10490_v5 = vadd.f32 %v10489_v9, %v10297_v29  ;;  %v10301_v20 = vadd.f32 %v10300_v28, %v17836_v61 }
 0x51f   : > { %v10789_v58 = vmax.f32 %v10725_v53, 0.0  ;;  %v10650_v6 = vmul.f32 %v18028_v0, %v10488_v23  ;;  %v10302_v18 = vpop.f32.mrf.mxu0 }
 0x520   : > { %v10495_v27 = vpop.f32.mrf.mxu1  ;;  %11042 = vst [vmem:[%s18052_s30 + $0x8] sm:$0xff] %v12388_v57  ;;  %v10790_v55 = vmax.f32 %v10726_v43, 0.0  ;;  %v10651_v34 = vmul.f32 %v18033_v31, %v10490_v5  ;;  %v10494_v49 = vadd.f32 %v10493_v30, %v10301_v20  ;;  %v10303_v41 = vadd.f32 %v10302_v18, %v17841_v40 }
 0x521   : > { %v10727_v42 = vadd.f32 %v18030_v19, %v10650_v6  ;;  %v10304_v47 = vpop.f32.mrf.mxu0 }
 0x522   : > { %v10497_v51 = vpop.f32.mrf.mxu1  ;;  %v12389_v24 = vpack.c.bf16 %v10790_v55, %v10789_v58  ;;  %v10728_v61 = vadd.f32 %v18036_v16, %v10651_v34  ;;  %v10652_v9 = vmul.f32 %v18028_v0, %v10494_v49  ;;  %v10496_v10 = vadd.f32 %v10495_v27, %v10303_v41 }
 0x523   : > { %v10791_v14 = vmax.f32 %v10727_v42, 0.0  ;;  %v10305_v25 = vadd.f32 %v10304_v47, %v17846_v33  ;;  %v10306_v29 = vpop.f32.mrf.mxu0 }
 0x524   : > { %v10499_v53 = vpop.f32.mrf.mxu1  ;;  %11043 = vst [vmem:[%s18052_s30 + $0x10] sm:$0xff] %v12389_v24  ;;  %v10792_v23 = vmax.f32 %v10728_v61, 0.0  ;;  %v10729_v40 = vadd.f32 %v18030_v19, %v10652_v9  ;;  %v10653_v28 = vmul.f32 %v18033_v31, %v10496_v10  ;;  %v10307_v30 = vadd.f32 %v10306_v29, %v17849_v15 }
 0x525   : > { %v10498_v57 = vadd.f32 %v10497_v51, %v10305_v25  ;;  %v10310_v43 = vpop.f32.mrf.mxu0 }
 0x526   : > { %v10503_v5 = vpop.f32.mrf.mxu1  ;;  %v12390_v20 = vpack.c.bf16 %v10792_v23, %v10791_v14  ;;  %v10730_v58 = vadd.f32 %v18036_v16, %v10653_v28  ;;  %v10500_v6 = vadd.f32 %v10499_v53, %v10307_v30  ;;  %v10311_v18 = vadd.f32 %v10310_v43, %v17852_v46  ;;  %v18561_v46 = vld [vmem:[#allocation23_spill] sm:$0xff]  ;;  %v18562_v30 = vld [vmem:[#allocation2_spill] sm:$0xff] }
 0x527   : > { %v10654_v33 = vmul.f32 %v18028_v0, %v10498_v57  ;;  %v10312_v27 = vpop.f32.mrf.mxu0  ;;  %v10793_v34 = vmax.f32 %v10729_v40, 0.0 }
 0x528   : > { %v10505_v55 = vpop.f32.mrf.mxu1  ;;  %11044 = vst [vmem:[%s18052_s30 + $0x18] sm:$0xff] %v12390_v20  ;;  %v10794_v49 = vmax.f32 %v10730_v58, 0.0  ;;  %v10655_v41 = vmul.f32 %v18033_v31, %v10500_v6  ;;  %v10313_v15 = vadd.f32 %v10312_v27, %v17857_v12  ;;  %v10504_v47 = vadd.f32 %v10503_v5, %v10311_v18 }
 0x529   : > { %v10731_v42 = vadd.f32 %v18030_v19, %v10654_v33  ;;  %v10314_v51 = vpop.f32.mrf.mxu0 }
 0x52a   : > { %v10507_v24 = vpop.f32.mrf.mxu1  ;;  %v12391_v61 = vpack.c.bf16 %v10794_v49, %v10793_v34  ;;  %v10732_v9 = vadd.f32 %v18036_v16, %v10655_v41  ;;  %v10506_v10 = vadd.f32 %v10505_v55, %v10313_v15  ;;  %v10315_v14 = vadd.f32 %v10314_v51, %v18561_v46  ;;  %v18563_v55 = vld [vmem:[#allocation3_spill] sm:$0xff]  ;;  %v18564_v51 = vld [vmem:[#allocation4_spill] sm:$0xff] }
 0x52b   : > { %v10795_v25 = vmax.f32 %v10731_v42, 0.0  ;;  %v10656_v29 = vmul.f32 %v18028_v0, %v10504_v47  ;;  %v10316_v53 = vpop.f32.mrf.mxu0 }
 0x52c   : > { %v10509_v23 = vpop.f32.mrf.mxu1  ;;  %11045 = vst [vmem:[%s18052_s30 + $0x20] sm:$0xff] %v12391_v61  ;;  %v10796_v40 = vmax.f32 %v10732_v9, 0.0  ;;  %v10657_v12 = vmul.f32 %v18033_v31, %v10506_v10  ;;  %v10508_v28 = vadd.f32 %v10507_v24, %v10315_v14  ;;  %v10317_v57 = vadd.f32 %v10316_v53, %v18562_v30  ;;  %v18565_v53 = vld [vmem:[#allocation5_spill] sm:$0xff] }
 0x52d   : > { %v10733_v43 = vadd.f32 %v18030_v19, %v10656_v29  ;;  %v10320_v5 = vpop.f32.mrf.mxu0 }
 0x52e   : > { %v10513_v20 = vpop.f32.mrf.mxu1  ;;  %v12392_v58 = vpack.c.bf16 %v10796_v40, %v10795_v25  ;;  %v10734_v6 = vadd.f32 %v18036_v16, %v10657_v12  ;;  %v10658_v33 = vmul.f32 %v18028_v0, %v10508_v28  ;;  %v10510_v18 = vadd.f32 %v10509_v23, %v10317_v57 }
 0x52f   : > { %v10797_v27 = vmax.f32 %v10733_v43, 0.0  ;;  %v10321_v34 = vadd.f32 %v10320_v5, %v18563_v55  ;;  %v10322_v49 = vpop.f32.mrf.mxu0  ;;  %v18566_v43 = vld [vmem:[#allocation6_spill] sm:$0xff] }
 0x530   : > { %v10515_v41 = vpop.f32.mrf.mxu1  ;;  %11046 = vst [vmem:[%s18052_s30 + $0x28] sm:$0xff] %v12392_v58  ;;  %v10798_v15 = vmax.f32 %v10734_v6, 0.0  ;;  %v10735_v42 = vadd.f32 %v18030_v19, %v10658_v33  ;;  %v10659_v47 = vmul.f32 %v18033_v31, %v10510_v18  ;;  %v10323_v24 = vadd.f32 %v10322_v49, %v18564_v51 }
 0x531   : > { %v10514_v61 = vadd.f32 %v10513_v20, %v10321_v34  ;;  %v10324_v9 = vpop.f32.mrf.mxu0  ;;  %v18567_v34 = vld [vmem:[#allocation7_spill] sm:$0xff] }
 0x532   : > { %v10517_v10 = vpop.f32.mrf.mxu1  ;;  %v12393_v46 = vpack.c.bf16 %v10798_v15, %v10797_v27  ;;  %v10736_v14 = vadd.f32 %v18036_v16, %v10659_v47  ;;  %v10516_v25 = vadd.f32 %v10515_v41, %v10323_v24  ;;  %v10325_v23 = vadd.f32 %v10324_v9, %v18565_v53  ;;  %v18568_v9 = vld [vmem:[#allocation8_spill] sm:$0xff] }
 0x533   : > { %v10660_v29 = vmul.f32 %v18028_v0, %v10514_v61  ;;  %v10326_v40 = vpop.f32.mrf.mxu0  ;;  %v10799_v28 = vmax.f32 %v10735_v42, 0.0 }
 0x534   : > { %v10519_v12 = vpop.f32.mrf.mxu1  ;;  %11047 = vst [vmem:[%s18052_s30 + $0x30] sm:$0xff] %v12393_v46  ;;  %v10800_v30 = vmax.f32 %v10736_v14, 0.0  ;;  %v10661_v57 = vmul.f32 %v18033_v31, %v10516_v25  ;;  %v10327_v5 = vadd.f32 %v10326_v40, %v18566_v43  ;;  %v10518_v58 = vadd.f32 %v10517_v10, %v10325_v23 }
 0x535   : > { %v10737_v20 = vadd.f32 %v18030_v19, %v10660_v29  ;;  %v10330_v6 = vpop.f32.mrf.mxu0 }
 0x536   : > { %v10523_v33 = vpop.f32.mrf.mxu1  ;;  %v12394_v18 = vpack.c.bf16 %v10800_v30, %v10799_v28  ;;  %v10738_v27 = vadd.f32 %v18036_v16, %v10661_v57  ;;  %v10520_v55 = vadd.f32 %v10519_v12, %v10327_v5  ;;  %v10331_v49 = vadd.f32 %v10330_v6, %v18567_v34  ;;  %v18569_v28 = vld [vmem:[#allocation9_spill] sm:$0xff]  ;;  %v18570_v6 = vld [vmem:[#allocation10_spill] sm:$0xff] }
 0x537   : > { %v10801_v41 = vmax.f32 %v10737_v20, 0.0  ;;  %v10662_v15 = vmul.f32 %v18028_v0, %v10518_v58  ;;  %v10332_v42 = vpop.f32.mrf.mxu0 }
 0x538   : > { %v10525_v47 = vpop.f32.mrf.mxu1  ;;  %11048 = vst [vmem:[%s18052_s30 + $0x38] sm:$0xff] %v12394_v18  ;;  %v10802_v51 = vmax.f32 %v10738_v27, 0.0  ;;  %v10663_v24 = vmul.f32 %v18033_v31, %v10520_v55  ;;  %v10524_v61 = vadd.f32 %v10523_v33, %v10331_v49  ;;  %v10333_v10 = vadd.f32 %v10332_v42, %v18568_v9 }
 0x539   : > { %v10739_v46 = vadd.f32 %v18030_v19, %v10662_v15  ;;  %v10334_v14 = vpop.f32.mrf.mxu0 }
 0x53a   : > { %v10527_v25 = vpop.f32.mrf.mxu1  ;;  %v12395_v29 = vpack.c.bf16 %v10802_v51, %v10801_v41  ;;  %v10740_v53 = vadd.f32 %v18036_v16, %v10663_v24  ;;  %v10664_v23 = vmul.f32 %v18028_v0, %v10524_v61  ;;  %v10526_v40 = vadd.f32 %v10525_v47, %v10333_v10 }
 0x53b   : > { %v10803_v12 = vmax.f32 %v10739_v46, 0.0  ;;  %v10335_v30 = vadd.f32 %v10334_v14, %v18569_v28  ;;  %v10336_v57 = vpop.f32.mrf.mxu0 }
 0x53c   : > { %v10529_v43 = vpop.f32.mrf.mxu1  ;;  %11049 = vst [vmem:[%s18052_s30 + $0x40] sm:$0xff] %v12395_v29  ;;  %v10804_v5 = vmax.f32 %v10740_v53, 0.0  ;;  %v10741_v20 = vadd.f32 %v18030_v19, %v10664_v23  ;;  %v10665_v58 = vmul.f32 %v18033_v31, %v10526_v40  ;;  %v10337_v33 = vadd.f32 %v10336_v57, %v18570_v6 }
 0x53d   : > { %v10528_v18 = vadd.f32 %v10527_v25, %v10335_v30  ;;  %v10340_v27 = vpop.f32.mrf.mxu0 }
 0x53e   : > { %v10533_v55 = vpop.f32.mrf.mxu1  ;;  %v12396_v34 = vpack.c.bf16 %v10804_v5, %v10803_v12  ;;  %v10742_v49 = vadd.f32 %v18036_v16, %v10665_v58  ;;  %v10530_v41 = vadd.f32 %v10529_v43, %v10337_v33  ;;  %v10341_v42 = vadd.f32 %v10340_v27, %v17900_v56 }
 0x53f   : > { %v10666_v15 = vmul.f32 %v18028_v0, %v10528_v18  ;;  %v10342_v47 = vpop.f32.mrf.mxu0  ;;  %v10805_v24 = vmax.f32 %v10741_v20, 0.0 }
 0x540   : > { %v10535_v51 = vpop.f32.mrf.mxu1  ;;  %11050 = vst [vmem:[%s18052_s30 + $0x48] sm:$0xff] %v12396_v34  ;;  %v10806_v61 = vmax.f32 %v10742_v49, 0.0  ;;  %v10667_v9 = vmul.f32 %v18033_v31, %v10530_v41  ;;  %v10343_v10 = vadd.f32 %v10342_v47, %v17905_v17  ;;  %v10534_v14 = vadd.f32 %v10533_v55, %v10341_v42 }
 0x541   : > { %v10743_v46 = vadd.f32 %v18030_v19, %v10666_v15  ;;  %v10344_v25 = vpop.f32.mrf.mxu0 }
 0x542   : > { %v10537_v29 = vpop.f32.mrf.mxu1  ;;  %v12397_v53 = vpack.c.bf16 %v10806_v61, %v10805_v24  ;;  %v10744_v23 = vadd.f32 %v18036_v16, %v10667_v9  ;;  %v10536_v40 = vadd.f32 %v10535_v51, %v10343_v10  ;;  %v10345_v56 = vadd.f32 %v10344_v25, %v17908_v7 }
 0x543   : > { %v10807_v12 = vmax.f32 %v10743_v46, 0.0  ;;  %v10668_v28 = vmul.f32 %v18028_v0, %v10534_v14  ;;  %v10346_v30 = vpop.f32.mrf.mxu0 }
 0x544   : > { %v10539_v57 = vpop.f32.mrf.mxu1  ;;  %11051 = vst [vmem:[%s18052_s30 + $0x50] sm:$0xff] %v12397_v53  ;;  %v10808_v43 = vmax.f32 %v10744_v23, 0.0  ;;  %v10669_v17 = vmul.f32 %v18033_v31, %v10536_v40  ;;  %v10538_v5 = vadd.f32 %v10537_v29, %v10345_v56  ;;  %v10347_v20 = vadd.f32 %v10346_v30, %v17911_v1 }
 0x545   : > { %v10745_v58 = vadd.f32 %v18030_v19, %v10668_v28  ;;  %v10350_v6 = vpop.f32.mrf.mxu0 }
 0x546   : > { %v10543_v33 = vpop.f32.mrf.mxu1  ;;  %v12398_v18 = vpack.c.bf16 %v10808_v43, %v10807_v12  ;;  %v10746_v7 = vadd.f32 %v18036_v16, %v10669_v17  ;;  %v10670_v27 = vmul.f32 %v18028_v0, %v10538_v5  ;;  %v10540_v55 = vadd.f32 %v10539_v57, %v10347_v20 }
 0x547   : > { %v10809_v34 = vmax.f32 %v10745_v58, 0.0  ;;  %v10351_v49 = vadd.f32 %v10350_v6, %v17914_v35  ;;  %v10352_v41 = vpop.f32.mrf.mxu0 }
 0x548   : > { %v10545_v15 = vpop.f32.mrf.mxu1  ;;  %11052 = vst [vmem:[%s18052_s30 + $0x58] sm:$0xff] %v12398_v18  ;;  %v10810_v42 = vmax.f32 %v10746_v7, 0.0  ;;  %v10747_v1 = vadd.f32 %v18030_v19, %v10670_v27  ;;  %v10671_v47 = vmul.f32 %v18033_v31, %v10540_v55  ;;  %v10353_v51 = vadd.f32 %v10352_v41, %v17917_v4 }
 0x549   : > { %v10544_v24 = vadd.f32 %v10543_v33, %v10351_v49  ;;  %v10354_v61 = vpop.f32.mrf.mxu0 }
 0x54a   : > { %v10547_v9 = vpop.f32.mrf.mxu1  ;;  %v12399_v10 = vpack.c.bf16 %v10810_v42, %v10809_v34  ;;  %v10748_v46 = vadd.f32 %v18036_v16, %v10671_v47  ;;  %v10546_v14 = vadd.f32 %v10545_v15, %v10353_v51  ;;  %v10355_v25 = vadd.f32 %v10354_v61, %v17920_v22 }
 0x54b   : > { %v10672_v35 = vmul.f32 %v18028_v0, %v10544_v24  ;;  %v10356_v29 = vpop.f32.mrf.mxu0  ;;  %v10811_v23 = vmax.f32 %v10747_v1, 0.0 }
 0x54c   : > { %v10549_v53 = vpop.f32.mrf.mxu1  ;;  %11053 = vst [vmem:[%s18052_s30 + $0x60] sm:$0xff] %v12399_v10  ;;  %v10812_v40 = vmax.f32 %v10748_v46, 0.0  ;;  %v10673_v56 = vmul.f32 %v18033_v31, %v10546_v14  ;;  %v10357_v4 = vadd.f32 %v10356_v29, %v17923_v59  ;;  %v10548_v28 = vadd.f32 %v10547_v9, %v10355_v25 }
 0x54d   : > { %v10749_v12 = vadd.f32 %v18030_v19, %v10672_v35  ;;  %v10360_v30 = vpop.f32.mrf.mxu0 }
 0x54e   : > { %v10553_v57 = vpop.f32.mrf.mxu1  ;;  %v12400_v43 = vpack.c.bf16 %v10812_v40, %v10811_v23  ;;  %v10750_v17 = vadd.f32 %v18036_v16, %v10673_v56  ;;  %v10550_v5 = vadd.f32 %v10549_v53, %v10357_v4  ;;  %v10361_v22 = vadd.f32 %v10360_v30, %v17926_v21 }
 0x54f   : > { %v10813_v20 = vmax.f32 %v10749_v12, 0.0  ;;  %v10674_v58 = vmul.f32 %v18028_v0, %v10548_v28  ;;  %v10362_v6 = vpop.f32.mrf.mxu0 }
 0x550   : > { %v10555_v33 = vpop.f32.mrf.mxu1  ;;  %11054 = vst [vmem:[%s18052_s30 + $0x68] sm:$0xff] %v12400_v43  ;;  %v10814_v18 = vmax.f32 %v10750_v17, 0.0  ;;  %v10675_v59 = vmul.f32 %v18033_v31, %v10550_v5  ;;  %v10554_v7 = vadd.f32 %v10553_v57, %v10361_v22  ;;  %v10363_v27 = vadd.f32 %v10362_v6, %v17929_v26 }
 0x551   : > { %v10751_v55 = vadd.f32 %v18030_v19, %v10674_v58  ;;  %v10364_v34 = vpop.f32.mrf.mxu0 }
 0x552   : > { %v10557_v49 = vpop.f32.mrf.mxu1  ;;  %v12401_v41 = vpack.c.bf16 %v10814_v18, %v10813_v20  ;;  %v10752_v21 = vadd.f32 %v18036_v16, %v10675_v59  ;;  %v10676_v15 = vmul.f32 %v18028_v0, %v10554_v7  ;;  %v10556_v42 = vadd.f32 %v10555_v33, %v10363_v27 }
 0x553   : > { %v10815_v1 = vmax.f32 %v10751_v55, 0.0  ;;  %v10365_v47 = vadd.f32 %v10364_v34, %v17932_v52  ;;  %v10366_v51 = vpop.f32.mrf.mxu0 }
 0x554   : > { %v10559_v24 = vpop.f32.mrf.mxu1  ;;  %11055 = vst [vmem:[%s18052_s30 + $0x70] sm:$0xff] %v12401_v41  ;;  %v10816_v61 = vmax.f32 %v10752_v21, 0.0  ;;  %v10753_v26 = vadd.f32 %v18030_v19, %v10676_v15  ;;  %v10677_v9 = vmul.f32 %v18033_v31, %v10556_v42  ;;  %v10367_v10 = vadd.f32 %v10366_v51, %v17935_v32 }
 0x555   : > { %v10558_v46 = vadd.f32 %v10557_v49, %v10365_v47  ;;  %v10370_v14 = vpop.f32.mrf.mxu0 }
 0x556   : > { %v10563_v35 = vpop.f32.mrf.mxu1  ;;  %v12402_v25 = vpack.c.bf16 %v10816_v61, %v10815_v1  ;;  %v10754_v29 = vadd.f32 %v18036_v16, %v10677_v9  ;;  %v10560_v53 = vadd.f32 %v10559_v24, %v10367_v10  ;;  %v10371_v23 = vadd.f32 %v10370_v14, %v17938_v37 }
 0x557   : > { %v10678_v52 = vmul.f32 %v18028_v0, %v10558_v46  ;;  %v10372_v40 = vpop.f32.mrf.mxu0  ;;  %v10817_v4 = vmax.f32 %v10753_v26, 0.0 }
 0x558   : > { %v10565_v56 = vpop.f32.mrf.mxu1  ;;  %11056 = vst [vmem:[%s18052_s30 + $0x78] sm:$0xff] %v12402_v25  ;;  %v10818_v12 = vmax.f32 %v10754_v29, 0.0  ;;  %v10679_v28 = vmul.f32 %v18033_v31, %v10560_v53  ;;  %v10373_v32 = vadd.f32 %v10372_v40, %v17941_v62  ;;  %v10564_v57 = vadd.f32 %v10563_v35, %v10371_v23 }
 0x559   : > { %v10755_v30 = vadd.f32 %v18030_v19, %v10678_v52  ;;  %v10374_v43 = vpop.f32.mrf.mxu0 }
 0x55a   : > { %v10567_v17 = vpop.f32.mrf.mxu1  ;;  %v12403_v5 = vpack.c.bf16 %v10818_v12, %v10817_v4  ;;  %v10756_v22 = vadd.f32 %v18036_v16, %v10679_v28  ;;  %v10566_v20 = vadd.f32 %v10565_v56, %v10373_v32  ;;  %v10375_v37 = vadd.f32 %v10374_v43, %v17944_v2 }
 0x55b   : > { %v10819_v58 = vmax.f32 %v10755_v30, 0.0  ;;  %v10680_v6 = vmul.f32 %v18028_v0, %v10564_v57  ;;  %v10376_v33 = vpop.f32.mrf.mxu0 }
 0x55c   : > { %v10569_v18 = vpop.f32.mrf.mxu1  ;;  %11057 = vst [vmem:[%s18052_s30 + $0x80] sm:$0xff] %v12403_v5  ;;  %v10820_v59 = vmax.f32 %v10756_v22, 0.0  ;;  %v10681_v62 = vmul.f32 %v18033_v31, %v10566_v20  ;;  %v10568_v7 = vadd.f32 %v10567_v17, %v10375_v37  ;;  %v10377_v27 = vadd.f32 %v10376_v33, %v17947_v38 }
 0x55d   : > { %v10757_v55 = vadd.f32 %v18030_v19, %v10680_v6  ;;  %v10380_v34 = vpop.f32.mrf.mxu0 }
 0x55e   : > { %v10573_v49 = vpop.f32.mrf.mxu1  ;;  %v12404_v41 = vpack.c.bf16 %v10820_v59, %v10819_v58  ;;  %v10758_v2 = vadd.f32 %v18036_v16, %v10681_v62  ;;  %v10682_v21 = vmul.f32 %v18028_v0, %v10568_v7  ;;  %v10570_v15 = vadd.f32 %v10569_v18, %v10377_v27 }
 0x55f   : > { %v10821_v42 = vmax.f32 %v10757_v55, 0.0  ;;  %v10381_v1 = vadd.f32 %v10380_v34, %v17950_v11  ;;  %v10382_v47 = vpop.f32.mrf.mxu0  ;;  %v18571_v34 = vld [vmem:[#allocation11_spill] sm:$0xff] }
 0x560   : > { %v10575_v51 = vpop.f32.mrf.mxu1  ;;  %11058 = vst [vmem:[%s18052_s30 + $0x88] sm:$0xff] %v12404_v41  ;;  %v10822_v24 = vmax.f32 %v10758_v2, 0.0  ;;  %v10759_v38 = vadd.f32 %v18030_v19, %v10682_v21  ;;  %v10683_v61 = vmul.f32 %v18033_v31, %v10570_v15  ;;  %v10383_v26 = vadd.f32 %v10382_v47, %v17953_v13 }
 0x561   : > { %v10574_v9 = vadd.f32 %v10573_v49, %v10381_v1  ;;  %v10384_v10 = vpop.f32.mrf.mxu0 }
 0x562   : > { %v10577_v46 = vpop.f32.mrf.mxu1  ;;  %v12405_v14 = vpack.c.bf16 %v10822_v24, %v10821_v42  ;;  %v10760_v35 = vadd.f32 %v18036_v16, %v10683_v61  ;;  %v10576_v25 = vadd.f32 %v10575_v51, %v10383_v26  ;;  %v10385_v29 = vadd.f32 %v10384_v10, %v17956_v60  ;;  %v18572_v42 = vld [vmem:[#allocation12_spill] sm:$0xff] }
 0x563   : > { %v10684_v11 = vmul.f32 %v18028_v0, %v10574_v9  ;;  %v10386_v53 = vpop.f32.mrf.mxu0  ;;  %v10823_v23 = vmax.f32 %v10759_v38, 0.0 }
 0x564   : > { %v10579_v52 = vpop.f32.mrf.mxu1  ;;  %11059 = vst [vmem:[%s18052_s30 + $0x90] sm:$0xff] %v12405_v14  ;;  %v10824_v40 = vmax.f32 %v10760_v35, 0.0  ;;  %v10685_v56 = vmul.f32 %v18033_v31, %v10576_v25  ;;  %v10387_v13 = vadd.f32 %v10386_v53, %v17959_v48  ;;  %v10578_v12 = vadd.f32 %v10577_v46, %v10385_v29  ;;  %v18573_v29 = vld [vmem:[#allocation13_spill] sm:$0xff] }
 0x565   : > { %v10761_v4 = vadd.f32 %v18030_v19, %v10684_v11  ;;  %v10390_v28 = vpop.f32.mrf.mxu0 }
 0x566   : > { %v10583_v32 = vpop.f32.mrf.mxu1  ;;  %v12406_v30 = vpack.c.bf16 %v10824_v40, %v10823_v23  ;;  %v10762_v57 = vadd.f32 %v18036_v16, %v10685_v56  ;;  %v10580_v43 = vadd.f32 %v10579_v52, %v10387_v13  ;;  %v10391_v60 = vadd.f32 %v10390_v28, %v17962_v8 }
 0x567   : > { %v10825_v17 = vmax.f32 %v10761_v4, 0.0  ;;  %v10686_v5 = vmul.f32 %v18028_v0, %v10578_v12  ;;  %v10392_v22 = vpop.f32.mrf.mxu0 }
 0x568   : > { %v10585_v20 = vpop.f32.mrf.mxu1  ;;  %11060 = vst [vmem:[%s18052_s30 + $0x98] sm:$0xff] %v12406_v30  ;;  %v10826_v37 = vmax.f32 %v10762_v57, 0.0  ;;  %v10687_v48 = vmul.f32 %v18033_v31, %v10580_v43  ;;  %v10584_v58 = vadd.f32 %v10583_v32, %v10391_v60  ;;  %v10393_v6 = vadd.f32 %v10392_v22, %v17965_v50  ;;  %v18575_v22 = vld [vmem:[#allocation15_spill] sm:$0xff] }
 0x569   : > { %v10763_v33 = vadd.f32 %v18030_v19, %v10686_v5  ;;  %v10394_v18 = vpop.f32.mrf.mxu0 }
 0x56a   : > { %v10587_v59 = vpop.f32.mrf.mxu1  ;;  %v12407_v62 = vpack.c.bf16 %v10826_v37, %v10825_v17  ;;  %v10764_v8 = vadd.f32 %v18036_v16, %v10687_v48  ;;  %v10688_v7 = vmul.f32 %v18028_v0, %v10584_v58  ;;  %v10586_v27 = vadd.f32 %v10585_v20, %v10393_v6 }
 0x56b   : > { %v10827_v55 = vmax.f32 %v10763_v33, 0.0  ;;  %v10395_v49 = vadd.f32 %v10394_v18, %v18571_v34  ;;  %v10396_v41 = vpop.f32.mrf.mxu0 }
 0x56c   : > { %v10589_v2 = vpop.f32.mrf.mxu1  ;;  %11061 = vst [vmem:[%s18052_s30 + $0xa0] sm:$0xff] %v12407_v62  ;;  %v10828_v21 = vmax.f32 %v10764_v8, 0.0  ;;  %v10765_v50 = vadd.f32 %v18030_v19, %v10688_v7  ;;  %v10689_v15 = vmul.f32 %v18033_v31, %v10586_v27  ;;  %v10397_v1 = vadd.f32 %v10396_v41, %v18572_v42 }
 0x56d   : > { %v10588_v47 = vadd.f32 %v10587_v59, %v10395_v49  ;;  %v10400_v51 = vpop.f32.mrf.mxu0 }
 0x56e   : > { %v10593_v24 = vpop.f32.mrf.mxu1  ;;  %v12408_v38 = vpack.c.bf16 %v10828_v21, %v10827_v55  ;;  %v10766_v61 = vadd.f32 %v18036_v16, %v10689_v15  ;;  %v10590_v26 = vadd.f32 %v10589_v2, %v10397_v1  ;;  %v10401_v10 = vadd.f32 %v10400_v51, %v17974_v45  ;;  %v18574_v45 = vld [vmem:[#allocation14_spill] sm:$0xff] }
 0x56f   : > { %v10690_v9 = vmul.f32 %v18028_v0, %v10588_v47  ;;  %v10402_v46 = vpop.f32.mrf.mxu0  ;;  %v10829_v35 = vmax.f32 %v10765_v50, 0.0  ;;  %v18576_v47 = vld [vmem:[#allocation16_spill] sm:$0xff] }
 0x570   : > { %v10595_v14 = vpop.f32.mrf.mxu1  ;;  %11062 = vst [vmem:[%s18052_s30 + $0xa8] sm:$0xff] %v12408_v38  ;;  %v10830_v25 = vmax.f32 %v10766_v61, 0.0  ;;  %v10691_v11 = vmul.f32 %v18033_v31, %v10590_v26  ;;  %v10403_v53 = vadd.f32 %v10402_v46, %v18573_v29  ;;  %v10594_v23 = vadd.f32 %v10593_v24, %v10401_v10 }
 0x571   : > { %v10767_v52 = vadd.f32 %v18030_v19, %v10690_v9  ;;  %v10404_v40 = vpop.f32.mrf.mxu0 }
 0x572   : > { %v10597_v56 = vpop.f32.mrf.mxu1  ;;  %v12409_v13 = vpack.c.bf16 %v10830_v25, %v10829_v35  ;;  %v10768_v4 = vadd.f32 %v18036_v16, %v10691_v11  ;;  %v10596_v12 = vadd.f32 %v10595_v14, %v10403_v53  ;;  %v10405_v28 = vadd.f32 %v10404_v40, %v18574_v45 }
 0x573   : > { %v10831_v32 = vmax.f32 %v10767_v52, 0.0  ;;  %v10692_v30 = vmul.f32 %v18028_v0, %v10594_v23  ;;  %v10406_v57 = vpop.f32.mrf.mxu0 }
 0x574   : > { %v10599_v43 = vpop.f32.mrf.mxu1  ;;  %11063 = vst [vmem:[%s18052_s30 + $0xb0] sm:$0xff] %v12409_v13  ;;  %v10832_v60 = vmax.f32 %v10768_v4, 0.0  ;;  %v10693_v17 = vmul.f32 %v18033_v31, %v10596_v12  ;;  %v10598_v5 = vadd.f32 %v10597_v56, %v10405_v28  ;;  %v10407_v20 = vadd.f32 %v10406_v57, %v18575_v22  ;;  %v18578_v28 = vld [vmem:[#allocation18_spill] sm:$0xff] }
 0x575   : > { %v10769_v37 = vadd.f32 %v18030_v19, %v10692_v30  ;;  %v10410_v48 = vpop.f32.mrf.mxu0 }
 0x576   : > { %v10603_v58 = vpop.f32.mrf.mxu1  ;;  %v12410_v6 = vpack.c.bf16 %v10832_v60, %v10831_v32  ;;  %v10770_v33 = vadd.f32 %v18036_v16, %v10693_v17  ;;  %v10694_v18 = vmul.f32 %v18028_v0, %v10598_v5  ;;  %v10600_v59 = vadd.f32 %v10599_v43, %v10407_v20 }
 0x577   : > { %v10833_v62 = vmax.f32 %v10769_v37, 0.0  ;;  %v10411_v8 = vadd.f32 %v10410_v48, %v17986_v39  ;;  %v10412_v7 = vpop.f32.mrf.mxu0 }
 0x578   : > { %v10605_v27 = vpop.f32.mrf.mxu1  ;;  %11064 = vst [vmem:[%s18052_s30 + $0xb8] sm:$0xff] %v12410_v6  ;;  %v10834_v55 = vmax.f32 %v10770_v33, 0.0  ;;  %v10771_v34 = vadd.f32 %v18030_v19, %v10694_v18  ;;  %v10695_v49 = vmul.f32 %v18033_v31, %v10600_v59  ;;  %v10413_v41 = vadd.f32 %v10412_v7, %v17989_v44  ;;  %v18577_v44 = vld [vmem:[#allocation17_spill] sm:$0xff] }
 0x579   : > { %v10604_v2 = vadd.f32 %v10603_v58, %v10411_v8  ;;  %v10414_v21 = vpop.f32.mrf.mxu0 }
 0x57a   : > { %v10607_v50 = vpop.f32.mrf.mxu1  ;;  %v12411_v15 = vpack.c.bf16 %v10834_v55, %v10833_v62  ;;  %v10772_v42 = vadd.f32 %v18036_v16, %v10695_v49  ;;  %v10606_v1 = vadd.f32 %v10605_v27, %v10413_v41  ;;  %v10415_v51 = vadd.f32 %v10414_v21, %v18576_v47 }
 0x57b   : > { %v10696_v39 = vmul.f32 %v18028_v0, %v10604_v2  ;;  %v10416_v24 = vpop.f32.mrf.mxu0  ;;  %v10835_v61 = vmax.f32 %v10771_v34, 0.0 }
 0x57c   : > { %v10609_v38 = vpop.f32.mrf.mxu1  ;;  %11065 = vst [vmem:[%s18052_s30 + $0xc0] sm:$0xff] %v12411_v15  ;;  %v10836_v26 = vmax.f32 %v10772_v42, 0.0  ;;  %v10697_v9 = vmul.f32 %v18033_v31, %v10606_v1  ;;  %v10417_v10 = vadd.f32 %v10416_v24, %v18577_v44  ;;  %v10608_v14 = vadd.f32 %v10607_v50, %v10415_v51 }
 0x57d   : > { %v10773_v46 = vadd.f32 %v18030_v19, %v10696_v39  ;;  %v10420_v35 = vpop.f32.mrf.mxu0 }
 0x57e   : > { %v10613_v25 = vpop.f32.mrf.mxu1  ;;  %v12412_v11 = vpack.c.bf16 %v10836_v26, %v10835_v61  ;;  %v10774_v29 = vadd.f32 %v18036_v16, %v10697_v9  ;;  %v10610_v53 = vadd.f32 %v10609_v38, %v10417_v10  ;;  %v10421_v52 = vadd.f32 %v10420_v35, %v17998_v3  ;;  %v18581_v35 = vld [vmem:[#allocation21_spill] sm:$0xff] }
 0x57f   : > { %v10837_v23 = vmax.f32 %v10773_v46, 0.0  ;;  %v10698_v40 = vmul.f32 %v18028_v0, %v10608_v14  ;;  %v10422_v56 = vpop.f32.mrf.mxu0 }
 0x580   : > { %v10615_v13 = vpop.f32.mrf.mxu1  ;;  %11066 = vst [vmem:[%s18052_s30 + $0xc8] sm:$0xff] %v12412_v11  ;;  %v10838_v4 = vmax.f32 %v10774_v29, 0.0  ;;  %v10699_v12 = vmul.f32 %v18033_v31, %v10610_v53  ;;  %v10614_v45 = vadd.f32 %v10613_v25, %v10421_v52  ;;  %v10423_v32 = vadd.f32 %v10422_v56, %v18578_v28 }
 0x581   : > { %v10775_v30 = vadd.f32 %v18030_v19, %v10698_v40  ;;  %v10424_v57 = vpop.f32.mrf.mxu0 }
 0x582   : > { %v10617_v43 = vpop.f32.mrf.mxu1  ;;  %v12413_v60 = vpack.c.bf16 %v10838_v4, %v10837_v23  ;;  %v10776_v3 = vadd.f32 %v18036_v16, %v10699_v12  ;;  %v10700_v17 = vmul.f32 %v18028_v0, %v10614_v45  ;;  %v10616_v5 = vadd.f32 %v10615_v13, %v10423_v32 }
 0x583   : > { %v10839_v22 = vmax.f32 %v10775_v30, 0.0  ;;  %v10425_v20 = vadd.f32 %v10424_v57, %v18004_v36  ;;  %v10426_v37 = vpop.f32.mrf.mxu0 }
 0x584   : > { %v10619_v48 = vpop.f32.mrf.mxu1  ;;  %11067 = vst [vmem:[%s18052_s30 + $0xd0] sm:$0xff] %v12413_v60  ;;  %v10840_v58 = vmax.f32 %v10776_v3, 0.0  ;;  %v10777_v6 = vadd.f32 %v18030_v19, %v10700_v17  ;;  %v10701_v33 = vmul.f32 %v18033_v31, %v10616_v5  ;;  %v10427_v18 = vadd.f32 %v10426_v37, %v18007_v54  ;;  %v18579_v54 = vld [vmem:[#allocation19_spill] sm:$0xff] }
 0x585   : > { %v10618_v59 = vadd.f32 %v10617_v43, %v10425_v20  ;;  %v10430_v62 = vpop.f32.mrf.mxu0 }
 0x586   : > { %v10623_v8 = vpop.f32.mrf.mxu1  ;;  %v12414_v7 = vpack.c.bf16 %v10840_v58, %v10839_v22  ;;  %v10778_v27 = vadd.f32 %v18036_v16, %v10701_v33  ;;  %v10620_v55 = vadd.f32 %v10619_v48, %v10427_v18  ;;  %v10431_v34 = vadd.f32 %v10430_v62, %v18010_v63  ;;  %v18580_v63 = vld [vmem:[#allocation20_spill] sm:$0xff] }
 0x587   : > { %v10702_v36 = vmul.f32 %v18028_v0, %v10618_v59  ;;  %v10432_v49 = vpop.f32.mrf.mxu0  ;;  %v10841_v2 = vmax.f32 %v10777_v6, 0.0 }
 0x588   : > { %v10625_v41 = vpop.f32.mrf.mxu1  ;;  %11068 = vst [vmem:[%s18052_s30 + $0xd8] sm:$0xff] %v12414_v7  ;;  %v10842_v21 = vmax.f32 %v10778_v27, 0.0  ;;  %v10703_v50 = vmul.f32 %v18033_v31, %v10620_v55  ;;  %v10433_v15 = vadd.f32 %v10432_v49, %v18579_v54  ;;  %v10624_v1 = vadd.f32 %v10623_v8, %v10431_v34 }
 0x589   : > { %v10779_v42 = vadd.f32 %v18030_v19, %v10702_v36  ;;  %v10434_v39 = vpop.f32.mrf.mxu0 }
 0x58a   : > { %v10627_v47 = vpop.f32.mrf.mxu1  ;;  %v12415_v51 = vpack.c.bf16 %v10842_v21, %v10841_v2  ;;  %v10780_v24 = vadd.f32 %v18036_v16, %v10703_v50  ;;  %v10626_v38 = vadd.f32 %v10625_v41, %v10433_v15  ;;  %v10435_v61 = vadd.f32 %v10434_v39, %v18580_v63 }
 0x58b   : > { %v10843_v26 = vmax.f32 %v10779_v42, 0.0  ;;  %v10704_v9 = vmul.f32 %v18028_v0, %v10624_v1  ;;  %v10436_v44 = vpop.f32.mrf.mxu0 }
 0x58c   : > { %11069 = vst [vmem:[%s18052_s30 + $0xe0] sm:$0xff] %v12415_v51  ;;  %v10844_v10 = vmax.f32 %v10780_v24, 0.0  ;;  %v10705_v46 = vmul.f32 %v18033_v31, %v10626_v38  ;;  %v10628_v14 = vadd.f32 %v10627_v47, %v10435_v61  ;;  %v10437_v25 = vadd.f32 %v10436_v44, %v18581_v35  ;;  %v10629_v29 = vpop.f32.mrf.mxu1 }
 0x58d   : > { %v10781_v11 = vadd.f32 %v18030_v19, %v10704_v9 }
 0x58e   : > { %v12416_v53 = vpack.c.bf16 %v10844_v10, %v10843_v26  ;;  %v10782_v52 = vadd.f32 %v18036_v16, %v10705_v46  ;;  %v10706_v23 = vmul.f32 %v18028_v0, %v10628_v14  ;;  %v10630_v40 = vadd.f32 %v10629_v29, %v10437_v25 }
 0x58f   : > { %v10845_v56 = vmax.f32 %v10781_v11, 0.0 }
 0x590   : > { %11070 = vst [vmem:[%s18052_s30 + $0xe8] sm:$0xff] %v12416_v53  ;;  %v10846_v13 = vmax.f32 %v10782_v52, 0.0  ;;  %v10783_v4 = vadd.f32 %v18030_v19, %v10706_v23  ;;  %v10707_v12 = vmul.f32 %v18033_v31, %v10630_v40 }
 0x592   : > { %v12417_v45 = vpack.c.bf16 %v10846_v13, %v10845_v56  ;;  %v10784_v28 = vadd.f32 %v18036_v16, %v10707_v12  ;;  %v10847_v32 = vmax.f32 %v10783_v4, 0.0 }
 0x594   : > { %11071 = vst [vmem:[%s18052_s30 + $0xf0] sm:$0xff] %v12417_v45  ;;  %v10848_v30 = vmax.f32 %v10784_v28, 0.0 }
 0x596   : > { %v12418_v57 = vpack.c.bf16 %v10848_v30, %v10847_v32 }
 0x598   : > { %11072 = vst [vmem:[%s18052_s30 + $0xf8] sm:$0xff] %v12418_v57 }
 0x599 PF: > { %s13_s14 = sadd.s32 1, %s14194_s14   ;;  %s18582_s12 = smov %s14190_s13 }
 0x59a   : > { %p10_p5 = scmp.ge.s32.totalorder %s13_s14, 4   ;;  %s18583_s13 = smov %s18585_s15 }
 0x59c   :  { %12 = sbr.rel (!%p10_p5) target bundleno = 2 (0x2), region = 69 }

</bundles_post_ra>
